<compile_context>
chip_gen: v7x
topology: tpu7x:2x2x1
jax: 0.10.0
libtpu: 0.0.40
codegen_flags: <defaults>
</compile_context>

<pallas_src>
import jax
import jax.numpy as jnp
from jax import lax
from jax.experimental import pallas as pl
from jax.experimental.pallas import tpu as pltpu


def _round_up(x, m):
    return ((x + m - 1) // m) * m


def make_cbam_kernel(Bt, H, W, C, Cp, K):
    """Kernel for one (Bt, H, W, Cp) block.  C = true channel count (<= Cp)."""
    inv_hw = 1.0 / float(H * W)
    inv_c = 1.0 / float(C)
    needs_mask = Cp != C

    def kernel(x_ref, w1_ref, w2_ref, st_ref, bt_ref, o_ref):
        w1 = w1_ref[...]                                              # (Cp, Crp) f32
        w2 = w2_ref[...]                                              # (Crp, Cp) f32

        two_rows = lax.broadcasted_iota(jnp.int32, (2, Cp), 0)        # row ids 0 / 1
        h_lane = lax.broadcasted_iota(jnp.int32, (W, H), 1)           # lane == h position
        if needs_mask:
            # hoisted once: True on zero-padded channel lanes
            chan_pad = lax.broadcasted_iota(jnp.int32, (W, Cp), 1) >= C

        for bb in range(Bt):
            # ---------------- channel attention ----------------
            # Spatial avg/max pooling: elementwise (W, Cp) accumulation per row
            # (VPU only), then one cross-sublane reduction per image.
            sum_acc = jnp.zeros((W, Cp), jnp.float32)
            max_acc = jnp.full((W, Cp), -jnp.inf, jnp.float32)
            for h in range(H):
                slab = x_ref[bb, h].astype(jnp.float32)               # (W, Cp)
                sum_acc = sum_acc + slab
                max_acc = jnp.maximum(max_acc, slab)
            avg_c = jnp.sum(sum_acc, axis=0, keepdims=True) * inv_hw  # (1, Cp)
            max_c = jnp.max(max_acc, axis=0, keepdims=True)           # (1, Cp)

            # fused shared MLP: one pass over the stacked [avg; max] matrix
            pooled = jnp.where(two_rows == 0, avg_c, max_c)           # (2, Cp)
            hid = jnp.maximum(
                jnp.dot(pooled, w1, preferred_element_type=jnp.float32), 0.0)
            logits = jnp.dot(hid, w2, preferred_element_type=jnp.float32)   # (2, Cp)
            ca_logit = jnp.sum(logits, axis=0, keepdims=True)         # fc(avg)+fc(max)
            ca = 1.0 / (1.0 + jnp.exp(-ca_logit))                     # (1, Cp) sigmoid

            # ---------------- spatial attention ----------------
            # Channel-avg / channel-max maps built directly in transposed (W, H)
            # form (W on sublanes, H on lanes): per-row lane reductions + one-hot
            # lane placement -> no relayout of minor dims.
            avgT = jnp.zeros((W, H), jnp.float32)
            maxT = jnp.zeros((W, H), jnp.float32)
            for h in range(H):
                slab = x_ref[bb, h].astype(jnp.float32) * ca          # (W, Cp) = x1 row
                s_col = jnp.sum(slab, axis=-1, keepdims=True) * inv_c  # (W, 1) channel mean
                if needs_mask:
                    slab = jnp.where(chan_pad, -jnp.inf, slab)
                m_col = jnp.max(slab, axis=-1, keepdims=True)         # (W, 1) channel max
                sel = h_lane == h
                avgT = avgT + jnp.where(sel, s_col, 0.0)
                maxT = maxT + jnp.where(sel, m_col, 0.0)

            # 7x7 conv (2 -> 1 channel, padding=3, no bias) as MXU matmuls:
            #   conv(m)^T = sum_kh  B[c,kh]^T @ m_c^T @ S[kh]^T
            accT = jnp.zeros((W, H), jnp.float32)
            for kh in range(K):
                mixT = (jnp.dot(bt_ref[0, kh], avgT, preferred_element_type=jnp.float32)
                        + jnp.dot(bt_ref[1, kh], maxT, preferred_element_type=jnp.float32))
                accT = accT + jnp.dot(mixT, st_ref[kh],
                                      preferred_element_type=jnp.float32)    # (W, H)
            saT = 1.0 / (1.0 + jnp.exp(-accT))                        # (W, H) sigmoid

            # ---------------- apply & store (lane-dense (W, Cp) rows) ----------------
            for h in range(H):
                sa_col = jnp.sum(jnp.where(h_lane == h, saT, 0.0),
                                 axis=-1, keepdims=True)              # (W, 1) = sa[h, :]^T
                row = x_ref[bb, h].astype(jnp.float32) * ca * sa_col  # (W, Cp)
                o_ref[bb, h] = row.astype(o_ref.dtype)

    return kernel


def cbam_pallas(x_nhwc, w1, w2, wsp):
    """x_nhwc: (B, H, W, C); w1: (C, C//r); w2: (C//r, C); wsp: (2, K, K)."""
    B, H, W, C = x_nhwc.shape
    Cr = w1.shape[1]
    K = wsp.shape[-1]
    P = K // 2
    f32 = jnp.float32

    Cp = _round_up(C, 128)     # lane-dense channel dim
    Crp = _round_up(Cr, 128)   # lane-dense hidden dim (zero pad -> exact math)

    # zero-pad channels; padded channels stay exactly 0 through the whole kernel
    x_p = x_nhwc if Cp == C else jnp.pad(x_nhwc, ((0, 0), (0, 0), (0, 0), (0, Cp - C)))
    w1p = jnp.zeros((Cp, Crp), f32).at[:C, :Cr].set(w1.astype(f32))
    w2p = jnp.zeros((Crp, Cp), f32).at[:Cr, :C].set(w2.astype(f32))

    # transposed row-shift matrices S^T:  sT[kh, a, b] = 1  iff  a - b == kh - P
    ih = jnp.arange(H)
    sT = ((ih[None, :, None] - ih[None, None, :])
          == (jnp.arange(K)[:, None, None] - P)).astype(f32)          # (K, H, H)

    # transposed banded column-mix matrices B^T:
    #   bT[c, kh, a, b] = wsp[c, kh, b - a + P]  if 0 <= b - a + P < K  else 0
    iw = jnp.arange(W)
    kw_idx = iw[None, :] - iw[:, None] + P                            # (W, W)
    valid = (kw_idx >= 0) & (kw_idx < K)
    bT = jnp.where(valid[None, None],
                   wsp.astype(f32)[:, :, jnp.clip(kw_idx, 0, K - 1)], 0.0)  # (2, K, W, W)

    # several images per grid step to amortize per-step pipeline overhead
    per_img = H * W * Cp * 4
    budget = 6 * 1024 * 1024
    bt_cap = max(1, min(8, budget // (4 * per_img)))
    Bt = 1
    for d in range(1, min(B, bt_cap) + 1):
        if B % d == 0:
            Bt = d

    kernel = make_cbam_kernel(Bt, H, W, C, Cp, K)

    out = pl.pallas_call(
        kernel,
        out_shape=jax.ShapeDtypeStruct((B, H, W, Cp), x_nhwc.dtype),
        grid_spec=pltpu.PrefetchScalarGridSpec(
            num_scalar_prefetch=0,
            grid=(B // Bt,),
            in_specs=[
                pl.BlockSpec((Bt, H, W, Cp), lambda b: (b, 0, 0, 0)),
                pl.BlockSpec((Cp, Crp), lambda b: (0, 0)),
                pl.BlockSpec((Crp, Cp), lambda b: (0, 0)),
                pl.BlockSpec((K, H, H), lambda b: (0, 0, 0)),
                pl.BlockSpec((2, K, W, W), lambda b: (0, 0, 0, 0)),
            ],
            out_specs=pl.BlockSpec((Bt, H, W, Cp), lambda b: (b, 0, 0, 0)),
        ),
        compiler_params=pltpu.CompilerParams(
            dimension_semantics=("parallel",),
            vmem_limit_bytes=32 * 1024 * 1024,
        ),
    )(x_p, w1p, w2p, sT, bT)

    return out[..., :C] if Cp != C else out


def cbam_reference(x_nchw, w1, w2, wsp):
    """Pure-JAX NCHW reference matching the PyTorch module semantics."""
    avg = jnp.mean(x_nchw, axis=(2, 3))                               # (B, C)
    mx = jnp.max(x_nchw, axis=(2, 3))

    def fc(v):
        return jnp.maximum(v @ w1, 0.0) @ w2

    ca = jax.nn.sigmoid(fc(avg) + fc(mx))                             # (B, C)
    x1 = x_nchw * ca[:, :, None, None]

    avg_s = jnp.mean(x1, axis=1, keepdims=True)                       # (B, 1, H, W)
    max_s = jnp.max(x1, axis=1, keepdims=True)
    cat = jnp.concatenate([avg_s, max_s], axis=1)                     # (B, 2, H, W)
    pad = wsp.shape[-1] // 2
    sa = jax.lax.conv_general_dilated(
        cat, wsp[None].astype(jnp.float32),
        window_strides=(1, 1), padding=[(pad, pad), (pad, pad)],
        dimension_numbers=("NCHW", "OIHW", "NCHW"),
        precision=jax.lax.Precision.HIGHEST)
    sa = jax.nn.sigmoid(sa)                                           # (B, 1, H, W)
    return x1 * sa


if __name__ == "__main__":
    key = jax.random.PRNGKey(0)
    kx, k1, k2, k3 = jax.random.split(key, 4)

    B, C, H, W = 2, 32, 16, 16        # C >= ratio(16) so the hidden dim C//16 = 2
    ratio = 16
    Cr = C // ratio

    # Deterministic synthetic parameters (shapes from CBAMModule.__init__).
    x_nchw = jax.random.normal(kx, (B, C, H, W), dtype=jnp.float32)
    w1 = jax.random.normal(k1, (C, Cr), dtype=jnp.float32) * 0.2    # fc1 Conv2d(C, C//r, 1).weight^T
    w2 = jax.random.normal(k2, (Cr, C), dtype=jnp.float32) * 0.2    # fc2 Conv2d(C//r, C, 1).weight^T
    wsp = jax.random.normal(k3, (2, 7, 7), dtype=jnp.float32) * 0.1  # SpatialAttention Conv2d(2,1,7)

    x_nhwc = jnp.transpose(x_nchw, (0, 2, 3, 1))
    out_nhwc = cbam_pallas(x_nhwc, w1, w2, wsp)
    out = jnp.transpose(out_nhwc, (0, 3, 1, 2))                      # back to NCHW
    jax.block_until_ready(out)

    ref = cbam_reference(x_nchw, w1, w2, wsp)
    assert out.shape == (B, C, H, W)
    if not jnp.allclose(out, ref, rtol=2e-3, atol=2e-3):
        err = jnp.max(jnp.abs(out - ref))
        raise AssertionError(f"Pallas CBAM output mismatch vs JAX reference (max abs err {err})")
    print("KERNEL_OK")
</pallas_src>

<mosaic_0001>
module attributes {stable_mosaic.version = 11 : i64} {
  func.func @kernel(%arg0: i32, %arg1: memref<2x16x16x128xf32, #tpu.memory_space<vmem>>, %arg2: memref<128x128xf32, #tpu.memory_space<vmem>>, %arg3: memref<128x128xf32, #tpu.memory_space<vmem>>, %arg4: memref<7x16x16xf32, #tpu.memory_space<vmem>>, %arg5: memref<2x7x16x16xf32, #tpu.memory_space<vmem>>, %arg6: memref<2x16x16x128xf32, #tpu.memory_space<vmem>>) attributes {dimension_semantics = [#tpu.dimension_semantics<parallel>], iteration_bounds = array<i64: 1>, scalar_prefetch = 0 : i64, scratch_operands = 0 : i64, tpu.core_type = #tpu.core_type<tc>, window_params = [{transform_indices = @transform_0, window_bounds = array<i64: 2, 16, 16, 128>}, {pipeline_mode = #tpu.pipeline_mode<synchronous>, transform_indices = @transform_1, window_bounds = array<i64: 128, 128>}, {pipeline_mode = #tpu.pipeline_mode<synchronous>, transform_indices = @transform_2, window_bounds = array<i64: 128, 128>}, {pipeline_mode = #tpu.pipeline_mode<synchronous>, transform_indices = @transform_3, window_bounds = array<i64: 7, 16, 16>}, {pipeline_mode = #tpu.pipeline_mode<synchronous>, transform_indices = @transform_4, window_bounds = array<i64: 2, 7, 16, 16>}, {transform_indices = @transform_5, window_bounds = array<i64: 2, 16, 16, 128>}]} {
    %c0 = arith.constant 0 : index
    %c0_0 = arith.constant 0 : index
    %0 = vector.load %arg2[%c0, %c0_0] : memref<128x128xf32, #tpu.memory_space<vmem>>, vector<128x128xf32>
    %c0_1 = arith.constant 0 : index
    %c0_2 = arith.constant 0 : index
    %1 = vector.load %arg3[%c0_1, %c0_2] : memref<128x128xf32, #tpu.memory_space<vmem>>, vector<128x128xf32>
    %2 = tpu.iota {dimensions = array<i32: 0>} : vector<2x128xi32>
    %3 = tpu.iota {dimensions = array<i32: 1>} : vector<16x16xi32>
    %4 = tpu.iota {dimensions = array<i32: 1>} : vector<16x128xi32>
    %c32_i32 = arith.constant 32 : i32
    %5 = vector.broadcast %c32_i32 : i32 to vector<16x128xi32>
    %6 = arith.cmpi sge, %4, %5 : vector<16x128xi32>
    %cst = arith.constant 0.000000e+00 : f32
    %7 = vector.broadcast %cst : f32 to vector<16x128xf32>
    %cst_3 = arith.constant 0xFF800000 : f32
    %8 = vector.broadcast %cst_3 : f32 to vector<16x128xf32>
    %c0_4 = arith.constant 0 : index
    %c0_5 = arith.constant 0 : index
    %c0_6 = arith.constant 0 : index
    %c0_7 = arith.constant 0 : index
    %9 = vector.load %arg1[%c0_4, %c0_5, %c0_6, %c0_7] : memref<2x16x16x128xf32, #tpu.memory_space<vmem>>, vector<1x1x16x128xf32>
    %10 = vector.shape_cast %9 : vector<1x1x16x128xf32> to vector<16x128xf32>
    %11 = arith.addf %7, %10 : vector<16x128xf32>
    %12 = arith.maximumf %8, %10 : vector<16x128xf32>
    %c0_8 = arith.constant 0 : index
    %c1 = arith.constant 1 : index
    %c0_9 = arith.constant 0 : index
    %c0_10 = arith.constant 0 : index
    %13 = vector.load %arg1[%c0_8, %c1, %c0_9, %c0_10] : memref<2x16x16x128xf32, #tpu.memory_space<vmem>>, vector<1x1x16x128xf32>
    %14 = vector.shape_cast %13 : vector<1x1x16x128xf32> to vector<16x128xf32>
    %15 = arith.addf %11, %14 : vector<16x128xf32>
    %16 = arith.maximumf %12, %14 : vector<16x128xf32>
    %c0_11 = arith.constant 0 : index
    %c2 = arith.constant 2 : index
    %c0_12 = arith.constant 0 : index
    %c0_13 = arith.constant 0 : index
    %17 = vector.load %arg1[%c0_11, %c2, %c0_12, %c0_13] : memref<2x16x16x128xf32, #tpu.memory_space<vmem>>, vector<1x1x16x128xf32>
    %18 = vector.shape_cast %17 : vector<1x1x16x128xf32> to vector<16x128xf32>
    %19 = arith.addf %15, %18 : vector<16x128xf32>
    %20 = arith.maximumf %16, %18 : vector<16x128xf32>
    %c0_14 = arith.constant 0 : index
    %c3 = arith.constant 3 : index
    %c0_15 = arith.constant 0 : index
    %c0_16 = arith.constant 0 : index
    %21 = vector.load %arg1[%c0_14, %c3, %c0_15, %c0_16] : memref<2x16x16x128xf32, #tpu.memory_space<vmem>>, vector<1x1x16x128xf32>
    %22 = vector.shape_cast %21 : vector<1x1x16x128xf32> to vector<16x128xf32>
    %23 = arith.addf %19, %22 : vector<16x128xf32>
    %24 = arith.maximumf %20, %22 : vector<16x128xf32>
    %c0_17 = arith.constant 0 : index
    %c4 = arith.constant 4 : index
    %c0_18 = arith.constant 0 : index
    %c0_19 = arith.constant 0 : index
    %25 = vector.load %arg1[%c0_17, %c4, %c0_18, %c0_19] : memref<2x16x16x128xf32, #tpu.memory_space<vmem>>, vector<1x1x16x128xf32>
    %26 = vector.shape_cast %25 : vector<1x1x16x128xf32> to vector<16x128xf32>
    %27 = arith.addf %23, %26 : vector<16x128xf32>
    %28 = arith.maximumf %24, %26 : vector<16x128xf32>
    %c0_20 = arith.constant 0 : index
    %c5 = arith.constant 5 : index
    %c0_21 = arith.constant 0 : index
    %c0_22 = arith.constant 0 : index
    %29 = vector.load %arg1[%c0_20, %c5, %c0_21, %c0_22] : memref<2x16x16x128xf32, #tpu.memory_space<vmem>>, vector<1x1x16x128xf32>
    %30 = vector.shape_cast %29 : vector<1x1x16x128xf32> to vector<16x128xf32>
    %31 = arith.addf %27, %30 : vector<16x128xf32>
    %32 = arith.maximumf %28, %30 : vector<16x128xf32>
    %c0_23 = arith.constant 0 : index
    %c6 = arith.constant 6 : index
    %c0_24 = arith.constant 0 : index
    %c0_25 = arith.constant 0 : index
    %33 = vector.load %arg1[%c0_23, %c6, %c0_24, %c0_25] : memref<2x16x16x128xf32, #tpu.memory_space<vmem>>, vector<1x1x16x128xf32>
    %34 = vector.shape_cast %33 : vector<1x1x16x128xf32> to vector<16x128xf32>
    %35 = arith.addf %31, %34 : vector<16x128xf32>
    %36 = arith.maximumf %32, %34 : vector<16x128xf32>
    %c0_26 = arith.constant 0 : index
    %c7 = arith.constant 7 : index
    %c0_27 = arith.constant 0 : index
    %c0_28 = arith.constant 0 : index
    %37 = vector.load %arg1[%c0_26, %c7, %c0_27, %c0_28] : memref<2x16x16x128xf32, #tpu.memory_space<vmem>>, vector<1x1x16x128xf32>
    %38 = vector.shape_cast %37 : vector<1x1x16x128xf32> to vector<16x128xf32>
    %39 = arith.addf %35, %38 : vector<16x128xf32>
    %40 = arith.maximumf %36, %38 : vector<16x128xf32>
    %c0_29 = arith.constant 0 : index
    %c8 = arith.constant 8 : index
    %c0_30 = arith.constant 0 : index
    %c0_31 = arith.constant 0 : index
    %41 = vector.load %arg1[%c0_29, %c8, %c0_30, %c0_31] : memref<2x16x16x128xf32, #tpu.memory_space<vmem>>, vector<1x1x16x128xf32>
    %42 = vector.shape_cast %41 : vector<1x1x16x128xf32> to vector<16x128xf32>
    %43 = arith.addf %39, %42 : vector<16x128xf32>
    %44 = arith.maximumf %40, %42 : vector<16x128xf32>
    %c0_32 = arith.constant 0 : index
    %c9 = arith.constant 9 : index
    %c0_33 = arith.constant 0 : index
    %c0_34 = arith.constant 0 : index
    %45 = vector.load %arg1[%c0_32, %c9, %c0_33, %c0_34] : memref<2x16x16x128xf32, #tpu.memory_space<vmem>>, vector<1x1x16x128xf32>
    %46 = vector.shape_cast %45 : vector<1x1x16x128xf32> to vector<16x128xf32>
    %47 = arith.addf %43, %46 : vector<16x128xf32>
    %48 = arith.maximumf %44, %46 : vector<16x128xf32>
    %c0_35 = arith.constant 0 : index
    %c10 = arith.constant 10 : index
    %c0_36 = arith.constant 0 : index
    %c0_37 = arith.constant 0 : index
    %49 = vector.load %arg1[%c0_35, %c10, %c0_36, %c0_37] : memref<2x16x16x128xf32, #tpu.memory_space<vmem>>, vector<1x1x16x128xf32>
    %50 = vector.shape_cast %49 : vector<1x1x16x128xf32> to vector<16x128xf32>
    %51 = arith.addf %47, %50 : vector<16x128xf32>
    %52 = arith.maximumf %48, %50 : vector<16x128xf32>
    %c0_38 = arith.constant 0 : index
    %c11 = arith.constant 11 : index
    %c0_39 = arith.constant 0 : index
    %c0_40 = arith.constant 0 : index
    %53 = vector.load %arg1[%c0_38, %c11, %c0_39, %c0_40] : memref<2x16x16x128xf32, #tpu.memory_space<vmem>>, vector<1x1x16x128xf32>
    %54 = vector.shape_cast %53 : vector<1x1x16x128xf32> to vector<16x128xf32>
    %55 = arith.addf %51, %54 : vector<16x128xf32>
    %56 = arith.maximumf %52, %54 : vector<16x128xf32>
    %c0_41 = arith.constant 0 : index
    %c12 = arith.constant 12 : index
    %c0_42 = arith.constant 0 : index
    %c0_43 = arith.constant 0 : index
    %57 = vector.load %arg1[%c0_41, %c12, %c0_42, %c0_43] : memref<2x16x16x128xf32, #tpu.memory_space<vmem>>, vector<1x1x16x128xf32>
    %58 = vector.shape_cast %57 : vector<1x1x16x128xf32> to vector<16x128xf32>
    %59 = arith.addf %55, %58 : vector<16x128xf32>
    %60 = arith.maximumf %56, %58 : vector<16x128xf32>
    %c0_44 = arith.constant 0 : index
    %c13 = arith.constant 13 : index
    %c0_45 = arith.constant 0 : index
    %c0_46 = arith.constant 0 : index
    %61 = vector.load %arg1[%c0_44, %c13, %c0_45, %c0_46] : memref<2x16x16x128xf32, #tpu.memory_space<vmem>>, vector<1x1x16x128xf32>
    %62 = vector.shape_cast %61 : vector<1x1x16x128xf32> to vector<16x128xf32>
    %63 = arith.addf %59, %62 : vector<16x128xf32>
    %64 = arith.maximumf %60, %62 : vector<16x128xf32>
    %c0_47 = arith.constant 0 : index
    %c14 = arith.constant 14 : index
    %c0_48 = arith.constant 0 : index
    %c0_49 = arith.constant 0 : index
    %65 = vector.load %arg1[%c0_47, %c14, %c0_48, %c0_49] : memref<2x16x16x128xf32, #tpu.memory_space<vmem>>, vector<1x1x16x128xf32>
    %66 = vector.shape_cast %65 : vector<1x1x16x128xf32> to vector<16x128xf32>
    %67 = arith.addf %63, %66 : vector<16x128xf32>
    %68 = arith.maximumf %64, %66 : vector<16x128xf32>
    %c0_50 = arith.constant 0 : index
    %c15 = arith.constant 15 : index
    %c0_51 = arith.constant 0 : index
    %c0_52 = arith.constant 0 : index
    %69 = vector.load %arg1[%c0_50, %c15, %c0_51, %c0_52] : memref<2x16x16x128xf32, #tpu.memory_space<vmem>>, vector<1x1x16x128xf32>
    %70 = vector.shape_cast %69 : vector<1x1x16x128xf32> to vector<16x128xf32>
    %71 = arith.addf %67, %70 : vector<16x128xf32>
    %72 = arith.maximumf %68, %70 : vector<16x128xf32>
    %cst_53 = arith.constant dense<0.000000e+00> : vector<128xf32>
    %73 = vector.multi_reduction <add>, %71, %cst_53 [0] : vector<16x128xf32> to vector<128xf32>
    %74 = vector.shape_cast %73 : vector<128xf32> to vector<1x128xf32>
    %cst_54 = arith.constant 3.906250e-03 : f32
    %75 = vector.broadcast %cst_54 : f32 to vector<1x128xf32>
    %76 = arith.mulf %74, %75 : vector<1x128xf32>
    %cst_55 = arith.constant dense<0xFF800000> : vector<128xf32>
    %77 = vector.multi_reduction <maximumf>, %72, %cst_55 [0] : vector<16x128xf32> to vector<128xf32>
    %78 = vector.shape_cast %77 : vector<128xf32> to vector<1x128xf32>
    %c0_i32 = arith.constant 0 : i32
    %79 = vector.broadcast %c0_i32 : i32 to vector<2x128xi32>
    %80 = arith.cmpi eq, %2, %79 : vector<2x128xi32>
    %81 = vector.shape_cast %76 : vector<1x128xf32> to vector<1x128xf32>
    %82 = vector.broadcast %81 : vector<1x128xf32> to vector<2x128xf32>
    %83 = vector.shape_cast %78 : vector<1x128xf32> to vector<1x128xf32>
    %84 = vector.broadcast %83 : vector<1x128xf32> to vector<2x128xf32>
    %85 = arith.select %80, %82, %84 : vector<2x128xi1>, vector<2x128xf32>
    %cst_56 = arith.constant dense<0.000000e+00> : vector<2x128xf32>
    %86 = tpu.matmul %85, %0, %cst_56 {dimension_numbers = #tpu.dot_dimension_numbers<[1], [0], [0], [1], [0, 0, 1, 1], [], []>} : vector<2x128xf32>, vector<128x128xf32>, vector<2x128xf32> -> vector<2x128xf32>
    %cst_57 = arith.constant 0.000000e+00 : f32
    %87 = vector.broadcast %cst_57 : f32 to vector<2x128xf32>
    %88 = arith.maximumf %86, %87 : vector<2x128xf32>
    %cst_58 = arith.constant dense<0.000000e+00> : vector<2x128xf32>
    %89 = tpu.matmul %88, %1, %cst_58 {dimension_numbers = #tpu.dot_dimension_numbers<[1], [0], [0], [1], [0, 0, 1, 1], [], []>} : vector<2x128xf32>, vector<128x128xf32>, vector<2x128xf32> -> vector<2x128xf32>
    %cst_59 = arith.constant dense<0.000000e+00> : vector<128xf32>
    %90 = vector.multi_reduction <add>, %89, %cst_59 [0] : vector<2x128xf32> to vector<128xf32>
    %91 = vector.shape_cast %90 : vector<128xf32> to vector<1x128xf32>
    %cst_60 = arith.constant 0.000000e+00 : f32
    %92 = vector.broadcast %cst_60 : f32 to vector<1x128xf32>
    %93 = arith.subf %92, %91 : vector<1x128xf32>
    %94 = math.exp %93 : vector<1x128xf32>
    %cst_61 = arith.constant 1.000000e+00 : f32
    %95 = vector.broadcast %cst_61 : f32 to vector<1x128xf32>
    %96 = arith.addf %95, %94 : vector<1x128xf32>
    %cst_62 = arith.constant 1.000000e+00 : f32
    %97 = vector.broadcast %cst_62 : f32 to vector<1x128xf32>
    %98 = arith.divf %97, %96 : vector<1x128xf32>
    %cst_63 = arith.constant 0.000000e+00 : f32
    %99 = vector.broadcast %cst_63 : f32 to vector<16x16xf32>
    %cst_64 = arith.constant 0.000000e+00 : f32
    %100 = vector.broadcast %cst_64 : f32 to vector<16x16xf32>
    %c0_65 = arith.constant 0 : index
    %c0_66 = arith.constant 0 : index
    %c0_67 = arith.constant 0 : index
    %c0_68 = arith.constant 0 : index
    %101 = vector.load %arg1[%c0_65, %c0_66, %c0_67, %c0_68] : memref<2x16x16x128xf32, #tpu.memory_space<vmem>>, vector<1x1x16x128xf32>
    %102 = vector.shape_cast %101 : vector<1x1x16x128xf32> to vector<16x128xf32>
    %103 = vector.broadcast %98 : vector<1x128xf32> to vector<16x128xf32>
    %104 = arith.mulf %102, %103 : vector<16x128xf32>
    %cst_69 = arith.constant dense<0.000000e+00> : vector<16xf32>
    %105 = vector.multi_reduction <add>, %104, %cst_69 [1] : vector<16x128xf32> to vector<16xf32>
    %106 = vector.shape_cast %105 : vector<16xf32> to vector<16x1xf32>
    %cst_70 = arith.constant 3.125000e-02 : f32
    %107 = vector.broadcast %cst_70 : f32 to vector<16x1xf32>
    %108 = arith.mulf %106, %107 : vector<16x1xf32>
    %cst_71 = arith.constant 0xFF800000 : f32
    %109 = vector.broadcast %cst_71 : f32 to vector<16x128xf32>
    %110 = arith.select %6, %109, %104 : vector<16x128xi1>, vector<16x128xf32>
    %cst_72 = arith.constant dense<0xFF800000> : vector<16xf32>
    %111 = vector.multi_reduction <maximumf>, %110, %cst_72 [1] : vector<16x128xf32> to vector<16xf32>
    %112 = vector.shape_cast %111 : vector<16xf32> to vector<16x1xf32>
    %c0_i32_73 = arith.constant 0 : i32
    %113 = vector.broadcast %c0_i32_73 : i32 to vector<16x16xi32>
    %114 = arith.cmpi eq, %3, %113 : vector<16x16xi32>
    %cst_74 = arith.constant 0.000000e+00 : f32
    %115 = vector.shape_cast %108 : vector<16x1xf32> to vector<16x1xf32>
    %116 = vector.broadcast %115 : vector<16x1xf32> to vector<16x16xf32>
    %117 = vector.broadcast %cst_74 : f32 to vector<16x16xf32>
    %118 = arith.select %114, %116, %117 : vector<16x16xi1>, vector<16x16xf32>
    %119 = arith.addf %99, %118 : vector<16x16xf32>
    %cst_75 = arith.constant 0.000000e+00 : f32
    %120 = vector.shape_cast %112 : vector<16x1xf32> to vector<16x1xf32>
    %121 = vector.broadcast %120 : vector<16x1xf32> to vector<16x16xf32>
    %122 = vector.broadcast %cst_75 : f32 to vector<16x16xf32>
    %123 = arith.select %114, %121, %122 : vector<16x16xi1>, vector<16x16xf32>
    %124 = arith.addf %100, %123 : vector<16x16xf32>
    %c0_76 = arith.constant 0 : index
    %c1_77 = arith.constant 1 : index
    %c0_78 = arith.constant 0 : index
    %c0_79 = arith.constant 0 : index
    %125 = vector.load %arg1[%c0_76, %c1_77, %c0_78, %c0_79] : memref<2x16x16x128xf32, #tpu.memory_space<vmem>>, vector<1x1x16x128xf32>
    %126 = vector.shape_cast %125 : vector<1x1x16x128xf32> to vector<16x128xf32>
    %127 = vector.broadcast %98 : vector<1x128xf32> to vector<16x128xf32>
    %128 = arith.mulf %126, %127 : vector<16x128xf32>
    %cst_80 = arith.constant dense<0.000000e+00> : vector<16xf32>
    %129 = vector.multi_reduction <add>, %128, %cst_80 [1] : vector<16x128xf32> to vector<16xf32>
    %130 = vector.shape_cast %129 : vector<16xf32> to vector<16x1xf32>
    %cst_81 = arith.constant 3.125000e-02 : f32
    %131 = vector.broadcast %cst_81 : f32 to vector<16x1xf32>
    %132 = arith.mulf %130, %131 : vector<16x1xf32>
    %cst_82 = arith.constant 0xFF800000 : f32
    %133 = vector.broadcast %cst_82 : f32 to vector<16x128xf32>
    %134 = arith.select %6, %133, %128 : vector<16x128xi1>, vector<16x128xf32>
    %cst_83 = arith.constant dense<0xFF800000> : vector<16xf32>
    %135 = vector.multi_reduction <maximumf>, %134, %cst_83 [1] : vector<16x128xf32> to vector<16xf32>
    %136 = vector.shape_cast %135 : vector<16xf32> to vector<16x1xf32>
    %c1_i32 = arith.constant 1 : i32
    %137 = vector.broadcast %c1_i32 : i32 to vector<16x16xi32>
    %138 = arith.cmpi eq, %3, %137 : vector<16x16xi32>
    %cst_84 = arith.constant 0.000000e+00 : f32
    %139 = vector.shape_cast %132 : vector<16x1xf32> to vector<16x1xf32>
    %140 = vector.broadcast %139 : vector<16x1xf32> to vector<16x16xf32>
    %141 = vector.broadcast %cst_84 : f32 to vector<16x16xf32>
    %142 = arith.select %138, %140, %141 : vector<16x16xi1>, vector<16x16xf32>
    %143 = arith.addf %119, %142 : vector<16x16xf32>
    %cst_85 = arith.constant 0.000000e+00 : f32
    %144 = vector.shape_cast %136 : vector<16x1xf32> to vector<16x1xf32>
    %145 = vector.broadcast %144 : vector<16x1xf32> to vector<16x16xf32>
    %146 = vector.broadcast %cst_85 : f32 to vector<16x16xf32>
    %147 = arith.select %138, %145, %146 : vector<16x16xi1>, vector<16x16xf32>
    %148 = arith.addf %124, %147 : vector<16x16xf32>
    %c0_86 = arith.constant 0 : index
    %c2_87 = arith.constant 2 : index
    %c0_88 = arith.constant 0 : index
    %c0_89 = arith.constant 0 : index
    %149 = vector.load %arg1[%c0_86, %c2_87, %c0_88, %c0_89] : memref<2x16x16x128xf32, #tpu.memory_space<vmem>>, vector<1x1x16x128xf32>
    %150 = vector.shape_cast %149 : vector<1x1x16x128xf32> to vector<16x128xf32>
    %151 = vector.broadcast %98 : vector<1x128xf32> to vector<16x128xf32>
    %152 = arith.mulf %150, %151 : vector<16x128xf32>
    %cst_90 = arith.constant dense<0.000000e+00> : vector<16xf32>
    %153 = vector.multi_reduction <add>, %152, %cst_90 [1] : vector<16x128xf32> to vector<16xf32>
    %154 = vector.shape_cast %153 : vector<16xf32> to vector<16x1xf32>
    %cst_91 = arith.constant 3.125000e-02 : f32
    %155 = vector.broadcast %cst_91 : f32 to vector<16x1xf32>
    %156 = arith.mulf %154, %155 : vector<16x1xf32>
    %cst_92 = arith.constant 0xFF800000 : f32
    %157 = vector.broadcast %cst_92 : f32 to vector<16x128xf32>
    %158 = arith.select %6, %157, %152 : vector<16x128xi1>, vector<16x128xf32>
    %cst_93 = arith.constant dense<0xFF800000> : vector<16xf32>
    %159 = vector.multi_reduction <maximumf>, %158, %cst_93 [1] : vector<16x128xf32> to vector<16xf32>
    %160 = vector.shape_cast %159 : vector<16xf32> to vector<16x1xf32>
    %c2_i32 = arith.constant 2 : i32
    %161 = vector.broadcast %c2_i32 : i32 to vector<16x16xi32>
    %162 = arith.cmpi eq, %3, %161 : vector<16x16xi32>
    %cst_94 = arith.constant 0.000000e+00 : f32
    %163 = vector.shape_cast %156 : vector<16x1xf32> to vector<16x1xf32>
    %164 = vector.broadcast %163 : vector<16x1xf32> to vector<16x16xf32>
    %165 = vector.broadcast %cst_94 : f32 to vector<16x16xf32>
    %166 = arith.select %162, %164, %165 : vector<16x16xi1>, vector<16x16xf32>
    %167 = arith.addf %143, %166 : vector<16x16xf32>
    %cst_95 = arith.constant 0.000000e+00 : f32
    %168 = vector.shape_cast %160 : vector<16x1xf32> to vector<16x1xf32>
    %169 = vector.broadcast %168 : vector<16x1xf32> to vector<16x16xf32>
    %170 = vector.broadcast %cst_95 : f32 to vector<16x16xf32>
    %171 = arith.select %162, %169, %170 : vector<16x16xi1>, vector<16x16xf32>
    %172 = arith.addf %148, %171 : vector<16x16xf32>
    %c0_96 = arith.constant 0 : index
    %c3_97 = arith.constant 3 : index
    %c0_98 = arith.constant 0 : index
    %c0_99 = arith.constant 0 : index
    %173 = vector.load %arg1[%c0_96, %c3_97, %c0_98, %c0_99] : memref<2x16x16x128xf32, #tpu.memory_space<vmem>>, vector<1x1x16x128xf32>
    %174 = vector.shape_cast %173 : vector<1x1x16x128xf32> to vector<16x128xf32>
    %175 = vector.broadcast %98 : vector<1x128xf32> to vector<16x128xf32>
    %176 = arith.mulf %174, %175 : vector<16x128xf32>
    %cst_100 = arith.constant dense<0.000000e+00> : vector<16xf32>
    %177 = vector.multi_reduction <add>, %176, %cst_100 [1] : vector<16x128xf32> to vector<16xf32>
    %178 = vector.shape_cast %177 : vector<16xf32> to vector<16x1xf32>
    %cst_101 = arith.constant 3.125000e-02 : f32
    %179 = vector.broadcast %cst_101 : f32 to vector<16x1xf32>
    %180 = arith.mulf %178, %179 : vector<16x1xf32>
    %cst_102 = arith.constant 0xFF800000 : f32
    %181 = vector.broadcast %cst_102 : f32 to vector<16x128xf32>
    %182 = arith.select %6, %181, %176 : vector<16x128xi1>, vector<16x128xf32>
    %cst_103 = arith.constant dense<0xFF800000> : vector<16xf32>
    %183 = vector.multi_reduction <maximumf>, %182, %cst_103 [1] : vector<16x128xf32> to vector<16xf32>
    %184 = vector.shape_cast %183 : vector<16xf32> to vector<16x1xf32>
    %c3_i32 = arith.constant 3 : i32
    %185 = vector.broadcast %c3_i32 : i32 to vector<16x16xi32>
    %186 = arith.cmpi eq, %3, %185 : vector<16x16xi32>
    %cst_104 = arith.constant 0.000000e+00 : f32
    %187 = vector.shape_cast %180 : vector<16x1xf32> to vector<16x1xf32>
    %188 = vector.broadcast %187 : vector<16x1xf32> to vector<16x16xf32>
    %189 = vector.broadcast %cst_104 : f32 to vector<16x16xf32>
    %190 = arith.select %186, %188, %189 : vector<16x16xi1>, vector<16x16xf32>
    %191 = arith.addf %167, %190 : vector<16x16xf32>
    %cst_105 = arith.constant 0.000000e+00 : f32
    %192 = vector.shape_cast %184 : vector<16x1xf32> to vector<16x1xf32>
    %193 = vector.broadcast %192 : vector<16x1xf32> to vector<16x16xf32>
    %194 = vector.broadcast %cst_105 : f32 to vector<16x16xf32>
    %195 = arith.select %186, %193, %194 : vector<16x16xi1>, vector<16x16xf32>
    %196 = arith.addf %172, %195 : vector<16x16xf32>
    %c0_106 = arith.constant 0 : index
    %c4_107 = arith.constant 4 : index
    %c0_108 = arith.constant 0 : index
    %c0_109 = arith.constant 0 : index
    %197 = vector.load %arg1[%c0_106, %c4_107, %c0_108, %c0_109] : memref<2x16x16x128xf32, #tpu.memory_space<vmem>>, vector<1x1x16x128xf32>
    %198 = vector.shape_cast %197 : vector<1x1x16x128xf32> to vector<16x128xf32>
    %199 = vector.broadcast %98 : vector<1x128xf32> to vector<16x128xf32>
    %200 = arith.mulf %198, %199 : vector<16x128xf32>
    %cst_110 = arith.constant dense<0.000000e+00> : vector<16xf32>
    %201 = vector.multi_reduction <add>, %200, %cst_110 [1] : vector<16x128xf32> to vector<16xf32>
    %202 = vector.shape_cast %201 : vector<16xf32> to vector<16x1xf32>
    %cst_111 = arith.constant 3.125000e-02 : f32
    %203 = vector.broadcast %cst_111 : f32 to vector<16x1xf32>
    %204 = arith.mulf %202, %203 : vector<16x1xf32>
    %cst_112 = arith.constant 0xFF800000 : f32
    %205 = vector.broadcast %cst_112 : f32 to vector<16x128xf32>
    %206 = arith.select %6, %205, %200 : vector<16x128xi1>, vector<16x128xf32>
    %cst_113 = arith.constant dense<0xFF800000> : vector<16xf32>
    %207 = vector.multi_reduction <maximumf>, %206, %cst_113 [1] : vector<16x128xf32> to vector<16xf32>
    %208 = vector.shape_cast %207 : vector<16xf32> to vector<16x1xf32>
    %c4_i32 = arith.constant 4 : i32
    %209 = vector.broadcast %c4_i32 : i32 to vector<16x16xi32>
    %210 = arith.cmpi eq, %3, %209 : vector<16x16xi32>
    %cst_114 = arith.constant 0.000000e+00 : f32
    %211 = vector.shape_cast %204 : vector<16x1xf32> to vector<16x1xf32>
    %212 = vector.broadcast %211 : vector<16x1xf32> to vector<16x16xf32>
    %213 = vector.broadcast %cst_114 : f32 to vector<16x16xf32>
    %214 = arith.select %210, %212, %213 : vector<16x16xi1>, vector<16x16xf32>
    %215 = arith.addf %191, %214 : vector<16x16xf32>
    %cst_115 = arith.constant 0.000000e+00 : f32
    %216 = vector.shape_cast %208 : vector<16x1xf32> to vector<16x1xf32>
    %217 = vector.broadcast %216 : vector<16x1xf32> to vector<16x16xf32>
    %218 = vector.broadcast %cst_115 : f32 to vector<16x16xf32>
    %219 = arith.select %210, %217, %218 : vector<16x16xi1>, vector<16x16xf32>
    %220 = arith.addf %196, %219 : vector<16x16xf32>
    %c0_116 = arith.constant 0 : index
    %c5_117 = arith.constant 5 : index
    %c0_118 = arith.constant 0 : index
    %c0_119 = arith.constant 0 : index
    %221 = vector.load %arg1[%c0_116, %c5_117, %c0_118, %c0_119] : memref<2x16x16x128xf32, #tpu.memory_space<vmem>>, vector<1x1x16x128xf32>
    %222 = vector.shape_cast %221 : vector<1x1x16x128xf32> to vector<16x128xf32>
    %223 = vector.broadcast %98 : vector<1x128xf32> to vector<16x128xf32>
    %224 = arith.mulf %222, %223 : vector<16x128xf32>
    %cst_120 = arith.constant dense<0.000000e+00> : vector<16xf32>
    %225 = vector.multi_reduction <add>, %224, %cst_120 [1] : vector<16x128xf32> to vector<16xf32>
    %226 = vector.shape_cast %225 : vector<16xf32> to vector<16x1xf32>
    %cst_121 = arith.constant 3.125000e-02 : f32
    %227 = vector.broadcast %cst_121 : f32 to vector<16x1xf32>
    %228 = arith.mulf %226, %227 : vector<16x1xf32>
    %cst_122 = arith.constant 0xFF800000 : f32
    %229 = vector.broadcast %cst_122 : f32 to vector<16x128xf32>
    %230 = arith.select %6, %229, %224 : vector<16x128xi1>, vector<16x128xf32>
    %cst_123 = arith.constant dense<0xFF800000> : vector<16xf32>
    %231 = vector.multi_reduction <maximumf>, %230, %cst_123 [1] : vector<16x128xf32> to vector<16xf32>
    %232 = vector.shape_cast %231 : vector<16xf32> to vector<16x1xf32>
    %c5_i32 = arith.constant 5 : i32
    %233 = vector.broadcast %c5_i32 : i32 to vector<16x16xi32>
    %234 = arith.cmpi eq, %3, %233 : vector<16x16xi32>
    %cst_124 = arith.constant 0.000000e+00 : f32
    %235 = vector.shape_cast %228 : vector<16x1xf32> to vector<16x1xf32>
    %236 = vector.broadcast %235 : vector<16x1xf32> to vector<16x16xf32>
    %237 = vector.broadcast %cst_124 : f32 to vector<16x16xf32>
    %238 = arith.select %234, %236, %237 : vector<16x16xi1>, vector<16x16xf32>
    %239 = arith.addf %215, %238 : vector<16x16xf32>
    %cst_125 = arith.constant 0.000000e+00 : f32
    %240 = vector.shape_cast %232 : vector<16x1xf32> to vector<16x1xf32>
    %241 = vector.broadcast %240 : vector<16x1xf32> to vector<16x16xf32>
    %242 = vector.broadcast %cst_125 : f32 to vector<16x16xf32>
    %243 = arith.select %234, %241, %242 : vector<16x16xi1>, vector<16x16xf32>
    %244 = arith.addf %220, %243 : vector<16x16xf32>
    %c0_126 = arith.constant 0 : index
    %c6_127 = arith.constant 6 : index
    %c0_128 = arith.constant 0 : index
    %c0_129 = arith.constant 0 : index
    %245 = vector.load %arg1[%c0_126, %c6_127, %c0_128, %c0_129] : memref<2x16x16x128xf32, #tpu.memory_space<vmem>>, vector<1x1x16x128xf32>
    %246 = vector.shape_cast %245 : vector<1x1x16x128xf32> to vector<16x128xf32>
    %247 = vector.broadcast %98 : vector<1x128xf32> to vector<16x128xf32>
    %248 = arith.mulf %246, %247 : vector<16x128xf32>
    %cst_130 = arith.constant dense<0.000000e+00> : vector<16xf32>
    %249 = vector.multi_reduction <add>, %248, %cst_130 [1] : vector<16x128xf32> to vector<16xf32>
    %250 = vector.shape_cast %249 : vector<16xf32> to vector<16x1xf32>
    %cst_131 = arith.constant 3.125000e-02 : f32
    %251 = vector.broadcast %cst_131 : f32 to vector<16x1xf32>
    %252 = arith.mulf %250, %251 : vector<16x1xf32>
    %cst_132 = arith.constant 0xFF800000 : f32
    %253 = vector.broadcast %cst_132 : f32 to vector<16x128xf32>
    %254 = arith.select %6, %253, %248 : vector<16x128xi1>, vector<16x128xf32>
    %cst_133 = arith.constant dense<0xFF800000> : vector<16xf32>
    %255 = vector.multi_reduction <maximumf>, %254, %cst_133 [1] : vector<16x128xf32> to vector<16xf32>
    %256 = vector.shape_cast %255 : vector<16xf32> to vector<16x1xf32>
    %c6_i32 = arith.constant 6 : i32
    %257 = vector.broadcast %c6_i32 : i32 to vector<16x16xi32>
    %258 = arith.cmpi eq, %3, %257 : vector<16x16xi32>
    %cst_134 = arith.constant 0.000000e+00 : f32
    %259 = vector.shape_cast %252 : vector<16x1xf32> to vector<16x1xf32>
    %260 = vector.broadcast %259 : vector<16x1xf32> to vector<16x16xf32>
    %261 = vector.broadcast %cst_134 : f32 to vector<16x16xf32>
    %262 = arith.select %258, %260, %261 : vector<16x16xi1>, vector<16x16xf32>
    %263 = arith.addf %239, %262 : vector<16x16xf32>
    %cst_135 = arith.constant 0.000000e+00 : f32
    %264 = vector.shape_cast %256 : vector<16x1xf32> to vector<16x1xf32>
    %265 = vector.broadcast %264 : vector<16x1xf32> to vector<16x16xf32>
    %266 = vector.broadcast %cst_135 : f32 to vector<16x16xf32>
    %267 = arith.select %258, %265, %266 : vector<16x16xi1>, vector<16x16xf32>
    %268 = arith.addf %244, %267 : vector<16x16xf32>
    %c0_136 = arith.constant 0 : index
    %c7_137 = arith.constant 7 : index
    %c0_138 = arith.constant 0 : index
    %c0_139 = arith.constant 0 : index
    %269 = vector.load %arg1[%c0_136, %c7_137, %c0_138, %c0_139] : memref<2x16x16x128xf32, #tpu.memory_space<vmem>>, vector<1x1x16x128xf32>
    %270 = vector.shape_cast %269 : vector<1x1x16x128xf32> to vector<16x128xf32>
    %271 = vector.broadcast %98 : vector<1x128xf32> to vector<16x128xf32>
    %272 = arith.mulf %270, %271 : vector<16x128xf32>
    %cst_140 = arith.constant dense<0.000000e+00> : vector<16xf32>
    %273 = vector.multi_reduction <add>, %272, %cst_140 [1] : vector<16x128xf32> to vector<16xf32>
    %274 = vector.shape_cast %273 : vector<16xf32> to vector<16x1xf32>
    %cst_141 = arith.constant 3.125000e-02 : f32
    %275 = vector.broadcast %cst_141 : f32 to vector<16x1xf32>
    %276 = arith.mulf %274, %275 : vector<16x1xf32>
    %cst_142 = arith.constant 0xFF800000 : f32
    %277 = vector.broadcast %cst_142 : f32 to vector<16x128xf32>
    %278 = arith.select %6, %277, %272 : vector<16x128xi1>, vector<16x128xf32>
    %cst_143 = arith.constant dense<0xFF800000> : vector<16xf32>
    %279 = vector.multi_reduction <maximumf>, %278, %cst_143 [1] : vector<16x128xf32> to vector<16xf32>
    %280 = vector.shape_cast %279 : vector<16xf32> to vector<16x1xf32>
    %c7_i32 = arith.constant 7 : i32
    %281 = vector.broadcast %c7_i32 : i32 to vector<16x16xi32>
    %282 = arith.cmpi eq, %3, %281 : vector<16x16xi32>
    %cst_144 = arith.constant 0.000000e+00 : f32
    %283 = vector.shape_cast %276 : vector<16x1xf32> to vector<16x1xf32>
    %284 = vector.broadcast %283 : vector<16x1xf32> to vector<16x16xf32>
    %285 = vector.broadcast %cst_144 : f32 to vector<16x16xf32>
    %286 = arith.select %282, %284, %285 : vector<16x16xi1>, vector<16x16xf32>
    %287 = arith.addf %263, %286 : vector<16x16xf32>
    %cst_145 = arith.constant 0.000000e+00 : f32
    %288 = vector.shape_cast %280 : vector<16x1xf32> to vector<16x1xf32>
    %289 = vector.broadcast %288 : vector<16x1xf32> to vector<16x16xf32>
    %290 = vector.broadcast %cst_145 : f32 to vector<16x16xf32>
    %291 = arith.select %282, %289, %290 : vector<16x16xi1>, vector<16x16xf32>
    %292 = arith.addf %268, %291 : vector<16x16xf32>
    %c0_146 = arith.constant 0 : index
    %c8_147 = arith.constant 8 : index
    %c0_148 = arith.constant 0 : index
    %c0_149 = arith.constant 0 : index
    %293 = vector.load %arg1[%c0_146, %c8_147, %c0_148, %c0_149] : memref<2x16x16x128xf32, #tpu.memory_space<vmem>>, vector<1x1x16x128xf32>
    %294 = vector.shape_cast %293 : vector<1x1x16x128xf32> to vector<16x128xf32>
    %295 = vector.broadcast %98 : vector<1x128xf32> to vector<16x128xf32>
    %296 = arith.mulf %294, %295 : vector<16x128xf32>
    %cst_150 = arith.constant dense<0.000000e+00> : vector<16xf32>
    %297 = vector.multi_reduction <add>, %296, %cst_150 [1] : vector<16x128xf32> to vector<16xf32>
    %298 = vector.shape_cast %297 : vector<16xf32> to vector<16x1xf32>
    %cst_151 = arith.constant 3.125000e-02 : f32
    %299 = vector.broadcast %cst_151 : f32 to vector<16x1xf32>
    %300 = arith.mulf %298, %299 : vector<16x1xf32>
    %cst_152 = arith.constant 0xFF800000 : f32
    %301 = vector.broadcast %cst_152 : f32 to vector<16x128xf32>
    %302 = arith.select %6, %301, %296 : vector<16x128xi1>, vector<16x128xf32>
    %cst_153 = arith.constant dense<0xFF800000> : vector<16xf32>
    %303 = vector.multi_reduction <maximumf>, %302, %cst_153 [1] : vector<16x128xf32> to vector<16xf32>
    %304 = vector.shape_cast %303 : vector<16xf32> to vector<16x1xf32>
    %c8_i32 = arith.constant 8 : i32
    %305 = vector.broadcast %c8_i32 : i32 to vector<16x16xi32>
    %306 = arith.cmpi eq, %3, %305 : vector<16x16xi32>
    %cst_154 = arith.constant 0.000000e+00 : f32
    %307 = vector.shape_cast %300 : vector<16x1xf32> to vector<16x1xf32>
    %308 = vector.broadcast %307 : vector<16x1xf32> to vector<16x16xf32>
    %309 = vector.broadcast %cst_154 : f32 to vector<16x16xf32>
    %310 = arith.select %306, %308, %309 : vector<16x16xi1>, vector<16x16xf32>
    %311 = arith.addf %287, %310 : vector<16x16xf32>
    %cst_155 = arith.constant 0.000000e+00 : f32
    %312 = vector.shape_cast %304 : vector<16x1xf32> to vector<16x1xf32>
    %313 = vector.broadcast %312 : vector<16x1xf32> to vector<16x16xf32>
    %314 = vector.broadcast %cst_155 : f32 to vector<16x16xf32>
    %315 = arith.select %306, %313, %314 : vector<16x16xi1>, vector<16x16xf32>
    %316 = arith.addf %292, %315 : vector<16x16xf32>
    %c0_156 = arith.constant 0 : index
    %c9_157 = arith.constant 9 : index
    %c0_158 = arith.constant 0 : index
    %c0_159 = arith.constant 0 : index
    %317 = vector.load %arg1[%c0_156, %c9_157, %c0_158, %c0_159] : memref<2x16x16x128xf32, #tpu.memory_space<vmem>>, vector<1x1x16x128xf32>
    %318 = vector.shape_cast %317 : vector<1x1x16x128xf32> to vector<16x128xf32>
    %319 = vector.broadcast %98 : vector<1x128xf32> to vector<16x128xf32>
    %320 = arith.mulf %318, %319 : vector<16x128xf32>
    %cst_160 = arith.constant dense<0.000000e+00> : vector<16xf32>
    %321 = vector.multi_reduction <add>, %320, %cst_160 [1] : vector<16x128xf32> to vector<16xf32>
    %322 = vector.shape_cast %321 : vector<16xf32> to vector<16x1xf32>
    %cst_161 = arith.constant 3.125000e-02 : f32
    %323 = vector.broadcast %cst_161 : f32 to vector<16x1xf32>
    %324 = arith.mulf %322, %323 : vector<16x1xf32>
    %cst_162 = arith.constant 0xFF800000 : f32
    %325 = vector.broadcast %cst_162 : f32 to vector<16x128xf32>
    %326 = arith.select %6, %325, %320 : vector<16x128xi1>, vector<16x128xf32>
    %cst_163 = arith.constant dense<0xFF800000> : vector<16xf32>
    %327 = vector.multi_reduction <maximumf>, %326, %cst_163 [1] : vector<16x128xf32> to vector<16xf32>
    %328 = vector.shape_cast %327 : vector<16xf32> to vector<16x1xf32>
    %c9_i32 = arith.constant 9 : i32
    %329 = vector.broadcast %c9_i32 : i32 to vector<16x16xi32>
    %330 = arith.cmpi eq, %3, %329 : vector<16x16xi32>
    %cst_164 = arith.constant 0.000000e+00 : f32
    %331 = vector.shape_cast %324 : vector<16x1xf32> to vector<16x1xf32>
    %332 = vector.broadcast %331 : vector<16x1xf32> to vector<16x16xf32>
    %333 = vector.broadcast %cst_164 : f32 to vector<16x16xf32>
    %334 = arith.select %330, %332, %333 : vector<16x16xi1>, vector<16x16xf32>
    %335 = arith.addf %311, %334 : vector<16x16xf32>
    %cst_165 = arith.constant 0.000000e+00 : f32
    %336 = vector.shape_cast %328 : vector<16x1xf32> to vector<16x1xf32>
    %337 = vector.broadcast %336 : vector<16x1xf32> to vector<16x16xf32>
    %338 = vector.broadcast %cst_165 : f32 to vector<16x16xf32>
    %339 = arith.select %330, %337, %338 : vector<16x16xi1>, vector<16x16xf32>
    %340 = arith.addf %316, %339 : vector<16x16xf32>
    %c0_166 = arith.constant 0 : index
    %c10_167 = arith.constant 10 : index
    %c0_168 = arith.constant 0 : index
    %c0_169 = arith.constant 0 : index
    %341 = vector.load %arg1[%c0_166, %c10_167, %c0_168, %c0_169] : memref<2x16x16x128xf32, #tpu.memory_space<vmem>>, vector<1x1x16x128xf32>
    %342 = vector.shape_cast %341 : vector<1x1x16x128xf32> to vector<16x128xf32>
    %343 = vector.broadcast %98 : vector<1x128xf32> to vector<16x128xf32>
    %344 = arith.mulf %342, %343 : vector<16x128xf32>
    %cst_170 = arith.constant dense<0.000000e+00> : vector<16xf32>
    %345 = vector.multi_reduction <add>, %344, %cst_170 [1] : vector<16x128xf32> to vector<16xf32>
    %346 = vector.shape_cast %345 : vector<16xf32> to vector<16x1xf32>
    %cst_171 = arith.constant 3.125000e-02 : f32
    %347 = vector.broadcast %cst_171 : f32 to vector<16x1xf32>
    %348 = arith.mulf %346, %347 : vector<16x1xf32>
    %cst_172 = arith.constant 0xFF800000 : f32
    %349 = vector.broadcast %cst_172 : f32 to vector<16x128xf32>
    %350 = arith.select %6, %349, %344 : vector<16x128xi1>, vector<16x128xf32>
    %cst_173 = arith.constant dense<0xFF800000> : vector<16xf32>
    %351 = vector.multi_reduction <maximumf>, %350, %cst_173 [1] : vector<16x128xf32> to vector<16xf32>
    %352 = vector.shape_cast %351 : vector<16xf32> to vector<16x1xf32>
    %c10_i32 = arith.constant 10 : i32
    %353 = vector.broadcast %c10_i32 : i32 to vector<16x16xi32>
    %354 = arith.cmpi eq, %3, %353 : vector<16x16xi32>
    %cst_174 = arith.constant 0.000000e+00 : f32
    %355 = vector.shape_cast %348 : vector<16x1xf32> to vector<16x1xf32>
    %356 = vector.broadcast %355 : vector<16x1xf32> to vector<16x16xf32>
    %357 = vector.broadcast %cst_174 : f32 to vector<16x16xf32>
    %358 = arith.select %354, %356, %357 : vector<16x16xi1>, vector<16x16xf32>
    %359 = arith.addf %335, %358 : vector<16x16xf32>
    %cst_175 = arith.constant 0.000000e+00 : f32
    %360 = vector.shape_cast %352 : vector<16x1xf32> to vector<16x1xf32>
    %361 = vector.broadcast %360 : vector<16x1xf32> to vector<16x16xf32>
    %362 = vector.broadcast %cst_175 : f32 to vector<16x16xf32>
    %363 = arith.select %354, %361, %362 : vector<16x16xi1>, vector<16x16xf32>
    %364 = arith.addf %340, %363 : vector<16x16xf32>
    %c0_176 = arith.constant 0 : index
    %c11_177 = arith.constant 11 : index
    %c0_178 = arith.constant 0 : index
    %c0_179 = arith.constant 0 : index
    %365 = vector.load %arg1[%c0_176, %c11_177, %c0_178, %c0_179] : memref<2x16x16x128xf32, #tpu.memory_space<vmem>>, vector<1x1x16x128xf32>
    %366 = vector.shape_cast %365 : vector<1x1x16x128xf32> to vector<16x128xf32>
    %367 = vector.broadcast %98 : vector<1x128xf32> to vector<16x128xf32>
    %368 = arith.mulf %366, %367 : vector<16x128xf32>
    %cst_180 = arith.constant dense<0.000000e+00> : vector<16xf32>
    %369 = vector.multi_reduction <add>, %368, %cst_180 [1] : vector<16x128xf32> to vector<16xf32>
    %370 = vector.shape_cast %369 : vector<16xf32> to vector<16x1xf32>
    %cst_181 = arith.constant 3.125000e-02 : f32
    %371 = vector.broadcast %cst_181 : f32 to vector<16x1xf32>
    %372 = arith.mulf %370, %371 : vector<16x1xf32>
    %cst_182 = arith.constant 0xFF800000 : f32
    %373 = vector.broadcast %cst_182 : f32 to vector<16x128xf32>
    %374 = arith.select %6, %373, %368 : vector<16x128xi1>, vector<16x128xf32>
    %cst_183 = arith.constant dense<0xFF800000> : vector<16xf32>
    %375 = vector.multi_reduction <maximumf>, %374, %cst_183 [1] : vector<16x128xf32> to vector<16xf32>
    %376 = vector.shape_cast %375 : vector<16xf32> to vector<16x1xf32>
    %c11_i32 = arith.constant 11 : i32
    %377 = vector.broadcast %c11_i32 : i32 to vector<16x16xi32>
    %378 = arith.cmpi eq, %3, %377 : vector<16x16xi32>
    %cst_184 = arith.constant 0.000000e+00 : f32
    %379 = vector.shape_cast %372 : vector<16x1xf32> to vector<16x1xf32>
    %380 = vector.broadcast %379 : vector<16x1xf32> to vector<16x16xf32>
    %381 = vector.broadcast %cst_184 : f32 to vector<16x16xf32>
    %382 = arith.select %378, %380, %381 : vector<16x16xi1>, vector<16x16xf32>
    %383 = arith.addf %359, %382 : vector<16x16xf32>
    %cst_185 = arith.constant 0.000000e+00 : f32
    %384 = vector.shape_cast %376 : vector<16x1xf32> to vector<16x1xf32>
    %385 = vector.broadcast %384 : vector<16x1xf32> to vector<16x16xf32>
    %386 = vector.broadcast %cst_185 : f32 to vector<16x16xf32>
    %387 = arith.select %378, %385, %386 : vector<16x16xi1>, vector<16x16xf32>
    %388 = arith.addf %364, %387 : vector<16x16xf32>
    %c0_186 = arith.constant 0 : index
    %c12_187 = arith.constant 12 : index
    %c0_188 = arith.constant 0 : index
    %c0_189 = arith.constant 0 : index
    %389 = vector.load %arg1[%c0_186, %c12_187, %c0_188, %c0_189] : memref<2x16x16x128xf32, #tpu.memory_space<vmem>>, vector<1x1x16x128xf32>
    %390 = vector.shape_cast %389 : vector<1x1x16x128xf32> to vector<16x128xf32>
    %391 = vector.broadcast %98 : vector<1x128xf32> to vector<16x128xf32>
    %392 = arith.mulf %390, %391 : vector<16x128xf32>
    %cst_190 = arith.constant dense<0.000000e+00> : vector<16xf32>
    %393 = vector.multi_reduction <add>, %392, %cst_190 [1] : vector<16x128xf32> to vector<16xf32>
    %394 = vector.shape_cast %393 : vector<16xf32> to vector<16x1xf32>
    %cst_191 = arith.constant 3.125000e-02 : f32
    %395 = vector.broadcast %cst_191 : f32 to vector<16x1xf32>
    %396 = arith.mulf %394, %395 : vector<16x1xf32>
    %cst_192 = arith.constant 0xFF800000 : f32
    %397 = vector.broadcast %cst_192 : f32 to vector<16x128xf32>
    %398 = arith.select %6, %397, %392 : vector<16x128xi1>, vector<16x128xf32>
    %cst_193 = arith.constant dense<0xFF800000> : vector<16xf32>
    %399 = vector.multi_reduction <maximumf>, %398, %cst_193 [1] : vector<16x128xf32> to vector<16xf32>
    %400 = vector.shape_cast %399 : vector<16xf32> to vector<16x1xf32>
    %c12_i32 = arith.constant 12 : i32
    %401 = vector.broadcast %c12_i32 : i32 to vector<16x16xi32>
    %402 = arith.cmpi eq, %3, %401 : vector<16x16xi32>
    %cst_194 = arith.constant 0.000000e+00 : f32
    %403 = vector.shape_cast %396 : vector<16x1xf32> to vector<16x1xf32>
    %404 = vector.broadcast %403 : vector<16x1xf32> to vector<16x16xf32>
    %405 = vector.broadcast %cst_194 : f32 to vector<16x16xf32>
    %406 = arith.select %402, %404, %405 : vector<16x16xi1>, vector<16x16xf32>
    %407 = arith.addf %383, %406 : vector<16x16xf32>
    %cst_195 = arith.constant 0.000000e+00 : f32
    %408 = vector.shape_cast %400 : vector<16x1xf32> to vector<16x1xf32>
    %409 = vector.broadcast %408 : vector<16x1xf32> to vector<16x16xf32>
    %410 = vector.broadcast %cst_195 : f32 to vector<16x16xf32>
    %411 = arith.select %402, %409, %410 : vector<16x16xi1>, vector<16x16xf32>
    %412 = arith.addf %388, %411 : vector<16x16xf32>
    %c0_196 = arith.constant 0 : index
    %c13_197 = arith.constant 13 : index
    %c0_198 = arith.constant 0 : index
    %c0_199 = arith.constant 0 : index
    %413 = vector.load %arg1[%c0_196, %c13_197, %c0_198, %c0_199] : memref<2x16x16x128xf32, #tpu.memory_space<vmem>>, vector<1x1x16x128xf32>
    %414 = vector.shape_cast %413 : vector<1x1x16x128xf32> to vector<16x128xf32>
    %415 = vector.broadcast %98 : vector<1x128xf32> to vector<16x128xf32>
    %416 = arith.mulf %414, %415 : vector<16x128xf32>
    %cst_200 = arith.constant dense<0.000000e+00> : vector<16xf32>
    %417 = vector.multi_reduction <add>, %416, %cst_200 [1] : vector<16x128xf32> to vector<16xf32>
    %418 = vector.shape_cast %417 : vector<16xf32> to vector<16x1xf32>
    %cst_201 = arith.constant 3.125000e-02 : f32
    %419 = vector.broadcast %cst_201 : f32 to vector<16x1xf32>
    %420 = arith.mulf %418, %419 : vector<16x1xf32>
    %cst_202 = arith.constant 0xFF800000 : f32
    %421 = vector.broadcast %cst_202 : f32 to vector<16x128xf32>
    %422 = arith.select %6, %421, %416 : vector<16x128xi1>, vector<16x128xf32>
    %cst_203 = arith.constant dense<0xFF800000> : vector<16xf32>
    %423 = vector.multi_reduction <maximumf>, %422, %cst_203 [1] : vector<16x128xf32> to vector<16xf32>
    %424 = vector.shape_cast %423 : vector<16xf32> to vector<16x1xf32>
    %c13_i32 = arith.constant 13 : i32
    %425 = vector.broadcast %c13_i32 : i32 to vector<16x16xi32>
    %426 = arith.cmpi eq, %3, %425 : vector<16x16xi32>
    %cst_204 = arith.constant 0.000000e+00 : f32
    %427 = vector.shape_cast %420 : vector<16x1xf32> to vector<16x1xf32>
    %428 = vector.broadcast %427 : vector<16x1xf32> to vector<16x16xf32>
    %429 = vector.broadcast %cst_204 : f32 to vector<16x16xf32>
    %430 = arith.select %426, %428, %429 : vector<16x16xi1>, vector<16x16xf32>
    %431 = arith.addf %407, %430 : vector<16x16xf32>
    %cst_205 = arith.constant 0.000000e+00 : f32
    %432 = vector.shape_cast %424 : vector<16x1xf32> to vector<16x1xf32>
    %433 = vector.broadcast %432 : vector<16x1xf32> to vector<16x16xf32>
    %434 = vector.broadcast %cst_205 : f32 to vector<16x16xf32>
    %435 = arith.select %426, %433, %434 : vector<16x16xi1>, vector<16x16xf32>
    %436 = arith.addf %412, %435 : vector<16x16xf32>
    %c0_206 = arith.constant 0 : index
    %c14_207 = arith.constant 14 : index
    %c0_208 = arith.constant 0 : index
    %c0_209 = arith.constant 0 : index
    %437 = vector.load %arg1[%c0_206, %c14_207, %c0_208, %c0_209] : memref<2x16x16x128xf32, #tpu.memory_space<vmem>>, vector<1x1x16x128xf32>
    %438 = vector.shape_cast %437 : vector<1x1x16x128xf32> to vector<16x128xf32>
    %439 = vector.broadcast %98 : vector<1x128xf32> to vector<16x128xf32>
    %440 = arith.mulf %438, %439 : vector<16x128xf32>
    %cst_210 = arith.constant dense<0.000000e+00> : vector<16xf32>
    %441 = vector.multi_reduction <add>, %440, %cst_210 [1] : vector<16x128xf32> to vector<16xf32>
    %442 = vector.shape_cast %441 : vector<16xf32> to vector<16x1xf32>
    %cst_211 = arith.constant 3.125000e-02 : f32
    %443 = vector.broadcast %cst_211 : f32 to vector<16x1xf32>
    %444 = arith.mulf %442, %443 : vector<16x1xf32>
    %cst_212 = arith.constant 0xFF800000 : f32
    %445 = vector.broadcast %cst_212 : f32 to vector<16x128xf32>
    %446 = arith.select %6, %445, %440 : vector<16x128xi1>, vector<16x128xf32>
    %cst_213 = arith.constant dense<0xFF800000> : vector<16xf32>
    %447 = vector.multi_reduction <maximumf>, %446, %cst_213 [1] : vector<16x128xf32> to vector<16xf32>
    %448 = vector.shape_cast %447 : vector<16xf32> to vector<16x1xf32>
    %c14_i32 = arith.constant 14 : i32
    %449 = vector.broadcast %c14_i32 : i32 to vector<16x16xi32>
    %450 = arith.cmpi eq, %3, %449 : vector<16x16xi32>
    %cst_214 = arith.constant 0.000000e+00 : f32
    %451 = vector.shape_cast %444 : vector<16x1xf32> to vector<16x1xf32>
    %452 = vector.broadcast %451 : vector<16x1xf32> to vector<16x16xf32>
    %453 = vector.broadcast %cst_214 : f32 to vector<16x16xf32>
    %454 = arith.select %450, %452, %453 : vector<16x16xi1>, vector<16x16xf32>
    %455 = arith.addf %431, %454 : vector<16x16xf32>
    %cst_215 = arith.constant 0.000000e+00 : f32
    %456 = vector.shape_cast %448 : vector<16x1xf32> to vector<16x1xf32>
    %457 = vector.broadcast %456 : vector<16x1xf32> to vector<16x16xf32>
    %458 = vector.broadcast %cst_215 : f32 to vector<16x16xf32>
    %459 = arith.select %450, %457, %458 : vector<16x16xi1>, vector<16x16xf32>
    %460 = arith.addf %436, %459 : vector<16x16xf32>
    %c0_216 = arith.constant 0 : index
    %c15_217 = arith.constant 15 : index
    %c0_218 = arith.constant 0 : index
    %c0_219 = arith.constant 0 : index
    %461 = vector.load %arg1[%c0_216, %c15_217, %c0_218, %c0_219] : memref<2x16x16x128xf32, #tpu.memory_space<vmem>>, vector<1x1x16x128xf32>
    %462 = vector.shape_cast %461 : vector<1x1x16x128xf32> to vector<16x128xf32>
    %463 = vector.broadcast %98 : vector<1x128xf32> to vector<16x128xf32>
    %464 = arith.mulf %462, %463 : vector<16x128xf32>
    %cst_220 = arith.constant dense<0.000000e+00> : vector<16xf32>
    %465 = vector.multi_reduction <add>, %464, %cst_220 [1] : vector<16x128xf32> to vector<16xf32>
    %466 = vector.shape_cast %465 : vector<16xf32> to vector<16x1xf32>
    %cst_221 = arith.constant 3.125000e-02 : f32
    %467 = vector.broadcast %cst_221 : f32 to vector<16x1xf32>
    %468 = arith.mulf %466, %467 : vector<16x1xf32>
    %cst_222 = arith.constant 0xFF800000 : f32
    %469 = vector.broadcast %cst_222 : f32 to vector<16x128xf32>
    %470 = arith.select %6, %469, %464 : vector<16x128xi1>, vector<16x128xf32>
    %cst_223 = arith.constant dense<0xFF800000> : vector<16xf32>
    %471 = vector.multi_reduction <maximumf>, %470, %cst_223 [1] : vector<16x128xf32> to vector<16xf32>
    %472 = vector.shape_cast %471 : vector<16xf32> to vector<16x1xf32>
    %c15_i32 = arith.constant 15 : i32
    %473 = vector.broadcast %c15_i32 : i32 to vector<16x16xi32>
    %474 = arith.cmpi eq, %3, %473 : vector<16x16xi32>
    %cst_224 = arith.constant 0.000000e+00 : f32
    %475 = vector.shape_cast %468 : vector<16x1xf32> to vector<16x1xf32>
    %476 = vector.broadcast %475 : vector<16x1xf32> to vector<16x16xf32>
    %477 = vector.broadcast %cst_224 : f32 to vector<16x16xf32>
    %478 = arith.select %474, %476, %477 : vector<16x16xi1>, vector<16x16xf32>
    %479 = arith.addf %455, %478 : vector<16x16xf32>
    %cst_225 = arith.constant 0.000000e+00 : f32
    %480 = vector.shape_cast %472 : vector<16x1xf32> to vector<16x1xf32>
    %481 = vector.broadcast %480 : vector<16x1xf32> to vector<16x16xf32>
    %482 = vector.broadcast %cst_225 : f32 to vector<16x16xf32>
    %483 = arith.select %474, %481, %482 : vector<16x16xi1>, vector<16x16xf32>
    %484 = arith.addf %460, %483 : vector<16x16xf32>
    %cst_226 = arith.constant 0.000000e+00 : f32
    %485 = vector.broadcast %cst_226 : f32 to vector<16x16xf32>
    %c0_227 = arith.constant 0 : index
    %c0_228 = arith.constant 0 : index
    %c0_229 = arith.constant 0 : index
    %c0_230 = arith.constant 0 : index
    %486 = vector.load %arg5[%c0_227, %c0_228, %c0_229, %c0_230] : memref<2x7x16x16xf32, #tpu.memory_space<vmem>>, vector<1x1x16x16xf32>
    %487 = vector.shape_cast %486 : vector<1x1x16x16xf32> to vector<16x16xf32>
    %cst_231 = arith.constant dense<0.000000e+00> : vector<16x16xf32>
    %488 = tpu.matmul %487, %479, %cst_231 {dimension_numbers = #tpu.dot_dimension_numbers<[1], [0], [0], [1], [0, 0, 1, 1], [], []>} : vector<16x16xf32>, vector<16x16xf32>, vector<16x16xf32> -> vector<16x16xf32>
    %c1_232 = arith.constant 1 : index
    %c0_233 = arith.constant 0 : index
    %c0_234 = arith.constant 0 : index
    %c0_235 = arith.constant 0 : index
    %489 = vector.load %arg5[%c1_232, %c0_233, %c0_234, %c0_235] : memref<2x7x16x16xf32, #tpu.memory_space<vmem>>, vector<1x1x16x16xf32>
    %490 = vector.shape_cast %489 : vector<1x1x16x16xf32> to vector<16x16xf32>
    %cst_236 = arith.constant dense<0.000000e+00> : vector<16x16xf32>
    %491 = tpu.matmul %490, %484, %cst_236 {dimension_numbers = #tpu.dot_dimension_numbers<[1], [0], [0], [1], [0, 0, 1, 1], [], []>} : vector<16x16xf32>, vector<16x16xf32>, vector<16x16xf32> -> vector<16x16xf32>
    %492 = arith.addf %488, %491 : vector<16x16xf32>
    %c0_237 = arith.constant 0 : index
    %c0_238 = arith.constant 0 : index
    %c0_239 = arith.constant 0 : index
    %493 = vector.load %arg4[%c0_237, %c0_238, %c0_239] : memref<7x16x16xf32, #tpu.memory_space<vmem>>, vector<1x16x16xf32>
    %494 = vector.shape_cast %493 : vector<1x16x16xf32> to vector<16x16xf32>
    %cst_240 = arith.constant dense<0.000000e+00> : vector<16x16xf32>
    %495 = tpu.matmul %492, %494, %cst_240 {dimension_numbers = #tpu.dot_dimension_numbers<[1], [0], [0], [1], [0, 0, 1, 1], [], []>} : vector<16x16xf32>, vector<16x16xf32>, vector<16x16xf32> -> vector<16x16xf32>
    %496 = arith.addf %485, %495 : vector<16x16xf32>
    %c0_241 = arith.constant 0 : index
    %c1_242 = arith.constant 1 : index
    %c0_243 = arith.constant 0 : index
    %c0_244 = arith.constant 0 : index
    %497 = vector.load %arg5[%c0_241, %c1_242, %c0_243, %c0_244] : memref<2x7x16x16xf32, #tpu.memory_space<vmem>>, vector<1x1x16x16xf32>
    %498 = vector.shape_cast %497 : vector<1x1x16x16xf32> to vector<16x16xf32>
    %cst_245 = arith.constant dense<0.000000e+00> : vector<16x16xf32>
    %499 = tpu.matmul %498, %479, %cst_245 {dimension_numbers = #tpu.dot_dimension_numbers<[1], [0], [0], [1], [0, 0, 1, 1], [], []>} : vector<16x16xf32>, vector<16x16xf32>, vector<16x16xf32> -> vector<16x16xf32>
    %c1_246 = arith.constant 1 : index
    %c1_247 = arith.constant 1 : index
    %c0_248 = arith.constant 0 : index
    %c0_249 = arith.constant 0 : index
    %500 = vector.load %arg5[%c1_246, %c1_247, %c0_248, %c0_249] : memref<2x7x16x16xf32, #tpu.memory_space<vmem>>, vector<1x1x16x16xf32>
    %501 = vector.shape_cast %500 : vector<1x1x16x16xf32> to vector<16x16xf32>
    %cst_250 = arith.constant dense<0.000000e+00> : vector<16x16xf32>
    %502 = tpu.matmul %501, %484, %cst_250 {dimension_numbers = #tpu.dot_dimension_numbers<[1], [0], [0], [1], [0, 0, 1, 1], [], []>} : vector<16x16xf32>, vector<16x16xf32>, vector<16x16xf32> -> vector<16x16xf32>
    %503 = arith.addf %499, %502 : vector<16x16xf32>
    %c1_251 = arith.constant 1 : index
    %c0_252 = arith.constant 0 : index
    %c0_253 = arith.constant 0 : index
    %504 = vector.load %arg4[%c1_251, %c0_252, %c0_253] : memref<7x16x16xf32, #tpu.memory_space<vmem>>, vector<1x16x16xf32>
    %505 = vector.shape_cast %504 : vector<1x16x16xf32> to vector<16x16xf32>
    %cst_254 = arith.constant dense<0.000000e+00> : vector<16x16xf32>
    %506 = tpu.matmul %503, %505, %cst_254 {dimension_numbers = #tpu.dot_dimension_numbers<[1], [0], [0], [1], [0, 0, 1, 1], [], []>} : vector<16x16xf32>, vector<16x16xf32>, vector<16x16xf32> -> vector<16x16xf32>
    %507 = arith.addf %496, %506 : vector<16x16xf32>
    %c0_255 = arith.constant 0 : index
    %c2_256 = arith.constant 2 : index
    %c0_257 = arith.constant 0 : index
    %c0_258 = arith.constant 0 : index
    %508 = vector.load %arg5[%c0_255, %c2_256, %c0_257, %c0_258] : memref<2x7x16x16xf32, #tpu.memory_space<vmem>>, vector<1x1x16x16xf32>
    %509 = vector.shape_cast %508 : vector<1x1x16x16xf32> to vector<16x16xf32>
    %cst_259 = arith.constant dense<0.000000e+00> : vector<16x16xf32>
    %510 = tpu.matmul %509, %479, %cst_259 {dimension_numbers = #tpu.dot_dimension_numbers<[1], [0], [0], [1], [0, 0, 1, 1], [], []>} : vector<16x16xf32>, vector<16x16xf32>, vector<16x16xf32> -> vector<16x16xf32>
    %c1_260 = arith.constant 1 : index
    %c2_261 = arith.constant 2 : index
    %c0_262 = arith.constant 0 : index
    %c0_263 = arith.constant 0 : index
    %511 = vector.load %arg5[%c1_260, %c2_261, %c0_262, %c0_263] : memref<2x7x16x16xf32, #tpu.memory_space<vmem>>, vector<1x1x16x16xf32>
    %512 = vector.shape_cast %511 : vector<1x1x16x16xf32> to vector<16x16xf32>
    %cst_264 = arith.constant dense<0.000000e+00> : vector<16x16xf32>
    %513 = tpu.matmul %512, %484, %cst_264 {dimension_numbers = #tpu.dot_dimension_numbers<[1], [0], [0], [1], [0, 0, 1, 1], [], []>} : vector<16x16xf32>, vector<16x16xf32>, vector<16x16xf32> -> vector<16x16xf32>
    %514 = arith.addf %510, %513 : vector<16x16xf32>
    %c2_265 = arith.constant 2 : index
    %c0_266 = arith.constant 0 : index
    %c0_267 = arith.constant 0 : index
    %515 = vector.load %arg4[%c2_265, %c0_266, %c0_267] : memref<7x16x16xf32, #tpu.memory_space<vmem>>, vector<1x16x16xf32>
    %516 = vector.shape_cast %515 : vector<1x16x16xf32> to vector<16x16xf32>
    %cst_268 = arith.constant dense<0.000000e+00> : vector<16x16xf32>
    %517 = tpu.matmul %514, %516, %cst_268 {dimension_numbers = #tpu.dot_dimension_numbers<[1], [0], [0], [1], [0, 0, 1, 1], [], []>} : vector<16x16xf32>, vector<16x16xf32>, vector<16x16xf32> -> vector<16x16xf32>
    %518 = arith.addf %507, %517 : vector<16x16xf32>
    %c0_269 = arith.constant 0 : index
    %c3_270 = arith.constant 3 : index
    %c0_271 = arith.constant 0 : index
    %c0_272 = arith.constant 0 : index
    %519 = vector.load %arg5[%c0_269, %c3_270, %c0_271, %c0_272] : memref<2x7x16x16xf32, #tpu.memory_space<vmem>>, vector<1x1x16x16xf32>
    %520 = vector.shape_cast %519 : vector<1x1x16x16xf32> to vector<16x16xf32>
    %cst_273 = arith.constant dense<0.000000e+00> : vector<16x16xf32>
    %521 = tpu.matmul %520, %479, %cst_273 {dimension_numbers = #tpu.dot_dimension_numbers<[1], [0], [0], [1], [0, 0, 1, 1], [], []>} : vector<16x16xf32>, vector<16x16xf32>, vector<16x16xf32> -> vector<16x16xf32>
    %c1_274 = arith.constant 1 : index
    %c3_275 = arith.constant 3 : index
    %c0_276 = arith.constant 0 : index
    %c0_277 = arith.constant 0 : index
    %522 = vector.load %arg5[%c1_274, %c3_275, %c0_276, %c0_277] : memref<2x7x16x16xf32, #tpu.memory_space<vmem>>, vector<1x1x16x16xf32>
    %523 = vector.shape_cast %522 : vector<1x1x16x16xf32> to vector<16x16xf32>
    %cst_278 = arith.constant dense<0.000000e+00> : vector<16x16xf32>
    %524 = tpu.matmul %523, %484, %cst_278 {dimension_numbers = #tpu.dot_dimension_numbers<[1], [0], [0], [1], [0, 0, 1, 1], [], []>} : vector<16x16xf32>, vector<16x16xf32>, vector<16x16xf32> -> vector<16x16xf32>
    %525 = arith.addf %521, %524 : vector<16x16xf32>
    %c3_279 = arith.constant 3 : index
    %c0_280 = arith.constant 0 : index
    %c0_281 = arith.constant 0 : index
    %526 = vector.load %arg4[%c3_279, %c0_280, %c0_281] : memref<7x16x16xf32, #tpu.memory_space<vmem>>, vector<1x16x16xf32>
    %527 = vector.shape_cast %526 : vector<1x16x16xf32> to vector<16x16xf32>
    %cst_282 = arith.constant dense<0.000000e+00> : vector<16x16xf32>
    %528 = tpu.matmul %525, %527, %cst_282 {dimension_numbers = #tpu.dot_dimension_numbers<[1], [0], [0], [1], [0, 0, 1, 1], [], []>} : vector<16x16xf32>, vector<16x16xf32>, vector<16x16xf32> -> vector<16x16xf32>
    %529 = arith.addf %518, %528 : vector<16x16xf32>
    %c0_283 = arith.constant 0 : index
    %c4_284 = arith.constant 4 : index
    %c0_285 = arith.constant 0 : index
    %c0_286 = arith.constant 0 : index
    %530 = vector.load %arg5[%c0_283, %c4_284, %c0_285, %c0_286] : memref<2x7x16x16xf32, #tpu.memory_space<vmem>>, vector<1x1x16x16xf32>
    %531 = vector.shape_cast %530 : vector<1x1x16x16xf32> to vector<16x16xf32>
    %cst_287 = arith.constant dense<0.000000e+00> : vector<16x16xf32>
    %532 = tpu.matmul %531, %479, %cst_287 {dimension_numbers = #tpu.dot_dimension_numbers<[1], [0], [0], [1], [0, 0, 1, 1], [], []>} : vector<16x16xf32>, vector<16x16xf32>, vector<16x16xf32> -> vector<16x16xf32>
    %c1_288 = arith.constant 1 : index
    %c4_289 = arith.constant 4 : index
    %c0_290 = arith.constant 0 : index
    %c0_291 = arith.constant 0 : index
    %533 = vector.load %arg5[%c1_288, %c4_289, %c0_290, %c0_291] : memref<2x7x16x16xf32, #tpu.memory_space<vmem>>, vector<1x1x16x16xf32>
    %534 = vector.shape_cast %533 : vector<1x1x16x16xf32> to vector<16x16xf32>
    %cst_292 = arith.constant dense<0.000000e+00> : vector<16x16xf32>
    %535 = tpu.matmul %534, %484, %cst_292 {dimension_numbers = #tpu.dot_dimension_numbers<[1], [0], [0], [1], [0, 0, 1, 1], [], []>} : vector<16x16xf32>, vector<16x16xf32>, vector<16x16xf32> -> vector<16x16xf32>
    %536 = arith.addf %532, %535 : vector<16x16xf32>
    %c4_293 = arith.constant 4 : index
    %c0_294 = arith.constant 0 : index
    %c0_295 = arith.constant 0 : index
    %537 = vector.load %arg4[%c4_293, %c0_294, %c0_295] : memref<7x16x16xf32, #tpu.memory_space<vmem>>, vector<1x16x16xf32>
    %538 = vector.shape_cast %537 : vector<1x16x16xf32> to vector<16x16xf32>
    %cst_296 = arith.constant dense<0.000000e+00> : vector<16x16xf32>
    %539 = tpu.matmul %536, %538, %cst_296 {dimension_numbers = #tpu.dot_dimension_numbers<[1], [0], [0], [1], [0, 0, 1, 1], [], []>} : vector<16x16xf32>, vector<16x16xf32>, vector<16x16xf32> -> vector<16x16xf32>
    %540 = arith.addf %529, %539 : vector<16x16xf32>
    %c0_297 = arith.constant 0 : index
    %c5_298 = arith.constant 5 : index
    %c0_299 = arith.constant 0 : index
    %c0_300 = arith.constant 0 : index
    %541 = vector.load %arg5[%c0_297, %c5_298, %c0_299, %c0_300] : memref<2x7x16x16xf32, #tpu.memory_space<vmem>>, vector<1x1x16x16xf32>
    %542 = vector.shape_cast %541 : vector<1x1x16x16xf32> to vector<16x16xf32>
    %cst_301 = arith.constant dense<0.000000e+00> : vector<16x16xf32>
    %543 = tpu.matmul %542, %479, %cst_301 {dimension_numbers = #tpu.dot_dimension_numbers<[1], [0], [0], [1], [0, 0, 1, 1], [], []>} : vector<16x16xf32>, vector<16x16xf32>, vector<16x16xf32> -> vector<16x16xf32>
    %c1_302 = arith.constant 1 : index
    %c5_303 = arith.constant 5 : index
    %c0_304 = arith.constant 0 : index
    %c0_305 = arith.constant 0 : index
    %544 = vector.load %arg5[%c1_302, %c5_303, %c0_304, %c0_305] : memref<2x7x16x16xf32, #tpu.memory_space<vmem>>, vector<1x1x16x16xf32>
    %545 = vector.shape_cast %544 : vector<1x1x16x16xf32> to vector<16x16xf32>
    %cst_306 = arith.constant dense<0.000000e+00> : vector<16x16xf32>
    %546 = tpu.matmul %545, %484, %cst_306 {dimension_numbers = #tpu.dot_dimension_numbers<[1], [0], [0], [1], [0, 0, 1, 1], [], []>} : vector<16x16xf32>, vector<16x16xf32>, vector<16x16xf32> -> vector<16x16xf32>
    %547 = arith.addf %543, %546 : vector<16x16xf32>
    %c5_307 = arith.constant 5 : index
    %c0_308 = arith.constant 0 : index
    %c0_309 = arith.constant 0 : index
    %548 = vector.load %arg4[%c5_307, %c0_308, %c0_309] : memref<7x16x16xf32, #tpu.memory_space<vmem>>, vector<1x16x16xf32>
    %549 = vector.shape_cast %548 : vector<1x16x16xf32> to vector<16x16xf32>
    %cst_310 = arith.constant dense<0.000000e+00> : vector<16x16xf32>
    %550 = tpu.matmul %547, %549, %cst_310 {dimension_numbers = #tpu.dot_dimension_numbers<[1], [0], [0], [1], [0, 0, 1, 1], [], []>} : vector<16x16xf32>, vector<16x16xf32>, vector<16x16xf32> -> vector<16x16xf32>
    %551 = arith.addf %540, %550 : vector<16x16xf32>
    %c0_311 = arith.constant 0 : index
    %c6_312 = arith.constant 6 : index
    %c0_313 = arith.constant 0 : index
    %c0_314 = arith.constant 0 : index
    %552 = vector.load %arg5[%c0_311, %c6_312, %c0_313, %c0_314] : memref<2x7x16x16xf32, #tpu.memory_space<vmem>>, vector<1x1x16x16xf32>
    %553 = vector.shape_cast %552 : vector<1x1x16x16xf32> to vector<16x16xf32>
    %cst_315 = arith.constant dense<0.000000e+00> : vector<16x16xf32>
    %554 = tpu.matmul %553, %479, %cst_315 {dimension_numbers = #tpu.dot_dimension_numbers<[1], [0], [0], [1], [0, 0, 1, 1], [], []>} : vector<16x16xf32>, vector<16x16xf32>, vector<16x16xf32> -> vector<16x16xf32>
    %c1_316 = arith.constant 1 : index
    %c6_317 = arith.constant 6 : index
    %c0_318 = arith.constant 0 : index
    %c0_319 = arith.constant 0 : index
    %555 = vector.load %arg5[%c1_316, %c6_317, %c0_318, %c0_319] : memref<2x7x16x16xf32, #tpu.memory_space<vmem>>, vector<1x1x16x16xf32>
    %556 = vector.shape_cast %555 : vector<1x1x16x16xf32> to vector<16x16xf32>
    %cst_320 = arith.constant dense<0.000000e+00> : vector<16x16xf32>
    %557 = tpu.matmul %556, %484, %cst_320 {dimension_numbers = #tpu.dot_dimension_numbers<[1], [0], [0], [1], [0, 0, 1, 1], [], []>} : vector<16x16xf32>, vector<16x16xf32>, vector<16x16xf32> -> vector<16x16xf32>
    %558 = arith.addf %554, %557 : vector<16x16xf32>
    %c6_321 = arith.constant 6 : index
    %c0_322 = arith.constant 0 : index
    %c0_323 = arith.constant 0 : index
    %559 = vector.load %arg4[%c6_321, %c0_322, %c0_323] : memref<7x16x16xf32, #tpu.memory_space<vmem>>, vector<1x16x16xf32>
    %560 = vector.shape_cast %559 : vector<1x16x16xf32> to vector<16x16xf32>
    %cst_324 = arith.constant dense<0.000000e+00> : vector<16x16xf32>
    %561 = tpu.matmul %558, %560, %cst_324 {dimension_numbers = #tpu.dot_dimension_numbers<[1], [0], [0], [1], [0, 0, 1, 1], [], []>} : vector<16x16xf32>, vector<16x16xf32>, vector<16x16xf32> -> vector<16x16xf32>
    %562 = arith.addf %551, %561 : vector<16x16xf32>
    %cst_325 = arith.constant 0.000000e+00 : f32
    %563 = vector.broadcast %cst_325 : f32 to vector<16x16xf32>
    %564 = arith.subf %563, %562 : vector<16x16xf32>
    %565 = math.exp %564 : vector<16x16xf32>
    %cst_326 = arith.constant 1.000000e+00 : f32
    %566 = vector.broadcast %cst_326 : f32 to vector<16x16xf32>
    %567 = arith.addf %566, %565 : vector<16x16xf32>
    %cst_327 = arith.constant 1.000000e+00 : f32
    %568 = vector.broadcast %cst_327 : f32 to vector<16x16xf32>
    %569 = arith.divf %568, %567 : vector<16x16xf32>
    %c0_i32_328 = arith.constant 0 : i32
    %570 = vector.broadcast %c0_i32_328 : i32 to vector<16x16xi32>
    %571 = arith.cmpi eq, %3, %570 : vector<16x16xi32>
    %cst_329 = arith.constant 0.000000e+00 : f32
    %572 = vector.broadcast %cst_329 : f32 to vector<16x16xf32>
    %573 = arith.select %571, %569, %572 : vector<16x16xi1>, vector<16x16xf32>
    %cst_330 = arith.constant dense<0.000000e+00> : vector<16xf32>
    %574 = vector.multi_reduction <add>, %573, %cst_330 [1] : vector<16x16xf32> to vector<16xf32>
    %575 = vector.shape_cast %574 : vector<16xf32> to vector<16x1xf32>
    %c0_331 = arith.constant 0 : index
    %c0_332 = arith.constant 0 : index
    %c0_333 = arith.constant 0 : index
    %c0_334 = arith.constant 0 : index
    %576 = vector.load %arg1[%c0_331, %c0_332, %c0_333, %c0_334] : memref<2x16x16x128xf32, #tpu.memory_space<vmem>>, vector<1x1x16x128xf32>
    %577 = vector.shape_cast %576 : vector<1x1x16x128xf32> to vector<16x128xf32>
    %578 = vector.broadcast %98 : vector<1x128xf32> to vector<16x128xf32>
    %579 = arith.mulf %577, %578 : vector<16x128xf32>
    %580 = vector.broadcast %575 : vector<16x1xf32> to vector<16x128xf32>
    %581 = arith.mulf %579, %580 : vector<16x128xf32>
    %c0_335 = arith.constant 0 : index
    %c0_336 = arith.constant 0 : index
    %c0_337 = arith.constant 0 : index
    %c0_338 = arith.constant 0 : index
    %582 = vector.load %arg6[%c0_335, %c0_336, %c0_337, %c0_338] : memref<2x16x16x128xf32, #tpu.memory_space<vmem>>, vector<1x1x16x128xf32>
    %583 = vector.shape_cast %582 : vector<1x1x16x128xf32> to vector<16x128xf32>
    %584 = vector.shape_cast %581 : vector<16x128xf32> to vector<1x1x16x128xf32>
    tpu.vector_store %arg6[%c0_335, %c0_336, %c0_337, %c0_338], %584 {strides = array<i32>} : memref<2x16x16x128xf32, #tpu.memory_space<vmem>>, vector<1x1x16x128xf32>,
    %c1_i32_339 = arith.constant 1 : i32
    %585 = vector.broadcast %c1_i32_339 : i32 to vector<16x16xi32>
    %586 = arith.cmpi eq, %3, %585 : vector<16x16xi32>
    %cst_340 = arith.constant 0.000000e+00 : f32
    %587 = vector.broadcast %cst_340 : f32 to vector<16x16xf32>
    %588 = arith.select %586, %569, %587 : vector<16x16xi1>, vector<16x16xf32>
    %cst_341 = arith.constant dense<0.000000e+00> : vector<16xf32>
    %589 = vector.multi_reduction <add>, %588, %cst_341 [1] : vector<16x16xf32> to vector<16xf32>
    %590 = vector.shape_cast %589 : vector<16xf32> to vector<16x1xf32>
    %c0_342 = arith.constant 0 : index
    %c1_343 = arith.constant 1 : index
    %c0_344 = arith.constant 0 : index
    %c0_345 = arith.constant 0 : index
    %591 = vector.load %arg1[%c0_342, %c1_343, %c0_344, %c0_345] : memref<2x16x16x128xf32, #tpu.memory_space<vmem>>, vector<1x1x16x128xf32>
    %592 = vector.shape_cast %591 : vector<1x1x16x128xf32> to vector<16x128xf32>
    %593 = vector.broadcast %98 : vector<1x128xf32> to vector<16x128xf32>
    %594 = arith.mulf %592, %593 : vector<16x128xf32>
    %595 = vector.broadcast %590 : vector<16x1xf32> to vector<16x128xf32>
    %596 = arith.mulf %594, %595 : vector<16x128xf32>
    %c0_346 = arith.constant 0 : index
    %c1_347 = arith.constant 1 : index
    %c0_348 = arith.constant 0 : index
    %c0_349 = arith.constant 0 : index
    %597 = vector.load %arg6[%c0_346, %c1_347, %c0_348, %c0_349] : memref<2x16x16x128xf32, #tpu.memory_space<vmem>>, vector<1x1x16x128xf32>
    %598 = vector.shape_cast %597 : vector<1x1x16x128xf32> to vector<16x128xf32>
    %599 = vector.shape_cast %596 : vector<16x128xf32> to vector<1x1x16x128xf32>
    tpu.vector_store %arg6[%c0_346, %c1_347, %c0_348, %c0_349], %599 {strides = array<i32>} : memref<2x16x16x128xf32, #tpu.memory_space<vmem>>, vector<1x1x16x128xf32>,
    %c2_i32_350 = arith.constant 2 : i32
    %600 = vector.broadcast %c2_i32_350 : i32 to vector<16x16xi32>
    %601 = arith.cmpi eq, %3, %600 : vector<16x16xi32>
    %cst_351 = arith.constant 0.000000e+00 : f32
    %602 = vector.broadcast %cst_351 : f32 to vector<16x16xf32>
    %603 = arith.select %601, %569, %602 : vector<16x16xi1>, vector<16x16xf32>
    %cst_352 = arith.constant dense<0.000000e+00> : vector<16xf32>
    %604 = vector.multi_reduction <add>, %603, %cst_352 [1] : vector<16x16xf32> to vector<16xf32>
    %605 = vector.shape_cast %604 : vector<16xf32> to vector<16x1xf32>
    %c0_353 = arith.constant 0 : index
    %c2_354 = arith.constant 2 : index
    %c0_355 = arith.constant 0 : index
    %c0_356 = arith.constant 0 : index
    %606 = vector.load %arg1[%c0_353, %c2_354, %c0_355, %c0_356] : memref<2x16x16x128xf32, #tpu.memory_space<vmem>>, vector<1x1x16x128xf32>
    %607 = vector.shape_cast %606 : vector<1x1x16x128xf32> to vector<16x128xf32>
    %608 = vector.broadcast %98 : vector<1x128xf32> to vector<16x128xf32>
    %609 = arith.mulf %607, %608 : vector<16x128xf32>
    %610 = vector.broadcast %605 : vector<16x1xf32> to vector<16x128xf32>
    %611 = arith.mulf %609, %610 : vector<16x128xf32>
    %c0_357 = arith.constant 0 : index
    %c2_358 = arith.constant 2 : index
    %c0_359 = arith.constant 0 : index
    %c0_360 = arith.constant 0 : index
    %612 = vector.load %arg6[%c0_357, %c2_358, %c0_359, %c0_360] : memref<2x16x16x128xf32, #tpu.memory_space<vmem>>, vector<1x1x16x128xf32>
    %613 = vector.shape_cast %612 : vector<1x1x16x128xf32> to vector<16x128xf32>
    %614 = vector.shape_cast %611 : vector<16x128xf32> to vector<1x1x16x128xf32>
    tpu.vector_store %arg6[%c0_357, %c2_358, %c0_359, %c0_360], %614 {strides = array<i32>} : memref<2x16x16x128xf32, #tpu.memory_space<vmem>>, vector<1x1x16x128xf32>,
    %c3_i32_361 = arith.constant 3 : i32
    %615 = vector.broadcast %c3_i32_361 : i32 to vector<16x16xi32>
    %616 = arith.cmpi eq, %3, %615 : vector<16x16xi32>
    %cst_362 = arith.constant 0.000000e+00 : f32
    %617 = vector.broadcast %cst_362 : f32 to vector<16x16xf32>
    %618 = arith.select %616, %569, %617 : vector<16x16xi1>, vector<16x16xf32>
    %cst_363 = arith.constant dense<0.000000e+00> : vector<16xf32>
    %619 = vector.multi_reduction <add>, %618, %cst_363 [1] : vector<16x16xf32> to vector<16xf32>
    %620 = vector.shape_cast %619 : vector<16xf32> to vector<16x1xf32>
    %c0_364 = arith.constant 0 : index
    %c3_365 = arith.constant 3 : index
    %c0_366 = arith.constant 0 : index
    %c0_367 = arith.constant 0 : index
    %621 = vector.load %arg1[%c0_364, %c3_365, %c0_366, %c0_367] : memref<2x16x16x128xf32, #tpu.memory_space<vmem>>, vector<1x1x16x128xf32>
    %622 = vector.shape_cast %621 : vector<1x1x16x128xf32> to vector<16x128xf32>
    %623 = vector.broadcast %98 : vector<1x128xf32> to vector<16x128xf32>
    %624 = arith.mulf %622, %623 : vector<16x128xf32>
    %625 = vector.broadcast %620 : vector<16x1xf32> to vector<16x128xf32>
    %626 = arith.mulf %624, %625 : vector<16x128xf32>
    %c0_368 = arith.constant 0 : index
    %c3_369 = arith.constant 3 : index
    %c0_370 = arith.constant 0 : index
    %c0_371 = arith.constant 0 : index
    %627 = vector.load %arg6[%c0_368, %c3_369, %c0_370, %c0_371] : memref<2x16x16x128xf32, #tpu.memory_space<vmem>>, vector<1x1x16x128xf32>
    %628 = vector.shape_cast %627 : vector<1x1x16x128xf32> to vector<16x128xf32>
    %629 = vector.shape_cast %626 : vector<16x128xf32> to vector<1x1x16x128xf32>
    tpu.vector_store %arg6[%c0_368, %c3_369, %c0_370, %c0_371], %629 {strides = array<i32>} : memref<2x16x16x128xf32, #tpu.memory_space<vmem>>, vector<1x1x16x128xf32>,
    %c4_i32_372 = arith.constant 4 : i32
    %630 = vector.broadcast %c4_i32_372 : i32 to vector<16x16xi32>
    %631 = arith.cmpi eq, %3, %630 : vector<16x16xi32>
    %cst_373 = arith.constant 0.000000e+00 : f32
    %632 = vector.broadcast %cst_373 : f32 to vector<16x16xf32>
    %633 = arith.select %631, %569, %632 : vector<16x16xi1>, vector<16x16xf32>
    %cst_374 = arith.constant dense<0.000000e+00> : vector<16xf32>
    %634 = vector.multi_reduction <add>, %633, %cst_374 [1] : vector<16x16xf32> to vector<16xf32>
    %635 = vector.shape_cast %634 : vector<16xf32> to vector<16x1xf32>
    %c0_375 = arith.constant 0 : index
    %c4_376 = arith.constant 4 : index
    %c0_377 = arith.constant 0 : index
    %c0_378 = arith.constant 0 : index
    %636 = vector.load %arg1[%c0_375, %c4_376, %c0_377, %c0_378] : memref<2x16x16x128xf32, #tpu.memory_space<vmem>>, vector<1x1x16x128xf32>
    %637 = vector.shape_cast %636 : vector<1x1x16x128xf32> to vector<16x128xf32>
    %638 = vector.broadcast %98 : vector<1x128xf32> to vector<16x128xf32>
    %639 = arith.mulf %637, %638 : vector<16x128xf32>
    %640 = vector.broadcast %635 : vector<16x1xf32> to vector<16x128xf32>
    %641 = arith.mulf %639, %640 : vector<16x128xf32>
    %c0_379 = arith.constant 0 : index
    %c4_380 = arith.constant 4 : index
    %c0_381 = arith.constant 0 : index
    %c0_382 = arith.constant 0 : index
    %642 = vector.load %arg6[%c0_379, %c4_380, %c0_381, %c0_382] : memref<2x16x16x128xf32, #tpu.memory_space<vmem>>, vector<1x1x16x128xf32>
    %643 = vector.shape_cast %642 : vector<1x1x16x128xf32> to vector<16x128xf32>
    %644 = vector.shape_cast %641 : vector<16x128xf32> to vector<1x1x16x128xf32>
    tpu.vector_store %arg6[%c0_379, %c4_380, %c0_381, %c0_382], %644 {strides = array<i32>} : memref<2x16x16x128xf32, #tpu.memory_space<vmem>>, vector<1x1x16x128xf32>,
    %c5_i32_383 = arith.constant 5 : i32
    %645 = vector.broadcast %c5_i32_383 : i32 to vector<16x16xi32>
    %646 = arith.cmpi eq, %3, %645 : vector<16x16xi32>
    %cst_384 = arith.constant 0.000000e+00 : f32
    %647 = vector.broadcast %cst_384 : f32 to vector<16x16xf32>
    %648 = arith.select %646, %569, %647 : vector<16x16xi1>, vector<16x16xf32>
    %cst_385 = arith.constant dense<0.000000e+00> : vector<16xf32>
    %649 = vector.multi_reduction <add>, %648, %cst_385 [1] : vector<16x16xf32> to vector<16xf32>
    %650 = vector.shape_cast %649 : vector<16xf32> to vector<16x1xf32>
    %c0_386 = arith.constant 0 : index
    %c5_387 = arith.constant 5 : index
    %c0_388 = arith.constant 0 : index
    %c0_389 = arith.constant 0 : index
    %651 = vector.load %arg1[%c0_386, %c5_387, %c0_388, %c0_389] : memref<2x16x16x128xf32, #tpu.memory_space<vmem>>, vector<1x1x16x128xf32>
    %652 = vector.shape_cast %651 : vector<1x1x16x128xf32> to vector<16x128xf32>
    %653 = vector.broadcast %98 : vector<1x128xf32> to vector<16x128xf32>
    %654 = arith.mulf %652, %653 : vector<16x128xf32>
    %655 = vector.broadcast %650 : vector<16x1xf32> to vector<16x128xf32>
    %656 = arith.mulf %654, %655 : vector<16x128xf32>
    %c0_390 = arith.constant 0 : index
    %c5_391 = arith.constant 5 : index
    %c0_392 = arith.constant 0 : index
    %c0_393 = arith.constant 0 : index
    %657 = vector.load %arg6[%c0_390, %c5_391, %c0_392, %c0_393] : memref<2x16x16x128xf32, #tpu.memory_space<vmem>>, vector<1x1x16x128xf32>
    %658 = vector.shape_cast %657 : vector<1x1x16x128xf32> to vector<16x128xf32>
    %659 = vector.shape_cast %656 : vector<16x128xf32> to vector<1x1x16x128xf32>
    tpu.vector_store %arg6[%c0_390, %c5_391, %c0_392, %c0_393], %659 {strides = array<i32>} : memref<2x16x16x128xf32, #tpu.memory_space<vmem>>, vector<1x1x16x128xf32>,
    %c6_i32_394 = arith.constant 6 : i32
    %660 = vector.broadcast %c6_i32_394 : i32 to vector<16x16xi32>
    %661 = arith.cmpi eq, %3, %660 : vector<16x16xi32>
    %cst_395 = arith.constant 0.000000e+00 : f32
    %662 = vector.broadcast %cst_395 : f32 to vector<16x16xf32>
    %663 = arith.select %661, %569, %662 : vector<16x16xi1>, vector<16x16xf32>
    %cst_396 = arith.constant dense<0.000000e+00> : vector<16xf32>
    %664 = vector.multi_reduction <add>, %663, %cst_396 [1] : vector<16x16xf32> to vector<16xf32>
    %665 = vector.shape_cast %664 : vector<16xf32> to vector<16x1xf32>
    %c0_397 = arith.constant 0 : index
    %c6_398 = arith.constant 6 : index
    %c0_399 = arith.constant 0 : index
    %c0_400 = arith.constant 0 : index
    %666 = vector.load %arg1[%c0_397, %c6_398, %c0_399, %c0_400] : memref<2x16x16x128xf32, #tpu.memory_space<vmem>>, vector<1x1x16x128xf32>
    %667 = vector.shape_cast %666 : vector<1x1x16x128xf32> to vector<16x128xf32>
    %668 = vector.broadcast %98 : vector<1x128xf32> to vector<16x128xf32>
    %669 = arith.mulf %667, %668 : vector<16x128xf32>
    %670 = vector.broadcast %665 : vector<16x1xf32> to vector<16x128xf32>
    %671 = arith.mulf %669, %670 : vector<16x128xf32>
    %c0_401 = arith.constant 0 : index
    %c6_402 = arith.constant 6 : index
    %c0_403 = arith.constant 0 : index
    %c0_404 = arith.constant 0 : index
    %672 = vector.load %arg6[%c0_401, %c6_402, %c0_403, %c0_404] : memref<2x16x16x128xf32, #tpu.memory_space<vmem>>, vector<1x1x16x128xf32>
    %673 = vector.shape_cast %672 : vector<1x1x16x128xf32> to vector<16x128xf32>
    %674 = vector.shape_cast %671 : vector<16x128xf32> to vector<1x1x16x128xf32>
    tpu.vector_store %arg6[%c0_401, %c6_402, %c0_403, %c0_404], %674 {strides = array<i32>} : memref<2x16x16x128xf32, #tpu.memory_space<vmem>>, vector<1x1x16x128xf32>,
    %c7_i32_405 = arith.constant 7 : i32
    %675 = vector.broadcast %c7_i32_405 : i32 to vector<16x16xi32>
    %676 = arith.cmpi eq, %3, %675 : vector<16x16xi32>
    %cst_406 = arith.constant 0.000000e+00 : f32
    %677 = vector.broadcast %cst_406 : f32 to vector<16x16xf32>
    %678 = arith.select %676, %569, %677 : vector<16x16xi1>, vector<16x16xf32>
    %cst_407 = arith.constant dense<0.000000e+00> : vector<16xf32>
    %679 = vector.multi_reduction <add>, %678, %cst_407 [1] : vector<16x16xf32> to vector<16xf32>
    %680 = vector.shape_cast %679 : vector<16xf32> to vector<16x1xf32>
    %c0_408 = arith.constant 0 : index
    %c7_409 = arith.constant 7 : index
    %c0_410 = arith.constant 0 : index
    %c0_411 = arith.constant 0 : index
    %681 = vector.load %arg1[%c0_408, %c7_409, %c0_410, %c0_411] : memref<2x16x16x128xf32, #tpu.memory_space<vmem>>, vector<1x1x16x128xf32>
    %682 = vector.shape_cast %681 : vector<1x1x16x128xf32> to vector<16x128xf32>
    %683 = vector.broadcast %98 : vector<1x128xf32> to vector<16x128xf32>
    %684 = arith.mulf %682, %683 : vector<16x128xf32>
    %685 = vector.broadcast %680 : vector<16x1xf32> to vector<16x128xf32>
    %686 = arith.mulf %684, %685 : vector<16x128xf32>
    %c0_412 = arith.constant 0 : index
    %c7_413 = arith.constant 7 : index
    %c0_414 = arith.constant 0 : index
    %c0_415 = arith.constant 0 : index
    %687 = vector.load %arg6[%c0_412, %c7_413, %c0_414, %c0_415] : memref<2x16x16x128xf32, #tpu.memory_space<vmem>>, vector<1x1x16x128xf32>
    %688 = vector.shape_cast %687 : vector<1x1x16x128xf32> to vector<16x128xf32>
    %689 = vector.shape_cast %686 : vector<16x128xf32> to vector<1x1x16x128xf32>
    tpu.vector_store %arg6[%c0_412, %c7_413, %c0_414, %c0_415], %689 {strides = array<i32>} : memref<2x16x16x128xf32, #tpu.memory_space<vmem>>, vector<1x1x16x128xf32>,
    %c8_i32_416 = arith.constant 8 : i32
    %690 = vector.broadcast %c8_i32_416 : i32 to vector<16x16xi32>
    %691 = arith.cmpi eq, %3, %690 : vector<16x16xi32>
    %cst_417 = arith.constant 0.000000e+00 : f32
    %692 = vector.broadcast %cst_417 : f32 to vector<16x16xf32>
    %693 = arith.select %691, %569, %692 : vector<16x16xi1>, vector<16x16xf32>
    %cst_418 = arith.constant dense<0.000000e+00> : vector<16xf32>
    %694 = vector.multi_reduction <add>, %693, %cst_418 [1] : vector<16x16xf32> to vector<16xf32>
    %695 = vector.shape_cast %694 : vector<16xf32> to vector<16x1xf32>
    %c0_419 = arith.constant 0 : index
    %c8_420 = arith.constant 8 : index
    %c0_421 = arith.constant 0 : index
    %c0_422 = arith.constant 0 : index
    %696 = vector.load %arg1[%c0_419, %c8_420, %c0_421, %c0_422] : memref<2x16x16x128xf32, #tpu.memory_space<vmem>>, vector<1x1x16x128xf32>
    %697 = vector.shape_cast %696 : vector<1x1x16x128xf32> to vector<16x128xf32>
    %698 = vector.broadcast %98 : vector<1x128xf32> to vector<16x128xf32>
    %699 = arith.mulf %697, %698 : vector<16x128xf32>
    %700 = vector.broadcast %695 : vector<16x1xf32> to vector<16x128xf32>
    %701 = arith.mulf %699, %700 : vector<16x128xf32>
    %c0_423 = arith.constant 0 : index
    %c8_424 = arith.constant 8 : index
    %c0_425 = arith.constant 0 : index
    %c0_426 = arith.constant 0 : index
    %702 = vector.load %arg6[%c0_423, %c8_424, %c0_425, %c0_426] : memref<2x16x16x128xf32, #tpu.memory_space<vmem>>, vector<1x1x16x128xf32>
    %703 = vector.shape_cast %702 : vector<1x1x16x128xf32> to vector<16x128xf32>
    %704 = vector.shape_cast %701 : vector<16x128xf32> to vector<1x1x16x128xf32>
    tpu.vector_store %arg6[%c0_423, %c8_424, %c0_425, %c0_426], %704 {strides = array<i32>} : memref<2x16x16x128xf32, #tpu.memory_space<vmem>>, vector<1x1x16x128xf32>,
    %c9_i32_427 = arith.constant 9 : i32
    %705 = vector.broadcast %c9_i32_427 : i32 to vector<16x16xi32>
    %706 = arith.cmpi eq, %3, %705 : vector<16x16xi32>
    %cst_428 = arith.constant 0.000000e+00 : f32
    %707 = vector.broadcast %cst_428 : f32 to vector<16x16xf32>
    %708 = arith.select %706, %569, %707 : vector<16x16xi1>, vector<16x16xf32>
    %cst_429 = arith.constant dense<0.000000e+00> : vector<16xf32>
    %709 = vector.multi_reduction <add>, %708, %cst_429 [1] : vector<16x16xf32> to vector<16xf32>
    %710 = vector.shape_cast %709 : vector<16xf32> to vector<16x1xf32>
    %c0_430 = arith.constant 0 : index
    %c9_431 = arith.constant 9 : index
    %c0_432 = arith.constant 0 : index
    %c0_433 = arith.constant 0 : index
    %711 = vector.load %arg1[%c0_430, %c9_431, %c0_432, %c0_433] : memref<2x16x16x128xf32, #tpu.memory_space<vmem>>, vector<1x1x16x128xf32>
    %712 = vector.shape_cast %711 : vector<1x1x16x128xf32> to vector<16x128xf32>
    %713 = vector.broadcast %98 : vector<1x128xf32> to vector<16x128xf32>
    %714 = arith.mulf %712, %713 : vector<16x128xf32>
    %715 = vector.broadcast %710 : vector<16x1xf32> to vector<16x128xf32>
    %716 = arith.mulf %714, %715 : vector<16x128xf32>
    %c0_434 = arith.constant 0 : index
    %c9_435 = arith.constant 9 : index
    %c0_436 = arith.constant 0 : index
    %c0_437 = arith.constant 0 : index
    %717 = vector.load %arg6[%c0_434, %c9_435, %c0_436, %c0_437] : memref<2x16x16x128xf32, #tpu.memory_space<vmem>>, vector<1x1x16x128xf32>
    %718 = vector.shape_cast %717 : vector<1x1x16x128xf32> to vector<16x128xf32>
    %719 = vector.shape_cast %716 : vector<16x128xf32> to vector<1x1x16x128xf32>
    tpu.vector_store %arg6[%c0_434, %c9_435, %c0_436, %c0_437], %719 {strides = array<i32>} : memref<2x16x16x128xf32, #tpu.memory_space<vmem>>, vector<1x1x16x128xf32>,
    %c10_i32_438 = arith.constant 10 : i32
    %720 = vector.broadcast %c10_i32_438 : i32 to vector<16x16xi32>
    %721 = arith.cmpi eq, %3, %720 : vector<16x16xi32>
    %cst_439 = arith.constant 0.000000e+00 : f32
    %722 = vector.broadcast %cst_439 : f32 to vector<16x16xf32>
    %723 = arith.select %721, %569, %722 : vector<16x16xi1>, vector<16x16xf32>
    %cst_440 = arith.constant dense<0.000000e+00> : vector<16xf32>
    %724 = vector.multi_reduction <add>, %723, %cst_440 [1] : vector<16x16xf32> to vector<16xf32>
    %725 = vector.shape_cast %724 : vector<16xf32> to vector<16x1xf32>
    %c0_441 = arith.constant 0 : index
    %c10_442 = arith.constant 10 : index
    %c0_443 = arith.constant 0 : index
    %c0_444 = arith.constant 0 : index
    %726 = vector.load %arg1[%c0_441, %c10_442, %c0_443, %c0_444] : memref<2x16x16x128xf32, #tpu.memory_space<vmem>>, vector<1x1x16x128xf32>
    %727 = vector.shape_cast %726 : vector<1x1x16x128xf32> to vector<16x128xf32>
    %728 = vector.broadcast %98 : vector<1x128xf32> to vector<16x128xf32>
    %729 = arith.mulf %727, %728 : vector<16x128xf32>
    %730 = vector.broadcast %725 : vector<16x1xf32> to vector<16x128xf32>
    %731 = arith.mulf %729, %730 : vector<16x128xf32>
    %c0_445 = arith.constant 0 : index
    %c10_446 = arith.constant 10 : index
    %c0_447 = arith.constant 0 : index
    %c0_448 = arith.constant 0 : index
    %732 = vector.load %arg6[%c0_445, %c10_446, %c0_447, %c0_448] : memref<2x16x16x128xf32, #tpu.memory_space<vmem>>, vector<1x1x16x128xf32>
    %733 = vector.shape_cast %732 : vector<1x1x16x128xf32> to vector<16x128xf32>
    %734 = vector.shape_cast %731 : vector<16x128xf32> to vector<1x1x16x128xf32>
    tpu.vector_store %arg6[%c0_445, %c10_446, %c0_447, %c0_448], %734 {strides = array<i32>} : memref<2x16x16x128xf32, #tpu.memory_space<vmem>>, vector<1x1x16x128xf32>,
    %c11_i32_449 = arith.constant 11 : i32
    %735 = vector.broadcast %c11_i32_449 : i32 to vector<16x16xi32>
    %736 = arith.cmpi eq, %3, %735 : vector<16x16xi32>
    %cst_450 = arith.constant 0.000000e+00 : f32
    %737 = vector.broadcast %cst_450 : f32 to vector<16x16xf32>
    %738 = arith.select %736, %569, %737 : vector<16x16xi1>, vector<16x16xf32>
    %cst_451 = arith.constant dense<0.000000e+00> : vector<16xf32>
    %739 = vector.multi_reduction <add>, %738, %cst_451 [1] : vector<16x16xf32> to vector<16xf32>
    %740 = vector.shape_cast %739 : vector<16xf32> to vector<16x1xf32>
    %c0_452 = arith.constant 0 : index
    %c11_453 = arith.constant 11 : index
    %c0_454 = arith.constant 0 : index
    %c0_455 = arith.constant 0 : index
    %741 = vector.load %arg1[%c0_452, %c11_453, %c0_454, %c0_455] : memref<2x16x16x128xf32, #tpu.memory_space<vmem>>, vector<1x1x16x128xf32>
    %742 = vector.shape_cast %741 : vector<1x1x16x128xf32> to vector<16x128xf32>
    %743 = vector.broadcast %98 : vector<1x128xf32> to vector<16x128xf32>
    %744 = arith.mulf %742, %743 : vector<16x128xf32>
    %745 = vector.broadcast %740 : vector<16x1xf32> to vector<16x128xf32>
    %746 = arith.mulf %744, %745 : vector<16x128xf32>
    %c0_456 = arith.constant 0 : index
    %c11_457 = arith.constant 11 : index
    %c0_458 = arith.constant 0 : index
    %c0_459 = arith.constant 0 : index
    %747 = vector.load %arg6[%c0_456, %c11_457, %c0_458, %c0_459] : memref<2x16x16x128xf32, #tpu.memory_space<vmem>>, vector<1x1x16x128xf32>
    %748 = vector.shape_cast %747 : vector<1x1x16x128xf32> to vector<16x128xf32>
    %749 = vector.shape_cast %746 : vector<16x128xf32> to vector<1x1x16x128xf32>
    tpu.vector_store %arg6[%c0_456, %c11_457, %c0_458, %c0_459], %749 {strides = array<i32>} : memref<2x16x16x128xf32, #tpu.memory_space<vmem>>, vector<1x1x16x128xf32>,
    %c12_i32_460 = arith.constant 12 : i32
    %750 = vector.broadcast %c12_i32_460 : i32 to vector<16x16xi32>
    %751 = arith.cmpi eq, %3, %750 : vector<16x16xi32>
    %cst_461 = arith.constant 0.000000e+00 : f32
    %752 = vector.broadcast %cst_461 : f32 to vector<16x16xf32>
    %753 = arith.select %751, %569, %752 : vector<16x16xi1>, vector<16x16xf32>
    %cst_462 = arith.constant dense<0.000000e+00> : vector<16xf32>
    %754 = vector.multi_reduction <add>, %753, %cst_462 [1] : vector<16x16xf32> to vector<16xf32>
    %755 = vector.shape_cast %754 : vector<16xf32> to vector<16x1xf32>
    %c0_463 = arith.constant 0 : index
    %c12_464 = arith.constant 12 : index
    %c0_465 = arith.constant 0 : index
    %c0_466 = arith.constant 0 : index
    %756 = vector.load %arg1[%c0_463, %c12_464, %c0_465, %c0_466] : memref<2x16x16x128xf32, #tpu.memory_space<vmem>>, vector<1x1x16x128xf32>
    %757 = vector.shape_cast %756 : vector<1x1x16x128xf32> to vector<16x128xf32>
    %758 = vector.broadcast %98 : vector<1x128xf32> to vector<16x128xf32>
    %759 = arith.mulf %757, %758 : vector<16x128xf32>
    %760 = vector.broadcast %755 : vector<16x1xf32> to vector<16x128xf32>
    %761 = arith.mulf %759, %760 : vector<16x128xf32>
    %c0_467 = arith.constant 0 : index
    %c12_468 = arith.constant 12 : index
    %c0_469 = arith.constant 0 : index
    %c0_470 = arith.constant 0 : index
    %762 = vector.load %arg6[%c0_467, %c12_468, %c0_469, %c0_470] : memref<2x16x16x128xf32, #tpu.memory_space<vmem>>, vector<1x1x16x128xf32>
    %763 = vector.shape_cast %762 : vector<1x1x16x128xf32> to vector<16x128xf32>
    %764 = vector.shape_cast %761 : vector<16x128xf32> to vector<1x1x16x128xf32>
    tpu.vector_store %arg6[%c0_467, %c12_468, %c0_469, %c0_470], %764 {strides = array<i32>} : memref<2x16x16x128xf32, #tpu.memory_space<vmem>>, vector<1x1x16x128xf32>,
    %c13_i32_471 = arith.constant 13 : i32
    %765 = vector.broadcast %c13_i32_471 : i32 to vector<16x16xi32>
    %766 = arith.cmpi eq, %3, %765 : vector<16x16xi32>
    %cst_472 = arith.constant 0.000000e+00 : f32
    %767 = vector.broadcast %cst_472 : f32 to vector<16x16xf32>
    %768 = arith.select %766, %569, %767 : vector<16x16xi1>, vector<16x16xf32>
    %cst_473 = arith.constant dense<0.000000e+00> : vector<16xf32>
    %769 = vector.multi_reduction <add>, %768, %cst_473 [1] : vector<16x16xf32> to vector<16xf32>
    %770 = vector.shape_cast %769 : vector<16xf32> to vector<16x1xf32>
    %c0_474 = arith.constant 0 : index
    %c13_475 = arith.constant 13 : index
    %c0_476 = arith.constant 0 : index
    %c0_477 = arith.constant 0 : index
    %771 = vector.load %arg1[%c0_474, %c13_475, %c0_476, %c0_477] : memref<2x16x16x128xf32, #tpu.memory_space<vmem>>, vector<1x1x16x128xf32>
    %772 = vector.shape_cast %771 : vector<1x1x16x128xf32> to vector<16x128xf32>
    %773 = vector.broadcast %98 : vector<1x128xf32> to vector<16x128xf32>
    %774 = arith.mulf %772, %773 : vector<16x128xf32>
    %775 = vector.broadcast %770 : vector<16x1xf32> to vector<16x128xf32>
    %776 = arith.mulf %774, %775 : vector<16x128xf32>
    %c0_478 = arith.constant 0 : index
    %c13_479 = arith.constant 13 : index
    %c0_480 = arith.constant 0 : index
    %c0_481 = arith.constant 0 : index
    %777 = vector.load %arg6[%c0_478, %c13_479, %c0_480, %c0_481] : memref<2x16x16x128xf32, #tpu.memory_space<vmem>>, vector<1x1x16x128xf32>
    %778 = vector.shape_cast %777 : vector<1x1x16x128xf32> to vector<16x128xf32>
    %779 = vector.shape_cast %776 : vector<16x128xf32> to vector<1x1x16x128xf32>
    tpu.vector_store %arg6[%c0_478, %c13_479, %c0_480, %c0_481], %779 {strides = array<i32>} : memref<2x16x16x128xf32, #tpu.memory_space<vmem>>, vector<1x1x16x128xf32>,
    %c14_i32_482 = arith.constant 14 : i32
    %780 = vector.broadcast %c14_i32_482 : i32 to vector<16x16xi32>
    %781 = arith.cmpi eq, %3, %780 : vector<16x16xi32>
    %cst_483 = arith.constant 0.000000e+00 : f32
    %782 = vector.broadcast %cst_483 : f32 to vector<16x16xf32>
    %783 = arith.select %781, %569, %782 : vector<16x16xi1>, vector<16x16xf32>
    %cst_484 = arith.constant dense<0.000000e+00> : vector<16xf32>
    %784 = vector.multi_reduction <add>, %783, %cst_484 [1] : vector<16x16xf32> to vector<16xf32>
    %785 = vector.shape_cast %784 : vector<16xf32> to vector<16x1xf32>
    %c0_485 = arith.constant 0 : index
    %c14_486 = arith.constant 14 : index
    %c0_487 = arith.constant 0 : index
    %c0_488 = arith.constant 0 : index
    %786 = vector.load %arg1[%c0_485, %c14_486, %c0_487, %c0_488] : memref<2x16x16x128xf32, #tpu.memory_space<vmem>>, vector<1x1x16x128xf32>
    %787 = vector.shape_cast %786 : vector<1x1x16x128xf32> to vector<16x128xf32>
    %788 = vector.broadcast %98 : vector<1x128xf32> to vector<16x128xf32>
    %789 = arith.mulf %787, %788 : vector<16x128xf32>
    %790 = vector.broadcast %785 : vector<16x1xf32> to vector<16x128xf32>
    %791 = arith.mulf %789, %790 : vector<16x128xf32>
    %c0_489 = arith.constant 0 : index
    %c14_490 = arith.constant 14 : index
    %c0_491 = arith.constant 0 : index
    %c0_492 = arith.constant 0 : index
    %792 = vector.load %arg6[%c0_489, %c14_490, %c0_491, %c0_492] : memref<2x16x16x128xf32, #tpu.memory_space<vmem>>, vector<1x1x16x128xf32>
    %793 = vector.shape_cast %792 : vector<1x1x16x128xf32> to vector<16x128xf32>
    %794 = vector.shape_cast %791 : vector<16x128xf32> to vector<1x1x16x128xf32>
    tpu.vector_store %arg6[%c0_489, %c14_490, %c0_491, %c0_492], %794 {strides = array<i32>} : memref<2x16x16x128xf32, #tpu.memory_space<vmem>>, vector<1x1x16x128xf32>,
    %c15_i32_493 = arith.constant 15 : i32
    %795 = vector.broadcast %c15_i32_493 : i32 to vector<16x16xi32>
    %796 = arith.cmpi eq, %3, %795 : vector<16x16xi32>
    %cst_494 = arith.constant 0.000000e+00 : f32
    %797 = vector.broadcast %cst_494 : f32 to vector<16x16xf32>
    %798 = arith.select %796, %569, %797 : vector<16x16xi1>, vector<16x16xf32>
    %cst_495 = arith.constant dense<0.000000e+00> : vector<16xf32>
    %799 = vector.multi_reduction <add>, %798, %cst_495 [1] : vector<16x16xf32> to vector<16xf32>
    %800 = vector.shape_cast %799 : vector<16xf32> to vector<16x1xf32>
    %c0_496 = arith.constant 0 : index
    %c15_497 = arith.constant 15 : index
    %c0_498 = arith.constant 0 : index
    %c0_499 = arith.constant 0 : index
    %801 = vector.load %arg1[%c0_496, %c15_497, %c0_498, %c0_499] : memref<2x16x16x128xf32, #tpu.memory_space<vmem>>, vector<1x1x16x128xf32>
    %802 = vector.shape_cast %801 : vector<1x1x16x128xf32> to vector<16x128xf32>
    %803 = vector.broadcast %98 : vector<1x128xf32> to vector<16x128xf32>
    %804 = arith.mulf %802, %803 : vector<16x128xf32>
    %805 = vector.broadcast %800 : vector<16x1xf32> to vector<16x128xf32>
    %806 = arith.mulf %804, %805 : vector<16x128xf32>
    %c0_500 = arith.constant 0 : index
    %c15_501 = arith.constant 15 : index
    %c0_502 = arith.constant 0 : index
    %c0_503 = arith.constant 0 : index
    %807 = vector.load %arg6[%c0_500, %c15_501, %c0_502, %c0_503] : memref<2x16x16x128xf32, #tpu.memory_space<vmem>>, vector<1x1x16x128xf32>
    %808 = vector.shape_cast %807 : vector<1x1x16x128xf32> to vector<16x128xf32>
    %809 = vector.shape_cast %806 : vector<16x128xf32> to vector<1x1x16x128xf32>
    tpu.vector_store %arg6[%c0_500, %c15_501, %c0_502, %c0_503], %809 {strides = array<i32>} : memref<2x16x16x128xf32, #tpu.memory_space<vmem>>, vector<1x1x16x128xf32>,
    %cst_504 = arith.constant 0.000000e+00 : f32
    %810 = vector.broadcast %cst_504 : f32 to vector<16x128xf32>
    %cst_505 = arith.constant 0xFF800000 : f32
    %811 = vector.broadcast %cst_505 : f32 to vector<16x128xf32>
    %c1_506 = arith.constant 1 : index
    %c0_507 = arith.constant 0 : index
    %c0_508 = arith.constant 0 : index
    %c0_509 = arith.constant 0 : index
    %812 = vector.load %arg1[%c1_506, %c0_507, %c0_508, %c0_509] : memref<2x16x16x128xf32, #tpu.memory_space<vmem>>, vector<1x1x16x128xf32>
    %813 = vector.shape_cast %812 : vector<1x1x16x128xf32> to vector<16x128xf32>
    %814 = arith.addf %810, %813 : vector<16x128xf32>
    %815 = arith.maximumf %811, %813 : vector<16x128xf32>
    %c1_510 = arith.constant 1 : index
    %c1_511 = arith.constant 1 : index
    %c0_512 = arith.constant 0 : index
    %c0_513 = arith.constant 0 : index
    %816 = vector.load %arg1[%c1_510, %c1_511, %c0_512, %c0_513] : memref<2x16x16x128xf32, #tpu.memory_space<vmem>>, vector<1x1x16x128xf32>
    %817 = vector.shape_cast %816 : vector<1x1x16x128xf32> to vector<16x128xf32>
    %818 = arith.addf %814, %817 : vector<16x128xf32>
    %819 = arith.maximumf %815, %817 : vector<16x128xf32>
    %c1_514 = arith.constant 1 : index
    %c2_515 = arith.constant 2 : index
    %c0_516 = arith.constant 0 : index
    %c0_517 = arith.constant 0 : index
    %820 = vector.load %arg1[%c1_514, %c2_515, %c0_516, %c0_517] : memref<2x16x16x128xf32, #tpu.memory_space<vmem>>, vector<1x1x16x128xf32>
    %821 = vector.shape_cast %820 : vector<1x1x16x128xf32> to vector<16x128xf32>
    %822 = arith.addf %818, %821 : vector<16x128xf32>
    %823 = arith.maximumf %819, %821 : vector<16x128xf32>
    %c1_518 = arith.constant 1 : index
    %c3_519 = arith.constant 3 : index
    %c0_520 = arith.constant 0 : index
    %c0_521 = arith.constant 0 : index
    %824 = vector.load %arg1[%c1_518, %c3_519, %c0_520, %c0_521] : memref<2x16x16x128xf32, #tpu.memory_space<vmem>>, vector<1x1x16x128xf32>
    %825 = vector.shape_cast %824 : vector<1x1x16x128xf32> to vector<16x128xf32>
    %826 = arith.addf %822, %825 : vector<16x128xf32>
    %827 = arith.maximumf %823, %825 : vector<16x128xf32>
    %c1_522 = arith.constant 1 : index
    %c4_523 = arith.constant 4 : index
    %c0_524 = arith.constant 0 : index
    %c0_525 = arith.constant 0 : index
    %828 = vector.load %arg1[%c1_522, %c4_523, %c0_524, %c0_525] : memref<2x16x16x128xf32, #tpu.memory_space<vmem>>, vector<1x1x16x128xf32>
    %829 = vector.shape_cast %828 : vector<1x1x16x128xf32> to vector<16x128xf32>
    %830 = arith.addf %826, %829 : vector<16x128xf32>
    %831 = arith.maximumf %827, %829 : vector<16x128xf32>
    %c1_526 = arith.constant 1 : index
    %c5_527 = arith.constant 5 : index
    %c0_528 = arith.constant 0 : index
    %c0_529 = arith.constant 0 : index
    %832 = vector.load %arg1[%c1_526, %c5_527, %c0_528, %c0_529] : memref<2x16x16x128xf32, #tpu.memory_space<vmem>>, vector<1x1x16x128xf32>
    %833 = vector.shape_cast %832 : vector<1x1x16x128xf32> to vector<16x128xf32>
    %834 = arith.addf %830, %833 : vector<16x128xf32>
    %835 = arith.maximumf %831, %833 : vector<16x128xf32>
    %c1_530 = arith.constant 1 : index
    %c6_531 = arith.constant 6 : index
    %c0_532 = arith.constant 0 : index
    %c0_533 = arith.constant 0 : index
    %836 = vector.load %arg1[%c1_530, %c6_531, %c0_532, %c0_533] : memref<2x16x16x128xf32, #tpu.memory_space<vmem>>, vector<1x1x16x128xf32>
    %837 = vector.shape_cast %836 : vector<1x1x16x128xf32> to vector<16x128xf32>
    %838 = arith.addf %834, %837 : vector<16x128xf32>
    %839 = arith.maximumf %835, %837 : vector<16x128xf32>
    %c1_534 = arith.constant 1 : index
    %c7_535 = arith.constant 7 : index
    %c0_536 = arith.constant 0 : index
    %c0_537 = arith.constant 0 : index
    %840 = vector.load %arg1[%c1_534, %c7_535, %c0_536, %c0_537] : memref<2x16x16x128xf32, #tpu.memory_space<vmem>>, vector<1x1x16x128xf32>
    %841 = vector.shape_cast %840 : vector<1x1x16x128xf32> to vector<16x128xf32>
    %842 = arith.addf %838, %841 : vector<16x128xf32>
    %843 = arith.maximumf %839, %841 : vector<16x128xf32>
    %c1_538 = arith.constant 1 : index
    %c8_539 = arith.constant 8 : index
    %c0_540 = arith.constant 0 : index
    %c0_541 = arith.constant 0 : index
    %844 = vector.load %arg1[%c1_538, %c8_539, %c0_540, %c0_541] : memref<2x16x16x128xf32, #tpu.memory_space<vmem>>, vector<1x1x16x128xf32>
    %845 = vector.shape_cast %844 : vector<1x1x16x128xf32> to vector<16x128xf32>
    %846 = arith.addf %842, %845 : vector<16x128xf32>
    %847 = arith.maximumf %843, %845 : vector<16x128xf32>
    %c1_542 = arith.constant 1 : index
    %c9_543 = arith.constant 9 : index
    %c0_544 = arith.constant 0 : index
    %c0_545 = arith.constant 0 : index
    %848 = vector.load %arg1[%c1_542, %c9_543, %c0_544, %c0_545] : memref<2x16x16x128xf32, #tpu.memory_space<vmem>>, vector<1x1x16x128xf32>
    %849 = vector.shape_cast %848 : vector<1x1x16x128xf32> to vector<16x128xf32>
    %850 = arith.addf %846, %849 : vector<16x128xf32>
    %851 = arith.maximumf %847, %849 : vector<16x128xf32>
    %c1_546 = arith.constant 1 : index
    %c10_547 = arith.constant 10 : index
    %c0_548 = arith.constant 0 : index
    %c0_549 = arith.constant 0 : index
    %852 = vector.load %arg1[%c1_546, %c10_547, %c0_548, %c0_549] : memref<2x16x16x128xf32, #tpu.memory_space<vmem>>, vector<1x1x16x128xf32>
    %853 = vector.shape_cast %852 : vector<1x1x16x128xf32> to vector<16x128xf32>
    %854 = arith.addf %850, %853 : vector<16x128xf32>
    %855 = arith.maximumf %851, %853 : vector<16x128xf32>
    %c1_550 = arith.constant 1 : index
    %c11_551 = arith.constant 11 : index
    %c0_552 = arith.constant 0 : index
    %c0_553 = arith.constant 0 : index
    %856 = vector.load %arg1[%c1_550, %c11_551, %c0_552, %c0_553] : memref<2x16x16x128xf32, #tpu.memory_space<vmem>>, vector<1x1x16x128xf32>
    %857 = vector.shape_cast %856 : vector<1x1x16x128xf32> to vector<16x128xf32>
    %858 = arith.addf %854, %857 : vector<16x128xf32>
    %859 = arith.maximumf %855, %857 : vector<16x128xf32>
    %c1_554 = arith.constant 1 : index
    %c12_555 = arith.constant 12 : index
    %c0_556 = arith.constant 0 : index
    %c0_557 = arith.constant 0 : index
    %860 = vector.load %arg1[%c1_554, %c12_555, %c0_556, %c0_557] : memref<2x16x16x128xf32, #tpu.memory_space<vmem>>, vector<1x1x16x128xf32>
    %861 = vector.shape_cast %860 : vector<1x1x16x128xf32> to vector<16x128xf32>
    %862 = arith.addf %858, %861 : vector<16x128xf32>
    %863 = arith.maximumf %859, %861 : vector<16x128xf32>
    %c1_558 = arith.constant 1 : index
    %c13_559 = arith.constant 13 : index
    %c0_560 = arith.constant 0 : index
    %c0_561 = arith.constant 0 : index
    %864 = vector.load %arg1[%c1_558, %c13_559, %c0_560, %c0_561] : memref<2x16x16x128xf32, #tpu.memory_space<vmem>>, vector<1x1x16x128xf32>
    %865 = vector.shape_cast %864 : vector<1x1x16x128xf32> to vector<16x128xf32>
    %866 = arith.addf %862, %865 : vector<16x128xf32>
    %867 = arith.maximumf %863, %865 : vector<16x128xf32>
    %c1_562 = arith.constant 1 : index
    %c14_563 = arith.constant 14 : index
    %c0_564 = arith.constant 0 : index
    %c0_565 = arith.constant 0 : index
    %868 = vector.load %arg1[%c1_562, %c14_563, %c0_564, %c0_565] : memref<2x16x16x128xf32, #tpu.memory_space<vmem>>, vector<1x1x16x128xf32>
    %869 = vector.shape_cast %868 : vector<1x1x16x128xf32> to vector<16x128xf32>
    %870 = arith.addf %866, %869 : vector<16x128xf32>
    %871 = arith.maximumf %867, %869 : vector<16x128xf32>
    %c1_566 = arith.constant 1 : index
    %c15_567 = arith.constant 15 : index
    %c0_568 = arith.constant 0 : index
    %c0_569 = arith.constant 0 : index
    %872 = vector.load %arg1[%c1_566, %c15_567, %c0_568, %c0_569] : memref<2x16x16x128xf32, #tpu.memory_space<vmem>>, vector<1x1x16x128xf32>
    %873 = vector.shape_cast %872 : vector<1x1x16x128xf32> to vector<16x128xf32>
    %874 = arith.addf %870, %873 : vector<16x128xf32>
    %875 = arith.maximumf %871, %873 : vector<16x128xf32>
    %cst_570 = arith.constant dense<0.000000e+00> : vector<128xf32>
    %876 = vector.multi_reduction <add>, %874, %cst_570 [0] : vector<16x128xf32> to vector<128xf32>
    %877 = vector.shape_cast %876 : vector<128xf32> to vector<1x128xf32>
    %cst_571 = arith.constant 3.906250e-03 : f32
    %878 = vector.broadcast %cst_571 : f32 to vector<1x128xf32>
    %879 = arith.mulf %877, %878 : vector<1x128xf32>
    %cst_572 = arith.constant dense<0xFF800000> : vector<128xf32>
    %880 = vector.multi_reduction <maximumf>, %875, %cst_572 [0] : vector<16x128xf32> to vector<128xf32>
    %881 = vector.shape_cast %880 : vector<128xf32> to vector<1x128xf32>
    %c0_i32_573 = arith.constant 0 : i32
    %882 = vector.broadcast %c0_i32_573 : i32 to vector<2x128xi32>
    %883 = arith.cmpi eq, %2, %882 : vector<2x128xi32>
    %884 = vector.shape_cast %879 : vector<1x128xf32> to vector<1x128xf32>
    %885 = vector.broadcast %884 : vector<1x128xf32> to vector<2x128xf32>
    %886 = vector.shape_cast %881 : vector<1x128xf32> to vector<1x128xf32>
    %887 = vector.broadcast %886 : vector<1x128xf32> to vector<2x128xf32>
    %888 = arith.select %883, %885, %887 : vector<2x128xi1>, vector<2x128xf32>
    %cst_574 = arith.constant dense<0.000000e+00> : vector<2x128xf32>
    %889 = tpu.matmul %888, %0, %cst_574 {dimension_numbers = #tpu.dot_dimension_numbers<[1], [0], [0], [1], [0, 0, 1, 1], [], []>} : vector<2x128xf32>, vector<128x128xf32>, vector<2x128xf32> -> vector<2x128xf32>
    %cst_575 = arith.constant 0.000000e+00 : f32
    %890 = vector.broadcast %cst_575 : f32 to vector<2x128xf32>
    %891 = arith.maximumf %889, %890 : vector<2x128xf32>
    %cst_576 = arith.constant dense<0.000000e+00> : vector<2x128xf32>
    %892 = tpu.matmul %891, %1, %cst_576 {dimension_numbers = #tpu.dot_dimension_numbers<[1], [0], [0], [1], [0, 0, 1, 1], [], []>} : vector<2x128xf32>, vector<128x128xf32>, vector<2x128xf32> -> vector<2x128xf32>
    %cst_577 = arith.constant dense<0.000000e+00> : vector<128xf32>
    %893 = vector.multi_reduction <add>, %892, %cst_577 [0] : vector<2x128xf32> to vector<128xf32>
    %894 = vector.shape_cast %893 : vector<128xf32> to vector<1x128xf32>
    %cst_578 = arith.constant 0.000000e+00 : f32
    %895 = vector.broadcast %cst_578 : f32 to vector<1x128xf32>
    %896 = arith.subf %895, %894 : vector<1x128xf32>
    %897 = math.exp %896 : vector<1x128xf32>
    %cst_579 = arith.constant 1.000000e+00 : f32
    %898 = vector.broadcast %cst_579 : f32 to vector<1x128xf32>
    %899 = arith.addf %898, %897 : vector<1x128xf32>
    %cst_580 = arith.constant 1.000000e+00 : f32
    %900 = vector.broadcast %cst_580 : f32 to vector<1x128xf32>
    %901 = arith.divf %900, %899 : vector<1x128xf32>
    %cst_581 = arith.constant 0.000000e+00 : f32
    %902 = vector.broadcast %cst_581 : f32 to vector<16x16xf32>
    %cst_582 = arith.constant 0.000000e+00 : f32
    %903 = vector.broadcast %cst_582 : f32 to vector<16x16xf32>
    %c1_583 = arith.constant 1 : index
    %c0_584 = arith.constant 0 : index
    %c0_585 = arith.constant 0 : index
    %c0_586 = arith.constant 0 : index
    %904 = vector.load %arg1[%c1_583, %c0_584, %c0_585, %c0_586] : memref<2x16x16x128xf32, #tpu.memory_space<vmem>>, vector<1x1x16x128xf32>
    %905 = vector.shape_cast %904 : vector<1x1x16x128xf32> to vector<16x128xf32>
    %906 = vector.broadcast %901 : vector<1x128xf32> to vector<16x128xf32>
    %907 = arith.mulf %905, %906 : vector<16x128xf32>
    %cst_587 = arith.constant dense<0.000000e+00> : vector<16xf32>
    %908 = vector.multi_reduction <add>, %907, %cst_587 [1] : vector<16x128xf32> to vector<16xf32>
    %909 = vector.shape_cast %908 : vector<16xf32> to vector<16x1xf32>
    %cst_588 = arith.constant 3.125000e-02 : f32
    %910 = vector.broadcast %cst_588 : f32 to vector<16x1xf32>
    %911 = arith.mulf %909, %910 : vector<16x1xf32>
    %cst_589 = arith.constant 0xFF800000 : f32
    %912 = vector.broadcast %cst_589 : f32 to vector<16x128xf32>
    %913 = arith.select %6, %912, %907 : vector<16x128xi1>, vector<16x128xf32>
    %cst_590 = arith.constant dense<0xFF800000> : vector<16xf32>
    %914 = vector.multi_reduction <maximumf>, %913, %cst_590 [1] : vector<16x128xf32> to vector<16xf32>
    %915 = vector.shape_cast %914 : vector<16xf32> to vector<16x1xf32>
    %c0_i32_591 = arith.constant 0 : i32
    %916 = vector.broadcast %c0_i32_591 : i32 to vector<16x16xi32>
    %917 = arith.cmpi eq, %3, %916 : vector<16x16xi32>
    %cst_592 = arith.constant 0.000000e+00 : f32
    %918 = vector.shape_cast %911 : vector<16x1xf32> to vector<16x1xf32>
    %919 = vector.broadcast %918 : vector<16x1xf32> to vector<16x16xf32>
    %920 = vector.broadcast %cst_592 : f32 to vector<16x16xf32>
    %921 = arith.select %917, %919, %920 : vector<16x16xi1>, vector<16x16xf32>
    %922 = arith.addf %902, %921 : vector<16x16xf32>
    %cst_593 = arith.constant 0.000000e+00 : f32
    %923 = vector.shape_cast %915 : vector<16x1xf32> to vector<16x1xf32>
    %924 = vector.broadcast %923 : vector<16x1xf32> to vector<16x16xf32>
    %925 = vector.broadcast %cst_593 : f32 to vector<16x16xf32>
    %926 = arith.select %917, %924, %925 : vector<16x16xi1>, vector<16x16xf32>
    %927 = arith.addf %903, %926 : vector<16x16xf32>
    %c1_594 = arith.constant 1 : index
    %c1_595 = arith.constant 1 : index
    %c0_596 = arith.constant 0 : index
    %c0_597 = arith.constant 0 : index
    %928 = vector.load %arg1[%c1_594, %c1_595, %c0_596, %c0_597] : memref<2x16x16x128xf32, #tpu.memory_space<vmem>>, vector<1x1x16x128xf32>
    %929 = vector.shape_cast %928 : vector<1x1x16x128xf32> to vector<16x128xf32>
    %930 = vector.broadcast %901 : vector<1x128xf32> to vector<16x128xf32>
    %931 = arith.mulf %929, %930 : vector<16x128xf32>
    %cst_598 = arith.constant dense<0.000000e+00> : vector<16xf32>
    %932 = vector.multi_reduction <add>, %931, %cst_598 [1] : vector<16x128xf32> to vector<16xf32>
    %933 = vector.shape_cast %932 : vector<16xf32> to vector<16x1xf32>
    %cst_599 = arith.constant 3.125000e-02 : f32
    %934 = vector.broadcast %cst_599 : f32 to vector<16x1xf32>
    %935 = arith.mulf %933, %934 : vector<16x1xf32>
    %cst_600 = arith.constant 0xFF800000 : f32
    %936 = vector.broadcast %cst_600 : f32 to vector<16x128xf32>
    %937 = arith.select %6, %936, %931 : vector<16x128xi1>, vector<16x128xf32>
    %cst_601 = arith.constant dense<0xFF800000> : vector<16xf32>
    %938 = vector.multi_reduction <maximumf>, %937, %cst_601 [1] : vector<16x128xf32> to vector<16xf32>
    %939 = vector.shape_cast %938 : vector<16xf32> to vector<16x1xf32>
    %c1_i32_602 = arith.constant 1 : i32
    %940 = vector.broadcast %c1_i32_602 : i32 to vector<16x16xi32>
    %941 = arith.cmpi eq, %3, %940 : vector<16x16xi32>
    %cst_603 = arith.constant 0.000000e+00 : f32
    %942 = vector.shape_cast %935 : vector<16x1xf32> to vector<16x1xf32>
    %943 = vector.broadcast %942 : vector<16x1xf32> to vector<16x16xf32>
    %944 = vector.broadcast %cst_603 : f32 to vector<16x16xf32>
    %945 = arith.select %941, %943, %944 : vector<16x16xi1>, vector<16x16xf32>
    %946 = arith.addf %922, %945 : vector<16x16xf32>
    %cst_604 = arith.constant 0.000000e+00 : f32
    %947 = vector.shape_cast %939 : vector<16x1xf32> to vector<16x1xf32>
    %948 = vector.broadcast %947 : vector<16x1xf32> to vector<16x16xf32>
    %949 = vector.broadcast %cst_604 : f32 to vector<16x16xf32>
    %950 = arith.select %941, %948, %949 : vector<16x16xi1>, vector<16x16xf32>
    %951 = arith.addf %927, %950 : vector<16x16xf32>
    %c1_605 = arith.constant 1 : index
    %c2_606 = arith.constant 2 : index
    %c0_607 = arith.constant 0 : index
    %c0_608 = arith.constant 0 : index
    %952 = vector.load %arg1[%c1_605, %c2_606, %c0_607, %c0_608] : memref<2x16x16x128xf32, #tpu.memory_space<vmem>>, vector<1x1x16x128xf32>
    %953 = vector.shape_cast %952 : vector<1x1x16x128xf32> to vector<16x128xf32>
    %954 = vector.broadcast %901 : vector<1x128xf32> to vector<16x128xf32>
    %955 = arith.mulf %953, %954 : vector<16x128xf32>
    %cst_609 = arith.constant dense<0.000000e+00> : vector<16xf32>
    %956 = vector.multi_reduction <add>, %955, %cst_609 [1] : vector<16x128xf32> to vector<16xf32>
    %957 = vector.shape_cast %956 : vector<16xf32> to vector<16x1xf32>
    %cst_610 = arith.constant 3.125000e-02 : f32
    %958 = vector.broadcast %cst_610 : f32 to vector<16x1xf32>
    %959 = arith.mulf %957, %958 : vector<16x1xf32>
    %cst_611 = arith.constant 0xFF800000 : f32
    %960 = vector.broadcast %cst_611 : f32 to vector<16x128xf32>
    %961 = arith.select %6, %960, %955 : vector<16x128xi1>, vector<16x128xf32>
    %cst_612 = arith.constant dense<0xFF800000> : vector<16xf32>
    %962 = vector.multi_reduction <maximumf>, %961, %cst_612 [1] : vector<16x128xf32> to vector<16xf32>
    %963 = vector.shape_cast %962 : vector<16xf32> to vector<16x1xf32>
    %c2_i32_613 = arith.constant 2 : i32
    %964 = vector.broadcast %c2_i32_613 : i32 to vector<16x16xi32>
    %965 = arith.cmpi eq, %3, %964 : vector<16x16xi32>
    %cst_614 = arith.constant 0.000000e+00 : f32
    %966 = vector.shape_cast %959 : vector<16x1xf32> to vector<16x1xf32>
    %967 = vector.broadcast %966 : vector<16x1xf32> to vector<16x16xf32>
    %968 = vector.broadcast %cst_614 : f32 to vector<16x16xf32>
    %969 = arith.select %965, %967, %968 : vector<16x16xi1>, vector<16x16xf32>
    %970 = arith.addf %946, %969 : vector<16x16xf32>
    %cst_615 = arith.constant 0.000000e+00 : f32
    %971 = vector.shape_cast %963 : vector<16x1xf32> to vector<16x1xf32>
    %972 = vector.broadcast %971 : vector<16x1xf32> to vector<16x16xf32>
    %973 = vector.broadcast %cst_615 : f32 to vector<16x16xf32>
    %974 = arith.select %965, %972, %973 : vector<16x16xi1>, vector<16x16xf32>
    %975 = arith.addf %951, %974 : vector<16x16xf32>
    %c1_616 = arith.constant 1 : index
    %c3_617 = arith.constant 3 : index
    %c0_618 = arith.constant 0 : index
    %c0_619 = arith.constant 0 : index
    %976 = vector.load %arg1[%c1_616, %c3_617, %c0_618, %c0_619] : memref<2x16x16x128xf32, #tpu.memory_space<vmem>>, vector<1x1x16x128xf32>
    %977 = vector.shape_cast %976 : vector<1x1x16x128xf32> to vector<16x128xf32>
    %978 = vector.broadcast %901 : vector<1x128xf32> to vector<16x128xf32>
    %979 = arith.mulf %977, %978 : vector<16x128xf32>
    %cst_620 = arith.constant dense<0.000000e+00> : vector<16xf32>
    %980 = vector.multi_reduction <add>, %979, %cst_620 [1] : vector<16x128xf32> to vector<16xf32>
    %981 = vector.shape_cast %980 : vector<16xf32> to vector<16x1xf32>
    %cst_621 = arith.constant 3.125000e-02 : f32
    %982 = vector.broadcast %cst_621 : f32 to vector<16x1xf32>
    %983 = arith.mulf %981, %982 : vector<16x1xf32>
    %cst_622 = arith.constant 0xFF800000 : f32
    %984 = vector.broadcast %cst_622 : f32 to vector<16x128xf32>
    %985 = arith.select %6, %984, %979 : vector<16x128xi1>, vector<16x128xf32>
    %cst_623 = arith.constant dense<0xFF800000> : vector<16xf32>
    %986 = vector.multi_reduction <maximumf>, %985, %cst_623 [1] : vector<16x128xf32> to vector<16xf32>
    %987 = vector.shape_cast %986 : vector<16xf32> to vector<16x1xf32>
    %c3_i32_624 = arith.constant 3 : i32
    %988 = vector.broadcast %c3_i32_624 : i32 to vector<16x16xi32>
    %989 = arith.cmpi eq, %3, %988 : vector<16x16xi32>
    %cst_625 = arith.constant 0.000000e+00 : f32
    %990 = vector.shape_cast %983 : vector<16x1xf32> to vector<16x1xf32>
    %991 = vector.broadcast %990 : vector<16x1xf32> to vector<16x16xf32>
    %992 = vector.broadcast %cst_625 : f32 to vector<16x16xf32>
    %993 = arith.select %989, %991, %992 : vector<16x16xi1>, vector<16x16xf32>
    %994 = arith.addf %970, %993 : vector<16x16xf32>
    %cst_626 = arith.constant 0.000000e+00 : f32
    %995 = vector.shape_cast %987 : vector<16x1xf32> to vector<16x1xf32>
    %996 = vector.broadcast %995 : vector<16x1xf32> to vector<16x16xf32>
    %997 = vector.broadcast %cst_626 : f32 to vector<16x16xf32>
    %998 = arith.select %989, %996, %997 : vector<16x16xi1>, vector<16x16xf32>
    %999 = arith.addf %975, %998 : vector<16x16xf32>
    %c1_627 = arith.constant 1 : index
    %c4_628 = arith.constant 4 : index
    %c0_629 = arith.constant 0 : index
    %c0_630 = arith.constant 0 : index
    %1000 = vector.load %arg1[%c1_627, %c4_628, %c0_629, %c0_630] : memref<2x16x16x128xf32, #tpu.memory_space<vmem>>, vector<1x1x16x128xf32>
    %1001 = vector.shape_cast %1000 : vector<1x1x16x128xf32> to vector<16x128xf32>
    %1002 = vector.broadcast %901 : vector<1x128xf32> to vector<16x128xf32>
    %1003 = arith.mulf %1001, %1002 : vector<16x128xf32>
    %cst_631 = arith.constant dense<0.000000e+00> : vector<16xf32>
    %1004 = vector.multi_reduction <add>, %1003, %cst_631 [1] : vector<16x128xf32> to vector<16xf32>
    %1005 = vector.shape_cast %1004 : vector<16xf32> to vector<16x1xf32>
    %cst_632 = arith.constant 3.125000e-02 : f32
    %1006 = vector.broadcast %cst_632 : f32 to vector<16x1xf32>
    %1007 = arith.mulf %1005, %1006 : vector<16x1xf32>
    %cst_633 = arith.constant 0xFF800000 : f32
    %1008 = vector.broadcast %cst_633 : f32 to vector<16x128xf32>
    %1009 = arith.select %6, %1008, %1003 : vector<16x128xi1>, vector<16x128xf32>
    %cst_634 = arith.constant dense<0xFF800000> : vector<16xf32>
    %1010 = vector.multi_reduction <maximumf>, %1009, %cst_634 [1] : vector<16x128xf32> to vector<16xf32>
    %1011 = vector.shape_cast %1010 : vector<16xf32> to vector<16x1xf32>
    %c4_i32_635 = arith.constant 4 : i32
    %1012 = vector.broadcast %c4_i32_635 : i32 to vector<16x16xi32>
    %1013 = arith.cmpi eq, %3, %1012 : vector<16x16xi32>
    %cst_636 = arith.constant 0.000000e+00 : f32
    %1014 = vector.shape_cast %1007 : vector<16x1xf32> to vector<16x1xf32>
    %1015 = vector.broadcast %1014 : vector<16x1xf32> to vector<16x16xf32>
    %1016 = vector.broadcast %cst_636 : f32 to vector<16x16xf32>
    %1017 = arith.select %1013, %1015, %1016 : vector<16x16xi1>, vector<16x16xf32>
    %1018 = arith.addf %994, %1017 : vector<16x16xf32>
    %cst_637 = arith.constant 0.000000e+00 : f32
    %1019 = vector.shape_cast %1011 : vector<16x1xf32> to vector<16x1xf32>
    %1020 = vector.broadcast %1019 : vector<16x1xf32> to vector<16x16xf32>
    %1021 = vector.broadcast %cst_637 : f32 to vector<16x16xf32>
    %1022 = arith.select %1013, %1020, %1021 : vector<16x16xi1>, vector<16x16xf32>
    %1023 = arith.addf %999, %1022 : vector<16x16xf32>
    %c1_638 = arith.constant 1 : index
    %c5_639 = arith.constant 5 : index
    %c0_640 = arith.constant 0 : index
    %c0_641 = arith.constant 0 : index
    %1024 = vector.load %arg1[%c1_638, %c5_639, %c0_640, %c0_641] : memref<2x16x16x128xf32, #tpu.memory_space<vmem>>, vector<1x1x16x128xf32>
    %1025 = vector.shape_cast %1024 : vector<1x1x16x128xf32> to vector<16x128xf32>
    %1026 = vector.broadcast %901 : vector<1x128xf32> to vector<16x128xf32>
    %1027 = arith.mulf %1025, %1026 : vector<16x128xf32>
    %cst_642 = arith.constant dense<0.000000e+00> : vector<16xf32>
    %1028 = vector.multi_reduction <add>, %1027, %cst_642 [1] : vector<16x128xf32> to vector<16xf32>
    %1029 = vector.shape_cast %1028 : vector<16xf32> to vector<16x1xf32>
    %cst_643 = arith.constant 3.125000e-02 : f32
    %1030 = vector.broadcast %cst_643 : f32 to vector<16x1xf32>
    %1031 = arith.mulf %1029, %1030 : vector<16x1xf32>
    %cst_644 = arith.constant 0xFF800000 : f32
    %1032 = vector.broadcast %cst_644 : f32 to vector<16x128xf32>
    %1033 = arith.select %6, %1032, %1027 : vector<16x128xi1>, vector<16x128xf32>
    %cst_645 = arith.constant dense<0xFF800000> : vector<16xf32>
    %1034 = vector.multi_reduction <maximumf>, %1033, %cst_645 [1] : vector<16x128xf32> to vector<16xf32>
    %1035 = vector.shape_cast %1034 : vector<16xf32> to vector<16x1xf32>
    %c5_i32_646 = arith.constant 5 : i32
    %1036 = vector.broadcast %c5_i32_646 : i32 to vector<16x16xi32>
    %1037 = arith.cmpi eq, %3, %1036 : vector<16x16xi32>
    %cst_647 = arith.constant 0.000000e+00 : f32
    %1038 = vector.shape_cast %1031 : vector<16x1xf32> to vector<16x1xf32>
    %1039 = vector.broadcast %1038 : vector<16x1xf32> to vector<16x16xf32>
    %1040 = vector.broadcast %cst_647 : f32 to vector<16x16xf32>
    %1041 = arith.select %1037, %1039, %1040 : vector<16x16xi1>, vector<16x16xf32>
    %1042 = arith.addf %1018, %1041 : vector<16x16xf32>
    %cst_648 = arith.constant 0.000000e+00 : f32
    %1043 = vector.shape_cast %1035 : vector<16x1xf32> to vector<16x1xf32>
    %1044 = vector.broadcast %1043 : vector<16x1xf32> to vector<16x16xf32>
    %1045 = vector.broadcast %cst_648 : f32 to vector<16x16xf32>
    %1046 = arith.select %1037, %1044, %1045 : vector<16x16xi1>, vector<16x16xf32>
    %1047 = arith.addf %1023, %1046 : vector<16x16xf32>
    %c1_649 = arith.constant 1 : index
    %c6_650 = arith.constant 6 : index
    %c0_651 = arith.constant 0 : index
    %c0_652 = arith.constant 0 : index
    %1048 = vector.load %arg1[%c1_649, %c6_650, %c0_651, %c0_652] : memref<2x16x16x128xf32, #tpu.memory_space<vmem>>, vector<1x1x16x128xf32>
    %1049 = vector.shape_cast %1048 : vector<1x1x16x128xf32> to vector<16x128xf32>
    %1050 = vector.broadcast %901 : vector<1x128xf32> to vector<16x128xf32>
    %1051 = arith.mulf %1049, %1050 : vector<16x128xf32>
    %cst_653 = arith.constant dense<0.000000e+00> : vector<16xf32>
    %1052 = vector.multi_reduction <add>, %1051, %cst_653 [1] : vector<16x128xf32> to vector<16xf32>
    %1053 = vector.shape_cast %1052 : vector<16xf32> to vector<16x1xf32>
    %cst_654 = arith.constant 3.125000e-02 : f32
    %1054 = vector.broadcast %cst_654 : f32 to vector<16x1xf32>
    %1055 = arith.mulf %1053, %1054 : vector<16x1xf32>
    %cst_655 = arith.constant 0xFF800000 : f32
    %1056 = vector.broadcast %cst_655 : f32 to vector<16x128xf32>
    %1057 = arith.select %6, %1056, %1051 : vector<16x128xi1>, vector<16x128xf32>
    %cst_656 = arith.constant dense<0xFF800000> : vector<16xf32>
    %1058 = vector.multi_reduction <maximumf>, %1057, %cst_656 [1] : vector<16x128xf32> to vector<16xf32>
    %1059 = vector.shape_cast %1058 : vector<16xf32> to vector<16x1xf32>
    %c6_i32_657 = arith.constant 6 : i32
    %1060 = vector.broadcast %c6_i32_657 : i32 to vector<16x16xi32>
    %1061 = arith.cmpi eq, %3, %1060 : vector<16x16xi32>
    %cst_658 = arith.constant 0.000000e+00 : f32
    %1062 = vector.shape_cast %1055 : vector<16x1xf32> to vector<16x1xf32>
    %1063 = vector.broadcast %1062 : vector<16x1xf32> to vector<16x16xf32>
    %1064 = vector.broadcast %cst_658 : f32 to vector<16x16xf32>
    %1065 = arith.select %1061, %1063, %1064 : vector<16x16xi1>, vector<16x16xf32>
    %1066 = arith.addf %1042, %1065 : vector<16x16xf32>
    %cst_659 = arith.constant 0.000000e+00 : f32
    %1067 = vector.shape_cast %1059 : vector<16x1xf32> to vector<16x1xf32>
    %1068 = vector.broadcast %1067 : vector<16x1xf32> to vector<16x16xf32>
    %1069 = vector.broadcast %cst_659 : f32 to vector<16x16xf32>
    %1070 = arith.select %1061, %1068, %1069 : vector<16x16xi1>, vector<16x16xf32>
    %1071 = arith.addf %1047, %1070 : vector<16x16xf32>
    %c1_660 = arith.constant 1 : index
    %c7_661 = arith.constant 7 : index
    %c0_662 = arith.constant 0 : index
    %c0_663 = arith.constant 0 : index
    %1072 = vector.load %arg1[%c1_660, %c7_661, %c0_662, %c0_663] : memref<2x16x16x128xf32, #tpu.memory_space<vmem>>, vector<1x1x16x128xf32>
    %1073 = vector.shape_cast %1072 : vector<1x1x16x128xf32> to vector<16x128xf32>
    %1074 = vector.broadcast %901 : vector<1x128xf32> to vector<16x128xf32>
    %1075 = arith.mulf %1073, %1074 : vector<16x128xf32>
    %cst_664 = arith.constant dense<0.000000e+00> : vector<16xf32>
    %1076 = vector.multi_reduction <add>, %1075, %cst_664 [1] : vector<16x128xf32> to vector<16xf32>
    %1077 = vector.shape_cast %1076 : vector<16xf32> to vector<16x1xf32>
    %cst_665 = arith.constant 3.125000e-02 : f32
    %1078 = vector.broadcast %cst_665 : f32 to vector<16x1xf32>
    %1079 = arith.mulf %1077, %1078 : vector<16x1xf32>
    %cst_666 = arith.constant 0xFF800000 : f32
    %1080 = vector.broadcast %cst_666 : f32 to vector<16x128xf32>
    %1081 = arith.select %6, %1080, %1075 : vector<16x128xi1>, vector<16x128xf32>
    %cst_667 = arith.constant dense<0xFF800000> : vector<16xf32>
    %1082 = vector.multi_reduction <maximumf>, %1081, %cst_667 [1] : vector<16x128xf32> to vector<16xf32>
    %1083 = vector.shape_cast %1082 : vector<16xf32> to vector<16x1xf32>
    %c7_i32_668 = arith.constant 7 : i32
    %1084 = vector.broadcast %c7_i32_668 : i32 to vector<16x16xi32>
    %1085 = arith.cmpi eq, %3, %1084 : vector<16x16xi32>
    %cst_669 = arith.constant 0.000000e+00 : f32
    %1086 = vector.shape_cast %1079 : vector<16x1xf32> to vector<16x1xf32>
    %1087 = vector.broadcast %1086 : vector<16x1xf32> to vector<16x16xf32>
    %1088 = vector.broadcast %cst_669 : f32 to vector<16x16xf32>
    %1089 = arith.select %1085, %1087, %1088 : vector<16x16xi1>, vector<16x16xf32>
    %1090 = arith.addf %1066, %1089 : vector<16x16xf32>
    %cst_670 = arith.constant 0.000000e+00 : f32
    %1091 = vector.shape_cast %1083 : vector<16x1xf32> to vector<16x1xf32>
    %1092 = vector.broadcast %1091 : vector<16x1xf32> to vector<16x16xf32>
    %1093 = vector.broadcast %cst_670 : f32 to vector<16x16xf32>
    %1094 = arith.select %1085, %1092, %1093 : vector<16x16xi1>, vector<16x16xf32>
    %1095 = arith.addf %1071, %1094 : vector<16x16xf32>
    %c1_671 = arith.constant 1 : index
    %c8_672 = arith.constant 8 : index
    %c0_673 = arith.constant 0 : index
    %c0_674 = arith.constant 0 : index
    %1096 = vector.load %arg1[%c1_671, %c8_672, %c0_673, %c0_674] : memref<2x16x16x128xf32, #tpu.memory_space<vmem>>, vector<1x1x16x128xf32>
    %1097 = vector.shape_cast %1096 : vector<1x1x16x128xf32> to vector<16x128xf32>
    %1098 = vector.broadcast %901 : vector<1x128xf32> to vector<16x128xf32>
    %1099 = arith.mulf %1097, %1098 : vector<16x128xf32>
    %cst_675 = arith.constant dense<0.000000e+00> : vector<16xf32>
    %1100 = vector.multi_reduction <add>, %1099, %cst_675 [1] : vector<16x128xf32> to vector<16xf32>
    %1101 = vector.shape_cast %1100 : vector<16xf32> to vector<16x1xf32>
    %cst_676 = arith.constant 3.125000e-02 : f32
    %1102 = vector.broadcast %cst_676 : f32 to vector<16x1xf32>
    %1103 = arith.mulf %1101, %1102 : vector<16x1xf32>
    %cst_677 = arith.constant 0xFF800000 : f32
    %1104 = vector.broadcast %cst_677 : f32 to vector<16x128xf32>
    %1105 = arith.select %6, %1104, %1099 : vector<16x128xi1>, vector<16x128xf32>
    %cst_678 = arith.constant dense<0xFF800000> : vector<16xf32>
    %1106 = vector.multi_reduction <maximumf>, %1105, %cst_678 [1] : vector<16x128xf32> to vector<16xf32>
    %1107 = vector.shape_cast %1106 : vector<16xf32> to vector<16x1xf32>
    %c8_i32_679 = arith.constant 8 : i32
    %1108 = vector.broadcast %c8_i32_679 : i32 to vector<16x16xi32>
    %1109 = arith.cmpi eq, %3, %1108 : vector<16x16xi32>
    %cst_680 = arith.constant 0.000000e+00 : f32
    %1110 = vector.shape_cast %1103 : vector<16x1xf32> to vector<16x1xf32>
    %1111 = vector.broadcast %1110 : vector<16x1xf32> to vector<16x16xf32>
    %1112 = vector.broadcast %cst_680 : f32 to vector<16x16xf32>
    %1113 = arith.select %1109, %1111, %1112 : vector<16x16xi1>, vector<16x16xf32>
    %1114 = arith.addf %1090, %1113 : vector<16x16xf32>
    %cst_681 = arith.constant 0.000000e+00 : f32
    %1115 = vector.shape_cast %1107 : vector<16x1xf32> to vector<16x1xf32>
    %1116 = vector.broadcast %1115 : vector<16x1xf32> to vector<16x16xf32>
    %1117 = vector.broadcast %cst_681 : f32 to vector<16x16xf32>
    %1118 = arith.select %1109, %1116, %1117 : vector<16x16xi1>, vector<16x16xf32>
    %1119 = arith.addf %1095, %1118 : vector<16x16xf32>
    %c1_682 = arith.constant 1 : index
    %c9_683 = arith.constant 9 : index
    %c0_684 = arith.constant 0 : index
    %c0_685 = arith.constant 0 : index
    %1120 = vector.load %arg1[%c1_682, %c9_683, %c0_684, %c0_685] : memref<2x16x16x128xf32, #tpu.memory_space<vmem>>, vector<1x1x16x128xf32>
    %1121 = vector.shape_cast %1120 : vector<1x1x16x128xf32> to vector<16x128xf32>
    %1122 = vector.broadcast %901 : vector<1x128xf32> to vector<16x128xf32>
    %1123 = arith.mulf %1121, %1122 : vector<16x128xf32>
    %cst_686 = arith.constant dense<0.000000e+00> : vector<16xf32>
    %1124 = vector.multi_reduction <add>, %1123, %cst_686 [1] : vector<16x128xf32> to vector<16xf32>
    %1125 = vector.shape_cast %1124 : vector<16xf32> to vector<16x1xf32>
    %cst_687 = arith.constant 3.125000e-02 : f32
    %1126 = vector.broadcast %cst_687 : f32 to vector<16x1xf32>
    %1127 = arith.mulf %1125, %1126 : vector<16x1xf32>
    %cst_688 = arith.constant 0xFF800000 : f32
    %1128 = vector.broadcast %cst_688 : f32 to vector<16x128xf32>
    %1129 = arith.select %6, %1128, %1123 : vector<16x128xi1>, vector<16x128xf32>
    %cst_689 = arith.constant dense<0xFF800000> : vector<16xf32>
    %1130 = vector.multi_reduction <maximumf>, %1129, %cst_689 [1] : vector<16x128xf32> to vector<16xf32>
    %1131 = vector.shape_cast %1130 : vector<16xf32> to vector<16x1xf32>
    %c9_i32_690 = arith.constant 9 : i32
    %1132 = vector.broadcast %c9_i32_690 : i32 to vector<16x16xi32>
    %1133 = arith.cmpi eq, %3, %1132 : vector<16x16xi32>
    %cst_691 = arith.constant 0.000000e+00 : f32
    %1134 = vector.shape_cast %1127 : vector<16x1xf32> to vector<16x1xf32>
    %1135 = vector.broadcast %1134 : vector<16x1xf32> to vector<16x16xf32>
    %1136 = vector.broadcast %cst_691 : f32 to vector<16x16xf32>
    %1137 = arith.select %1133, %1135, %1136 : vector<16x16xi1>, vector<16x16xf32>
    %1138 = arith.addf %1114, %1137 : vector<16x16xf32>
    %cst_692 = arith.constant 0.000000e+00 : f32
    %1139 = vector.shape_cast %1131 : vector<16x1xf32> to vector<16x1xf32>
    %1140 = vector.broadcast %1139 : vector<16x1xf32> to vector<16x16xf32>
    %1141 = vector.broadcast %cst_692 : f32 to vector<16x16xf32>
    %1142 = arith.select %1133, %1140, %1141 : vector<16x16xi1>, vector<16x16xf32>
    %1143 = arith.addf %1119, %1142 : vector<16x16xf32>
    %c1_693 = arith.constant 1 : index
    %c10_694 = arith.constant 10 : index
    %c0_695 = arith.constant 0 : index
    %c0_696 = arith.constant 0 : index
    %1144 = vector.load %arg1[%c1_693, %c10_694, %c0_695, %c0_696] : memref<2x16x16x128xf32, #tpu.memory_space<vmem>>, vector<1x1x16x128xf32>
    %1145 = vector.shape_cast %1144 : vector<1x1x16x128xf32> to vector<16x128xf32>
    %1146 = vector.broadcast %901 : vector<1x128xf32> to vector<16x128xf32>
    %1147 = arith.mulf %1145, %1146 : vector<16x128xf32>
    %cst_697 = arith.constant dense<0.000000e+00> : vector<16xf32>
    %1148 = vector.multi_reduction <add>, %1147, %cst_697 [1] : vector<16x128xf32> to vector<16xf32>
    %1149 = vector.shape_cast %1148 : vector<16xf32> to vector<16x1xf32>
    %cst_698 = arith.constant 3.125000e-02 : f32
    %1150 = vector.broadcast %cst_698 : f32 to vector<16x1xf32>
    %1151 = arith.mulf %1149, %1150 : vector<16x1xf32>
    %cst_699 = arith.constant 0xFF800000 : f32
    %1152 = vector.broadcast %cst_699 : f32 to vector<16x128xf32>
    %1153 = arith.select %6, %1152, %1147 : vector<16x128xi1>, vector<16x128xf32>
    %cst_700 = arith.constant dense<0xFF800000> : vector<16xf32>
    %1154 = vector.multi_reduction <maximumf>, %1153, %cst_700 [1] : vector<16x128xf32> to vector<16xf32>
    %1155 = vector.shape_cast %1154 : vector<16xf32> to vector<16x1xf32>
    %c10_i32_701 = arith.constant 10 : i32
    %1156 = vector.broadcast %c10_i32_701 : i32 to vector<16x16xi32>
    %1157 = arith.cmpi eq, %3, %1156 : vector<16x16xi32>
    %cst_702 = arith.constant 0.000000e+00 : f32
    %1158 = vector.shape_cast %1151 : vector<16x1xf32> to vector<16x1xf32>
    %1159 = vector.broadcast %1158 : vector<16x1xf32> to vector<16x16xf32>
    %1160 = vector.broadcast %cst_702 : f32 to vector<16x16xf32>
    %1161 = arith.select %1157, %1159, %1160 : vector<16x16xi1>, vector<16x16xf32>
    %1162 = arith.addf %1138, %1161 : vector<16x16xf32>
    %cst_703 = arith.constant 0.000000e+00 : f32
    %1163 = vector.shape_cast %1155 : vector<16x1xf32> to vector<16x1xf32>
    %1164 = vector.broadcast %1163 : vector<16x1xf32> to vector<16x16xf32>
    %1165 = vector.broadcast %cst_703 : f32 to vector<16x16xf32>
    %1166 = arith.select %1157, %1164, %1165 : vector<16x16xi1>, vector<16x16xf32>
    %1167 = arith.addf %1143, %1166 : vector<16x16xf32>
    %c1_704 = arith.constant 1 : index
    %c11_705 = arith.constant 11 : index
    %c0_706 = arith.constant 0 : index
    %c0_707 = arith.constant 0 : index
    %1168 = vector.load %arg1[%c1_704, %c11_705, %c0_706, %c0_707] : memref<2x16x16x128xf32, #tpu.memory_space<vmem>>, vector<1x1x16x128xf32>
    %1169 = vector.shape_cast %1168 : vector<1x1x16x128xf32> to vector<16x128xf32>
    %1170 = vector.broadcast %901 : vector<1x128xf32> to vector<16x128xf32>
    %1171 = arith.mulf %1169, %1170 : vector<16x128xf32>
    %cst_708 = arith.constant dense<0.000000e+00> : vector<16xf32>
    %1172 = vector.multi_reduction <add>, %1171, %cst_708 [1] : vector<16x128xf32> to vector<16xf32>
    %1173 = vector.shape_cast %1172 : vector<16xf32> to vector<16x1xf32>
    %cst_709 = arith.constant 3.125000e-02 : f32
    %1174 = vector.broadcast %cst_709 : f32 to vector<16x1xf32>
    %1175 = arith.mulf %1173, %1174 : vector<16x1xf32>
    %cst_710 = arith.constant 0xFF800000 : f32
    %1176 = vector.broadcast %cst_710 : f32 to vector<16x128xf32>
    %1177 = arith.select %6, %1176, %1171 : vector<16x128xi1>, vector<16x128xf32>
    %cst_711 = arith.constant dense<0xFF800000> : vector<16xf32>
    %1178 = vector.multi_reduction <maximumf>, %1177, %cst_711 [1] : vector<16x128xf32> to vector<16xf32>
    %1179 = vector.shape_cast %1178 : vector<16xf32> to vector<16x1xf32>
    %c11_i32_712 = arith.constant 11 : i32
    %1180 = vector.broadcast %c11_i32_712 : i32 to vector<16x16xi32>
    %1181 = arith.cmpi eq, %3, %1180 : vector<16x16xi32>
    %cst_713 = arith.constant 0.000000e+00 : f32
    %1182 = vector.shape_cast %1175 : vector<16x1xf32> to vector<16x1xf32>
    %1183 = vector.broadcast %1182 : vector<16x1xf32> to vector<16x16xf32>
    %1184 = vector.broadcast %cst_713 : f32 to vector<16x16xf32>
    %1185 = arith.select %1181, %1183, %1184 : vector<16x16xi1>, vector<16x16xf32>
    %1186 = arith.addf %1162, %1185 : vector<16x16xf32>
    %cst_714 = arith.constant 0.000000e+00 : f32
    %1187 = vector.shape_cast %1179 : vector<16x1xf32> to vector<16x1xf32>
    %1188 = vector.broadcast %1187 : vector<16x1xf32> to vector<16x16xf32>
    %1189 = vector.broadcast %cst_714 : f32 to vector<16x16xf32>
    %1190 = arith.select %1181, %1188, %1189 : vector<16x16xi1>, vector<16x16xf32>
    %1191 = arith.addf %1167, %1190 : vector<16x16xf32>
    %c1_715 = arith.constant 1 : index
    %c12_716 = arith.constant 12 : index
    %c0_717 = arith.constant 0 : index
    %c0_718 = arith.constant 0 : index
    %1192 = vector.load %arg1[%c1_715, %c12_716, %c0_717, %c0_718] : memref<2x16x16x128xf32, #tpu.memory_space<vmem>>, vector<1x1x16x128xf32>
    %1193 = vector.shape_cast %1192 : vector<1x1x16x128xf32> to vector<16x128xf32>
    %1194 = vector.broadcast %901 : vector<1x128xf32> to vector<16x128xf32>
    %1195 = arith.mulf %1193, %1194 : vector<16x128xf32>
    %cst_719 = arith.constant dense<0.000000e+00> : vector<16xf32>
    %1196 = vector.multi_reduction <add>, %1195, %cst_719 [1] : vector<16x128xf32> to vector<16xf32>
    %1197 = vector.shape_cast %1196 : vector<16xf32> to vector<16x1xf32>
    %cst_720 = arith.constant 3.125000e-02 : f32
    %1198 = vector.broadcast %cst_720 : f32 to vector<16x1xf32>
    %1199 = arith.mulf %1197, %1198 : vector<16x1xf32>
    %cst_721 = arith.constant 0xFF800000 : f32
    %1200 = vector.broadcast %cst_721 : f32 to vector<16x128xf32>
    %1201 = arith.select %6, %1200, %1195 : vector<16x128xi1>, vector<16x128xf32>
    %cst_722 = arith.constant dense<0xFF800000> : vector<16xf32>
    %1202 = vector.multi_reduction <maximumf>, %1201, %cst_722 [1] : vector<16x128xf32> to vector<16xf32>
    %1203 = vector.shape_cast %1202 : vector<16xf32> to vector<16x1xf32>
    %c12_i32_723 = arith.constant 12 : i32
    %1204 = vector.broadcast %c12_i32_723 : i32 to vector<16x16xi32>
    %1205 = arith.cmpi eq, %3, %1204 : vector<16x16xi32>
    %cst_724 = arith.constant 0.000000e+00 : f32
    %1206 = vector.shape_cast %1199 : vector<16x1xf32> to vector<16x1xf32>
    %1207 = vector.broadcast %1206 : vector<16x1xf32> to vector<16x16xf32>
    %1208 = vector.broadcast %cst_724 : f32 to vector<16x16xf32>
    %1209 = arith.select %1205, %1207, %1208 : vector<16x16xi1>, vector<16x16xf32>
    %1210 = arith.addf %1186, %1209 : vector<16x16xf32>
    %cst_725 = arith.constant 0.000000e+00 : f32
    %1211 = vector.shape_cast %1203 : vector<16x1xf32> to vector<16x1xf32>
    %1212 = vector.broadcast %1211 : vector<16x1xf32> to vector<16x16xf32>
    %1213 = vector.broadcast %cst_725 : f32 to vector<16x16xf32>
    %1214 = arith.select %1205, %1212, %1213 : vector<16x16xi1>, vector<16x16xf32>
    %1215 = arith.addf %1191, %1214 : vector<16x16xf32>
    %c1_726 = arith.constant 1 : index
    %c13_727 = arith.constant 13 : index
    %c0_728 = arith.constant 0 : index
    %c0_729 = arith.constant 0 : index
    %1216 = vector.load %arg1[%c1_726, %c13_727, %c0_728, %c0_729] : memref<2x16x16x128xf32, #tpu.memory_space<vmem>>, vector<1x1x16x128xf32>
    %1217 = vector.shape_cast %1216 : vector<1x1x16x128xf32> to vector<16x128xf32>
    %1218 = vector.broadcast %901 : vector<1x128xf32> to vector<16x128xf32>
    %1219 = arith.mulf %1217, %1218 : vector<16x128xf32>
    %cst_730 = arith.constant dense<0.000000e+00> : vector<16xf32>
    %1220 = vector.multi_reduction <add>, %1219, %cst_730 [1] : vector<16x128xf32> to vector<16xf32>
    %1221 = vector.shape_cast %1220 : vector<16xf32> to vector<16x1xf32>
    %cst_731 = arith.constant 3.125000e-02 : f32
    %1222 = vector.broadcast %cst_731 : f32 to vector<16x1xf32>
    %1223 = arith.mulf %1221, %1222 : vector<16x1xf32>
    %cst_732 = arith.constant 0xFF800000 : f32
    %1224 = vector.broadcast %cst_732 : f32 to vector<16x128xf32>
    %1225 = arith.select %6, %1224, %1219 : vector<16x128xi1>, vector<16x128xf32>
    %cst_733 = arith.constant dense<0xFF800000> : vector<16xf32>
    %1226 = vector.multi_reduction <maximumf>, %1225, %cst_733 [1] : vector<16x128xf32> to vector<16xf32>
    %1227 = vector.shape_cast %1226 : vector<16xf32> to vector<16x1xf32>
    %c13_i32_734 = arith.constant 13 : i32
    %1228 = vector.broadcast %c13_i32_734 : i32 to vector<16x16xi32>
    %1229 = arith.cmpi eq, %3, %1228 : vector<16x16xi32>
    %cst_735 = arith.constant 0.000000e+00 : f32
    %1230 = vector.shape_cast %1223 : vector<16x1xf32> to vector<16x1xf32>
    %1231 = vector.broadcast %1230 : vector<16x1xf32> to vector<16x16xf32>
    %1232 = vector.broadcast %cst_735 : f32 to vector<16x16xf32>
    %1233 = arith.select %1229, %1231, %1232 : vector<16x16xi1>, vector<16x16xf32>
    %1234 = arith.addf %1210, %1233 : vector<16x16xf32>
    %cst_736 = arith.constant 0.000000e+00 : f32
    %1235 = vector.shape_cast %1227 : vector<16x1xf32> to vector<16x1xf32>
    %1236 = vector.broadcast %1235 : vector<16x1xf32> to vector<16x16xf32>
    %1237 = vector.broadcast %cst_736 : f32 to vector<16x16xf32>
    %1238 = arith.select %1229, %1236, %1237 : vector<16x16xi1>, vector<16x16xf32>
    %1239 = arith.addf %1215, %1238 : vector<16x16xf32>
    %c1_737 = arith.constant 1 : index
    %c14_738 = arith.constant 14 : index
    %c0_739 = arith.constant 0 : index
    %c0_740 = arith.constant 0 : index
    %1240 = vector.load %arg1[%c1_737, %c14_738, %c0_739, %c0_740] : memref<2x16x16x128xf32, #tpu.memory_space<vmem>>, vector<1x1x16x128xf32>
    %1241 = vector.shape_cast %1240 : vector<1x1x16x128xf32> to vector<16x128xf32>
    %1242 = vector.broadcast %901 : vector<1x128xf32> to vector<16x128xf32>
    %1243 = arith.mulf %1241, %1242 : vector<16x128xf32>
    %cst_741 = arith.constant dense<0.000000e+00> : vector<16xf32>
    %1244 = vector.multi_reduction <add>, %1243, %cst_741 [1] : vector<16x128xf32> to vector<16xf32>
    %1245 = vector.shape_cast %1244 : vector<16xf32> to vector<16x1xf32>
    %cst_742 = arith.constant 3.125000e-02 : f32
    %1246 = vector.broadcast %cst_742 : f32 to vector<16x1xf32>
    %1247 = arith.mulf %1245, %1246 : vector<16x1xf32>
    %cst_743 = arith.constant 0xFF800000 : f32
    %1248 = vector.broadcast %cst_743 : f32 to vector<16x128xf32>
    %1249 = arith.select %6, %1248, %1243 : vector<16x128xi1>, vector<16x128xf32>
    %cst_744 = arith.constant dense<0xFF800000> : vector<16xf32>
    %1250 = vector.multi_reduction <maximumf>, %1249, %cst_744 [1] : vector<16x128xf32> to vector<16xf32>
    %1251 = vector.shape_cast %1250 : vector<16xf32> to vector<16x1xf32>
    %c14_i32_745 = arith.constant 14 : i32
    %1252 = vector.broadcast %c14_i32_745 : i32 to vector<16x16xi32>
    %1253 = arith.cmpi eq, %3, %1252 : vector<16x16xi32>
    %cst_746 = arith.constant 0.000000e+00 : f32
    %1254 = vector.shape_cast %1247 : vector<16x1xf32> to vector<16x1xf32>
    %1255 = vector.broadcast %1254 : vector<16x1xf32> to vector<16x16xf32>
    %1256 = vector.broadcast %cst_746 : f32 to vector<16x16xf32>
    %1257 = arith.select %1253, %1255, %1256 : vector<16x16xi1>, vector<16x16xf32>
    %1258 = arith.addf %1234, %1257 : vector<16x16xf32>
    %cst_747 = arith.constant 0.000000e+00 : f32
    %1259 = vector.shape_cast %1251 : vector<16x1xf32> to vector<16x1xf32>
    %1260 = vector.broadcast %1259 : vector<16x1xf32> to vector<16x16xf32>
    %1261 = vector.broadcast %cst_747 : f32 to vector<16x16xf32>
    %1262 = arith.select %1253, %1260, %1261 : vector<16x16xi1>, vector<16x16xf32>
    %1263 = arith.addf %1239, %1262 : vector<16x16xf32>
    %c1_748 = arith.constant 1 : index
    %c15_749 = arith.constant 15 : index
    %c0_750 = arith.constant 0 : index
    %c0_751 = arith.constant 0 : index
    %1264 = vector.load %arg1[%c1_748, %c15_749, %c0_750, %c0_751] : memref<2x16x16x128xf32, #tpu.memory_space<vmem>>, vector<1x1x16x128xf32>
    %1265 = vector.shape_cast %1264 : vector<1x1x16x128xf32> to vector<16x128xf32>
    %1266 = vector.broadcast %901 : vector<1x128xf32> to vector<16x128xf32>
    %1267 = arith.mulf %1265, %1266 : vector<16x128xf32>
    %cst_752 = arith.constant dense<0.000000e+00> : vector<16xf32>
    %1268 = vector.multi_reduction <add>, %1267, %cst_752 [1] : vector<16x128xf32> to vector<16xf32>
    %1269 = vector.shape_cast %1268 : vector<16xf32> to vector<16x1xf32>
    %cst_753 = arith.constant 3.125000e-02 : f32
    %1270 = vector.broadcast %cst_753 : f32 to vector<16x1xf32>
    %1271 = arith.mulf %1269, %1270 : vector<16x1xf32>
    %cst_754 = arith.constant 0xFF800000 : f32
    %1272 = vector.broadcast %cst_754 : f32 to vector<16x128xf32>
    %1273 = arith.select %6, %1272, %1267 : vector<16x128xi1>, vector<16x128xf32>
    %cst_755 = arith.constant dense<0xFF800000> : vector<16xf32>
    %1274 = vector.multi_reduction <maximumf>, %1273, %cst_755 [1] : vector<16x128xf32> to vector<16xf32>
    %1275 = vector.shape_cast %1274 : vector<16xf32> to vector<16x1xf32>
    %c15_i32_756 = arith.constant 15 : i32
    %1276 = vector.broadcast %c15_i32_756 : i32 to vector<16x16xi32>
    %1277 = arith.cmpi eq, %3, %1276 : vector<16x16xi32>
    %cst_757 = arith.constant 0.000000e+00 : f32
    %1278 = vector.shape_cast %1271 : vector<16x1xf32> to vector<16x1xf32>
    %1279 = vector.broadcast %1278 : vector<16x1xf32> to vector<16x16xf32>
    %1280 = vector.broadcast %cst_757 : f32 to vector<16x16xf32>
    %1281 = arith.select %1277, %1279, %1280 : vector<16x16xi1>, vector<16x16xf32>
    %1282 = arith.addf %1258, %1281 : vector<16x16xf32>
    %cst_758 = arith.constant 0.000000e+00 : f32
    %1283 = vector.shape_cast %1275 : vector<16x1xf32> to vector<16x1xf32>
    %1284 = vector.broadcast %1283 : vector<16x1xf32> to vector<16x16xf32>
    %1285 = vector.broadcast %cst_758 : f32 to vector<16x16xf32>
    %1286 = arith.select %1277, %1284, %1285 : vector<16x16xi1>, vector<16x16xf32>
    %1287 = arith.addf %1263, %1286 : vector<16x16xf32>
    %cst_759 = arith.constant 0.000000e+00 : f32
    %1288 = vector.broadcast %cst_759 : f32 to vector<16x16xf32>
    %c0_760 = arith.constant 0 : index
    %c0_761 = arith.constant 0 : index
    %c0_762 = arith.constant 0 : index
    %c0_763 = arith.constant 0 : index
    %1289 = vector.load %arg5[%c0_760, %c0_761, %c0_762, %c0_763] : memref<2x7x16x16xf32, #tpu.memory_space<vmem>>, vector<1x1x16x16xf32>
    %1290 = vector.shape_cast %1289 : vector<1x1x16x16xf32> to vector<16x16xf32>
    %cst_764 = arith.constant dense<0.000000e+00> : vector<16x16xf32>
    %1291 = tpu.matmul %1290, %1282, %cst_764 {dimension_numbers = #tpu.dot_dimension_numbers<[1], [0], [0], [1], [0, 0, 1, 1], [], []>} : vector<16x16xf32>, vector<16x16xf32>, vector<16x16xf32> -> vector<16x16xf32>
    %c1_765 = arith.constant 1 : index
    %c0_766 = arith.constant 0 : index
    %c0_767 = arith.constant 0 : index
    %c0_768 = arith.constant 0 : index
    %1292 = vector.load %arg5[%c1_765, %c0_766, %c0_767, %c0_768] : memref<2x7x16x16xf32, #tpu.memory_space<vmem>>, vector<1x1x16x16xf32>
    %1293 = vector.shape_cast %1292 : vector<1x1x16x16xf32> to vector<16x16xf32>
    %cst_769 = arith.constant dense<0.000000e+00> : vector<16x16xf32>
    %1294 = tpu.matmul %1293, %1287, %cst_769 {dimension_numbers = #tpu.dot_dimension_numbers<[1], [0], [0], [1], [0, 0, 1, 1], [], []>} : vector<16x16xf32>, vector<16x16xf32>, vector<16x16xf32> -> vector<16x16xf32>
    %1295 = arith.addf %1291, %1294 : vector<16x16xf32>
    %c0_770 = arith.constant 0 : index
    %c0_771 = arith.constant 0 : index
    %c0_772 = arith.constant 0 : index
    %1296 = vector.load %arg4[%c0_770, %c0_771, %c0_772] : memref<7x16x16xf32, #tpu.memory_space<vmem>>, vector<1x16x16xf32>
    %1297 = vector.shape_cast %1296 : vector<1x16x16xf32> to vector<16x16xf32>
    %cst_773 = arith.constant dense<0.000000e+00> : vector<16x16xf32>
    %1298 = tpu.matmul %1295, %1297, %cst_773 {dimension_numbers = #tpu.dot_dimension_numbers<[1], [0], [0], [1], [0, 0, 1, 1], [], []>} : vector<16x16xf32>, vector<16x16xf32>, vector<16x16xf32> -> vector<16x16xf32>
    %1299 = arith.addf %1288, %1298 : vector<16x16xf32>
    %c0_774 = arith.constant 0 : index
    %c1_775 = arith.constant 1 : index
    %c0_776 = arith.constant 0 : index
    %c0_777 = arith.constant 0 : index
    %1300 = vector.load %arg5[%c0_774, %c1_775, %c0_776, %c0_777] : memref<2x7x16x16xf32, #tpu.memory_space<vmem>>, vector<1x1x16x16xf32>
    %1301 = vector.shape_cast %1300 : vector<1x1x16x16xf32> to vector<16x16xf32>
    %cst_778 = arith.constant dense<0.000000e+00> : vector<16x16xf32>
    %1302 = tpu.matmul %1301, %1282, %cst_778 {dimension_numbers = #tpu.dot_dimension_numbers<[1], [0], [0], [1], [0, 0, 1, 1], [], []>} : vector<16x16xf32>, vector<16x16xf32>, vector<16x16xf32> -> vector<16x16xf32>
    %c1_779 = arith.constant 1 : index
    %c1_780 = arith.constant 1 : index
    %c0_781 = arith.constant 0 : index
    %c0_782 = arith.constant 0 : index
    %1303 = vector.load %arg5[%c1_779, %c1_780, %c0_781, %c0_782] : memref<2x7x16x16xf32, #tpu.memory_space<vmem>>, vector<1x1x16x16xf32>
    %1304 = vector.shape_cast %1303 : vector<1x1x16x16xf32> to vector<16x16xf32>
    %cst_783 = arith.constant dense<0.000000e+00> : vector<16x16xf32>
    %1305 = tpu.matmul %1304, %1287, %cst_783 {dimension_numbers = #tpu.dot_dimension_numbers<[1], [0], [0], [1], [0, 0, 1, 1], [], []>} : vector<16x16xf32>, vector<16x16xf32>, vector<16x16xf32> -> vector<16x16xf32>
    %1306 = arith.addf %1302, %1305 : vector<16x16xf32>
    %c1_784 = arith.constant 1 : index
    %c0_785 = arith.constant 0 : index
    %c0_786 = arith.constant 0 : index
    %1307 = vector.load %arg4[%c1_784, %c0_785, %c0_786] : memref<7x16x16xf32, #tpu.memory_space<vmem>>, vector<1x16x16xf32>
    %1308 = vector.shape_cast %1307 : vector<1x16x16xf32> to vector<16x16xf32>
    %cst_787 = arith.constant dense<0.000000e+00> : vector<16x16xf32>
    %1309 = tpu.matmul %1306, %1308, %cst_787 {dimension_numbers = #tpu.dot_dimension_numbers<[1], [0], [0], [1], [0, 0, 1, 1], [], []>} : vector<16x16xf32>, vector<16x16xf32>, vector<16x16xf32> -> vector<16x16xf32>
    %1310 = arith.addf %1299, %1309 : vector<16x16xf32>
    %c0_788 = arith.constant 0 : index
    %c2_789 = arith.constant 2 : index
    %c0_790 = arith.constant 0 : index
    %c0_791 = arith.constant 0 : index
    %1311 = vector.load %arg5[%c0_788, %c2_789, %c0_790, %c0_791] : memref<2x7x16x16xf32, #tpu.memory_space<vmem>>, vector<1x1x16x16xf32>
    %1312 = vector.shape_cast %1311 : vector<1x1x16x16xf32> to vector<16x16xf32>
    %cst_792 = arith.constant dense<0.000000e+00> : vector<16x16xf32>
    %1313 = tpu.matmul %1312, %1282, %cst_792 {dimension_numbers = #tpu.dot_dimension_numbers<[1], [0], [0], [1], [0, 0, 1, 1], [], []>} : vector<16x16xf32>, vector<16x16xf32>, vector<16x16xf32> -> vector<16x16xf32>
    %c1_793 = arith.constant 1 : index
    %c2_794 = arith.constant 2 : index
    %c0_795 = arith.constant 0 : index
    %c0_796 = arith.constant 0 : index
    %1314 = vector.load %arg5[%c1_793, %c2_794, %c0_795, %c0_796] : memref<2x7x16x16xf32, #tpu.memory_space<vmem>>, vector<1x1x16x16xf32>
    %1315 = vector.shape_cast %1314 : vector<1x1x16x16xf32> to vector<16x16xf32>
    %cst_797 = arith.constant dense<0.000000e+00> : vector<16x16xf32>
    %1316 = tpu.matmul %1315, %1287, %cst_797 {dimension_numbers = #tpu.dot_dimension_numbers<[1], [0], [0], [1], [0, 0, 1, 1], [], []>} : vector<16x16xf32>, vector<16x16xf32>, vector<16x16xf32> -> vector<16x16xf32>
    %1317 = arith.addf %1313, %1316 : vector<16x16xf32>
    %c2_798 = arith.constant 2 : index
    %c0_799 = arith.constant 0 : index
    %c0_800 = arith.constant 0 : index
    %1318 = vector.load %arg4[%c2_798, %c0_799, %c0_800] : memref<7x16x16xf32, #tpu.memory_space<vmem>>, vector<1x16x16xf32>
    %1319 = vector.shape_cast %1318 : vector<1x16x16xf32> to vector<16x16xf32>
    %cst_801 = arith.constant dense<0.000000e+00> : vector<16x16xf32>
    %1320 = tpu.matmul %1317, %1319, %cst_801 {dimension_numbers = #tpu.dot_dimension_numbers<[1], [0], [0], [1], [0, 0, 1, 1], [], []>} : vector<16x16xf32>, vector<16x16xf32>, vector<16x16xf32> -> vector<16x16xf32>
    %1321 = arith.addf %1310, %1320 : vector<16x16xf32>
    %c0_802 = arith.constant 0 : index
    %c3_803 = arith.constant 3 : index
    %c0_804 = arith.constant 0 : index
    %c0_805 = arith.constant 0 : index
    %1322 = vector.load %arg5[%c0_802, %c3_803, %c0_804, %c0_805] : memref<2x7x16x16xf32, #tpu.memory_space<vmem>>, vector<1x1x16x16xf32>
    %1323 = vector.shape_cast %1322 : vector<1x1x16x16xf32> to vector<16x16xf32>
    %cst_806 = arith.constant dense<0.000000e+00> : vector<16x16xf32>
    %1324 = tpu.matmul %1323, %1282, %cst_806 {dimension_numbers = #tpu.dot_dimension_numbers<[1], [0], [0], [1], [0, 0, 1, 1], [], []>} : vector<16x16xf32>, vector<16x16xf32>, vector<16x16xf32> -> vector<16x16xf32>
    %c1_807 = arith.constant 1 : index
    %c3_808 = arith.constant 3 : index
    %c0_809 = arith.constant 0 : index
    %c0_810 = arith.constant 0 : index
    %1325 = vector.load %arg5[%c1_807, %c3_808, %c0_809, %c0_810] : memref<2x7x16x16xf32, #tpu.memory_space<vmem>>, vector<1x1x16x16xf32>
    %1326 = vector.shape_cast %1325 : vector<1x1x16x16xf32> to vector<16x16xf32>
    %cst_811 = arith.constant dense<0.000000e+00> : vector<16x16xf32>
    %1327 = tpu.matmul %1326, %1287, %cst_811 {dimension_numbers = #tpu.dot_dimension_numbers<[1], [0], [0], [1], [0, 0, 1, 1], [], []>} : vector<16x16xf32>, vector<16x16xf32>, vector<16x16xf32> -> vector<16x16xf32>
    %1328 = arith.addf %1324, %1327 : vector<16x16xf32>
    %c3_812 = arith.constant 3 : index
    %c0_813 = arith.constant 0 : index
    %c0_814 = arith.constant 0 : index
    %1329 = vector.load %arg4[%c3_812, %c0_813, %c0_814] : memref<7x16x16xf32, #tpu.memory_space<vmem>>, vector<1x16x16xf32>
    %1330 = vector.shape_cast %1329 : vector<1x16x16xf32> to vector<16x16xf32>
    %cst_815 = arith.constant dense<0.000000e+00> : vector<16x16xf32>
    %1331 = tpu.matmul %1328, %1330, %cst_815 {dimension_numbers = #tpu.dot_dimension_numbers<[1], [0], [0], [1], [0, 0, 1, 1], [], []>} : vector<16x16xf32>, vector<16x16xf32>, vector<16x16xf32> -> vector<16x16xf32>
    %1332 = arith.addf %1321, %1331 : vector<16x16xf32>
    %c0_816 = arith.constant 0 : index
    %c4_817 = arith.constant 4 : index
    %c0_818 = arith.constant 0 : index
    %c0_819 = arith.constant 0 : index
    %1333 = vector.load %arg5[%c0_816, %c4_817, %c0_818, %c0_819] : memref<2x7x16x16xf32, #tpu.memory_space<vmem>>, vector<1x1x16x16xf32>
    %1334 = vector.shape_cast %1333 : vector<1x1x16x16xf32> to vector<16x16xf32>
    %cst_820 = arith.constant dense<0.000000e+00> : vector<16x16xf32>
    %1335 = tpu.matmul %1334, %1282, %cst_820 {dimension_numbers = #tpu.dot_dimension_numbers<[1], [0], [0], [1], [0, 0, 1, 1], [], []>} : vector<16x16xf32>, vector<16x16xf32>, vector<16x16xf32> -> vector<16x16xf32>
    %c1_821 = arith.constant 1 : index
    %c4_822 = arith.constant 4 : index
    %c0_823 = arith.constant 0 : index
    %c0_824 = arith.constant 0 : index
    %1336 = vector.load %arg5[%c1_821, %c4_822, %c0_823, %c0_824] : memref<2x7x16x16xf32, #tpu.memory_space<vmem>>, vector<1x1x16x16xf32>
    %1337 = vector.shape_cast %1336 : vector<1x1x16x16xf32> to vector<16x16xf32>
    %cst_825 = arith.constant dense<0.000000e+00> : vector<16x16xf32>
    %1338 = tpu.matmul %1337, %1287, %cst_825 {dimension_numbers = #tpu.dot_dimension_numbers<[1], [0], [0], [1], [0, 0, 1, 1], [], []>} : vector<16x16xf32>, vector<16x16xf32>, vector<16x16xf32> -> vector<16x16xf32>
    %1339 = arith.addf %1335, %1338 : vector<16x16xf32>
    %c4_826 = arith.constant 4 : index
    %c0_827 = arith.constant 0 : index
    %c0_828 = arith.constant 0 : index
    %1340 = vector.load %arg4[%c4_826, %c0_827, %c0_828] : memref<7x16x16xf32, #tpu.memory_space<vmem>>, vector<1x16x16xf32>
    %1341 = vector.shape_cast %1340 : vector<1x16x16xf32> to vector<16x16xf32>
    %cst_829 = arith.constant dense<0.000000e+00> : vector<16x16xf32>
    %1342 = tpu.matmul %1339, %1341, %cst_829 {dimension_numbers = #tpu.dot_dimension_numbers<[1], [0], [0], [1], [0, 0, 1, 1], [], []>} : vector<16x16xf32>, vector<16x16xf32>, vector<16x16xf32> -> vector<16x16xf32>
    %1343 = arith.addf %1332, %1342 : vector<16x16xf32>
    %c0_830 = arith.constant 0 : index
    %c5_831 = arith.constant 5 : index
    %c0_832 = arith.constant 0 : index
    %c0_833 = arith.constant 0 : index
    %1344 = vector.load %arg5[%c0_830, %c5_831, %c0_832, %c0_833] : memref<2x7x16x16xf32, #tpu.memory_space<vmem>>, vector<1x1x16x16xf32>
    %1345 = vector.shape_cast %1344 : vector<1x1x16x16xf32> to vector<16x16xf32>
    %cst_834 = arith.constant dense<0.000000e+00> : vector<16x16xf32>
    %1346 = tpu.matmul %1345, %1282, %cst_834 {dimension_numbers = #tpu.dot_dimension_numbers<[1], [0], [0], [1], [0, 0, 1, 1], [], []>} : vector<16x16xf32>, vector<16x16xf32>, vector<16x16xf32> -> vector<16x16xf32>
    %c1_835 = arith.constant 1 : index
    %c5_836 = arith.constant 5 : index
    %c0_837 = arith.constant 0 : index
    %c0_838 = arith.constant 0 : index
    %1347 = vector.load %arg5[%c1_835, %c5_836, %c0_837, %c0_838] : memref<2x7x16x16xf32, #tpu.memory_space<vmem>>, vector<1x1x16x16xf32>
    %1348 = vector.shape_cast %1347 : vector<1x1x16x16xf32> to vector<16x16xf32>
    %cst_839 = arith.constant dense<0.000000e+00> : vector<16x16xf32>
    %1349 = tpu.matmul %1348, %1287, %cst_839 {dimension_numbers = #tpu.dot_dimension_numbers<[1], [0], [0], [1], [0, 0, 1, 1], [], []>} : vector<16x16xf32>, vector<16x16xf32>, vector<16x16xf32> -> vector<16x16xf32>
    %1350 = arith.addf %1346, %1349 : vector<16x16xf32>
    %c5_840 = arith.constant 5 : index
    %c0_841 = arith.constant 0 : index
    %c0_842 = arith.constant 0 : index
    %1351 = vector.load %arg4[%c5_840, %c0_841, %c0_842] : memref<7x16x16xf32, #tpu.memory_space<vmem>>, vector<1x16x16xf32>
    %1352 = vector.shape_cast %1351 : vector<1x16x16xf32> to vector<16x16xf32>
    %cst_843 = arith.constant dense<0.000000e+00> : vector<16x16xf32>
    %1353 = tpu.matmul %1350, %1352, %cst_843 {dimension_numbers = #tpu.dot_dimension_numbers<[1], [0], [0], [1], [0, 0, 1, 1], [], []>} : vector<16x16xf32>, vector<16x16xf32>, vector<16x16xf32> -> vector<16x16xf32>
    %1354 = arith.addf %1343, %1353 : vector<16x16xf32>
    %c0_844 = arith.constant 0 : index
    %c6_845 = arith.constant 6 : index
    %c0_846 = arith.constant 0 : index
    %c0_847 = arith.constant 0 : index
    %1355 = vector.load %arg5[%c0_844, %c6_845, %c0_846, %c0_847] : memref<2x7x16x16xf32, #tpu.memory_space<vmem>>, vector<1x1x16x16xf32>
    %1356 = vector.shape_cast %1355 : vector<1x1x16x16xf32> to vector<16x16xf32>
    %cst_848 = arith.constant dense<0.000000e+00> : vector<16x16xf32>
    %1357 = tpu.matmul %1356, %1282, %cst_848 {dimension_numbers = #tpu.dot_dimension_numbers<[1], [0], [0], [1], [0, 0, 1, 1], [], []>} : vector<16x16xf32>, vector<16x16xf32>, vector<16x16xf32> -> vector<16x16xf32>
    %c1_849 = arith.constant 1 : index
    %c6_850 = arith.constant 6 : index
    %c0_851 = arith.constant 0 : index
    %c0_852 = arith.constant 0 : index
    %1358 = vector.load %arg5[%c1_849, %c6_850, %c0_851, %c0_852] : memref<2x7x16x16xf32, #tpu.memory_space<vmem>>, vector<1x1x16x16xf32>
    %1359 = vector.shape_cast %1358 : vector<1x1x16x16xf32> to vector<16x16xf32>
    %cst_853 = arith.constant dense<0.000000e+00> : vector<16x16xf32>
    %1360 = tpu.matmul %1359, %1287, %cst_853 {dimension_numbers = #tpu.dot_dimension_numbers<[1], [0], [0], [1], [0, 0, 1, 1], [], []>} : vector<16x16xf32>, vector<16x16xf32>, vector<16x16xf32> -> vector<16x16xf32>
    %1361 = arith.addf %1357, %1360 : vector<16x16xf32>
    %c6_854 = arith.constant 6 : index
    %c0_855 = arith.constant 0 : index
    %c0_856 = arith.constant 0 : index
    %1362 = vector.load %arg4[%c6_854, %c0_855, %c0_856] : memref<7x16x16xf32, #tpu.memory_space<vmem>>, vector<1x16x16xf32>
    %1363 = vector.shape_cast %1362 : vector<1x16x16xf32> to vector<16x16xf32>
    %cst_857 = arith.constant dense<0.000000e+00> : vector<16x16xf32>
    %1364 = tpu.matmul %1361, %1363, %cst_857 {dimension_numbers = #tpu.dot_dimension_numbers<[1], [0], [0], [1], [0, 0, 1, 1], [], []>} : vector<16x16xf32>, vector<16x16xf32>, vector<16x16xf32> -> vector<16x16xf32>
    %1365 = arith.addf %1354, %1364 : vector<16x16xf32>
    %cst_858 = arith.constant 0.000000e+00 : f32
    %1366 = vector.broadcast %cst_858 : f32 to vector<16x16xf32>
    %1367 = arith.subf %1366, %1365 : vector<16x16xf32>
    %1368 = math.exp %1367 : vector<16x16xf32>
    %cst_859 = arith.constant 1.000000e+00 : f32
    %1369 = vector.broadcast %cst_859 : f32 to vector<16x16xf32>
    %1370 = arith.addf %1369, %1368 : vector<16x16xf32>
    %cst_860 = arith.constant 1.000000e+00 : f32
    %1371 = vector.broadcast %cst_860 : f32 to vector<16x16xf32>
    %1372 = arith.divf %1371, %1370 : vector<16x16xf32>
    %c0_i32_861 = arith.constant 0 : i32
    %1373 = vector.broadcast %c0_i32_861 : i32 to vector<16x16xi32>
    %1374 = arith.cmpi eq, %3, %1373 : vector<16x16xi32>
    %cst_862 = arith.constant 0.000000e+00 : f32
    %1375 = vector.broadcast %cst_862 : f32 to vector<16x16xf32>
    %1376 = arith.select %1374, %1372, %1375 : vector<16x16xi1>, vector<16x16xf32>
    %cst_863 = arith.constant dense<0.000000e+00> : vector<16xf32>
    %1377 = vector.multi_reduction <add>, %1376, %cst_863 [1] : vector<16x16xf32> to vector<16xf32>
    %1378 = vector.shape_cast %1377 : vector<16xf32> to vector<16x1xf32>
    %c1_864 = arith.constant 1 : index
    %c0_865 = arith.constant 0 : index
    %c0_866 = arith.constant 0 : index
    %c0_867 = arith.constant 0 : index
    %1379 = vector.load %arg1[%c1_864, %c0_865, %c0_866, %c0_867] : memref<2x16x16x128xf32, #tpu.memory_space<vmem>>, vector<1x1x16x128xf32>
    %1380 = vector.shape_cast %1379 : vector<1x1x16x128xf32> to vector<16x128xf32>
    %1381 = vector.broadcast %901 : vector<1x128xf32> to vector<16x128xf32>
    %1382 = arith.mulf %1380, %1381 : vector<16x128xf32>
    %1383 = vector.broadcast %1378 : vector<16x1xf32> to vector<16x128xf32>
    %1384 = arith.mulf %1382, %1383 : vector<16x128xf32>
    %c1_868 = arith.constant 1 : index
    %c0_869 = arith.constant 0 : index
    %c0_870 = arith.constant 0 : index
    %c0_871 = arith.constant 0 : index
    %1385 = vector.load %arg6[%c1_868, %c0_869, %c0_870, %c0_871] : memref<2x16x16x128xf32, #tpu.memory_space<vmem>>, vector<1x1x16x128xf32>
    %1386 = vector.shape_cast %1385 : vector<1x1x16x128xf32> to vector<16x128xf32>
    %1387 = vector.shape_cast %1384 : vector<16x128xf32> to vector<1x1x16x128xf32>
    tpu.vector_store %arg6[%c1_868, %c0_869, %c0_870, %c0_871], %1387 {strides = array<i32>} : memref<2x16x16x128xf32, #tpu.memory_space<vmem>>, vector<1x1x16x128xf32>,
    %c1_i32_872 = arith.constant 1 : i32
    %1388 = vector.broadcast %c1_i32_872 : i32 to vector<16x16xi32>
    %1389 = arith.cmpi eq, %3, %1388 : vector<16x16xi32>
    %cst_873 = arith.constant 0.000000e+00 : f32
    %1390 = vector.broadcast %cst_873 : f32 to vector<16x16xf32>
    %1391 = arith.select %1389, %1372, %1390 : vector<16x16xi1>, vector<16x16xf32>
    %cst_874 = arith.constant dense<0.000000e+00> : vector<16xf32>
    %1392 = vector.multi_reduction <add>, %1391, %cst_874 [1] : vector<16x16xf32> to vector<16xf32>
    %1393 = vector.shape_cast %1392 : vector<16xf32> to vector<16x1xf32>
    %c1_875 = arith.constant 1 : index
    %c1_876 = arith.constant 1 : index
    %c0_877 = arith.constant 0 : index
    %c0_878 = arith.constant 0 : index
    %1394 = vector.load %arg1[%c1_875, %c1_876, %c0_877, %c0_878] : memref<2x16x16x128xf32, #tpu.memory_space<vmem>>, vector<1x1x16x128xf32>
    %1395 = vector.shape_cast %1394 : vector<1x1x16x128xf32> to vector<16x128xf32>
    %1396 = vector.broadcast %901 : vector<1x128xf32> to vector<16x128xf32>
    %1397 = arith.mulf %1395, %1396 : vector<16x128xf32>
    %1398 = vector.broadcast %1393 : vector<16x1xf32> to vector<16x128xf32>
    %1399 = arith.mulf %1397, %1398 : vector<16x128xf32>
    %c1_879 = arith.constant 1 : index
    %c1_880 = arith.constant 1 : index
    %c0_881 = arith.constant 0 : index
    %c0_882 = arith.constant 0 : index
    %1400 = vector.load %arg6[%c1_879, %c1_880, %c0_881, %c0_882] : memref<2x16x16x128xf32, #tpu.memory_space<vmem>>, vector<1x1x16x128xf32>
    %1401 = vector.shape_cast %1400 : vector<1x1x16x128xf32> to vector<16x128xf32>
    %1402 = vector.shape_cast %1399 : vector<16x128xf32> to vector<1x1x16x128xf32>
    tpu.vector_store %arg6[%c1_879, %c1_880, %c0_881, %c0_882], %1402 {strides = array<i32>} : memref<2x16x16x128xf32, #tpu.memory_space<vmem>>, vector<1x1x16x128xf32>,
    %c2_i32_883 = arith.constant 2 : i32
    %1403 = vector.broadcast %c2_i32_883 : i32 to vector<16x16xi32>
    %1404 = arith.cmpi eq, %3, %1403 : vector<16x16xi32>
    %cst_884 = arith.constant 0.000000e+00 : f32
    %1405 = vector.broadcast %cst_884 : f32 to vector<16x16xf32>
    %1406 = arith.select %1404, %1372, %1405 : vector<16x16xi1>, vector<16x16xf32>
    %cst_885 = arith.constant dense<0.000000e+00> : vector<16xf32>
    %1407 = vector.multi_reduction <add>, %1406, %cst_885 [1] : vector<16x16xf32> to vector<16xf32>
    %1408 = vector.shape_cast %1407 : vector<16xf32> to vector<16x1xf32>
    %c1_886 = arith.constant 1 : index
    %c2_887 = arith.constant 2 : index
    %c0_888 = arith.constant 0 : index
    %c0_889 = arith.constant 0 : index
    %1409 = vector.load %arg1[%c1_886, %c2_887, %c0_888, %c0_889] : memref<2x16x16x128xf32, #tpu.memory_space<vmem>>, vector<1x1x16x128xf32>
    %1410 = vector.shape_cast %1409 : vector<1x1x16x128xf32> to vector<16x128xf32>
    %1411 = vector.broadcast %901 : vector<1x128xf32> to vector<16x128xf32>
    %1412 = arith.mulf %1410, %1411 : vector<16x128xf32>
    %1413 = vector.broadcast %1408 : vector<16x1xf32> to vector<16x128xf32>
    %1414 = arith.mulf %1412, %1413 : vector<16x128xf32>
    %c1_890 = arith.constant 1 : index
    %c2_891 = arith.constant 2 : index
    %c0_892 = arith.constant 0 : index
    %c0_893 = arith.constant 0 : index
    %1415 = vector.load %arg6[%c1_890, %c2_891, %c0_892, %c0_893] : memref<2x16x16x128xf32, #tpu.memory_space<vmem>>, vector<1x1x16x128xf32>
    %1416 = vector.shape_cast %1415 : vector<1x1x16x128xf32> to vector<16x128xf32>
    %1417 = vector.shape_cast %1414 : vector<16x128xf32> to vector<1x1x16x128xf32>
    tpu.vector_store %arg6[%c1_890, %c2_891, %c0_892, %c0_893], %1417 {strides = array<i32>} : memref<2x16x16x128xf32, #tpu.memory_space<vmem>>, vector<1x1x16x128xf32>,
    %c3_i32_894 = arith.constant 3 : i32
    %1418 = vector.broadcast %c3_i32_894 : i32 to vector<16x16xi32>
    %1419 = arith.cmpi eq, %3, %1418 : vector<16x16xi32>
    %cst_895 = arith.constant 0.000000e+00 : f32
    %1420 = vector.broadcast %cst_895 : f32 to vector<16x16xf32>
    %1421 = arith.select %1419, %1372, %1420 : vector<16x16xi1>, vector<16x16xf32>
    %cst_896 = arith.constant dense<0.000000e+00> : vector<16xf32>
    %1422 = vector.multi_reduction <add>, %1421, %cst_896 [1] : vector<16x16xf32> to vector<16xf32>
    %1423 = vector.shape_cast %1422 : vector<16xf32> to vector<16x1xf32>
    %c1_897 = arith.constant 1 : index
    %c3_898 = arith.constant 3 : index
    %c0_899 = arith.constant 0 : index
    %c0_900 = arith.constant 0 : index
    %1424 = vector.load %arg1[%c1_897, %c3_898, %c0_899, %c0_900] : memref<2x16x16x128xf32, #tpu.memory_space<vmem>>, vector<1x1x16x128xf32>
    %1425 = vector.shape_cast %1424 : vector<1x1x16x128xf32> to vector<16x128xf32>
    %1426 = vector.broadcast %901 : vector<1x128xf32> to vector<16x128xf32>
    %1427 = arith.mulf %1425, %1426 : vector<16x128xf32>
    %1428 = vector.broadcast %1423 : vector<16x1xf32> to vector<16x128xf32>
    %1429 = arith.mulf %1427, %1428 : vector<16x128xf32>
    %c1_901 = arith.constant 1 : index
    %c3_902 = arith.constant 3 : index
    %c0_903 = arith.constant 0 : index
    %c0_904 = arith.constant 0 : index
    %1430 = vector.load %arg6[%c1_901, %c3_902, %c0_903, %c0_904] : memref<2x16x16x128xf32, #tpu.memory_space<vmem>>, vector<1x1x16x128xf32>
    %1431 = vector.shape_cast %1430 : vector<1x1x16x128xf32> to vector<16x128xf32>
    %1432 = vector.shape_cast %1429 : vector<16x128xf32> to vector<1x1x16x128xf32>
    tpu.vector_store %arg6[%c1_901, %c3_902, %c0_903, %c0_904], %1432 {strides = array<i32>} : memref<2x16x16x128xf32, #tpu.memory_space<vmem>>, vector<1x1x16x128xf32>,
    %c4_i32_905 = arith.constant 4 : i32
    %1433 = vector.broadcast %c4_i32_905 : i32 to vector<16x16xi32>
    %1434 = arith.cmpi eq, %3, %1433 : vector<16x16xi32>
    %cst_906 = arith.constant 0.000000e+00 : f32
    %1435 = vector.broadcast %cst_906 : f32 to vector<16x16xf32>
    %1436 = arith.select %1434, %1372, %1435 : vector<16x16xi1>, vector<16x16xf32>
    %cst_907 = arith.constant dense<0.000000e+00> : vector<16xf32>
    %1437 = vector.multi_reduction <add>, %1436, %cst_907 [1] : vector<16x16xf32> to vector<16xf32>
    %1438 = vector.shape_cast %1437 : vector<16xf32> to vector<16x1xf32>
    %c1_908 = arith.constant 1 : index
    %c4_909 = arith.constant 4 : index
    %c0_910 = arith.constant 0 : index
    %c0_911 = arith.constant 0 : index
    %1439 = vector.load %arg1[%c1_908, %c4_909, %c0_910, %c0_911] : memref<2x16x16x128xf32, #tpu.memory_space<vmem>>, vector<1x1x16x128xf32>
    %1440 = vector.shape_cast %1439 : vector<1x1x16x128xf32> to vector<16x128xf32>
    %1441 = vector.broadcast %901 : vector<1x128xf32> to vector<16x128xf32>
    %1442 = arith.mulf %1440, %1441 : vector<16x128xf32>
    %1443 = vector.broadcast %1438 : vector<16x1xf32> to vector<16x128xf32>
    %1444 = arith.mulf %1442, %1443 : vector<16x128xf32>
    %c1_912 = arith.constant 1 : index
    %c4_913 = arith.constant 4 : index
    %c0_914 = arith.constant 0 : index
    %c0_915 = arith.constant 0 : index
    %1445 = vector.load %arg6[%c1_912, %c4_913, %c0_914, %c0_915] : memref<2x16x16x128xf32, #tpu.memory_space<vmem>>, vector<1x1x16x128xf32>
    %1446 = vector.shape_cast %1445 : vector<1x1x16x128xf32> to vector<16x128xf32>
    %1447 = vector.shape_cast %1444 : vector<16x128xf32> to vector<1x1x16x128xf32>
    tpu.vector_store %arg6[%c1_912, %c4_913, %c0_914, %c0_915], %1447 {strides = array<i32>} : memref<2x16x16x128xf32, #tpu.memory_space<vmem>>, vector<1x1x16x128xf32>,
    %c5_i32_916 = arith.constant 5 : i32
    %1448 = vector.broadcast %c5_i32_916 : i32 to vector<16x16xi32>
    %1449 = arith.cmpi eq, %3, %1448 : vector<16x16xi32>
    %cst_917 = arith.constant 0.000000e+00 : f32
    %1450 = vector.broadcast %cst_917 : f32 to vector<16x16xf32>
    %1451 = arith.select %1449, %1372, %1450 : vector<16x16xi1>, vector<16x16xf32>
    %cst_918 = arith.constant dense<0.000000e+00> : vector<16xf32>
    %1452 = vector.multi_reduction <add>, %1451, %cst_918 [1] : vector<16x16xf32> to vector<16xf32>
    %1453 = vector.shape_cast %1452 : vector<16xf32> to vector<16x1xf32>
    %c1_919 = arith.constant 1 : index
    %c5_920 = arith.constant 5 : index
    %c0_921 = arith.constant 0 : index
    %c0_922 = arith.constant 0 : index
    %1454 = vector.load %arg1[%c1_919, %c5_920, %c0_921, %c0_922] : memref<2x16x16x128xf32, #tpu.memory_space<vmem>>, vector<1x1x16x128xf32>
    %1455 = vector.shape_cast %1454 : vector<1x1x16x128xf32> to vector<16x128xf32>
    %1456 = vector.broadcast %901 : vector<1x128xf32> to vector<16x128xf32>
    %1457 = arith.mulf %1455, %1456 : vector<16x128xf32>
    %1458 = vector.broadcast %1453 : vector<16x1xf32> to vector<16x128xf32>
    %1459 = arith.mulf %1457, %1458 : vector<16x128xf32>
    %c1_923 = arith.constant 1 : index
    %c5_924 = arith.constant 5 : index
    %c0_925 = arith.constant 0 : index
    %c0_926 = arith.constant 0 : index
    %1460 = vector.load %arg6[%c1_923, %c5_924, %c0_925, %c0_926] : memref<2x16x16x128xf32, #tpu.memory_space<vmem>>, vector<1x1x16x128xf32>
    %1461 = vector.shape_cast %1460 : vector<1x1x16x128xf32> to vector<16x128xf32>
    %1462 = vector.shape_cast %1459 : vector<16x128xf32> to vector<1x1x16x128xf32>
    tpu.vector_store %arg6[%c1_923, %c5_924, %c0_925, %c0_926], %1462 {strides = array<i32>} : memref<2x16x16x128xf32, #tpu.memory_space<vmem>>, vector<1x1x16x128xf32>,
    %c6_i32_927 = arith.constant 6 : i32
    %1463 = vector.broadcast %c6_i32_927 : i32 to vector<16x16xi32>
    %1464 = arith.cmpi eq, %3, %1463 : vector<16x16xi32>
    %cst_928 = arith.constant 0.000000e+00 : f32
    %1465 = vector.broadcast %cst_928 : f32 to vector<16x16xf32>
    %1466 = arith.select %1464, %1372, %1465 : vector<16x16xi1>, vector<16x16xf32>
    %cst_929 = arith.constant dense<0.000000e+00> : vector<16xf32>
    %1467 = vector.multi_reduction <add>, %1466, %cst_929 [1] : vector<16x16xf32> to vector<16xf32>
    %1468 = vector.shape_cast %1467 : vector<16xf32> to vector<16x1xf32>
    %c1_930 = arith.constant 1 : index
    %c6_931 = arith.constant 6 : index
    %c0_932 = arith.constant 0 : index
    %c0_933 = arith.constant 0 : index
    %1469 = vector.load %arg1[%c1_930, %c6_931, %c0_932, %c0_933] : memref<2x16x16x128xf32, #tpu.memory_space<vmem>>, vector<1x1x16x128xf32>
    %1470 = vector.shape_cast %1469 : vector<1x1x16x128xf32> to vector<16x128xf32>
    %1471 = vector.broadcast %901 : vector<1x128xf32> to vector<16x128xf32>
    %1472 = arith.mulf %1470, %1471 : vector<16x128xf32>
    %1473 = vector.broadcast %1468 : vector<16x1xf32> to vector<16x128xf32>
    %1474 = arith.mulf %1472, %1473 : vector<16x128xf32>
    %c1_934 = arith.constant 1 : index
    %c6_935 = arith.constant 6 : index
    %c0_936 = arith.constant 0 : index
    %c0_937 = arith.constant 0 : index
    %1475 = vector.load %arg6[%c1_934, %c6_935, %c0_936, %c0_937] : memref<2x16x16x128xf32, #tpu.memory_space<vmem>>, vector<1x1x16x128xf32>
    %1476 = vector.shape_cast %1475 : vector<1x1x16x128xf32> to vector<16x128xf32>
    %1477 = vector.shape_cast %1474 : vector<16x128xf32> to vector<1x1x16x128xf32>
    tpu.vector_store %arg6[%c1_934, %c6_935, %c0_936, %c0_937], %1477 {strides = array<i32>} : memref<2x16x16x128xf32, #tpu.memory_space<vmem>>, vector<1x1x16x128xf32>,
    %c7_i32_938 = arith.constant 7 : i32
    %1478 = vector.broadcast %c7_i32_938 : i32 to vector<16x16xi32>
    %1479 = arith.cmpi eq, %3, %1478 : vector<16x16xi32>
    %cst_939 = arith.constant 0.000000e+00 : f32
    %1480 = vector.broadcast %cst_939 : f32 to vector<16x16xf32>
    %1481 = arith.select %1479, %1372, %1480 : vector<16x16xi1>, vector<16x16xf32>
    %cst_940 = arith.constant dense<0.000000e+00> : vector<16xf32>
    %1482 = vector.multi_reduction <add>, %1481, %cst_940 [1] : vector<16x16xf32> to vector<16xf32>
    %1483 = vector.shape_cast %1482 : vector<16xf32> to vector<16x1xf32>
    %c1_941 = arith.constant 1 : index
    %c7_942 = arith.constant 7 : index
    %c0_943 = arith.constant 0 : index
    %c0_944 = arith.constant 0 : index
    %1484 = vector.load %arg1[%c1_941, %c7_942, %c0_943, %c0_944] : memref<2x16x16x128xf32, #tpu.memory_space<vmem>>, vector<1x1x16x128xf32>
    %1485 = vector.shape_cast %1484 : vector<1x1x16x128xf32> to vector<16x128xf32>
    %1486 = vector.broadcast %901 : vector<1x128xf32> to vector<16x128xf32>
    %1487 = arith.mulf %1485, %1486 : vector<16x128xf32>
    %1488 = vector.broadcast %1483 : vector<16x1xf32> to vector<16x128xf32>
    %1489 = arith.mulf %1487, %1488 : vector<16x128xf32>
    %c1_945 = arith.constant 1 : index
    %c7_946 = arith.constant 7 : index
    %c0_947 = arith.constant 0 : index
    %c0_948 = arith.constant 0 : index
    %1490 = vector.load %arg6[%c1_945, %c7_946, %c0_947, %c0_948] : memref<2x16x16x128xf32, #tpu.memory_space<vmem>>, vector<1x1x16x128xf32>
    %1491 = vector.shape_cast %1490 : vector<1x1x16x128xf32> to vector<16x128xf32>
    %1492 = vector.shape_cast %1489 : vector<16x128xf32> to vector<1x1x16x128xf32>
    tpu.vector_store %arg6[%c1_945, %c7_946, %c0_947, %c0_948], %1492 {strides = array<i32>} : memref<2x16x16x128xf32, #tpu.memory_space<vmem>>, vector<1x1x16x128xf32>,
    %c8_i32_949 = arith.constant 8 : i32
    %1493 = vector.broadcast %c8_i32_949 : i32 to vector<16x16xi32>
    %1494 = arith.cmpi eq, %3, %1493 : vector<16x16xi32>
    %cst_950 = arith.constant 0.000000e+00 : f32
    %1495 = vector.broadcast %cst_950 : f32 to vector<16x16xf32>
    %1496 = arith.select %1494, %1372, %1495 : vector<16x16xi1>, vector<16x16xf32>
    %cst_951 = arith.constant dense<0.000000e+00> : vector<16xf32>
    %1497 = vector.multi_reduction <add>, %1496, %cst_951 [1] : vector<16x16xf32> to vector<16xf32>
    %1498 = vector.shape_cast %1497 : vector<16xf32> to vector<16x1xf32>
    %c1_952 = arith.constant 1 : index
    %c8_953 = arith.constant 8 : index
    %c0_954 = arith.constant 0 : index
    %c0_955 = arith.constant 0 : index
    %1499 = vector.load %arg1[%c1_952, %c8_953, %c0_954, %c0_955] : memref<2x16x16x128xf32, #tpu.memory_space<vmem>>, vector<1x1x16x128xf32>
    %1500 = vector.shape_cast %1499 : vector<1x1x16x128xf32> to vector<16x128xf32>
    %1501 = vector.broadcast %901 : vector<1x128xf32> to vector<16x128xf32>
    %1502 = arith.mulf %1500, %1501 : vector<16x128xf32>
    %1503 = vector.broadcast %1498 : vector<16x1xf32> to vector<16x128xf32>
    %1504 = arith.mulf %1502, %1503 : vector<16x128xf32>
    %c1_956 = arith.constant 1 : index
    %c8_957 = arith.constant 8 : index
    %c0_958 = arith.constant 0 : index
    %c0_959 = arith.constant 0 : index
    %1505 = vector.load %arg6[%c1_956, %c8_957, %c0_958, %c0_959] : memref<2x16x16x128xf32, #tpu.memory_space<vmem>>, vector<1x1x16x128xf32>
    %1506 = vector.shape_cast %1505 : vector<1x1x16x128xf32> to vector<16x128xf32>
    %1507 = vector.shape_cast %1504 : vector<16x128xf32> to vector<1x1x16x128xf32>
    tpu.vector_store %arg6[%c1_956, %c8_957, %c0_958, %c0_959], %1507 {strides = array<i32>} : memref<2x16x16x128xf32, #tpu.memory_space<vmem>>, vector<1x1x16x128xf32>,
    %c9_i32_960 = arith.constant 9 : i32
    %1508 = vector.broadcast %c9_i32_960 : i32 to vector<16x16xi32>
    %1509 = arith.cmpi eq, %3, %1508 : vector<16x16xi32>
    %cst_961 = arith.constant 0.000000e+00 : f32
    %1510 = vector.broadcast %cst_961 : f32 to vector<16x16xf32>
    %1511 = arith.select %1509, %1372, %1510 : vector<16x16xi1>, vector<16x16xf32>
    %cst_962 = arith.constant dense<0.000000e+00> : vector<16xf32>
    %1512 = vector.multi_reduction <add>, %1511, %cst_962 [1] : vector<16x16xf32> to vector<16xf32>
    %1513 = vector.shape_cast %1512 : vector<16xf32> to vector<16x1xf32>
    %c1_963 = arith.constant 1 : index
    %c9_964 = arith.constant 9 : index
    %c0_965 = arith.constant 0 : index
    %c0_966 = arith.constant 0 : index
    %1514 = vector.load %arg1[%c1_963, %c9_964, %c0_965, %c0_966] : memref<2x16x16x128xf32, #tpu.memory_space<vmem>>, vector<1x1x16x128xf32>
    %1515 = vector.shape_cast %1514 : vector<1x1x16x128xf32> to vector<16x128xf32>
    %1516 = vector.broadcast %901 : vector<1x128xf32> to vector<16x128xf32>
    %1517 = arith.mulf %1515, %1516 : vector<16x128xf32>
    %1518 = vector.broadcast %1513 : vector<16x1xf32> to vector<16x128xf32>
    %1519 = arith.mulf %1517, %1518 : vector<16x128xf32>
    %c1_967 = arith.constant 1 : index
    %c9_968 = arith.constant 9 : index
    %c0_969 = arith.constant 0 : index
    %c0_970 = arith.constant 0 : index
    %1520 = vector.load %arg6[%c1_967, %c9_968, %c0_969, %c0_970] : memref<2x16x16x128xf32, #tpu.memory_space<vmem>>, vector<1x1x16x128xf32>
    %1521 = vector.shape_cast %1520 : vector<1x1x16x128xf32> to vector<16x128xf32>
    %1522 = vector.shape_cast %1519 : vector<16x128xf32> to vector<1x1x16x128xf32>
    tpu.vector_store %arg6[%c1_967, %c9_968, %c0_969, %c0_970], %1522 {strides = array<i32>} : memref<2x16x16x128xf32, #tpu.memory_space<vmem>>, vector<1x1x16x128xf32>,
    %c10_i32_971 = arith.constant 10 : i32
    %1523 = vector.broadcast %c10_i32_971 : i32 to vector<16x16xi32>
    %1524 = arith.cmpi eq, %3, %1523 : vector<16x16xi32>
    %cst_972 = arith.constant 0.000000e+00 : f32
    %1525 = vector.broadcast %cst_972 : f32 to vector<16x16xf32>
    %1526 = arith.select %1524, %1372, %1525 : vector<16x16xi1>, vector<16x16xf32>
    %cst_973 = arith.constant dense<0.000000e+00> : vector<16xf32>
    %1527 = vector.multi_reduction <add>, %1526, %cst_973 [1] : vector<16x16xf32> to vector<16xf32>
    %1528 = vector.shape_cast %1527 : vector<16xf32> to vector<16x1xf32>
    %c1_974 = arith.constant 1 : index
    %c10_975 = arith.constant 10 : index
    %c0_976 = arith.constant 0 : index
    %c0_977 = arith.constant 0 : index
    %1529 = vector.load %arg1[%c1_974, %c10_975, %c0_976, %c0_977] : memref<2x16x16x128xf32, #tpu.memory_space<vmem>>, vector<1x1x16x128xf32>
    %1530 = vector.shape_cast %1529 : vector<1x1x16x128xf32> to vector<16x128xf32>
    %1531 = vector.broadcast %901 : vector<1x128xf32> to vector<16x128xf32>
    %1532 = arith.mulf %1530, %1531 : vector<16x128xf32>
    %1533 = vector.broadcast %1528 : vector<16x1xf32> to vector<16x128xf32>
    %1534 = arith.mulf %1532, %1533 : vector<16x128xf32>
    %c1_978 = arith.constant 1 : index
    %c10_979 = arith.constant 10 : index
    %c0_980 = arith.constant 0 : index
    %c0_981 = arith.constant 0 : index
    %1535 = vector.load %arg6[%c1_978, %c10_979, %c0_980, %c0_981] : memref<2x16x16x128xf32, #tpu.memory_space<vmem>>, vector<1x1x16x128xf32>
    %1536 = vector.shape_cast %1535 : vector<1x1x16x128xf32> to vector<16x128xf32>
    %1537 = vector.shape_cast %1534 : vector<16x128xf32> to vector<1x1x16x128xf32>
    tpu.vector_store %arg6[%c1_978, %c10_979, %c0_980, %c0_981], %1537 {strides = array<i32>} : memref<2x16x16x128xf32, #tpu.memory_space<vmem>>, vector<1x1x16x128xf32>,
    %c11_i32_982 = arith.constant 11 : i32
    %1538 = vector.broadcast %c11_i32_982 : i32 to vector<16x16xi32>
    %1539 = arith.cmpi eq, %3, %1538 : vector<16x16xi32>
    %cst_983 = arith.constant 0.000000e+00 : f32
    %1540 = vector.broadcast %cst_983 : f32 to vector<16x16xf32>
    %1541 = arith.select %1539, %1372, %1540 : vector<16x16xi1>, vector<16x16xf32>
    %cst_984 = arith.constant dense<0.000000e+00> : vector<16xf32>
    %1542 = vector.multi_reduction <add>, %1541, %cst_984 [1] : vector<16x16xf32> to vector<16xf32>
    %1543 = vector.shape_cast %1542 : vector<16xf32> to vector<16x1xf32>
    %c1_985 = arith.constant 1 : index
    %c11_986 = arith.constant 11 : index
    %c0_987 = arith.constant 0 : index
    %c0_988 = arith.constant 0 : index
    %1544 = vector.load %arg1[%c1_985, %c11_986, %c0_987, %c0_988] : memref<2x16x16x128xf32, #tpu.memory_space<vmem>>, vector<1x1x16x128xf32>
    %1545 = vector.shape_cast %1544 : vector<1x1x16x128xf32> to vector<16x128xf32>
    %1546 = vector.broadcast %901 : vector<1x128xf32> to vector<16x128xf32>
    %1547 = arith.mulf %1545, %1546 : vector<16x128xf32>
    %1548 = vector.broadcast %1543 : vector<16x1xf32> to vector<16x128xf32>
    %1549 = arith.mulf %1547, %1548 : vector<16x128xf32>
    %c1_989 = arith.constant 1 : index
    %c11_990 = arith.constant 11 : index
    %c0_991 = arith.constant 0 : index
    %c0_992 = arith.constant 0 : index
    %1550 = vector.load %arg6[%c1_989, %c11_990, %c0_991, %c0_992] : memref<2x16x16x128xf32, #tpu.memory_space<vmem>>, vector<1x1x16x128xf32>
    %1551 = vector.shape_cast %1550 : vector<1x1x16x128xf32> to vector<16x128xf32>
    %1552 = vector.shape_cast %1549 : vector<16x128xf32> to vector<1x1x16x128xf32>
    tpu.vector_store %arg6[%c1_989, %c11_990, %c0_991, %c0_992], %1552 {strides = array<i32>} : memref<2x16x16x128xf32, #tpu.memory_space<vmem>>, vector<1x1x16x128xf32>,
    %c12_i32_993 = arith.constant 12 : i32
    %1553 = vector.broadcast %c12_i32_993 : i32 to vector<16x16xi32>
    %1554 = arith.cmpi eq, %3, %1553 : vector<16x16xi32>
    %cst_994 = arith.constant 0.000000e+00 : f32
    %1555 = vector.broadcast %cst_994 : f32 to vector<16x16xf32>
    %1556 = arith.select %1554, %1372, %1555 : vector<16x16xi1>, vector<16x16xf32>
    %cst_995 = arith.constant dense<0.000000e+00> : vector<16xf32>
    %1557 = vector.multi_reduction <add>, %1556, %cst_995 [1] : vector<16x16xf32> to vector<16xf32>
    %1558 = vector.shape_cast %1557 : vector<16xf32> to vector<16x1xf32>
    %c1_996 = arith.constant 1 : index
    %c12_997 = arith.constant 12 : index
    %c0_998 = arith.constant 0 : index
    %c0_999 = arith.constant 0 : index
    %1559 = vector.load %arg1[%c1_996, %c12_997, %c0_998, %c0_999] : memref<2x16x16x128xf32, #tpu.memory_space<vmem>>, vector<1x1x16x128xf32>
    %1560 = vector.shape_cast %1559 : vector<1x1x16x128xf32> to vector<16x128xf32>
    %1561 = vector.broadcast %901 : vector<1x128xf32> to vector<16x128xf32>
    %1562 = arith.mulf %1560, %1561 : vector<16x128xf32>
    %1563 = vector.broadcast %1558 : vector<16x1xf32> to vector<16x128xf32>
    %1564 = arith.mulf %1562, %1563 : vector<16x128xf32>
    %c1_1000 = arith.constant 1 : index
    %c12_1001 = arith.constant 12 : index
    %c0_1002 = arith.constant 0 : index
    %c0_1003 = arith.constant 0 : index
    %1565 = vector.load %arg6[%c1_1000, %c12_1001, %c0_1002, %c0_1003] : memref<2x16x16x128xf32, #tpu.memory_space<vmem>>, vector<1x1x16x128xf32>
    %1566 = vector.shape_cast %1565 : vector<1x1x16x128xf32> to vector<16x128xf32>
    %1567 = vector.shape_cast %1564 : vector<16x128xf32> to vector<1x1x16x128xf32>
    tpu.vector_store %arg6[%c1_1000, %c12_1001, %c0_1002, %c0_1003], %1567 {strides = array<i32>} : memref<2x16x16x128xf32, #tpu.memory_space<vmem>>, vector<1x1x16x128xf32>,
    %c13_i32_1004 = arith.constant 13 : i32
    %1568 = vector.broadcast %c13_i32_1004 : i32 to vector<16x16xi32>
    %1569 = arith.cmpi eq, %3, %1568 : vector<16x16xi32>
    %cst_1005 = arith.constant 0.000000e+00 : f32
    %1570 = vector.broadcast %cst_1005 : f32 to vector<16x16xf32>
    %1571 = arith.select %1569, %1372, %1570 : vector<16x16xi1>, vector<16x16xf32>
    %cst_1006 = arith.constant dense<0.000000e+00> : vector<16xf32>
    %1572 = vector.multi_reduction <add>, %1571, %cst_1006 [1] : vector<16x16xf32> to vector<16xf32>
    %1573 = vector.shape_cast %1572 : vector<16xf32> to vector<16x1xf32>
    %c1_1007 = arith.constant 1 : index
    %c13_1008 = arith.constant 13 : index
    %c0_1009 = arith.constant 0 : index
    %c0_1010 = arith.constant 0 : index
    %1574 = vector.load %arg1[%c1_1007, %c13_1008, %c0_1009, %c0_1010] : memref<2x16x16x128xf32, #tpu.memory_space<vmem>>, vector<1x1x16x128xf32>
    %1575 = vector.shape_cast %1574 : vector<1x1x16x128xf32> to vector<16x128xf32>
    %1576 = vector.broadcast %901 : vector<1x128xf32> to vector<16x128xf32>
    %1577 = arith.mulf %1575, %1576 : vector<16x128xf32>
    %1578 = vector.broadcast %1573 : vector<16x1xf32> to vector<16x128xf32>
    %1579 = arith.mulf %1577, %1578 : vector<16x128xf32>
    %c1_1011 = arith.constant 1 : index
    %c13_1012 = arith.constant 13 : index
    %c0_1013 = arith.constant 0 : index
    %c0_1014 = arith.constant 0 : index
    %1580 = vector.load %arg6[%c1_1011, %c13_1012, %c0_1013, %c0_1014] : memref<2x16x16x128xf32, #tpu.memory_space<vmem>>, vector<1x1x16x128xf32>
    %1581 = vector.shape_cast %1580 : vector<1x1x16x128xf32> to vector<16x128xf32>
    %1582 = vector.shape_cast %1579 : vector<16x128xf32> to vector<1x1x16x128xf32>
    tpu.vector_store %arg6[%c1_1011, %c13_1012, %c0_1013, %c0_1014], %1582 {strides = array<i32>} : memref<2x16x16x128xf32, #tpu.memory_space<vmem>>, vector<1x1x16x128xf32>,
    %c14_i32_1015 = arith.constant 14 : i32
    %1583 = vector.broadcast %c14_i32_1015 : i32 to vector<16x16xi32>
    %1584 = arith.cmpi eq, %3, %1583 : vector<16x16xi32>
    %cst_1016 = arith.constant 0.000000e+00 : f32
    %1585 = vector.broadcast %cst_1016 : f32 to vector<16x16xf32>
    %1586 = arith.select %1584, %1372, %1585 : vector<16x16xi1>, vector<16x16xf32>
    %cst_1017 = arith.constant dense<0.000000e+00> : vector<16xf32>
    %1587 = vector.multi_reduction <add>, %1586, %cst_1017 [1] : vector<16x16xf32> to vector<16xf32>
    %1588 = vector.shape_cast %1587 : vector<16xf32> to vector<16x1xf32>
    %c1_1018 = arith.constant 1 : index
    %c14_1019 = arith.constant 14 : index
    %c0_1020 = arith.constant 0 : index
    %c0_1021 = arith.constant 0 : index
    %1589 = vector.load %arg1[%c1_1018, %c14_1019, %c0_1020, %c0_1021] : memref<2x16x16x128xf32, #tpu.memory_space<vmem>>, vector<1x1x16x128xf32>
    %1590 = vector.shape_cast %1589 : vector<1x1x16x128xf32> to vector<16x128xf32>
    %1591 = vector.broadcast %901 : vector<1x128xf32> to vector<16x128xf32>
    %1592 = arith.mulf %1590, %1591 : vector<16x128xf32>
    %1593 = vector.broadcast %1588 : vector<16x1xf32> to vector<16x128xf32>
    %1594 = arith.mulf %1592, %1593 : vector<16x128xf32>
    %c1_1022 = arith.constant 1 : index
    %c14_1023 = arith.constant 14 : index
    %c0_1024 = arith.constant 0 : index
    %c0_1025 = arith.constant 0 : index
    %1595 = vector.load %arg6[%c1_1022, %c14_1023, %c0_1024, %c0_1025] : memref<2x16x16x128xf32, #tpu.memory_space<vmem>>, vector<1x1x16x128xf32>
    %1596 = vector.shape_cast %1595 : vector<1x1x16x128xf32> to vector<16x128xf32>
    %1597 = vector.shape_cast %1594 : vector<16x128xf32> to vector<1x1x16x128xf32>
    tpu.vector_store %arg6[%c1_1022, %c14_1023, %c0_1024, %c0_1025], %1597 {strides = array<i32>} : memref<2x16x16x128xf32, #tpu.memory_space<vmem>>, vector<1x1x16x128xf32>,
    %c15_i32_1026 = arith.constant 15 : i32
    %1598 = vector.broadcast %c15_i32_1026 : i32 to vector<16x16xi32>
    %1599 = arith.cmpi eq, %3, %1598 : vector<16x16xi32>
    %cst_1027 = arith.constant 0.000000e+00 : f32
    %1600 = vector.broadcast %cst_1027 : f32 to vector<16x16xf32>
    %1601 = arith.select %1599, %1372, %1600 : vector<16x16xi1>, vector<16x16xf32>
    %cst_1028 = arith.constant dense<0.000000e+00> : vector<16xf32>
    %1602 = vector.multi_reduction <add>, %1601, %cst_1028 [1] : vector<16x16xf32> to vector<16xf32>
    %1603 = vector.shape_cast %1602 : vector<16xf32> to vector<16x1xf32>
    %c1_1029 = arith.constant 1 : index
    %c15_1030 = arith.constant 15 : index
    %c0_1031 = arith.constant 0 : index
    %c0_1032 = arith.constant 0 : index
    %1604 = vector.load %arg1[%c1_1029, %c15_1030, %c0_1031, %c0_1032] : memref<2x16x16x128xf32, #tpu.memory_space<vmem>>, vector<1x1x16x128xf32>
    %1605 = vector.shape_cast %1604 : vector<1x1x16x128xf32> to vector<16x128xf32>
    %1606 = vector.broadcast %901 : vector<1x128xf32> to vector<16x128xf32>
    %1607 = arith.mulf %1605, %1606 : vector<16x128xf32>
    %1608 = vector.broadcast %1603 : vector<16x1xf32> to vector<16x128xf32>
    %1609 = arith.mulf %1607, %1608 : vector<16x128xf32>
    %c1_1033 = arith.constant 1 : index
    %c15_1034 = arith.constant 15 : index
    %c0_1035 = arith.constant 0 : index
    %c0_1036 = arith.constant 0 : index
    %1610 = vector.load %arg6[%c1_1033, %c15_1034, %c0_1035, %c0_1036] : memref<2x16x16x128xf32, #tpu.memory_space<vmem>>, vector<1x1x16x128xf32>
    %1611 = vector.shape_cast %1610 : vector<1x1x16x128xf32> to vector<16x128xf32>
    %1612 = vector.shape_cast %1609 : vector<16x128xf32> to vector<1x1x16x128xf32>
    tpu.vector_store %arg6[%c1_1033, %c15_1034, %c0_1035, %c0_1036], %1612 {strides = array<i32>} : memref<2x16x16x128xf32, #tpu.memory_space<vmem>>, vector<1x1x16x128xf32>,
    return
  }
  func.func @transform_0(%arg0: i32) -> (i32, i32, i32, i32) {
    %c0_i32 = arith.constant 0 : i32
    %c0_i32_0 = arith.constant 0 : i32
    %c0_i32_1 = arith.constant 0 : i32
    %c0_i32_2 = arith.constant 0 : i32
    return %arg0, %c0_i32, %c0_i32_0, %c0_i32_1 : i32, i32, i32, i32
  }
  func.func @transform_1(%arg0: i32) -> (i32, i32) {
    %c0_i32 = arith.constant 0 : i32
    %c0_i32_0 = arith.constant 0 : i32
    %c0_i32_1 = arith.constant 0 : i32
    return %c0_i32, %c0_i32_0 : i32, i32
  }
  func.func @transform_2(%arg0: i32) -> (i32, i32) {
    %c0_i32 = arith.constant 0 : i32
    %c0_i32_0 = arith.constant 0 : i32
    %c0_i32_1 = arith.constant 0 : i32
    return %c0_i32, %c0_i32_0 : i32, i32
  }
  func.func @transform_3(%arg0: i32) -> (i32, i32, i32) {
    %c0_i32 = arith.constant 0 : i32
    %c0_i32_0 = arith.constant 0 : i32
    %c0_i32_1 = arith.constant 0 : i32
    %c0_i32_2 = arith.constant 0 : i32
    return %c0_i32, %c0_i32_0, %c0_i32_1 : i32, i32, i32
  }
  func.func @transform_4(%arg0: i32) -> (i32, i32, i32, i32) {
    %c0_i32 = arith.constant 0 : i32
    %c0_i32_0 = arith.constant 0 : i32
    %c0_i32_1 = arith.constant 0 : i32
    %c0_i32_2 = arith.constant 0 : i32
    %c0_i32_3 = arith.constant 0 : i32
    return %c0_i32, %c0_i32_0, %c0_i32_1, %c0_i32_2 : i32, i32, i32, i32
  }
  func.func @transform_5(%arg0: i32) -> (i32, i32, i32, i32) {
    %c0_i32 = arith.constant 0 : i32
    %c0_i32_0 = arith.constant 0 : i32
    %c0_i32_1 = arith.constant 0 : i32
    %c0_i32_2 = arith.constant 0 : i32
    return %arg0, %c0_i32, %c0_i32_0, %c0_i32_1 : i32, i32, i32, i32
  }
}

</mosaic_0001>

<bundles_post_ra>
// kernel: tpu_custom_call.1
= control target key start
LH: loop header
LB: loop body
LE: loop exit
PB: predicated region body
PF: predicated region fallthrough
CT: control target
= control target key end

     0   :  { %10 = vsyncpa [#allocation3], 0  ;;  %s8487_s0 = inlined_call_operand.hbm [shape: f32[2,16,16,128], index: 0, kind: input, shape index: {}]   ;;  %s8488_s1 = inlined_call_operand.hbm [shape: f32[128,128], index: 1, kind: input, shape index: {}]   ;;  %s8489_s2 = inlined_call_operand.hbm [shape: f32[128,128], index: 2, kind: input, shape index: {}]   ;;  %s8490_s3 = inlined_call_operand.hbm [shape: f32[7,16,16], index: 3, kind: input, shape index: {}]   ;;  %s8491_s4 = inlined_call_operand.hbm [shape: f32[2,7,16,16], index: 4, kind: input, shape index: {}]   ;;  %s8492_s5 = inlined_call_operand.hbm [shape: f32[2,16,16,128], index: 5, kind: output, shape index: {}]  }
   0x1   :  { %11 = vsyncpa [#allocation6], 0 }
   0x2   :  { %12 = vsyncpa [#allocation9], 0 }
   0x3   :  { %13 = vsyncpa [#allocation4], 0  ;;  %s6756_s18 = smov [#allocation5]   ;;  %s6757_s20 = smov [#allocation8]  }
   0x4   :  { %s31_s19 = sshll.u32 %s6756_s18, 4  ;;  %s55_s21 = sshll.u32 %s6757_s20, 4  ;;  %s32_s19 = int_to_ptr.vmem [resolvable:$true] %s31_s19  ;;  %s6797_s21 = int_to_ptr.vmem [resolvable:$true] %s55_s21 }
   0x5   :  { %s6616_s24 = scalar_lea.hbm %s8488_s1, 2048 }
   0x6   :  { %p6617_p0 = scmp.ne.s32.totalorder %s8488_s1, %s6616_s24  ;;  %p6620_p1 = scmp.lt.u32.totalorder %s6616_s24, %s8488_s1 }
   0x8   :  { %p6622_p2 = pnand %p6620_p1, %p6617_p0 }
   0xa   :  { %6625 = shalt.err (!%p6622_p2)
}
   0xb   :  { %s6626_s29 = scalar_lea.vmem %s32_s19, 2048  ;;  %p6631_p4 = scmp.lt.s32.totalorder %s32_s19, %s32_s19 }
   0xc   :  { %p6627_p3 = scmp.ne.s32.totalorder %s32_s19, %s6626_s29  ;;  %p6632_p5 = scmp.lt.s32.totalorder %s6626_s29, %s6626_s29 }
   0xe   :  { %p6633_p6 = por %p6632_p5, %p6631_p4 }
  0x10   :  { %p6634_p7 = pnand %p6633_p6, %p6627_p3 }
  0x12   :  { %6637 = shalt.err (!%p6634_p7)
}
  0x13   :  { %s6758_s30 = smov 128   ;;  %s6759_s6 = smov 8  }
  0x14   :  { %37 = dma.hbm_to_vmem [thread:$0]  %s8488_s1, 2048, %s32_s19, [#allocation6], %s6758_s30, %s6758_s30, %s6759_s6  }
  0x15   :  { %s6638_s11 = scalar_lea.hbm %s8490_s3, 1792 }
  0x16   :  { %p6639_p8 = scmp.ne.s32.totalorder %s8490_s3, %s6638_s11  ;;  %p6642_p9 = scmp.lt.u32.totalorder %s6638_s11, %s8490_s3 }
  0x18   :  { %p6644_p10 = pnand %p6642_p9, %p6639_p8 }
  0x1a   :  { %6647 = shalt.err (!%p6644_p10)
}
  0x1b   :  { %s6648_s16 = scalar_lea.vmem %s6797_s21, 1792  ;;  %p6653_p12 = scmp.lt.s32.totalorder %s6797_s21, %s6797_s21 }
  0x1c   :  { %p6649_p11 = scmp.ne.s32.totalorder %s6797_s21, %s6648_s16  ;;  %p6654_p13 = scmp.lt.s32.totalorder %s6648_s16, %s6648_s16 }
  0x1e   :  { %p6655_p0 = por %p6654_p13, %p6653_p12 }
  0x20   :  { %p6656_p1 = pnand %p6655_p0, %p6649_p11 }
  0x22   :  { %6659 = shalt.err (!%p6656_p1)
}
  0x23   :  { %61 = dma.hbm_to_vmem [thread:$0]  %s8490_s3, 1792, %s6797_s21, [#allocation9], %s6758_s30, %s6758_s30, %s6759_s6  }
  0x24   :  { %s6760_s18 = smov [#allocation2]   ;;  %s6761_s20 = smov [#allocation7]  }
  0x25   :  { %s19_s19 = sshll.u32 %s6760_s18, 4  ;;  %s43_s22 = sshll.u32 %s6761_s20, 4  ;;  %s20_s19 = int_to_ptr.vmem [resolvable:$true] %s19_s19  ;;  %s6834_s22 = int_to_ptr.vmem [resolvable:$true] %s43_s22 }
  0x26   :  { %s6660_s25 = scalar_lea.hbm %s8487_s0, 8192 }
  0x27   :  { %p6661_p2 = scmp.ne.s32.totalorder %s8487_s0, %s6660_s25  ;;  %p6664_p3 = scmp.lt.u32.totalorder %s6660_s25, %s8487_s0 }
  0x29   :  { %p6666_p4 = pnand %p6664_p3, %p6661_p2 }
  0x2b   :  { %6669 = shalt.err (!%p6666_p4)
}
  0x2c   :  { %s6670_s3 = scalar_lea.vmem %s20_s19, 8192  ;;  %p6675_p6 = scmp.lt.s32.totalorder %s20_s19, %s20_s19 }
  0x2d   :  { %p6671_p5 = scmp.ne.s32.totalorder %s20_s19, %s6670_s3  ;;  %p6676_p7 = scmp.lt.s32.totalorder %s6670_s3, %s6670_s3 }
  0x2f   :  { %p6677_p8 = por %p6676_p7, %p6675_p6 }
  0x31   :  { %p6678_p9 = pnand %p6677_p8, %p6671_p5 }
  0x33   :  { %6681 = shalt.err (!%p6678_p9)
}
  0x34   :  { %25 = dma.hbm_to_vmem [thread:$0]  %s8487_s0, 8192, %s20_s19, [#allocation3], %s6758_s30, %s6758_s30, %s6759_s6  }
  0x35   :  { %s6682_s10 = scalar_lea.hbm %s8489_s2, 2048 }
  0x36   :  { %p6683_p10 = scmp.ne.s32.totalorder %s8489_s2, %s6682_s10  ;;  %p6686_p11 = scmp.lt.u32.totalorder %s6682_s10, %s8489_s2 }
  0x38   :  { %p6688_p12 = pnand %p6686_p11, %p6683_p10 }
  0x3a   :  { %6691 = shalt.err (!%p6688_p12)
}
  0x3b   :  { %s6692_s15 = scalar_lea.vmem %s6834_s22, 2048  ;;  %p6697_p0 = scmp.lt.s32.totalorder %s6834_s22, %s6834_s22 }
  0x3c   :  { %p6693_p13 = scmp.ne.s32.totalorder %s6834_s22, %s6692_s15  ;;  %p6698_p1 = scmp.lt.s32.totalorder %s6692_s15, %s6692_s15 }
  0x3e   :  { %p6699_p2 = por %p6698_p1, %p6697_p0 }
  0x40   :  { %p6700_p3 = pnand %p6699_p2, %p6693_p13 }
  0x42   :  { %6703 = shalt.err (!%p6700_p3)
}
  0x43   :  { %49 = dma.hbm_to_vmem [thread:$0]  %s8489_s2, 2048, %s6834_s22, [#allocation6], %s6758_s30, %s6758_s30, %s6759_s6  }
  0x44   :  { %s6762_s1 = smov [#allocation10]   ;;  %s6704_s20 = scalar_lea.hbm %s8491_s4, 3584 }
  0x45   :  { %s67_s17 = sshll.u32 %s6762_s1, 4  ;;  %p6705_p4 = scmp.ne.s32.totalorder %s8491_s4, %s6704_s20  ;;  %s68_s17 = int_to_ptr.vmem [resolvable:$true] %s67_s17 }
  0x46   :  { %p6708_p5 = scmp.lt.u32.totalorder %s6704_s20, %s8491_s4 }
  0x48   :  { %p6710_p6 = pnand %p6708_p5, %p6705_p4 }
  0x4a   :  { %6713 = shalt.err (!%p6710_p6)
}
  0x4b   :  { %s6714_s27 = scalar_lea.vmem %s68_s17, 3584  ;;  %p6719_p8 = scmp.lt.s32.totalorder %s68_s17, %s68_s17 }
  0x4c   :  { %p6715_p7 = scmp.ne.s32.totalorder %s68_s17, %s6714_s27  ;;  %p6720_p9 = scmp.lt.s32.totalorder %s6714_s27, %s6714_s27 }
  0x4e   :  { %p6721_p10 = por %p6720_p9, %p6719_p8 }
  0x50   :  { %p6722_p11 = pnand %p6721_p10, %p6715_p7 }
  0x52   :  { %6725 = shalt.err (!%p6722_p11)
}
  0x53   :  { %73 = dma.hbm_to_vmem [thread:$0]  %s8491_s4, 3584, %s68_s17, [#allocation9], %s6758_s30, %s6758_s30, %s6759_s6  }
  0x54   :  { %6748 = dma.done.wait [#allocation3], 8192  }
  0x55   :  { %6749 = vsyncadd [#allocation3], 4294959104 }
  0x56   :  { %6750 = dma.done.wait [#allocation6], 4096  }
  0x57   :  { %6751 = vsyncadd [#allocation6], 4294963200 }
  0x58   :  { %6752 = dma.done.wait [#allocation9], 5376  }
  0x59   :  { %6753 = vsyncadd [#allocation9], 4294961920  ;;  %v8495_v0 = vmov 0.0|0.0   ;;  %vm6764_vm0 = vmmov 0   ;;  %v8493_v1 = vmov 0.0   ;;  %v89_v2 = vld [vmem:[#allocation5] sm:$0xff] }
  0x5a   :  { %6265 = vmatprep.subr.bf16.mxu0 %v8495_v0  ;;  %5863 = vmatprep.mubr.msk.f32.mxu0 %vm6764_vm0, %v8493_v1  ;;  %v90_v3 = vld [vmem:[#allocation5 + $0x8] sm:$0xff]  ;;  %v91_v4 = vld [vmem:[#allocation5 + $0x10] sm:$0xff]  ;;  %v92_v6 = vld [vmem:[#allocation5 + $0x18] sm:$0xff]  ;;  %vm393_vm2 = vcmask 1041408   ;;  %vm780_vm4 = vcmask 130048   ;;  %s6766_s4 = smov [#allocation11]  }
  0x5b   :  { %6289 = vmatprep.subr.bf16.mxu1 %v8495_v0  ;;  %5898 = vmatprep.mubr.msk.f32.mxu1 %vm6764_vm0, %v8493_v1  ;;  %v6892_v5 = vpack.c.bf16 %v90_v3, %v89_v2  ;;  %v6895_v7 = vpack.c.bf16 %v92_v6, %v91_v4  ;;  %v93_v8 = vld [vmem:[#allocation5 + $0x20] sm:$0xff]  ;;  %v94_v9 = vld [vmem:[#allocation5 + $0x28] sm:$0xff]  ;;  %v6904_v13 = vld [vmem:[#allocation2 + $0x10] sm:$0xff]  ;;  %s5497_s28 = sshll.u32 %s6766_s4, 4  ;;  %s5498_s28 = int_to_ptr.vmem [resolvable:$true] %s5497_s28 }
  0x5c   :  { %v6898_v10 = vld [vmem:[#allocation2] sm:$0xff]  ;;  %v6900_v11 = vld [vmem:[#allocation2 + $0x8] sm:$0xff]  ;;  %v6902_v12 = vpack.c.bf16 %v94_v9, %v93_v8  ;;  %v6906_v14 = vld [vmem:[#allocation2 + $0x18] sm:$0xff]  ;;  %s6726_s29 = scalar_lea.vmem %s5498_s28, 8192  ;;  %p6731_p13 = scmp.lt.s32.totalorder %s5498_s28, %s5498_s28 }
  0x5d   :  { %6267 = vmatpush3.bf16.msra.mxu0 %v6892_v5  ;;  %v6908_v15 = vld [vmem:[#allocation2 + $0x20] sm:$0xff]  ;;  %v95_v16 = vld [vmem:[#allocation5 + $0x30] sm:$0xff]  ;;  %v96_v17 = vld [vmem:[#allocation5 + $0x38] sm:$0xff]  ;;  %v133_v18 = vadd.f32 %v6904_v13, %v6898_v10  ;;  %v134_v19 = vadd.f32 %v6906_v14, %v6900_v11  ;;  %v135_v20 = vmax.f32 %v6898_v10, %v6904_v13  ;;  %v136_v21 = vmax.f32 %v6900_v11, %v6906_v14  ;;  %p6727_p12 = scmp.ne.s32.totalorder %s5498_s28, %s6726_s29  ;;  %p6732_p0 = scmp.lt.s32.totalorder %s6726_s29, %s6726_s29 }
  0x5e   :  { %6268 = vmatprep.subr.bf16.mxu0 %v8495_v0  ;;  %v6919_v22 = vld [vmem:[#allocation2 + $0x28] sm:$0xff]  ;;  %v6922_v23 = vld [vmem:[#allocation2 + $0x30] sm:$0xff]  ;;  %v6924_v24 = vld [vmem:[#allocation2 + $0x38] sm:$0xff]  ;;  %v6930_v29 = vpack.c.bf16 %v96_v17, %v95_v16 }
  0x5f   :  { %v140_v25 = vadd.f32 %v6908_v15, %v133_v18  ;;  %v141_v26 = vadd.f32 %v6919_v22, %v134_v19  ;;  %v142_v27 = vmax.f32 %v135_v20, %v6908_v15  ;;  %v143_v28 = vmax.f32 %v136_v21, %v6919_v22  ;;  %v6932_v30 = vld [vmem:[#allocation2 + $0x40] sm:$0xff]  ;;  %v6934_v31 = vld [vmem:[#allocation2 + $0x48] sm:$0xff]  ;;  %v6942_v38 = vld [vmem:[#allocation2 + $0x50] sm:$0xff]  ;;  %p6733_p1 = por %p6732_p0, %p6731_p13 }
  0x60   :  { %v97_v32 = vld [vmem:[#allocation5 + $0x40] sm:$0xff]  ;;  %v98_v33 = vld [vmem:[#allocation5 + $0x48] sm:$0xff]  ;;  %v6944_v39 = vld [vmem:[#allocation2 + $0x58] sm:$0xff] }
  0x61   :  { %6270 = vmatpush3.bf16.msra.mxu0 %v6895_v7  ;;  %v147_v34 = vadd.f32 %v6922_v23, %v140_v25  ;;  %v148_v35 = vadd.f32 %v6924_v24, %v141_v26  ;;  %v149_v36 = vmax.f32 %v142_v27, %v6922_v23  ;;  %v150_v37 = vmax.f32 %v143_v28, %v6924_v24  ;;  %v6952_v45 = vld [vmem:[#allocation2 + $0x60] sm:$0xff]  ;;  %v6954_v46 = vld [vmem:[#allocation2 + $0x68] sm:$0xff]  ;;  %v99_v47 = vld [vmem:[#allocation5 + $0x50] sm:$0xff]  ;;  %p6734_p2 = pnand %p6733_p1, %p6727_p12 }
  0x62   :  { %6271 = vmatprep.subr.bf16.mxu0 %v8495_v0  ;;  %v6950_v44 = vpack.c.bf16 %v98_v33, %v97_v32  ;;  %v100_v48 = vld [vmem:[#allocation5 + $0x58] sm:$0xff]  ;;  %v6961_v53 = vld [vmem:[#allocation2 + $0x70] sm:$0xff]  ;;  %v105_v55 = vld [vmem:[#allocation7] sm:$0xff] }
  0x63   :  { %v154_v40 = vadd.f32 %v6932_v30, %v147_v34  ;;  %v155_v41 = vadd.f32 %v6934_v31, %v148_v35  ;;  %v156_v42 = vmax.f32 %v149_v36, %v6932_v30  ;;  %v157_v43 = vmax.f32 %v150_v37, %v6934_v31  ;;  %v6964_v54 = vld [vmem:[#allocation2 + $0x78] sm:$0xff]  ;;  %v106_v56 = vld [vmem:[#allocation7 + $0x8] sm:$0xff]  ;;  %v107_v61 = vld [vmem:[#allocation7 + $0x10] sm:$0xff] }
  0x64   :  { %v108_v62 = vld [vmem:[#allocation7 + $0x18] sm:$0xff]  ;;  %v6970_v63 = vpack.c.bf16 %v100_v48, %v99_v47  ;;  %v6972_v2 = vld [vmem:[#allocation2 + $0x80] sm:$0xff]  ;;  %v6974_v3 = vld [vmem:[#allocation2 + $0x88] sm:$0xff]  ;;  %v6976_v4 = vpack.c.bf16 %v106_v56, %v105_v55 }
  0x65   :  { %6273 = vmatpush3.bf16.msra.mxu0 %v6902_v12  ;;  %v161_v49 = vadd.f32 %v6942_v38, %v154_v40  ;;  %v162_v50 = vadd.f32 %v6944_v39, %v155_v41  ;;  %v163_v51 = vmax.f32 %v156_v42, %v6942_v38  ;;  %v164_v52 = vmax.f32 %v157_v43, %v6944_v39  ;;  %v101_v6 = vld [vmem:[#allocation5 + $0x60] sm:$0xff]  ;;  %v102_v8 = vld [vmem:[#allocation5 + $0x68] sm:$0xff]  ;;  %v6984_v19 = vld [vmem:[#allocation2 + $0x90] sm:$0xff] }
  0x66   :  { %6274 = vmatprep.subr.bf16.mxu0 %v8495_v0  ;;  %v6986_v20 = vld [vmem:[#allocation2 + $0x98] sm:$0xff]  ;;  %6291 = vmatpush3.bf16.msra.mxu1 %v6976_v4  ;;  %v6989_v21 = vpack.c.bf16 %v108_v62, %v107_v61  ;;  %v109_v32 = vld [vmem:[#allocation7 + $0x20] sm:$0xff]  ;;  %v110_v33 = vld [vmem:[#allocation7 + $0x28] sm:$0xff]  ;;  %v6996_v34 = vpack.c.bf16 %v102_v8, %v101_v6 }
  0x67   :  { %v168_v57 = vadd.f32 %v6952_v45, %v161_v49  ;;  %v169_v58 = vadd.f32 %v6954_v46, %v162_v50  ;;  %v170_v59 = vmax.f32 %v163_v51, %v6952_v45  ;;  %v171_v60 = vmax.f32 %v164_v52, %v6954_v46  ;;  %6292 = vmatprep.subr.bf16.mxu1 %v8495_v0  ;;  %v6998_v35 = vld [vmem:[#allocation2 + $0xa0] sm:$0xff]  ;;  %v7000_v36 = vld [vmem:[#allocation2 + $0xa8] sm:$0xff]  ;;  %v103_v37 = vld [vmem:[#allocation5 + $0x70] sm:$0xff] }
  0x68   :  { %v104_v40 = vld [vmem:[#allocation5 + $0x78] sm:$0xff]  ;;  %v7008_v48 = vld [vmem:[#allocation2 + $0xb0] sm:$0xff]  ;;  %v7013_v50 = vpack.c.bf16 %v110_v33, %v109_v32  ;;  %v7024_v61 = vld [vmem:[#allocation2 + $0xc8] sm:$0xff] }
  0x69   :  { %6276 = vmatpush3.bf16.msra.mxu0 %v6930_v29  ;;  %v175_v9 = vadd.f32 %v6961_v53, %v168_v57  ;;  %v176_v16 = vadd.f32 %v6964_v54, %v169_v58  ;;  %v177_v17 = vmax.f32 %v170_v59, %v6961_v53  ;;  %v178_v18 = vmax.f32 %v171_v60, %v6964_v54  ;;  %v7010_v49 = vld [vmem:[#allocation2 + $0xb8] sm:$0xff]  ;;  %v111_v57 = vld [vmem:[#allocation7 + $0x30] sm:$0xff]  ;;  %v7022_v60 = vld [vmem:[#allocation2 + $0xc0] sm:$0xff] }
  0x6a   :  { %6277 = vmatprep.subr.bf16.mxu0 %v8495_v0  ;;  %6294 = vmatpush3.bf16.msra.mxu1 %v6989_v21  ;;  %8515 = vst [vmem:[#allocation16_spill] sm:$0xff] %v7013_v50  ;;  %v112_v58 = vld [vmem:[#allocation7 + $0x38] sm:$0xff]  ;;  %v7020_v59 = vpack.c.bf16 %v104_v40, %v103_v37  ;;  %v113_v32 = vld [vmem:[#allocation7 + $0x40] sm:$0xff]  ;;  %v114_v33 = vld [vmem:[#allocation7 + $0x48] sm:$0xff] }
  0x6b   :  { %v182_v25 = vadd.f32 %v6972_v2, %v175_v9  ;;  %v183_v26 = vadd.f32 %v6974_v3, %v176_v16  ;;  %v184_v27 = vmax.f32 %v177_v17, %v6972_v2  ;;  %v185_v28 = vmax.f32 %v178_v18, %v6974_v3  ;;  %6295 = vmatprep.subr.bf16.mxu1 %v8495_v0  ;;  %v7032_v16 = vld [vmem:[#allocation2 + $0xd0] sm:$0xff]  ;;  %v7034_v17 = vld [vmem:[#allocation2 + $0xd8] sm:$0xff]  ;;  %v7044_v37 = vld [vmem:[#allocation2 + $0xe0] sm:$0xff] }
  0x6c   :  { %v7037_v18 = vpack.c.bf16 %v112_v58, %v111_v57  ;;  %v7046_v40 = vld [vmem:[#allocation2 + $0xe8] sm:$0xff] }
  0x6d   :  { %6279 = vmatpush3.bf16.msra.mxu0 %v6950_v44  ;;  %v189_v41 = vadd.f32 %v6984_v19, %v182_v25  ;;  %v190_v42 = vadd.f32 %v6986_v20, %v183_v26  ;;  %v191_v43 = vmax.f32 %v184_v27, %v6984_v19  ;;  %v192_v47 = vmax.f32 %v185_v28, %v6986_v20 }
  0x6e   :  { %6280 = vmatprep.subr.bf16.mxu0 %v8495_v0  ;;  %6297 = vmatpush3.bf16.msra.mxu1 %v7013_v50  ;;  %8516 = vst [vmem:[#allocation17_spill] sm:$0xff] %v7037_v18 }
  0x6f   :  { %v196_v51 = vadd.f32 %v6998_v35, %v189_v41  ;;  %v197_v52 = vadd.f32 %v7000_v36, %v190_v42  ;;  %v198_v55 = vmax.f32 %v191_v43, %v6998_v35  ;;  %v199_v56 = vmax.f32 %v192_v47, %v7000_v36  ;;  %6298 = vmatprep.subr.bf16.mxu1 %v8495_v0 }
  0x71   :  { %6282 = vmatpush3.bf16.msra.mxu0 %v6970_v63  ;;  %v203_v62 = vadd.f32 %v7008_v48, %v196_v51  ;;  %v204_v6 = vadd.f32 %v7010_v49, %v197_v52  ;;  %v205_v8 = vmax.f32 %v198_v55, %v7008_v48  ;;  %v206_v9 = vmax.f32 %v199_v56, %v7010_v49  ;;  %v7053_v51 = vld [vmem:[#allocation2 + $0xf0] sm:$0xff]  ;;  %v7055_v52 = vld [vmem:[#allocation2 + $0xf8] sm:$0xff] }
  0x72   :  { %6283 = vmatprep.subr.bf16.mxu0 %v8495_v0  ;;  %6300 = vmatpush3.bf16.msra.mxu1 %v7037_v18  ;;  %v7058_v55 = vpack.c.bf16 %v114_v33, %v113_v32 }
  0x73   :  { %v210_v25 = vadd.f32 %v7022_v60, %v203_v62  ;;  %v211_v26 = vadd.f32 %v7024_v61, %v204_v6  ;;  %v212_v27 = vmax.f32 %v205_v8, %v7022_v60  ;;  %v213_v28 = vmax.f32 %v206_v9, %v7024_v61  ;;  %6301 = vmatprep.subr.bf16.mxu1 %v8495_v0  ;;  %v115_v6 = vld [vmem:[#allocation7 + $0x50] sm:$0xff]  ;;  %v116_v8 = vld [vmem:[#allocation7 + $0x58] sm:$0xff] }
  0x74   :  { %8517 = vst [vmem:[#allocation18_spill] sm:$0xff] %v7058_v55 }
  0x75   :  { %6285 = vmatpush3.bf16.msra.mxu0 %v6996_v34  ;;  %v217_v41 = vadd.f32 %v7032_v16, %v210_v25  ;;  %v218_v42 = vadd.f32 %v7034_v17, %v211_v26  ;;  %v219_v43 = vmax.f32 %v212_v27, %v7032_v16  ;;  %v220_v47 = vmax.f32 %v213_v28, %v7034_v17 }
  0x76   :  { %6286 = vmatprep.subr.bf16.mxu0 %v8495_v0  ;;  %6303 = vmatpush3.bf16.msra.mxu1 %v7058_v55  ;;  %v7070_v28 = vpack.c.bf16 %v116_v8, %v115_v6 }
  0x77   :  { %v224_v56 = vadd.f32 %v7044_v37, %v217_v41  ;;  %v225_v57 = vadd.f32 %v7046_v40, %v218_v42  ;;  %v226_v58 = vmax.f32 %v219_v43, %v7044_v37  ;;  %v227_v62 = vmax.f32 %v220_v47, %v7046_v40  ;;  %6304 = vmatprep.subr.bf16.mxu1 %v8495_v0  ;;  %v117_v41 = vld [vmem:[#allocation7 + $0x60] sm:$0xff]  ;;  %v118_v42 = vld [vmem:[#allocation7 + $0x68] sm:$0xff] }
  0x78   :  { %8518 = vst [vmem:[#allocation19_spill] sm:$0xff] %v7070_v28 }
  0x79   :  { %6288 = vmatpush3.bf16.msra.mxu0 %v7020_v59  ;;  %v231_v9 = vadd.f32 %v7053_v51, %v224_v56  ;;  %v232_v25 = vadd.f32 %v7055_v52, %v225_v57  ;;  %v233_v26 = vmax.f32 %v226_v58, %v7053_v51  ;;  %v234_v27 = vmax.f32 %v227_v62, %v7055_v52 }
  0x7a   :  { %6306 = vmatpush3.bf16.msra.mxu1 %v7070_v28  ;;  %v7074_v56 = vpack.c.bf16 %v118_v42, %v117_v41  ;;  %v8497_v62 = vlaneseq }
  0x7b   :  { %v235_v32 = vadd.f32 %v232_v25, %v231_v9  ;;  %v243_v33 = vmax.f32 %v233_v26, %v234_v27  ;;  %6307 = vmatprep.subr.bf16.mxu1 %v8495_v0 }
  0x7c   :  { %8519 = vst [vmem:[#allocation20_spill] sm:$0xff] %v7074_v56  ;;  %v7080_v25 = vshrl.u32 %v8497_v62, 7 }
  0x7d   :  { %v236_v43 = vrot.slane %v235_v32, 4  ;;  %v244_v47 = vrot.slane %v243_v33, 4 }
  0x7e   :  { %6309 = vmatpush3.bf16.msra.mxu1 %v7074_v56  ;;  %vm250_vm1 = vcmp.eq.s32.totalorder %v7080_v25, 0  ;;  %v1702_v25 = vld [vmem:[#allocation8 + $0x38] sm:$0xff] }
  0x7f   :  { %v237_v57 = vadd.f32 %v236_v43, %v235_v32  ;;  %v245_v58 = vmax.f32 %v243_v33, %v244_v47  ;;  %6310 = vmatprep.subr.bf16.mxu1 %v8495_v0  ;;  %v119_v43 = vld [vmem:[#allocation7 + $0x70] sm:$0xff]  ;;  %v120_v47 = vld [vmem:[#allocation7 + $0x78] sm:$0xff] }
  0x81   :  { %v238_v1 = vrot.slane %v237_v57, 2  ;;  %v246_v6 = vrot.slane %v245_v58, 2 }
  0x83   :  { %v239_v8 = vadd.f32 %v238_v1, %v237_v57  ;;  %v247_v9 = vmax.f32 %v245_v58, %v246_v6  ;;  %v7085_v1 = vpack.c.bf16 %v120_v47, %v119_v43 }
  0x85   :  { %v240_v26 = vrot.slane %v239_v8, 1  ;;  %v248_v27 = vrot.slane %v247_v9, 1  ;;  %8520 = vst [vmem:[#allocation21_spill] sm:$0xff] %v7085_v1  ;;  %6312 = vmatpush3.bf16.msra.mxu1 %v7085_v1 }
  0x87   :  { %v241_v41 = vadd.f32 %v240_v26, %v239_v8  ;;  %v249_v42 = vmax.f32 %v247_v9, %v248_v27 }
  0x89   :  { %v242_v32 = vmul.f32 0.00390625, %v241_v41 }
  0x8b   :  { %v251_v33 = vsel %vm250_vm1, %v242_v32, %v249_v42 }
  0x8c   :  { %5864 = vmatmul.mubr.f32.vlgmr.msra.gmra.mrb[0].mxu0 %v251_v33 }
 0x15f   :  { %v318_v57 = vpop.f32.mrb[0].mxu0 }
 0x160   :  { %v322_v58 = vmax.f32 %v318_v57, 0.0  ;;  %v5865_v6 = vpop.f32.mrb[1].mxu0 }
 0x162   :  { %5899 = vmatmul.mubr.f32.vlgmr.msra.gmra.mrb[0].mxu1 %v322_v58 }
 0x235   :  { %v389_v8 = vpop.f32.mrb[0].mxu1 }
 0x236   :  { %v394_v9 = vsel %vm393_vm2, %v389_v8, 0.0  ;;  %v5900_v26 = vpop.f32.mrb[1].mxu1 }
 0x237   :  { %v395_v27 = vrot.slane %v394_v9, 4 }
 0x239   :  { %v396_v41 = vadd.f32 %v395_v27, %v394_v9 }
 0x23b   :  { %v397_v0 = vrot.slane %v396_v41, 2 }
 0x23d   :  { %v398_v42 = vadd.f32 %v397_v0, %v396_v41 }
 0x23f   :  { %v399_v32 = vrot.slane %v398_v42, 1 }
 0x241   :  { %v400_v33 = vadd.f32 %v399_v32, %v398_v42 }
 0x243   :  { %v401_v62 = vsub.f32 0.0, %v400_v33 }
 0x245   :  { %v402_v43 = vmul.f32 1.442695, %v401_v62 }
 0x247   :  { %6592 = vpow2.f32 %v402_v43 }
 0x251   :  { %v6593_v47 = vpop.eup %6592 }
 0x252   :  { %v404_v1 = vadd.f32 1.0, %v6593_v47 }
 0x254   :  { %6594 = vrcp.f32 %v404_v1 }
 0x25e   :  { %v7089_v57 = vpop.eup %6594 }
 0x25f   :  { %8521 = vst [vmem:[#allocation22_spill] sm:$0xff] %v7089_v57  ;;  %v7093_v58 = vmul.f32 %v7089_v57, %v6900_v11  ;;  %v7097_v6 = vmul.f32 %v7089_v57, %v6898_v10  ;;  %v431_v0 = vmul.f32 %v7089_v57, %v6906_v14  ;;  %v430_v62 = vmul.f32 %v7089_v57, %v6904_v13 }
 0x260   :  { %v454_v11 = vmul.f32 %v7089_v57, %v6919_v22  ;;  %v453_v1 = vmul.f32 %v7089_v57, %v6908_v15  ;;  %v477_v10 = vmul.f32 %v7089_v57, %v6924_v24  ;;  %v476_v8 = vmul.f32 %v7089_v57, %v6922_v23 }
 0x261   :  { %8522 = vst [vmem:[#allocation23_spill] sm:$0xff] %v7093_v58  ;;  %8523 = vst [vmem:[#allocation24_spill] sm:$0xff] %v7097_v6  ;;  %411 = vadd.xlane.f32.xlu1 %v7093_v58  ;;  %409 = vadd.xlane.f32.xlu0 %v7097_v6  ;;  %v500_v13 = vmul.f32 %v7089_v57, %v6934_v31  ;;  %v499_v14 = vmul.f32 %v7089_v57, %v6932_v30 }
 0x262   :  { %v523_v15 = vmul.f32 %v7089_v57, %v6944_v39  ;;  %v522_v22 = vmul.f32 %v7089_v57, %v6942_v38  ;;  %v546_v23 = vmul.f32 %v7089_v57, %v6954_v46  ;;  %v545_v24 = vmul.f32 %v7089_v57, %v6952_v45 }
 0x263   :  { %v569_v30 = vmul.f32 %v7089_v57, %v6964_v54  ;;  %v568_v31 = vmul.f32 %v7089_v57, %v6961_v53  ;;  %v592_v38 = vmul.f32 %v7089_v57, %v6974_v3  ;;  %v591_v39 = vmul.f32 %v7089_v57, %v6972_v2 }
 0x264   :  { %v615_v45 = vmul.f32 %v7089_v57, %v6986_v20  ;;  %v614_v46 = vmul.f32 %v7089_v57, %v6984_v19  ;;  %v638_v53 = vmul.f32 %v7089_v57, %v7000_v36  ;;  %v637_v54 = vmul.f32 %v7089_v57, %v6998_v35 }
 0x265   :  { %434 = vadd.xlane.f32.xlu1 %v431_v0  ;;  %432 = vadd.xlane.f32.xlu0 %v430_v62  ;;  %v661_v2 = vmul.f32 %v7089_v57, %v7010_v49  ;;  %v660_v3 = vmul.f32 %v7089_v57, %v7008_v48  ;;  %v684_v19 = vmul.f32 %v7089_v57, %v7024_v61  ;;  %v8524_v36 = vlaneseq }
 0x266   :  { %v683_v20 = vmul.f32 %v7089_v57, %v7022_v60  ;;  %v707_v35 = vmul.f32 %v7089_v57, %v7034_v17  ;;  %v706_v49 = vmul.f32 %v7089_v57, %v7032_v16 }
 0x267   :  { %v7150_v9 = vand.u32 127, %v8524_v36 }
 0x269   :  { %457 = vadd.xlane.f32.xlu1 %v454_v11  ;;  %455 = vadd.xlane.f32.xlu0 %v453_v1  ;;  %vm125_vm3 = vcmp.ge.s32.totalorder %v7150_v9, 32  ;;  %vm444_vm5 = vcmp.eq.s32.totalorder %v7150_v9, 1  ;;  %vm421_vm6 = vcmp.eq.s32.totalorder %v7150_v9, 0  ;;  %vm467_vm7 = vcmp.eq.s32.totalorder %v7150_v9, 2 }
 0x26a   :  { %v438_v48 = vsel %vm125_vm3, -inf, %v430_v62  ;;  %v415_v60 = vsel %vm125_vm3, -inf, %v7097_v6  ;;  %v439_v61 = vsel %vm125_vm3, -inf, %v431_v0  ;;  %v416_v16 = vsel %vm125_vm3, -inf, %v7093_v58 }
 0x26b   :  { %v462_v17 = vsel %vm125_vm3, -inf, %v454_v11  ;;  %v461_v26 = vsel %vm125_vm3, -inf, %v453_v1  ;;  %v485_v27 = vsel %vm125_vm3, -inf, %v477_v10  ;;  %v484_v41 = vsel %vm125_vm3, -inf, %v476_v8 }
 0x26c   :  { %v508_v42 = vsel %vm125_vm3, -inf, %v500_v13  ;;  %v507_v32 = vsel %vm125_vm3, -inf, %v499_v14  ;;  %v531_v33 = vsel %vm125_vm3, -inf, %v523_v15  ;;  %v530_v43 = vsel %vm125_vm3, -inf, %v522_v22 }
 0x26d   :  { %480 = vadd.xlane.f32.xlu1 %v477_v10  ;;  %478 = vadd.xlane.f32.xlu0 %v476_v8  ;;  %v554_v47 = vsel %vm125_vm3, -inf, %v546_v23  ;;  %v553_v0 = vsel %vm125_vm3, -inf, %v545_v24  ;;  %v577_v62 = vsel %vm125_vm3, -inf, %v569_v30  ;;  %v576_v11 = vsel %vm125_vm3, -inf, %v568_v31 }
 0x26e   :  { %v600_v1 = vsel %vm125_vm3, -inf, %v592_v38  ;;  %v599_v10 = vsel %vm125_vm3, -inf, %v591_v39  ;;  %v623_v8 = vsel %vm125_vm3, -inf, %v615_v45  ;;  %vm8514_vm8 = vcmp.eq.s32.totalorder %v7150_v9, 3 }
 0x26f   :  { %vm8513_vm9 = vcmp.eq.s32.totalorder %v7150_v9, 4  ;;  %vm8509_vm10 = vcmp.eq.s32.totalorder %v7150_v9, 5  ;;  %vm8508_vm11 = vcmp.eq.s32.totalorder %v7150_v9, 6  ;;  %vm8511_vm12 = vcmp.eq.s32.totalorder %v7150_v9, 7 }
 0x270   :  { %vm8510_vm13 = vcmp.eq.s32.totalorder %v7150_v9, 8  ;;  %vm8512_vm14 = vcmp.eq.s32.totalorder %v7150_v9, 9  ;;  %vm651_vm15 = vcmp.eq.s32.totalorder %v7150_v9, 10 }
 0x271   :  { %503 = vadd.xlane.f32.xlu1 %v500_v13  ;;  %501 = vadd.xlane.f32.xlu0 %v499_v14  ;;  %v622_v13 = vsel %vm125_vm3, -inf, %v614_v46  ;;  %v646_v14 = vsel %vm125_vm3, -inf, %v638_v53 }
 0x275   :  { %526 = vadd.xlane.f32.xlu1 %v523_v15  ;;  %524 = vadd.xlane.f32.xlu0 %v522_v22  ;;  %v645_v15 = vsel %vm125_vm3, -inf, %v637_v54  ;;  %v669_v22 = vsel %vm125_vm3, -inf, %v661_v2 }
 0x279   :  { %549 = vadd.xlane.f32.xlu1 %v546_v23  ;;  %547 = vadd.xlane.f32.xlu0 %v545_v24  ;;  %v668_v23 = vsel %vm125_vm3, -inf, %v660_v3  ;;  %v692_v24 = vsel %vm125_vm3, -inf, %v684_v19 }
 0x27d   :  { %572 = vadd.xlane.f32.xlu1 %v569_v30  ;;  %570 = vadd.xlane.f32.xlu0 %v568_v31  ;;  %v691_v30 = vsel %vm125_vm3, -inf, %v683_v20  ;;  %v715_v31 = vsel %vm125_vm3, -inf, %v707_v35 }
 0x281   :  { %595 = vadd.xlane.f32.xlu1 %v592_v38  ;;  %593 = vadd.xlane.f32.xlu0 %v591_v39  ;;  %v714_v38 = vsel %vm125_vm3, -inf, %v706_v49  ;;  %v730_v39 = vmul.f32 %v7089_v57, %v7046_v40 }
 0x285   :  { %618 = vadd.xlane.f32.xlu1 %v615_v45  ;;  %616 = vadd.xlane.f32.xlu0 %v614_v46  ;;  %v729_v45 = vmul.f32 %v7089_v57, %v7044_v37  ;;  %v738_v46 = vsel %vm125_vm3, -inf, %v730_v39 }
 0x289   :  { %641 = vadd.xlane.f32.xlu1 %v638_v53  ;;  %639 = vadd.xlane.f32.xlu0 %v637_v54  ;;  %v737_v53 = vsel %vm125_vm3, -inf, %v729_v45  ;;  %v753_v54 = vmul.f32 %v7089_v57, %v7055_v52  ;;  %v778_v52 = vld [vmem:[#allocation10 + $0x70] sm:$0xff] }
 0x28a   :  { %5905 = vmatprep.mubr.msk.f32.mxu0 %vm780_vm4, %v778_v52 }
 0x28b   :  { %v761_v40 = vsel %vm125_vm3, -inf, %v753_v54 }
 0x28d   :  { %664 = vadd.xlane.f32.xlu1 %v661_v2  ;;  %662 = vadd.xlane.f32.xlu0 %v660_v3  ;;  %v752_v2 = vmul.f32 %v7089_v57, %v7053_v51 }
 0x28f   :  { %v760_v37 = vsel %vm125_vm3, -inf, %v752_v2 }
 0x291   :  { %687 = vadd.xlane.f32.xlu1 %v684_v19  ;;  %685 = vadd.xlane.f32.xlu0 %v683_v20  ;;  %v949_v20 = vld [vmem:[#allocation10 + $0x80] sm:$0xff] }
 0x292   :  { %5919 = vmatprep.mubr.msk.f32.mxu1 %vm780_vm4, %v949_v20 }
 0x295   :  { %710 = vadd.xlane.f32.xlu1 %v707_v35  ;;  %708 = vadd.xlane.f32.xlu0 %v706_v49 }
 0x299   :  { %440 = vmax.xlane.f32.xlu1 %v438_v48  ;;  %417 = vmax.xlane.f32.xlu0 %v415_v60 }
 0x29d   :  { %442 = vmax.xlane.f32.xlu1 %v439_v61  ;;  %419 = vmax.xlane.f32.xlu0 %v416_v16 }
 0x2a1   :  { %465 = vmax.xlane.f32.xlu1 %v462_v17  ;;  %463 = vmax.xlane.f32.xlu0 %v461_v26 }
 0x2a5   :  { %488 = vmax.xlane.f32.xlu1 %v485_v27  ;;  %486 = vmax.xlane.f32.xlu0 %v484_v41 }
 0x2a9   :  { %511 = vmax.xlane.f32.xlu1 %v508_v42  ;;  %509 = vmax.xlane.f32.xlu0 %v507_v32 }
 0x2ad   :  { %534 = vmax.xlane.f32.xlu1 %v531_v33  ;;  %532 = vmax.xlane.f32.xlu0 %v530_v43 }
 0x2b1   :  { %557 = vmax.xlane.f32.xlu1 %v554_v47  ;;  %555 = vmax.xlane.f32.xlu0 %v553_v0 }
 0x2b5   :  { %580 = vmax.xlane.f32.xlu1 %v577_v62  ;;  %578 = vmax.xlane.f32.xlu0 %v576_v11 }
 0x2b9   :  { %603 = vmax.xlane.f32.xlu1 %v600_v1  ;;  %601 = vmax.xlane.f32.xlu0 %v599_v10 }
 0x2bd   :  { %626 = vmax.xlane.f32.xlu1 %v623_v8  ;;  %624 = vmax.xlane.f32.xlu0 %v622_v13 }
 0x2c1   :  { %649 = vmax.xlane.f32.xlu1 %v646_v14  ;;  %647 = vmax.xlane.f32.xlu0 %v645_v15 }
 0x2c5   :  { %672 = vmax.xlane.f32.xlu1 %v669_v22  ;;  %670 = vmax.xlane.f32.xlu0 %v668_v23 }
 0x2c9   :  { %695 = vmax.xlane.f32.xlu1 %v692_v24  ;;  %693 = vmax.xlane.f32.xlu0 %v691_v30 }
 0x2cd   :  { %718 = vmax.xlane.f32.xlu1 %v715_v31  ;;  %716 = vmax.xlane.f32.xlu0 %v714_v38 }
 0x2d1   :  { %741 = vmax.xlane.f32.xlu1 %v738_v46  ;;  %739 = vmax.xlane.f32.xlu0 %v737_v53 }
 0x2d5   :  { %764 = vmax.xlane.f32.xlu1 %v761_v40  ;;  %762 = vmax.xlane.f32.xlu0 %v760_v37 }
 0x2d9   :  { %733 = vadd.xlane.f32.xlu1 %v730_v39  ;;  %731 = vadd.xlane.f32.xlu0 %v729_v45 }
 0x2dd   :  { %756 = vadd.xlane.f32.xlu1 %v753_v54  ;;  %754 = vadd.xlane.f32.xlu0 %v752_v2 }
 0x2ee   :  { %v412_v3 = vpop.xlane.xlu1 %411  ;;  %v410_v19 = vpop.xlane.xlu0 %409 }
 0x2ef   :  { %v414_v57 = vmul.f32 0.03125, %v412_v3  ;;  %v413_v6 = vmul.f32 0.03125, %v410_v19 }
 0x2f1   :  { %v423_v19 = vsel %vm421_vm6, %v414_v57, 0.0 }
 0x2f2   :  { %v435_v51 = vpop.xlane.xlu1 %434  ;;  %v433_v36 = vpop.xlane.xlu0 %432 }
 0x2f3   :  { %v437_v40 = vmul.f32 0.03125, %v435_v51  ;;  %v436_v37 = vmul.f32 0.03125, %v433_v36 }
 0x2f5   :  { %v446_v28 = vsel %vm444_vm5, %v437_v40, 0.0  ;;  %v445_v51 = vsel %vm444_vm5, %v436_v37, 0.0 }
 0x2f6   :  { %v458_v35 = vpop.xlane.xlu1 %457  ;;  %v456_v49 = vpop.xlane.xlu0 %455  ;;  %v448_v37 = vadd.f32 %v446_v28, %v423_v19 }
 0x2f7   :  { %v460_v58 = vmul.f32 0.03125, %v458_v35  ;;  %v459_v56 = vmul.f32 0.03125, %v456_v49  ;;  %v422_v35 = vsel %vm421_vm6, %v413_v6, 0.0 }
 0x2f8   :  { %v447_v50 = vadd.f32 %v445_v51, %v422_v35 }
 0x2f9   :  { %v469_v49 = vsel %vm467_vm7, %v460_v58, 0.0  ;;  %v468_v40 = vsel %vm467_vm7, %v459_v56, 0.0 }
 0x2fa   :  { %v481_v48 = vpop.xlane.xlu1 %480  ;;  %v479_v60 = vpop.xlane.xlu0 %478  ;;  %v470_v56 = vadd.f32 %v468_v40, %v447_v50 }
 0x2fb   :  { %v483_v36 = vmul.f32 0.03125, %v481_v48  ;;  %v482_v55 = vmul.f32 0.03125, %v479_v60  ;;  %v471_v60 = vadd.f32 %v469_v49, %v448_v37 }
 0x2fd   :  { %v492_v28 = vsel %vm8514_vm8, %v483_v36, 0.0  ;;  %v491_v51 = vsel %vm8514_vm8, %v482_v55, 0.0 }
 0x2fe   :  { %v7233_v61 = vpop.xlane.xlu1 %503  ;;  %v7235_v16 = vpop.xlane.xlu0 %501 }
 0x302   :  { %v7237_v17 = vpop.xlane.xlu1 %526  ;;  %v7239_v26 = vpop.xlane.xlu0 %524 }
 0x303   :  { %v529_v50 = vmul.f32 0.03125, %v7237_v17  ;;  %v528_v49 = vmul.f32 0.03125, %v7239_v26 }
 0x306   :  { %v7241_v27 = vpop.xlane.xlu1 %549  ;;  %v7243_v41 = vpop.xlane.xlu0 %547 }
 0x30a   :  { %v7245_v42 = vpop.xlane.xlu1 %572  ;;  %v7247_v32 = vpop.xlane.xlu0 %570 }
 0x30e   :  { %v7249_v33 = vpop.xlane.xlu1 %595  ;;  %v7251_v43 = vpop.xlane.xlu0 %593 }
 0x312   :  { %v7253_v47 = vpop.xlane.xlu1 %618  ;;  %v7255_v0 = vpop.xlane.xlu0 %616 }
 0x316   :  { %v7257_v62 = vpop.xlane.xlu1 %641  ;;  %v7259_v11 = vpop.xlane.xlu0 %639 }
 0x31a   :  { %v7261_v1 = vpop.xlane.xlu1 %664  ;;  %v7263_v10 = vpop.xlane.xlu0 %662 }
 0x31e   :  { %v7265_v8 = vpop.xlane.xlu1 %687  ;;  %v7267_v13 = vpop.xlane.xlu0 %685 }
 0x322   :  { %v7269_v14 = vpop.xlane.xlu1 %710  ;;  %v7271_v15 = vpop.xlane.xlu0 %708 }
 0x326   :  { %v441_v22 = vpop.xlane.xlu1 %440  ;;  %v418_v23 = vpop.xlane.xlu0 %417 }
 0x327   :  { %v449_v48 = vsel %vm444_vm5, %v441_v22, 0.0  ;;  %v426_v57 = vsel %vm421_vm6, %v418_v23, 0.0  ;;  %v506_v22 = vmul.f32 0.03125, %v7233_v61  ;;  %v505_v23 = vmul.f32 0.03125, %v7235_v16 }
 0x328   :  { %v451_v36 = vadd.f32 %v449_v48, %v426_v57  ;;  %v494_v16 = vadd.f32 %v492_v28, %v471_v60  ;;  %v552_v28 = vmul.f32 0.03125, %v7241_v27 }
 0x329   :  { %v515_v48 = vsel %vm8513_vm9, %v506_v22, 0.0  ;;  %v514_v57 = vsel %vm8513_vm9, %v505_v23, 0.0 }
 0x32a   :  { %v443_v24 = vpop.xlane.xlu1 %442  ;;  %v420_v30 = vpop.xlane.xlu0 %419 }
 0x32b   :  { %v450_v6 = vsel %vm444_vm5, %v443_v24, 0.0  ;;  %v427_v58 = vsel %vm421_vm6, %v420_v30, 0.0 }
 0x32c   :  { %v452_v40 = vadd.f32 %v450_v6, %v427_v58  ;;  %v538_v6 = vsel %vm8509_vm10, %v529_v50, 0.0  ;;  %v537_v58 = vsel %vm8509_vm10, %v528_v49, 0.0 }
 0x32e   :  { %v466_v31 = vpop.xlane.xlu1 %465  ;;  %v464_v38 = vpop.xlane.xlu0 %463 }
 0x32f   :  { %v473_v24 = vsel %vm467_vm7, %v466_v31, 0.0  ;;  %v472_v30 = vsel %vm467_vm7, %v464_v38, 0.0  ;;  %v493_v31 = vadd.f32 %v491_v51, %v470_v56  ;;  %v551_v51 = vmul.f32 0.03125, %v7243_v41 }
 0x330   :  { %v475_v38 = vadd.f32 %v473_v24, %v452_v40  ;;  %v474_v17 = vadd.f32 %v472_v30, %v451_v36 }
 0x331   :  { %v516_v23 = vadd.f32 %v514_v57, %v493_v31  ;;  %v574_v31 = vmul.f32 0.03125, %v7247_v32 }
 0x332   :  { %v489_v39 = vpop.xlane.xlu1 %488  ;;  %v487_v45 = vpop.xlane.xlu0 %486 }
 0x333   :  { %v496_v55 = vsel %vm8514_vm8, %v489_v39, 0.0  ;;  %v495_v61 = vsel %vm8514_vm8, %v487_v45, 0.0 }
 0x334   :  { %v498_v60 = vadd.f32 %v496_v55, %v475_v38  ;;  %v497_v56 = vadd.f32 %v495_v61, %v474_v17  ;;  %v561_v55 = vsel %vm8508_vm11, %v552_v28, 0.0  ;;  %v560_v61 = vsel %vm8508_vm11, %v551_v51, 0.0 }
 0x336   :  { %v512_v46 = vpop.xlane.xlu1 %511  ;;  %v510_v53 = vpop.xlane.xlu0 %509 }
 0x337   :  { %v519_v39 = vsel %vm8513_vm9, %v512_v46, 0.0  ;;  %v518_v45 = vsel %vm8513_vm9, %v510_v53, 0.0  ;;  %v517_v53 = vadd.f32 %v515_v48, %v494_v16 }
 0x338   :  { %v521_v24 = vadd.f32 %v519_v39, %v498_v60  ;;  %v520_v30 = vadd.f32 %v518_v45, %v497_v56  ;;  %v598_v39 = vmul.f32 0.03125, %v7249_v33  ;;  %v597_v45 = vmul.f32 0.03125, %v7251_v43 }
 0x33a   :  { %v7273_v54 = vpop.xlane.xlu1 %534  ;;  %v7275_v2 = vpop.xlane.xlu0 %532 }
 0x33b   :  { %v542_v22 = vsel %vm8509_vm10, %v7273_v54, 0.0  ;;  %v541_v46 = vsel %vm8509_vm10, %v7275_v2, 0.0  ;;  %v540_v54 = vadd.f32 %v538_v6, %v517_v53  ;;  %v539_v2 = vadd.f32 %v537_v58, %v516_v23 }
 0x33c   :  { %v544_v36 = vadd.f32 %v542_v22, %v521_v24  ;;  %v543_v40 = vadd.f32 %v541_v46, %v520_v30  ;;  %vm697_vm10 = vcmp.eq.s32.totalorder %v7150_v9, 12  ;;  %v607_v22 = vsel %vm8510_vm13, %v598_v39, 0.0 }
 0x33d   :  { %v562_v58 = vadd.f32 %v560_v61, %v539_v2  ;;  %v606_v46 = vsel %vm8510_vm13, %v597_v45, 0.0  ;;  %v621_v53 = vmul.f32 0.03125, %v7253_v47  ;;  %v620_v23 = vmul.f32 0.03125, %v7255_v0 }
 0x33e   :  { %v7278_v52 = vpop.xlane.xlu1 %557  ;;  %v7280_v20 = vpop.xlane.xlu0 %555  ;;  %v667_v39 = vmul.f32 0.03125, %v7261_v1  ;;  %v666_v45 = vmul.f32 0.03125, %v7263_v10 }
 0x33f   :  { %v565_v27 = vsel %vm8508_vm11, %v7278_v52, 0.0  ;;  %v564_v41 = vsel %vm8508_vm11, %v7280_v20, 0.0  ;;  %v575_v20 = vmul.f32 0.03125, %v7245_v42  ;;  %vm674_vm11 = vcmp.eq.s32.totalorder %v7150_v9, 11 }
 0x340   :  { %v567_v38 = vadd.f32 %v565_v27, %v544_v36  ;;  %v566_v17 = vadd.f32 %v564_v41, %v543_v40 }
 0x341   :  { %v584_v43 = vsel %vm8511_vm12, %v575_v20, 0.0 }
 0x342   :  { %v7289_v18 = vpop.xlane.xlu1 %580  ;;  %v7291_v3 = vpop.xlane.xlu0 %578 }
 0x343   :  { %v588_v16 = vsel %vm8511_vm12, %v7289_v18, 0.0  ;;  %v587_v52 = vsel %vm8511_vm12, %v7291_v3, 0.0  ;;  %v563_v3 = vadd.f32 %v561_v55, %v540_v54 }
 0x344   :  { %v590_v42 = vadd.f32 %v588_v16, %v567_v38  ;;  %v589_v32 = vadd.f32 %v587_v52, %v566_v17  ;;  %v630_v16 = vsel %vm8512_vm14, %v621_v53, 0.0  ;;  %v629_v52 = vsel %vm8512_vm14, %v620_v23, 0.0 }
 0x345   :  { %v586_v27 = vadd.f32 %v584_v43, %v563_v3  ;;  %v644_v38 = vmul.f32 0.03125, %v7257_v62  ;;  %v643_v17 = vmul.f32 0.03125, %v7259_v11  ;;  %v690_v43 = vmul.f32 0.03125, %v7265_v8 }
 0x346   :  { %v604_v19 = vpop.xlane.xlu1 %603  ;;  %v602_v35 = vpop.xlane.xlu0 %601 }
 0x347   :  { %v611_v6 = vsel %vm8510_vm13, %v604_v19, 0.0  ;;  %v610_v18 = vsel %vm8510_vm13, %v602_v35, 0.0  ;;  %v583_v19 = vsel %vm8511_vm12, %v574_v31, 0.0  ;;  %vm720_vm13 = vcmp.eq.s32.totalorder %v7150_v9, 13 }
 0x348   :  { %v613_v35 = vadd.f32 %v611_v6, %v590_v42  ;;  %v612_v56 = vadd.f32 %v610_v18, %v589_v32  ;;  %v585_v41 = vadd.f32 %v583_v19, %v562_v58  ;;  %vm743_vm12 = vcmp.eq.s32.totalorder %v7150_v9, 14 }
 0x349   :  { %v609_v47 = vadd.f32 %v607_v22, %v586_v27  ;;  %v653_v1 = vsel %vm651_vm15, %v644_v38, 0.0  ;;  %v652_v10 = vsel %vm651_vm15, %v643_v17, 0.0  ;;  %v689_v19 = vmul.f32 0.03125, %v7267_v13 }
 0x34a   :  { %v627_v37 = vpop.xlane.xlu1 %626  ;;  %v625_v26 = vpop.xlane.xlu0 %624  ;;  %v608_v0 = vadd.f32 %v606_v46, %v585_v41  ;;  %v699_v27 = vsel %vm697_vm10, %v690_v43, 0.0  ;;  %v947_v43 = vld [vmem:[#allocation10 + $0x18] sm:$0xff] }
 0x34b   :  { %v634_v60 = vsel %vm8512_vm14, %v627_v37, 0.0  ;;  %v633_v33 = vsel %vm8512_vm14, %v625_v26, 0.0  ;;  %vm766_vm14 = vcmp.eq.s32.totalorder %v7150_v9, 15  ;;  %v632_v11 = vadd.f32 %v630_v16, %v609_v47 }
 0x34c   :  { %v636_v24 = vadd.f32 %v634_v60, %v613_v35  ;;  %v635_v30 = vadd.f32 %v633_v33, %v612_v56  ;;  %v631_v58 = vadd.f32 %v629_v52, %v608_v0  ;;  %v676_v35 = vsel %vm674_vm11, %v667_v39, 0.0  ;;  %v779_v52 = vld [vmem:[#allocation10 + $0x78] sm:$0xff]  ;;  %v946_v39 = vld [vmem:[#allocation10 + $0x10] sm:$0xff] }
 0x34d   :  { %v675_v56 = vsel %vm674_vm11, %v666_v45, 0.0  ;;  %v655_v13 = vadd.f32 %v653_v1, %v632_v11  ;;  %v698_v41 = vsel %vm697_vm10, %v689_v19, 0.0  ;;  %v1115_v11 = vld [vmem:[#allocation8 + $0x18] sm:$0xff]  ;;  %v1282_v19 = vld [vmem:[#allocation10 + $0x90] sm:$0xff] }
 0x34e   :  { %v650_v50 = vpop.xlane.xlu1 %649  ;;  %v648_v49 = vpop.xlane.xlu0 %647  ;;  %v654_v23 = vadd.f32 %v652_v10, %v631_v58  ;;  %v776_v10 = vld [vmem:[#allocation10 + $0x8] sm:$0xff] }
 0x34f   :  { %v657_v37 = vsel %vm651_vm15, %v650_v50, 0.0  ;;  %v656_v26 = vsel %vm651_vm15, %v648_v49, 0.0 }
 0x350   :  { %v659_v50 = vadd.f32 %v657_v37, %v636_v24  ;;  %v658_v36 = vadd.f32 %v656_v26, %v635_v30  ;;  %v713_v37 = vmul.f32 0.03125, %v7269_v14  ;;  %v712_v26 = vmul.f32 0.03125, %v7271_v15 }
 0x351   :  { %v677_v14 = vadd.f32 %v675_v56, %v654_v23  ;;  %v1279_v56 = vld [vmem:[#allocation10 + $0x20] sm:$0xff]  ;;  %v2298_v23 = vld [vmem:[#allocation10 + $0xd0] sm:$0xff] }
 0x352   :  { %v673_v48 = vpop.xlane.xlu1 %672  ;;  %v671_v57 = vpop.xlane.xlu0 %670 }
 0x353   :  { %v680_v54 = vsel %vm674_vm11, %v673_v48, 0.0  ;;  %v679_v2 = vsel %vm674_vm11, %v671_v57, 0.0 }
 0x354   :  { %v682_v20 = vadd.f32 %v680_v54, %v659_v50  ;;  %v681_v31 = vadd.f32 %v679_v2, %v658_v36  ;;  %v678_v54 = vadd.f32 %v676_v35, %v655_v13  ;;  %v722_v36 = vsel %vm720_vm13, %v713_v37, 0.0  ;;  %v1283_v35 = vld [vmem:[#allocation10 + $0x98] sm:$0xff] }
 0x355   :  { %v1534_v37 = vld [vmem:[#allocation10 + $0x38] sm:$0xff] }
 0x356   :  { %v696_v28 = vpop.xlane.xlu1 %695  ;;  %v694_v51 = vpop.xlane.xlu0 %693  ;;  %v701_v0 = vadd.f32 %v699_v27, %v678_v54  ;;  %v2042_v13 = vld [vmem:[#allocation10 + $0x58] sm:$0xff]  ;;  %v943_v27 = vld [vmem:[#allocation8] sm:$0xff] }
 0x357   :  { %v703_v55 = vsel %vm697_vm10, %v696_v28, 0.0  ;;  %v702_v61 = vsel %vm697_vm10, %v694_v51, 0.0 }
 0x358   :  { %v705_v6 = vadd.f32 %v703_v55, %v682_v20  ;;  %v704_v18 = vadd.f32 %v702_v61, %v681_v31  ;;  %v700_v55 = vadd.f32 %v698_v41, %v677_v14  ;;  %v950_v20 = vld [vmem:[#allocation10 + $0x88] sm:$0xff]  ;;  %v724_v31 = vadd.f32 %v722_v36, %v701_v0  ;;  %v944_v41 = vld [vmem:[#allocation8 + $0x8] sm:$0xff]  ;;  %v2295_v14 = vld [vmem:[#allocation10 + $0x60] sm:$0xff] }
 0x359   :  { %v7504_v54 = vpack.c.bf16 %v944_v41, %v943_v27  ;;  %v7510_v36 = vld [vmem:[#allocation2 + $0x108] sm:$0xff]  ;;  %v7586_v27 = vld [vmem:[#allocation2 + $0x190] sm:$0xff]  ;;  %v7588_v41 = vld [vmem:[#allocation2 + $0x198] sm:$0xff] }
 0x35a   :  { %v719_v40 = vpop.xlane.xlu1 %718  ;;  %v717_v49 = vpop.xlane.xlu0 %716 }
 0x35b   :  { %v726_v48 = vsel %vm720_vm13, %v719_v40, 0.0  ;;  %v725_v57 = vsel %vm720_vm13, %v717_v49, 0.0  ;;  %v721_v40 = vsel %vm720_vm13, %v712_v26, 0.0  ;;  %v2044_v26 = vld [vmem:[#allocation10 + $0xc0] sm:$0xff] }
 0x35c   :  { %v728_v60 = vadd.f32 %v726_v48, %v705_v6  ;;  %v727_v33 = vadd.f32 %v725_v57, %v704_v18  ;;  %v723_v38 = vadd.f32 %v721_v40, %v700_v55  ;;  %v775_v57 = vld [vmem:[#allocation10] sm:$0xff] }
 0x35d   :  { %v7512_v40 = vld [vmem:[#allocation2 + $0x110] sm:$0xff] }
 0x35e   :  { %v742_v42 = vpop.xlane.xlu1 %741  ;;  %v740_v32 = vpop.xlane.xlu0 %739 }
 0x35f   :  { %v749_v3 = vsel %vm743_vm12, %v742_v42, 0.0  ;;  %v748_v62 = vsel %vm743_vm12, %v740_v32, 0.0 }
 0x360   :  { %v751_v28 = vadd.f32 %v749_v3, %v728_v60  ;;  %v750_v51 = vadd.f32 %v748_v62, %v727_v33  ;;  %v1114_v62 = vld [vmem:[#allocation8 + $0x10] sm:$0xff] }
 0x361   :  { %v6329_v1 = vpack.c.bf16 %v1115_v11, %v1114_v62  ;;  %v7552_v62 = vld [vmem:[#allocation2 + $0x158] sm:$0xff] }
 0x362   :  { %v765_v22 = vpop.xlane.xlu1 %764  ;;  %v763_v46 = vpop.xlane.xlu0 %762 }
 0x363   :  { %v772_v53 = vsel %vm766_vm14, %v765_v22, 0.0  ;;  %v771_v8 = vsel %vm766_vm14, %v763_v46, 0.0  ;;  %v1537_v22 = vld [vmem:[#allocation10 + $0xa8] sm:$0xff]  ;;  %v1533_v46 = vld [vmem:[#allocation10 + $0x30] sm:$0xff] }
 0x364   :  { %v774_v24 = vadd.f32 %v772_v53, %v751_v28  ;;  %v773_v30 = vadd.f32 %v771_v8, %v750_v51  ;;  %v1280_v28 = vld [vmem:[#allocation10 + $0x28] sm:$0xff]  ;;  %v1536_v51 = vld [vmem:[#allocation10 + $0xa0] sm:$0xff]  ;;  %v2041_v8 = vld [vmem:[#allocation10 + $0x50] sm:$0xff] }
 0x365   :  { %v2045_v53 = vld [vmem:[#allocation10 + $0xc8] sm:$0xff] }
 0x366   :  { %v7443_v2 = vpack.c.bf16 %v774_v24, %v773_v30  ;;  %v734_v15 = vpop.xlane.xlu1 %733  ;;  %v732_v50 = vpop.xlane.xlu0 %731  ;;  %v2299_v24 = vld [vmem:[#allocation10 + $0xd8] sm:$0xff]  ;;  %v8525_v30 = vmov 0.0|0.0  }
 0x367   :  { %v736_v49 = vmul.f32 0.03125, %v734_v15  ;;  %v735_v47 = vmul.f32 0.03125, %v732_v50  ;;  %v2296_v15 = vld [vmem:[#allocation10 + $0x68] sm:$0xff]  ;;  %v7507_v50 = vld [vmem:[#allocation2 + $0x100] sm:$0xff] }
 0x368   :  { %6314 = vmatprep.subr.bf16.mxu0 %v7443_v2  ;;  %6322 = vmatprep.subr.bf16.mxu1 %v7443_v2  ;;  %v2837_v55 = vmax.f32 %v7507_v50, %v7512_v40 }
 0x369   :  { %v745_v61 = vsel %vm743_vm12, %v736_v49, 0.0  ;;  %v744_v16 = vsel %vm743_vm12, %v735_v47, 0.0  ;;  %6316 = vmatpush3.bf16.msra.mxu0 %v7443_v2  ;;  %6324 = vmatpush3.bf16.msra.mxu1 %v7443_v2  ;;  %v7514_v49 = vld [vmem:[#allocation2 + $0x118] sm:$0xff]  ;;  %v2835_v47 = vadd.f32 %v7512_v40, %v7507_v50 }
 0x36a   :  { %v757_v17 = vpop.xlane.xlu1 %756  ;;  %v755_v48 = vpop.xlane.xlu0 %754  ;;  %v747_v18 = vadd.f32 %v745_v61, %v724_v31  ;;  %v746_v42 = vadd.f32 %v744_v16, %v723_v38  ;;  %v2836_v0 = vadd.f32 %v7514_v49, %v7510_v36  ;;  %v2838_v61 = vmax.f32 %v7510_v36, %v7514_v49  ;;  %v7525_v16 = vld [vmem:[#allocation2 + $0x120] sm:$0xff]  ;;  %v7532_v31 = vld [vmem:[#allocation2 + $0x130] sm:$0xff]  ;;  %v7534_v38 = vld [vmem:[#allocation2 + $0x138] sm:$0xff] }
 0x36b   :  { %v759_v45 = vmul.f32 0.03125, %v757_v17  ;;  %v758_v6 = vmul.f32 0.03125, %v755_v48  ;;  %v2842_v17 = vadd.f32 %v7525_v16, %v2835_v47 }
 0x36c   :  { %5906 = vmatmul.mubr.msk.f32.vlgmr.msra.gmra.mrb[2].mxu0 %vm780_vm4, %v779_v52  ;;  %5920 = vmatmul.mubr.msk.f32.vlgmr.msra.gmra.mrb[2].mxu1 %vm780_vm4, %v950_v20  ;;  %v7527_v52 = vld [vmem:[#allocation2 + $0x128] sm:$0xff]  ;;  %v8526_v20 = vmov 0.0  }
 0x36d   :  { %v768_v32 = vsel %vm766_vm14, %v759_v45, 0.0  ;;  %v767_v3 = vsel %vm766_vm14, %v758_v6, 0.0  ;;  %5912 = vmatprep.mubr.msk.f32.mxu0 %vm780_vm4, %v775_v57  ;;  %5926 = vmatprep.mubr.msk.f32.mxu1 %vm780_vm4, %v946_v39  ;;  %v2843_v48 = vadd.f32 %v7527_v52, %v2836_v0  ;;  %v2844_v57 = vmax.f32 %v2837_v55, %v7525_v16  ;;  %v7541_v45 = vld [vmem:[#allocation2 + $0x140] sm:$0xff] }
 0x36e   :  { %v770_v58 = vadd.f32 %v768_v32, %v747_v18  ;;  %v769_v60 = vadd.f32 %v767_v3, %v746_v42  ;;  %v2845_v39 = vmax.f32 %v2838_v61, %v7527_v52  ;;  %v2849_v6 = vadd.f32 %v7532_v31, %v2842_v17  ;;  %v7550_v3 = vld [vmem:[#allocation2 + $0x150] sm:$0xff]  ;;  %v7595_v55 = vld [vmem:[#allocation2 + $0x1a0] sm:$0xff]  ;;  %v7597_v61 = vld [vmem:[#allocation2 + $0x1a8] sm:$0xff] }
 0x36f   :  { %v2850_v18 = vadd.f32 %v7534_v38, %v2843_v48  ;;  %v2851_v42 = vmax.f32 %v2844_v57, %v7532_v31 }
 0x370   :  { %v7465_v33 = vpack.c.bf16 %v770_v58, %v769_v60  ;;  %v2852_v32 = vmax.f32 %v2845_v39, %v7534_v38  ;;  %v2856_v11 = vadd.f32 %v7541_v45, %v2849_v6  ;;  %v7604_v39 = vld [vmem:[#allocation2 + $0x1b0] sm:$0xff]  ;;  %v7606_v6 = vld [vmem:[#allocation2 + $0x1b8] sm:$0xff] }
 0x371   :  { %v2858_v60 = vmax.f32 %v2851_v42, %v7541_v45 }
 0x372   :  { %6318 = vmatprep.subr.bf16.mxu0 %v7465_v33  ;;  %6326 = vmatprep.subr.bf16.mxu1 %v7465_v33 }
 0x373   :  { %6320 = vmatpush3.bf16.msra.mxu0 %v7465_v33  ;;  %6328 = vmatpush3.bf16.msra.mxu1 %v7465_v33 }
 0x374   :  { %6338 = vmatprep.subr.bf16.mxu1 %v7443_v2  ;;  %6330 = vmatprep.subr.bf16.mxu0 %v6329_v1 }
 0x376   :  { %5913 = vmatmul.mubr.msk.f32.vlgmr.msra.gmra.mrb[2].mxu0 %vm780_vm4, %v776_v10  ;;  %5927 = vmatmul.mubr.msk.f32.vlgmr.msra.gmra.mrb[2].mxu1 %vm780_vm4, %v947_v43  ;;  %v7559_v10 = vld [vmem:[#allocation2 + $0x160] sm:$0xff]  ;;  %v7561_v43 = vld [vmem:[#allocation2 + $0x168] sm:$0xff] }
 0x377   :  { %6340 = vmatpush3.bf16.msra.mxu1 %v7443_v2  ;;  %5947 = vmatprep.mubr.msk.f32.mxu1 %vm780_vm4, %v1282_v19 }
 0x378   :  { %6342 = vmatprep.subr.bf16.mxu1 %v7465_v33  ;;  %6332 = vmatpush3.bf16.msra.mxu0 %v6329_v1 }
 0x379   :  { %6334 = vmatprep.subr.bf16.mxu0 %v7504_v54 }
 0x37a   :  { %5948 = vmatmul.mubr.msk.f32.vlgmr.msra.gmra.mrb[4].mxu1 %vm780_vm4, %v1283_v35  ;;  %v2865_v35 = vmax.f32 %v2858_v60, %v7550_v3  ;;  %v7615_v60 = vld [vmem:[#allocation2 + $0x1c8] sm:$0xff] }
 0x37b   :  { %6344 = vmatpush3.bf16.msra.mxu1 %v7465_v33  ;;  %5954 = vmatprep.mubr.msk.f32.mxu1 %vm780_vm4, %v1279_v56 }
 0x37c   :  { %6350 = vmatprep.subr.bf16.mxu1 %v7443_v2 }
 0x382   :  { %5955 = vmatmul.mubr.msk.f32.vlgmr.msra.gmra.mrb[4].mxu1 %vm780_vm4, %v1280_v28  ;;  %v7568_v28 = vld [vmem:[#allocation2 + $0x170] sm:$0xff] }
 0x383   :  { %6352 = vmatpush3.bf16.msra.mxu1 %v7443_v2  ;;  %5968 = vmatprep.mubr.msk.f32.mxu1 %vm780_vm4, %v1536_v51  ;;  %v7570_v51 = vld [vmem:[#allocation2 + $0x178] sm:$0xff] }
 0x384   :  { %6354 = vmatprep.subr.bf16.mxu1 %v7465_v33 }
 0x386   :  { %5969 = vmatmul.mubr.msk.f32.vlgmr.msra.gmra.mrb[6].mxu1 %vm780_vm4, %v1537_v22 }
 0x387   :  { %6356 = vmatpush3.bf16.msra.mxu1 %v7465_v33  ;;  %5975 = vmatprep.mubr.msk.f32.mxu1 %vm780_vm4, %v1533_v46 }
 0x388   :  { %6374 = vmatprep.subr.bf16.mxu1 %v7443_v2 }
 0x38e   :  { %5976 = vmatmul.mubr.msk.f32.vlgmr.msra.gmra.mrb[6].mxu1 %vm780_vm4, %v1534_v37  ;;  %v2872_v37 = vmax.f32 %v2865_v35, %v7559_v10  ;;  %v7622_v35 = vld [vmem:[#allocation2 + $0x1d0] sm:$0xff] }
 0x38f   :  { %6376 = vmatpush3.bf16.msra.mxu1 %v7443_v2  ;;  %6010 = vmatprep.mubr.msk.f32.mxu1 %vm780_vm4, %v2044_v26 }
 0x390   :  { %6378 = vmatprep.subr.bf16.mxu1 %v7465_v33 }
 0x392   :  { %6011 = vmatmul.mubr.msk.f32.vlgmr.msra.gmra.mrb[8].mxu1 %vm780_vm4, %v2045_v53  ;;  %v7577_v53 = vld [vmem:[#allocation2 + $0x180] sm:$0xff] }
 0x393   :  { %6380 = vmatpush3.bf16.msra.mxu1 %v7465_v33  ;;  %6017 = vmatprep.mubr.msk.f32.mxu1 %vm780_vm4, %v2041_v8  ;;  %v7579_v8 = vld [vmem:[#allocation2 + $0x188] sm:$0xff] }
 0x394   :  { %6386 = vmatprep.subr.bf16.mxu1 %v7443_v2 }
 0x39a   :  { %6018 = vmatmul.mubr.msk.f32.vlgmr.msra.gmra.mrb[8].mxu1 %vm780_vm4, %v2042_v13 }
 0x39b   :  { %6388 = vmatpush3.bf16.msra.mxu1 %v7443_v2  ;;  %6031 = vmatprep.mubr.msk.f32.mxu1 %vm780_vm4, %v2298_v23  ;;  %v2879_v23 = vmax.f32 %v2872_v37, %v7568_v28 }
 0x39c   :  { %6390 = vmatprep.subr.bf16.mxu1 %v7465_v33 }
 0x39d   :  { %v2886_v47 = vmax.f32 %v2879_v23, %v7577_v53 }
 0x39e   :  { %6032 = vmatmul.mubr.msk.f32.vlgmr.msra.gmra.mrb[10].mxu1 %vm780_vm4, %v2299_v24 }
 0x39f   :  { %6392 = vmatpush3.bf16.msra.mxu1 %v7465_v33  ;;  %6038 = vmatprep.mubr.msk.f32.mxu1 %vm780_vm4, %v2295_v14  ;;  %v2893_v48 = vmax.f32 %v2886_v47, %v7586_v27  ;;  %v7642_v47 = vld [vmem:[#allocation2 + $0x1f8] sm:$0xff] }
 0x3a0   :  { %6397 = vmatprep.subr.bf16.mxu1 %v8525_v30 }
 0x3a6   :  { %6039 = vmatmul.mubr.msk.f32.vlgmr.msra.gmra.mrb[10].mxu1 %vm780_vm4, %v2296_v15 }
 0x3a7   :  { %6399 = vmatpush3.bf16.msra.mxu1 %v6892_v5  ;;  %6080 = vmatprep.mubr.msk.f32.mxu1 %vm6764_vm0, %v8526_v20  ;;  %v7543_v5 = vld [vmem:[#allocation2 + $0x148] sm:$0xff] }
 0x3a8   :  { %6400 = vmatprep.subr.bf16.mxu1 %v8525_v30  ;;  %v2857_v58 = vadd.f32 %v7543_v5, %v2850_v18  ;;  %v2859_v1 = vmax.f32 %v2852_v32, %v7543_v5  ;;  %v2900_v32 = vmax.f32 %v2893_v48, %v7595_v55 }
 0x3aa   :  { %v2864_v19 = vadd.f32 %v7552_v62, %v2857_v58  ;;  %v2866_v56 = vmax.f32 %v2859_v1, %v7552_v62  ;;  %v7613_v58 = vld [vmem:[#allocation2 + $0x1c0] sm:$0xff] }
 0x3ab   :  { %6402 = vmatpush3.bf16.msra.mxu1 %v6895_v7  ;;  %v2863_v7 = vadd.f32 %v7550_v3, %v2856_v11 }
 0x3ac   :  { %6403 = vmatprep.subr.bf16.mxu1 %v8525_v30  ;;  %v2871_v46 = vadd.f32 %v7561_v43, %v2864_v19  ;;  %v2873_v26 = vmax.f32 %v2866_v56, %v7561_v43  ;;  %v7624_v56 = vld [vmem:[#allocation2 + $0x1d8] sm:$0xff] }
 0x3ad   :  { %v2870_v22 = vadd.f32 %v7559_v10, %v2863_v7  ;;  %v2907_v7 = vmax.f32 %v2900_v32, %v7604_v39 }
 0x3ae   :  { %v2878_v13 = vadd.f32 %v7570_v51, %v2871_v46  ;;  %v2880_v24 = vmax.f32 %v2873_v26, %v7570_v51 }
 0x3af   :  { %6405 = vmatpush3.bf16.msra.mxu1 %v6902_v12  ;;  %v2877_v12 = vadd.f32 %v7568_v28, %v2870_v22  ;;  %v2914_v37 = vmax.f32 %v2907_v7, %v7613_v58 }
 0x3b0   :  { %6406 = vmatprep.subr.bf16.mxu1 %v8525_v30  ;;  %v2885_v15 = vadd.f32 %v7579_v8, %v2878_v13  ;;  %v2887_v0 = vmax.f32 %v2880_v24, %v7579_v8  ;;  %v7633_v13 = vld [vmem:[#allocation2 + $0x1e8] sm:$0xff] }
 0x3b1   :  { %v2884_v14 = vadd.f32 %v7577_v53, %v2877_v12  ;;  %v7631_v12 = vld [vmem:[#allocation2 + $0x1e0] sm:$0xff]  ;;  %v2921_v24 = vmax.f32 %v2914_v37, %v7622_v35 }
 0x3b2   :  { %v2892_v17 = vadd.f32 %v7588_v41, %v2885_v15  ;;  %v2894_v57 = vmax.f32 %v2887_v0, %v7588_v41  ;;  %v7640_v15 = vld [vmem:[#allocation2 + $0x1f0] sm:$0xff] }
 0x3b3   :  { %6408 = vmatpush3.bf16.msra.mxu1 %v6930_v29  ;;  %v2891_v29 = vadd.f32 %v7586_v27, %v2884_v14 }
 0x3b4   :  { %6409 = vmatprep.subr.bf16.mxu1 %v8525_v30  ;;  %v2899_v42 = vadd.f32 %v7597_v61, %v2892_v17  ;;  %v2901_v11 = vmax.f32 %v2894_v57, %v7597_v61  ;;  %v2928_v17 = vmax.f32 %v2921_v24, %v7631_v12 }
 0x3b5   :  { %v2898_v18 = vadd.f32 %v7595_v55, %v2891_v29 }
 0x3b6   :  { %v2906_v1 = vadd.f32 %v7606_v6, %v2899_v42  ;;  %v2908_v19 = vmax.f32 %v2901_v11, %v7606_v6 }
 0x3b7   :  { %6411 = vmatpush3.bf16.msra.mxu1 %v6950_v44  ;;  %v2905_v44 = vadd.f32 %v7604_v39, %v2898_v18 }
 0x3b8   :  { %6412 = vmatprep.subr.bf16.mxu1 %v8525_v30  ;;  %v2913_v46 = vadd.f32 %v7615_v60, %v2906_v1  ;;  %v2915_v26 = vmax.f32 %v2908_v19, %v7615_v60 }
 0x3b9   :  { %v2912_v22 = vadd.f32 %v7613_v58, %v2905_v44 }
 0x3ba   :  { %v2920_v23 = vadd.f32 %v7624_v56, %v2913_v46  ;;  %v2922_v14 = vmax.f32 %v2915_v26, %v7624_v56 }
 0x3bb   :  { %6414 = vmatpush3.bf16.msra.mxu1 %v6970_v63  ;;  %v2919_v63 = vadd.f32 %v7622_v35, %v2912_v22 }
 0x3bc   :  { %6415 = vmatprep.subr.bf16.mxu1 %v8525_v30  ;;  %v2927_v29 = vadd.f32 %v7633_v13, %v2920_v23  ;;  %v2929_v48 = vmax.f32 %v2922_v14, %v7633_v13 }
 0x3bd   :  { %v2926_v0 = vadd.f32 %v7631_v12, %v2919_v63 }
 0x3be   :  { %v2934_v18 = vadd.f32 %v7642_v47, %v2927_v29  ;;  %v2936_v42 = vmax.f32 %v2929_v48, %v7642_v47 }
 0x3bf   :  { %6417 = vmatpush3.bf16.msra.mxu1 %v6996_v34  ;;  %v2933_v57 = vadd.f32 %v7640_v15, %v2926_v0  ;;  %v2935_v34 = vmax.f32 %v2928_v17, %v7640_v15  ;;  %v1448_v17 = vld [vmem:[#allocation8 + $0x28] sm:$0xff] }
 0x3c0   :  { %6418 = vmatprep.subr.bf16.mxu1 %v8525_v30 }
 0x3c1   :  { %v2937_v32 = vadd.f32 %v2934_v18, %v2933_v57  ;;  %v2945_v11 = vmax.f32 %v2935_v34, %v2936_v42 }
 0x3c3   :  { %6420 = vmatpush3.bf16.msra.mxu1 %v7020_v59  ;;  %v2938_v44 = vrot.slane %v2937_v32, 4  ;;  %v2946_v1 = vrot.slane %v2945_v11, 4  ;;  %v1447_v59 = vld [vmem:[#allocation8 + $0x20] sm:$0xff] }
 0x3c4   :  { %v6345_v42 = vpack.c.bf16 %v1448_v17, %v1447_v59 }
 0x3c5   :  { %v2939_v7 = vadd.f32 %v2938_v44, %v2937_v32  ;;  %v2947_v19 = vmax.f32 %v2945_v11, %v2946_v1  ;;  %v1701_v32 = vld [vmem:[#allocation8 + $0x30] sm:$0xff] }
 0x3c6   :  { %v6357_v11 = vpack.c.bf16 %v1702_v25, %v1701_v32  ;;  %v8527_v25 = vld [vmem:[#allocation16_spill] sm:$0xff] }
 0x3c7   :  { %v2940_v22 = vrot.slane %v2939_v7, 2  ;;  %v2948_v46 = vrot.slane %v2947_v19, 2 }
 0x3c9   :  { %v2941_v37 = vadd.f32 %v2940_v22, %v2939_v7  ;;  %v2949_v26 = vmax.f32 %v2947_v19, %v2948_v46  ;;  %v1955_v22 = vld [vmem:[#allocation8 + $0x40] sm:$0xff]  ;;  %v1956_v46 = vld [vmem:[#allocation8 + $0x48] sm:$0xff] }
 0x3cb   :  { %v2942_v63 = vrot.slane %v2941_v37, 1  ;;  %v2950_v23 = vrot.slane %v2949_v26, 1 }
 0x3cd   :  { %v2943_v24 = vadd.f32 %v2942_v63, %v2941_v37  ;;  %v2951_v14 = vmax.f32 %v2949_v26, %v2950_v23  ;;  %v1791_v37 = vld [vmem:[#allocation10 + $0xb8] sm:$0xff]  ;;  %v1787_v26 = vld [vmem:[#allocation10 + $0x40] sm:$0xff]  ;;  %v6369_v63 = vpack.c.bf16 %v1956_v46, %v1955_v22  ;;  %v1788_v23 = vld [vmem:[#allocation10 + $0x48] sm:$0xff] }
 0x3cf   :  { %v2944_v0 = vmul.f32 0.00390625, %v2943_v24 }
 0x3d1   :  { %v2952_v29 = vsel %vm250_vm1, %v2944_v0, %v2951_v14  ;;  %v2210_v0 = vld [vmem:[#allocation8 + $0x58] sm:$0xff] }
 0x3d2   :  { %6081 = vmatmul.mubr.f32.vlgmr.msra.gmra.mrb[12].mxu1 %v2952_v29 }
 0x449   :  { %v5914_v48 = vpop.f32.mrb[2].mxu0  ;;  %v5928_v57 = vpop.f32.mrb[2].mxu1 }
 0x44a   :  { %v934_v18 = vpop.f32.mrb[3].mxu0  ;;  %v1104_v34 = vpop.f32.mrb[3].mxu1 }
 0x44b   :  { %5933 = vmatprep.mubr.msk.f32.mxu0 %vm780_vm4, %v1104_v34  ;;  %v2464_v34 = vld [vmem:[#allocation8 + $0x68] sm:$0xff] }
 0x44c   :  { %5934 = vmatmul.mubr.msk.f32.vlgmr.msra.gmra.mrb[4].mxu0 %vm780_vm4, %v5928_v57 }
 0x44d   :  { %5940 = vmatprep.mubr.msk.f32.mxu0 %vm780_vm4, %v934_v18  ;;  %6336 = vmatpush3.bf16.msra.mxu0 %v7504_v54  ;;  %v1790_v54 = vld [vmem:[#allocation10 + $0xb0] sm:$0xff] }
 0x44e   :  { %6346 = vmatprep.subr.bf16.mxu0 %v6345_v42  ;;  %v2463_v18 = vld [vmem:[#allocation8 + $0x60] sm:$0xff] }
 0x44f   :  { %v6393_v32 = vpack.c.bf16 %v2464_v34, %v2463_v18 }
 0x454   :  { %5941 = vmatmul.mubr.msk.f32.vlgmr.msra.gmra.mrb[4].mxu0 %vm780_vm4, %v5914_v48 }
 0x455   :  { %v5956_v44 = vpop.f32.mrb[4].mxu1  ;;  %6348 = vmatpush3.bf16.msra.mxu0 %v6345_v42 }
 0x456   :  { %v1437_v1 = vpop.f32.mrb[5].mxu1  ;;  %6358 = vmatprep.subr.bf16.mxu0 %v6357_v11 }
 0x457   :  { %5961 = vmatprep.mubr.msk.f32.mxu0 %vm780_vm4, %v1437_v1  ;;  %v8532_v1 = vld [vmem:[#allocation21_spill] sm:$0xff] }
 0x45c   :  { %5962 = vmatmul.mubr.msk.f32.vlgmr.msra.gmra.mrb[4].mxu0 %vm780_vm4, %v5956_v44  ;;  %v8529_v44 = vld [vmem:[#allocation18_spill] sm:$0xff] }
 0x45d   :  { %6360 = vmatpush3.bf16.msra.mxu0 %v6357_v11  ;;  %v8528_v11 = vld [vmem:[#allocation17_spill] sm:$0xff] }
 0x45e   :  { %6362 = vmatprep.subr.bf16.mxu0 %v7443_v2 }
 0x461   :  { %v5977_v7 = vpop.f32.mrb[6].mxu1 }
 0x462   :  { %v1691_v19 = vpop.f32.mrb[7].mxu1 }
 0x463   :  { %5982 = vmatprep.mubr.msk.f32.mxu0 %vm780_vm4, %v1691_v19 }
 0x464   :  { %5983 = vmatmul.mubr.msk.f32.vlgmr.msra.gmra.mrb[4].mxu0 %vm780_vm4, %v5977_v7 }
 0x465   :  { %6364 = vmatpush3.bf16.msra.mxu0 %v7443_v2  ;;  %5989 = vmatprep.mubr.msk.f32.mxu0 %vm780_vm4, %v1790_v54  ;;  %v2209_v2 = vld [vmem:[#allocation8 + $0x50] sm:$0xff] }
 0x466   :  { %6366 = vmatprep.subr.bf16.mxu0 %v7465_v33  ;;  %v6381_v59 = vpack.c.bf16 %v2210_v0, %v2209_v2 }
 0x468   :  { %5990 = vmatmul.mubr.msk.f32.vlgmr.msra.gmra.mrb[6].mxu0 %vm780_vm4, %v1791_v37 }
 0x469   :  { %6368 = vmatpush3.bf16.msra.mxu0 %v7465_v33  ;;  %5996 = vmatprep.mubr.msk.f32.mxu0 %vm780_vm4, %v1787_v26 }
 0x46a   :  { %6370 = vmatprep.subr.bf16.mxu0 %v6369_v63 }
 0x46d   :  { %v6019_v24 = vpop.f32.mrb[8].mxu1 }
 0x46e   :  { %v2199_v14 = vpop.f32.mrb[9].mxu1 }
 0x470   :  { %5997 = vmatmul.mubr.msk.f32.vlgmr.msra.gmra.mrb[6].mxu0 %vm780_vm4, %v1788_v23 }
 0x471   :  { %6372 = vmatpush3.bf16.msra.mxu0 %v6369_v63 }
 0x472   :  { %6382 = vmatprep.subr.bf16.mxu0 %v6381_v59 }
 0x479   :  { %v6040_v29 = vpop.f32.mrb[10].mxu1 }
 0x47a   :  { %v2453_v17 = vpop.f32.mrb[11].mxu1 }
 0x4a5   :  { %v3019_v48 = vpop.f32.mrb[12].mxu1 }
 0x4a6   :  { %v6082_v57 = vpop.f32.mrb[13].mxu1 }
 0x543   :  { %v5998_v33 = vpop.f32.mrb[6].mxu0 }
 0x544   :  { %v1945_v42 = vpop.f32.mrb[7].mxu0 }
 0x545   :  { %6003 = vmatprep.mubr.msk.f32.mxu0 %vm780_vm4, %v1945_v42 }
 0x546   :  { %6004 = vmatmul.mubr.msk.f32.vlgmr.msra.gmra.mrb[4].mxu0 %vm780_vm4, %v5998_v33 }
 0x547   :  { %6024 = vmatprep.mubr.msk.f32.mxu0 %vm780_vm4, %v2199_v14  ;;  %6384 = vmatpush3.bf16.msra.mxu0 %v6381_v59 }
 0x548   :  { %6394 = vmatprep.subr.bf16.mxu0 %v6393_v32 }
 0x54e   :  { %6025 = vmatmul.mubr.msk.f32.vlgmr.msra.gmra.mrb[4].mxu0 %vm780_vm4, %v6019_v24 }
 0x54f   :  { %6045 = vmatprep.mubr.msk.f32.mxu0 %vm780_vm4, %v2453_v17  ;;  %6396 = vmatpush3.bf16.msra.mxu0 %v6393_v32 }
 0x550   :  { %6421 = vmatprep.subr.bf16.mxu0 %v8525_v30 }
 0x556   :  { %6046 = vmatmul.mubr.msk.f32.vlgmr.msra.gmra.mrb[4].mxu0 %vm780_vm4, %v6040_v29 }
 0x557   :  { %6423 = vmatpush3.bf16.msra.mxu0 %v6976_v4  ;;  %6115 = vmatprep.mubr.msk.f32.mxu0 %vm6764_vm0, %v8526_v20  ;;  %v8530_v4 = vld [vmem:[#allocation19_spill] sm:$0xff]  ;;  %v8531_v20 = vld [vmem:[#allocation20_spill] sm:$0xff]  ;;  %vm8533_vm0 = vcmp.eq.s32.totalorder %v7150_v9, 5 }
 0x558   :  { %6424 = vmatprep.subr.bf16.mxu0 %v8525_v30  ;;  %vm8534_vm1 = vmmov %vm8533_vm0 }
 0x55b   :  { %6426 = vmatpush3.bf16.msra.mxu0 %v6989_v21  ;;  %v3023_v21 = vmax.f32 %v3019_v48, 0.0 }
 0x55c   :  { %6427 = vmatprep.subr.bf16.mxu0 %v8525_v30 }
 0x55f   :  { %6429 = vmatpush3.bf16.msra.mxu0 %v8527_v25 }
 0x560   :  { %6430 = vmatprep.subr.bf16.mxu0 %v8525_v30 }
 0x563   :  { %6432 = vmatpush3.bf16.msra.mxu0 %v8528_v11 }
 0x564   :  { %6433 = vmatprep.subr.bf16.mxu0 %v8525_v30 }
 0x567   :  { %6435 = vmatpush3.bf16.msra.mxu0 %v8529_v44 }
 0x568   :  { %6436 = vmatprep.subr.bf16.mxu0 %v8525_v30 }
 0x56b   :  { %6438 = vmatpush3.bf16.msra.mxu0 %v8530_v4 }
 0x56c   :  { %6439 = vmatprep.subr.bf16.mxu0 %v8525_v30 }
 0x56f   :  { %6441 = vmatpush3.bf16.msra.mxu0 %v8531_v20 }
 0x570   :  { %6442 = vmatprep.subr.bf16.mxu0 %v8525_v30 }
 0x573   :  { %6444 = vmatpush3.bf16.msra.mxu0 %v8532_v1 }
 0x576   :  { %6116 = vmatmul.mubr.f32.vlgmr.msra.gmra.mrb[8].mxu0 %v3023_v21 }
 0x629   :  { %v7697_v7 = vpop.f32.mrb[4].mxu0 }
 0x62a   :  { %v7699_v19 = vpop.f32.mrb[5].mxu0 }
 0x649   :  { %v3090_v54 = vpop.f32.mrb[8].mxu0 }
 0x64a   :  { %v3094_v22 = vsel %vm393_vm2, %v3090_v54, 0.0  ;;  %v6117_v46 = vpop.f32.mrb[9].mxu0  ;;  %vm8535_vm2 = vcmp.eq.s32.totalorder %v7150_v9, 6 }
 0x64b   :  { %v3095_v37 = vrot.slane %v3094_v22, 4  ;;  %v2548_v46 = vsub.f32 0.0, %v7699_v19 }
 0x64d   :  { %v3096_v26 = vadd.f32 %v3095_v37, %v3094_v22  ;;  %v2549_v22 = vsub.f32 0.0, %v7697_v7 }
 0x64f   :  { %v3097_v63 = vrot.slane %v3096_v26, 2 }
 0x651   :  { %v3098_v23 = vadd.f32 %v3097_v63, %v3096_v26  ;;  %v2552_v63 = vmul.f32 1.442695, %v2549_v22 }
 0x653   :  { %v3099_v24 = vrot.slane %v3098_v23, 1 }
 0x655   :  { %v3100_v14 = vadd.f32 %v3099_v24, %v3098_v23  ;;  %v2550_v23 = vmul.f32 1.442695, %v2548_v46 }
 0x657   :  { %v3101_v2 = vsub.f32 0.0, %v3100_v14 }
 0x659   :  { %v3102_v30 = vmul.f32 1.442695, %v3101_v2 }
 0x65b   :  { %6596 = vpow2.f32 %v3102_v30 }
 0x665   :  { %v6597_v0 = vpop.eup %6596 }
 0x666   :  { %v3104_v29 = vadd.f32 1.0, %v6597_v0 }
 0x668   :  { %6598 = vrcp.f32 %v3104_v29 }
 0x669   :  { %6600 = vpow2.f32 %v2552_v63 }
 0x66a   :  { %6602 = vpow2.f32 %v2550_v23 }
 0x672   :  { %v7702_v59 = vpop.eup %6598 }
 0x673   :  { %v7706_v17 = vmul.f32 %v7702_v59, %v7510_v36  ;;  %v7710_v48 = vmul.f32 %v7702_v59, %v7507_v50  ;;  %v3130_v57 = vmul.f32 %v7702_v59, %v7514_v49  ;;  %v3129_v18 = vmul.f32 %v7702_v59, %v7512_v40  ;;  %v6601_v0 = vpop.eup %6600 }
 0x674   :  { %v3152_v36 = vmul.f32 %v7702_v59, %v7527_v52  ;;  %v3151_v34 = vmul.f32 %v7702_v59, %v7525_v16  ;;  %v3174_v50 = vmul.f32 %v7702_v59, %v7534_v38  ;;  %v3173_v33 = vmul.f32 %v7702_v59, %v7532_v31  ;;  %v6603_v29 = vpop.eup %6602 }
 0x675   :  { %3111 = vadd.xlane.f32.xlu1 %v7706_v17  ;;  %3109 = vadd.xlane.f32.xlu0 %v7710_v48  ;;  %v3196_v40 = vmul.f32 %v7702_v59, %v7543_v5  ;;  %v3195_v49 = vmul.f32 %v7702_v59, %v7541_v45  ;;  %v3218_v16 = vmul.f32 %v7702_v59, %v7552_v62 }
 0x676   :  { %v3217_v52 = vmul.f32 %v7702_v59, %v7550_v3  ;;  %v3240_v31 = vmul.f32 %v7702_v59, %v7561_v43  ;;  %v3239_v38 = vmul.f32 %v7702_v59, %v7559_v10  ;;  %v3262_v45 = vmul.f32 %v7702_v59, %v7570_v51 }
 0x677   :  { %v3261_v5 = vmul.f32 %v7702_v59, %v7568_v28  ;;  %v3284_v3 = vmul.f32 %v7702_v59, %v7579_v8  ;;  %v3283_v62 = vmul.f32 %v7702_v59, %v7577_v53  ;;  %v3306_v10 = vmul.f32 %v7702_v59, %v7588_v41 }
 0x678   :  { %v3305_v43 = vmul.f32 %v7702_v59, %v7586_v27  ;;  %v3328_v28 = vmul.f32 %v7702_v59, %v7597_v61  ;;  %v3327_v51 = vmul.f32 %v7702_v59, %v7595_v55  ;;  %v3350_v53 = vmul.f32 %v7702_v59, %v7606_v6 }
 0x679   :  { %3133 = vadd.xlane.f32.xlu1 %v3130_v57  ;;  %3131 = vadd.xlane.f32.xlu0 %v3129_v18  ;;  %v3349_v8 = vmul.f32 %v7702_v59, %v7604_v39  ;;  %v7760_v27 = vmul.f32 %v7702_v59, %v7615_v60  ;;  %v7764_v41 = vmul.f32 %v7702_v59, %v7613_v58  ;;  %v3116_v39 = vsel %vm125_vm3, -inf, %v7706_v17 }
 0x67a   :  { %v7770_v55 = vmul.f32 %v7702_v59, %v7624_v56  ;;  %v7774_v61 = vmul.f32 %v7702_v59, %v7622_v35  ;;  %v3115_v6 = vsel %vm125_vm3, -inf, %v7710_v48  ;;  %v3138_v58 = vsel %vm125_vm3, -inf, %v3130_v57 }
 0x67b   :  { %v3137_v60 = vsel %vm125_vm3, -inf, %v3129_v18  ;;  %v3160_v35 = vsel %vm125_vm3, -inf, %v3152_v36  ;;  %v3159_v56 = vsel %vm125_vm3, -inf, %v3151_v34  ;;  %v3182_v42 = vsel %vm125_vm3, -inf, %v3174_v50 }
 0x67c   :  { %v3181_v32 = vsel %vm125_vm3, -inf, %v3173_v33  ;;  %v3204_v25 = vsel %vm125_vm3, -inf, %v3196_v40  ;;  %v3203_v11 = vsel %vm125_vm3, -inf, %v3195_v49  ;;  %v3226_v44 = vsel %vm125_vm3, -inf, %v3218_v16 }
 0x67d   :  { %3155 = vadd.xlane.f32.xlu1 %v3152_v36  ;;  %3153 = vadd.xlane.f32.xlu0 %v3151_v34  ;;  %v3225_v4 = vsel %vm125_vm3, -inf, %v3217_v52  ;;  %v3248_v20 = vsel %vm125_vm3, -inf, %v3240_v31  ;;  %v3247_v21 = vsel %vm125_vm3, -inf, %v3239_v38  ;;  %v3270_v1 = vsel %vm125_vm3, -inf, %v3262_v45 }
 0x67e   :  { %v3269_v54 = vsel %vm125_vm3, -inf, %v3261_v5  ;;  %v3292_v37 = vsel %vm125_vm3, -inf, %v3284_v3  ;;  %v3291_v26 = vsel %vm125_vm3, -inf, %v3283_v62  ;;  %v3314_v24 = vsel %vm125_vm3, -inf, %v3306_v10 }
 0x67f   :  { %v3313_v7 = vsel %vm125_vm3, -inf, %v3305_v43  ;;  %v3336_v19 = vsel %vm125_vm3, -inf, %v3328_v28  ;;  %v3335_v14 = vsel %vm125_vm3, -inf, %v3327_v51  ;;  %v3358_v2 = vsel %vm125_vm3, -inf, %v3350_v53 }
 0x680   :  { %v3357_v30 = vsel %vm125_vm3, -inf, %v3349_v8  ;;  %v3380_v57 = vsel %vm125_vm3, -inf, %v7760_v27  ;;  %v3379_v18 = vsel %vm125_vm3, -inf, %v7764_v41  ;;  %v2555_v36 = vadd.f32 1.0, %v6601_v0 }
 0x681   :  { %3177 = vadd.xlane.f32.xlu1 %v3174_v50  ;;  %3175 = vadd.xlane.f32.xlu0 %v3173_v33  ;;  %v2554_v34 = vadd.f32 1.0, %v6603_v29  ;;  %v3402_v50 = vsel %vm125_vm3, -inf, %v7770_v55  ;;  %v3401_v33 = vsel %vm125_vm3, -inf, %v7774_v61 }
 0x682   :  { %6604 = vrcp.f32 %v2555_v36 }
 0x683   :  { %6606 = vrcp.f32 %v2554_v34 }
 0x685   :  { %3199 = vadd.xlane.f32.xlu1 %v3196_v40  ;;  %3197 = vadd.xlane.f32.xlu0 %v3195_v49  ;;  %v3416_v40 = vmul.f32 %v7702_v59, %v7633_v13  ;;  %v3415_v49 = vmul.f32 %v7702_v59, %v7631_v12 }
 0x689   :  { %3221 = vadd.xlane.f32.xlu1 %v3218_v16  ;;  %3219 = vadd.xlane.f32.xlu0 %v3217_v52  ;;  %v3424_v16 = vsel %vm125_vm3, -inf, %v3416_v40  ;;  %v3423_v52 = vsel %vm125_vm3, -inf, %v3415_v49 }
 0x68d   :  { %3243 = vadd.xlane.f32.xlu1 %v3240_v31  ;;  %3241 = vadd.xlane.f32.xlu0 %v3239_v38  ;;  %v3438_v31 = vmul.f32 %v7702_v59, %v7642_v47  ;;  %v3437_v38 = vmul.f32 %v7702_v59, %v7640_v15 }
 0x68f   :  { %v3446_v12 = vsel %vm125_vm3, -inf, %v3438_v31  ;;  %v3445_v13 = vsel %vm125_vm3, -inf, %v3437_v38  ;;  %vm8536_vm3 = vmmov %vm8535_vm2 }
 0x691   :  { %3265 = vadd.xlane.f32.xlu1 %v3262_v45  ;;  %3263 = vadd.xlane.f32.xlu0 %v3261_v5  ;;  %v7858_v45 = vpop.eup %6604 }
 0x692   :  { %v7860_v5 = vpop.eup %6606  ;;  %v2561_v15 = vsel %vm421_vm6, %v7858_v45, 0.0  ;;  %v2658_v22 = vsel %vm8535_vm2, %v7858_v45, 0.0  ;;  %vm8539_vm2 = vcmp.eq.s32.totalorder %v7150_v9, 8 }
 0x693   :  { %v2560_v47 = vsel %vm421_vm6, %v7860_v5, 0.0  ;;  %v2657_v46 = vsel %vm8536_vm3, %v7860_v5, 0.0  ;;  %v2662_v63 = vsel %vm780_vm4, %v2658_v22, 0.0  ;;  %v2692_v0 = vsel %vm8539_vm2, %v7858_v45, 0.0  ;;  %vm8540_vm3 = vmmov %vm8539_vm2 }
 0x694   :  { %v2659_v23 = vsel %vm780_vm4, %v2657_v46, 0.0  ;;  %v2691_v29 = vsel %vm8540_vm3, %v7860_v5, 0.0  ;;  %v2696_v36 = vsel %vm780_vm4, %v2692_v0, 0.0  ;;  %v2811_v22 = vsel %vm766_vm14, %v7858_v45, 0.0 }
 0x695   :  { %3287 = vadd.xlane.f32.xlu1 %v3284_v3  ;;  %3285 = vadd.xlane.f32.xlu0 %v3283_v62  ;;  %v2565_v3 = vsel %vm780_vm4, %v2561_v15, 0.0  ;;  %v2562_v62 = vsel %vm780_vm4, %v2560_v47, 0.0  ;;  %v2693_v34 = vsel %vm780_vm4, %v2691_v29, 0.0  ;;  %v2810_v46 = vsel %vm766_vm14, %v7860_v5, 0.0 }
 0x696   :  { %vm8543_vm2 = vcmp.eq.s32.totalorder %v7150_v9, 5 }
 0x697   :  { %vm8544_vm3 = vmmov %vm8543_vm2 }
 0x699   :  { %3309 = vadd.xlane.f32.xlu1 %v3306_v10  ;;  %3307 = vadd.xlane.f32.xlu0 %v3305_v43  ;;  %v2573_v10 = vsel %vm444_vm5, %v7858_v45, 0.0  ;;  %v2572_v43 = vsel %vm444_vm5, %v7860_v5, 0.0 }
 0x69d   :  { %3331 = vadd.xlane.f32.xlu1 %v3328_v28  ;;  %3329 = vadd.xlane.f32.xlu0 %v3327_v51  ;;  %v2577_v28 = vsel %vm780_vm4, %v2573_v10, 0.0  ;;  %v2574_v51 = vsel %vm780_vm4, %v2572_v43, 0.0 }
 0x6a1   :  { %3353 = vadd.xlane.f32.xlu1 %v3350_v53  ;;  %3351 = vadd.xlane.f32.xlu0 %v3349_v8  ;;  %v2590_v53 = vsel %vm467_vm7, %v7858_v45, 0.0  ;;  %v2589_v8 = vsel %vm467_vm7, %v7860_v5, 0.0 }
 0x6a5   :  { %3375 = vadd.xlane.f32.xlu1 %v7760_v27  ;;  %3373 = vadd.xlane.f32.xlu0 %v7764_v41  ;;  %v2594_v27 = vsel %vm780_vm4, %v2590_v53, 0.0  ;;  %v2591_v41 = vsel %vm780_vm4, %v2589_v8, 0.0  ;;  %v2760_v53 = vsel %vm697_vm10, %v7858_v45, 0.0  ;;  %v2759_v8 = vsel %vm697_vm10, %v7860_v5, 0.0 }
 0x6a9   :  { %3397 = vadd.xlane.f32.xlu1 %v7770_v55  ;;  %3395 = vadd.xlane.f32.xlu0 %v7774_v61  ;;  %v2607_v55 = vsel %vm8514_vm8, %v7858_v45, 0.0  ;;  %v2606_v61 = vsel %vm8514_vm8, %v7860_v5, 0.0 }
 0x6ad   :  { %3119 = vmax.xlane.f32.xlu1 %v3116_v39  ;;  %3117 = vmax.xlane.f32.xlu0 %v3115_v6  ;;  %v2611_v39 = vsel %vm780_vm4, %v2607_v55, 0.0  ;;  %v2608_v6 = vsel %vm780_vm4, %v2606_v61, 0.0  ;;  %v2764_v55 = vsel %vm780_vm4, %v2760_v53, 0.0  ;;  %v2761_v61 = vsel %vm780_vm4, %v2759_v8, 0.0 }
 0x6b1   :  { %3141 = vmax.xlane.f32.xlu1 %v3138_v58  ;;  %3139 = vmax.xlane.f32.xlu0 %v3137_v60  ;;  %v2624_v58 = vsel %vm8513_vm9, %v7858_v45, 0.0  ;;  %v2623_v60 = vsel %vm8513_vm9, %v7860_v5, 0.0 }
 0x6b5   :  { %3163 = vmax.xlane.f32.xlu1 %v3160_v35  ;;  %3161 = vmax.xlane.f32.xlu0 %v3159_v56 }
 0x6b9   :  { %3185 = vmax.xlane.f32.xlu1 %v3182_v42  ;;  %3183 = vmax.xlane.f32.xlu0 %v3181_v32  ;;  %v2628_v42 = vsel %vm780_vm4, %v2624_v58, 0.0  ;;  %v2625_v32 = vsel %vm780_vm4, %v2623_v60, 0.0 }
 0x6bd   :  { %3207 = vmax.xlane.f32.xlu1 %v3204_v25  ;;  %3205 = vmax.xlane.f32.xlu0 %v3203_v11  ;;  %v3629_v25 = vld [vmem:[#allocation10 + $0x80] sm:$0xff]  ;;  %v2641_v11 = vsel %vm8533_vm0, %v7858_v45, 0.0  ;;  %vm8537_vm0 = vcmp.eq.s32.totalorder %v7150_v9, 7 }
 0x6be   :  { %6136 = vmatprep.mubr.msk.f32.mxu0 %vm780_vm4, %v3629_v25  ;;  %v2794_v25 = vsel %vm743_vm12, %v7858_v45, 0.0 }
 0x6c1   :  { %3229 = vmax.xlane.f32.xlu1 %v3226_v44  ;;  %3227 = vmax.xlane.f32.xlu0 %v3225_v4  ;;  %v2640_v44 = vsel %vm8534_vm1, %v7860_v5, 0.0  ;;  %v3461_v4 = vld [vmem:[#allocation10 + $0x70] sm:$0xff]  ;;  %vm8538_vm1 = vmmov %vm8537_vm0 }
 0x6c2   :  { %6122 = vmatprep.mubr.msk.f32.mxu1 %vm780_vm4, %v3461_v4 }
 0x6c5   :  { %3251 = vmax.xlane.f32.xlu1 %v3248_v20  ;;  %3249 = vmax.xlane.f32.xlu0 %v3247_v21 }
 0x6c9   :  { %3273 = vmax.xlane.f32.xlu1 %v3270_v1  ;;  %3271 = vmax.xlane.f32.xlu0 %v3269_v54  ;;  %v2645_v1 = vsel %vm780_vm4, %v2641_v11, 0.0  ;;  %v2642_v54 = vsel %vm780_vm4, %v2640_v44, 0.0  ;;  %v2793_v11 = vsel %vm743_vm12, %v7860_v5, 0.0 }
 0x6cd   :  { %3295 = vmax.xlane.f32.xlu1 %v3292_v37  ;;  %3293 = vmax.xlane.f32.xlu0 %v3291_v26 }
 0x6d1   :  { %3317 = vmax.xlane.f32.xlu1 %v3314_v24  ;;  %3315 = vmax.xlane.f32.xlu0 %v3313_v7  ;;  %v2675_v24 = vsel %vm8537_vm0, %v7858_v45, 0.0  ;;  %v2674_v7 = vsel %vm8538_vm1, %v7860_v5, 0.0  ;;  %vm8541_vm0 = vcmp.eq.s32.totalorder %v7150_v9, 9 }
 0x6d2   :  { %vm8542_vm1 = vmmov %vm8541_vm0 }
 0x6d5   :  { %3339 = vmax.xlane.f32.xlu1 %v3336_v19  ;;  %3337 = vmax.xlane.f32.xlu0 %v3335_v14 }
 0x6d9   :  { %3361 = vmax.xlane.f32.xlu1 %v3358_v2  ;;  %3359 = vmax.xlane.f32.xlu0 %v3357_v30  ;;  %v2679_v2 = vsel %vm780_vm4, %v2675_v24, 0.0  ;;  %v2676_v30 = vsel %vm780_vm4, %v2674_v7, 0.0  ;;  %v2815_v24 = vsel %vm780_vm4, %v2811_v22, 0.0  ;;  %v2812_v7 = vsel %vm780_vm4, %v2810_v46, 0.0 }
 0x6dd   :  { %3383 = vmax.xlane.f32.xlu1 %v3380_v57  ;;  %3381 = vmax.xlane.f32.xlu0 %v3379_v18 }
 0x6e1   :  { %3405 = vmax.xlane.f32.xlu1 %v3402_v50  ;;  %3403 = vmax.xlane.f32.xlu0 %v3401_v33  ;;  %v2709_v50 = vsel %vm8541_vm0, %v7858_v45, 0.0  ;;  %v2708_v33 = vsel %vm8542_vm1, %v7860_v5, 0.0  ;;  %vm8545_vm0 = vmmov %vm8543_vm2 }
 0x6e2   :  { %vm8546_vm1 = vmmov %vm8545_vm0 }
 0x6e5   :  { %3427 = vmax.xlane.f32.xlu1 %v3424_v16  ;;  %3425 = vmax.xlane.f32.xlu0 %v3423_v52  ;;  %v2713_v16 = vsel %vm780_vm4, %v2709_v50, 0.0  ;;  %v2710_v52 = vsel %vm780_vm4, %v2708_v33, 0.0 }
 0x6e9   :  { %3449 = vmax.xlane.f32.xlu1 %v3446_v12  ;;  %3447 = vmax.xlane.f32.xlu0 %v3445_v13 }
 0x6ed   :  { %3419 = vadd.xlane.f32.xlu1 %v3416_v40  ;;  %3417 = vadd.xlane.f32.xlu0 %v3415_v49 }
 0x6f1   :  { %3441 = vadd.xlane.f32.xlu1 %v3438_v31  ;;  %3439 = vadd.xlane.f32.xlu0 %v3437_v38  ;;  %v2726_v31 = vsel %vm651_vm15, %v7858_v45, 0.0  ;;  %v2725_v38 = vsel %vm651_vm15, %v7860_v5, 0.0 }
 0x6f2   :  { %v2730_v15 = vsel %vm780_vm4, %v2726_v31, 0.0  ;;  %v2727_v47 = vsel %vm780_vm4, %v2725_v38, 0.0 }
 0x6f5   :  { %2566 = vadd.xlane.f32.xlu1 %v2565_v3  ;;  %2563 = vadd.xlane.f32.xlu0 %v2562_v62  ;;  %v2743_v3 = vsel %vm674_vm11, %v7858_v45, 0.0  ;;  %v2742_v62 = vsel %vm674_vm11, %v7860_v5, 0.0 }
 0x6f9   :  { %2578 = vadd.xlane.f32.xlu1 %v2577_v28  ;;  %2575 = vadd.xlane.f32.xlu0 %v2574_v51  ;;  %v2747_v28 = vsel %vm780_vm4, %v2743_v3, 0.0  ;;  %v2744_v51 = vsel %vm780_vm4, %v2742_v62, 0.0 }
 0x6fd   :  { %2595 = vadd.xlane.f32.xlu1 %v2594_v27  ;;  %2592 = vadd.xlane.f32.xlu0 %v2591_v41 }
 0x701   :  { %2612 = vadd.xlane.f32.xlu1 %v2611_v39  ;;  %2609 = vadd.xlane.f32.xlu0 %v2608_v6  ;;  %v2777_v39 = vsel %vm720_vm13, %v7858_v45, 0.0  ;;  %v2776_v6 = vsel %vm720_vm13, %v7860_v5, 0.0 }
 0x702   :  { %v7900_v35 = vpop.xlane.xlu1 %3111  ;;  %v7902_v56 = vpop.xlane.xlu0 %3109 }
 0x705   :  { %2629 = vadd.xlane.f32.xlu1 %v2628_v42  ;;  %2626 = vadd.xlane.f32.xlu0 %v2625_v32  ;;  %v2781_v42 = vsel %vm780_vm4, %v2777_v39, 0.0  ;;  %v2778_v32 = vsel %vm780_vm4, %v2776_v6, 0.0 }
 0x706   :  { %v7912_v20 = vpop.xlane.xlu1 %3133  ;;  %v7914_v21 = vpop.xlane.xlu0 %3131 }
 0x707   :  { %v3136_v3 = vmul.f32 0.03125, %v7912_v20  ;;  %v3135_v62 = vmul.f32 0.03125, %v7914_v21 }
 0x709   :  { %2646 = vadd.xlane.f32.xlu1 %v2645_v1  ;;  %2643 = vadd.xlane.f32.xlu0 %v2642_v54  ;;  %v2798_v1 = vsel %vm780_vm4, %v2794_v25, 0.0  ;;  %v2795_v54 = vsel %vm780_vm4, %v2793_v11, 0.0  ;;  %v3144_v39 = vsel %vm444_vm5, %v3136_v3, 0.0  ;;  %v3143_v6 = vsel %vm444_vm5, %v3135_v62, 0.0 }
 0x70a   :  { %v7926_v37 = vpop.xlane.xlu1 %3155  ;;  %v7928_v26 = vpop.xlane.xlu0 %3153 }
 0x70b   :  { %v3158_v53 = vmul.f32 0.03125, %v7926_v37  ;;  %v3157_v8 = vmul.f32 0.03125, %v7928_v26 }
 0x70d   :  { %2663 = vadd.xlane.f32.xlu1 %v2662_v63  ;;  %2660 = vadd.xlane.f32.xlu0 %v2659_v23  ;;  %v3165_v21 = vsel %vm467_vm7, %v3157_v8, 0.0 }
 0x70e   :  { %v7938_v19 = vpop.xlane.xlu1 %3177  ;;  %v7940_v14 = vpop.xlane.xlu0 %3175 }
 0x70f   :  { %v3180_v37 = vmul.f32 0.03125, %v7938_v19  ;;  %v3179_v26 = vmul.f32 0.03125, %v7940_v14 }
 0x711   :  { %2680 = vadd.xlane.f32.xlu1 %v2679_v2  ;;  %2677 = vadd.xlane.f32.xlu0 %v2676_v30  ;;  %v3187_v19 = vsel %vm8514_vm8, %v3179_v26, 0.0 }
 0x712   :  { %v7950_v57 = vpop.xlane.xlu1 %3199  ;;  %v7952_v18 = vpop.xlane.xlu0 %3197 }
 0x713   :  { %v3202_v14 = vmul.f32 0.03125, %v7950_v57 }
 0x715   :  { %2697 = vadd.xlane.f32.xlu1 %v2696_v36  ;;  %2694 = vadd.xlane.f32.xlu0 %v2693_v34 }
 0x716   :  { %v7962_v40 = vpop.xlane.xlu1 %3221  ;;  %v7964_v49 = vpop.xlane.xlu0 %3219 }
 0x717   :  { %v3223_v57 = vmul.f32 0.03125, %v7964_v49 }
 0x719   :  { %2714 = vadd.xlane.f32.xlu1 %v2713_v16  ;;  %2711 = vadd.xlane.f32.xlu0 %v2710_v52 }
 0x71a   :  { %v7974_v12 = vpop.xlane.xlu1 %3243  ;;  %v7976_v13 = vpop.xlane.xlu0 %3241 }
 0x71d   :  { %2731 = vadd.xlane.f32.xlu1 %v2730_v15  ;;  %2728 = vadd.xlane.f32.xlu0 %v2727_v47 }
 0x71e   :  { %v7986_v10 = vpop.xlane.xlu1 %3265  ;;  %v7988_v43 = vpop.xlane.xlu0 %3263 }
 0x721   :  { %2748 = vadd.xlane.f32.xlu1 %v2747_v28  ;;  %2745 = vadd.xlane.f32.xlu0 %v2744_v51  ;;  %v3114_v28 = vmul.f32 0.03125, %v7900_v35  ;;  %v3113_v51 = vmul.f32 0.03125, %v7902_v56  ;;  %v3166_v56 = vsel %vm467_vm7, %v3158_v53, 0.0  ;;  %v3224_v53 = vmul.f32 0.03125, %v7962_v40 }
 0x722   :  { %v7998_v27 = vpop.xlane.xlu1 %3287  ;;  %v8000_v41 = vpop.xlane.xlu0 %3285 }
 0x723   :  { %v3122_v20 = vsel %vm421_vm6, %v3114_v28, 0.0  ;;  %v3121_v35 = vsel %vm421_vm6, %v3113_v51, 0.0 }
 0x724   :  { %v3146_v25 = vadd.f32 %v3144_v39, %v3122_v20  ;;  %v3145_v11 = vadd.f32 %v3143_v6, %v3121_v35 }
 0x725   :  { %2765 = vadd.xlane.f32.xlu1 %v2764_v55  ;;  %2762 = vadd.xlane.f32.xlu0 %v2761_v61 }
 0x726   :  { %v8010_v58 = vpop.xlane.xlu1 %3309  ;;  %v8012_v60 = vpop.xlane.xlu0 %3307 }
 0x729   :  { %2782 = vadd.xlane.f32.xlu1 %v2781_v42  ;;  %2779 = vadd.xlane.f32.xlu0 %v2778_v32 }
 0x72a   :  { %v8022_v44 = vpop.xlane.xlu1 %3331  ;;  %v8024_v4 = vpop.xlane.xlu0 %3329 }
 0x72d   :  { %2799 = vadd.xlane.f32.xlu1 %v2798_v1  ;;  %2796 = vadd.xlane.f32.xlu0 %v2795_v54  ;;  %v3168_v1 = vadd.f32 %v3166_v56, %v3146_v25  ;;  %v3167_v54 = vadd.f32 %v3165_v21, %v3145_v11  ;;  %v3231_v21 = vsel %vm8544_vm3, %v3223_v57, 0.0  ;;  %v3246_v25 = vmul.f32 0.03125, %v7974_v12 }
 0x72e   :  { %v8034_v63 = vpop.xlane.xlu1 %3353  ;;  %v8036_v23 = vpop.xlane.xlu0 %3351  ;;  %v3245_v11 = vmul.f32 0.03125, %v7976_v13 }
 0x731   :  { %2816 = vadd.xlane.f32.xlu1 %v2815_v24  ;;  %2813 = vadd.xlane.f32.xlu0 %v2812_v7  ;;  %v3188_v24 = vsel %vm8514_vm8, %v3180_v37, 0.0  ;;  %v3201_v7 = vmul.f32 0.03125, %v7952_v18 }
 0x732   :  { %v8040_v2 = vpop.xlane.xlu1 %3375  ;;  %v8042_v30 = vpop.xlane.xlu0 %3373  ;;  %v3190_v6 = vadd.f32 %v3188_v24, %v3168_v1 }
 0x733   :  { %v3209_v40 = vsel %vm8513_vm9, %v3201_v7, 0.0 }
 0x736   :  { %v8044_v0 = vpop.xlane.xlu1 %3397  ;;  %v8046_v45 = vpop.xlane.xlu0 %3395 }
 0x73a   :  { %v3120_v29 = vpop.xlane.xlu1 %3119  ;;  %v3118_v5 = vpop.xlane.xlu0 %3117 }
 0x73b   :  { %v3126_v28 = vsel %vm421_vm6, %v3120_v29, 0.0 }
 0x73e   :  { %v3142_v36 = vpop.xlane.xlu1 %3141  ;;  %v3140_v34 = vpop.xlane.xlu0 %3139 }
 0x73f   :  { %v3148_v22 = vsel %vm444_vm5, %v3142_v36, 0.0  ;;  %v3147_v46 = vsel %vm444_vm5, %v3140_v34, 0.0  ;;  %v3125_v36 = vsel %vm421_vm6, %v3118_v5, 0.0  ;;  %v3189_v5 = vadd.f32 %v3187_v19, %v3167_v54 }
 0x740   :  { %v3150_v8 = vadd.f32 %v3148_v22, %v3126_v28  ;;  %v3149_v18 = vadd.f32 %v3147_v46, %v3125_v36 }
 0x742   :  { %v3164_v50 = vpop.xlane.xlu1 %3163  ;;  %v3162_v33 = vpop.xlane.xlu0 %3161 }
 0x743   :  { %v3170_v34 = vsel %vm467_vm7, %v3164_v50, 0.0  ;;  %v3169_v51 = vsel %vm467_vm7, %v3162_v33, 0.0  ;;  %v3210_v33 = vsel %vm8513_vm9, %v3202_v14, 0.0 }
 0x744   :  { %v3172_v20 = vadd.f32 %v3170_v34, %v3150_v8  ;;  %v3171_v35 = vadd.f32 %v3169_v51, %v3149_v18  ;;  %v3212_v54 = vadd.f32 %v3210_v33, %v3190_v6 }
 0x746   :  { %v3186_v16 = vpop.xlane.xlu1 %3185  ;;  %v3184_v52 = vpop.xlane.xlu0 %3183 }
 0x747   :  { %v3192_v39 = vsel %vm8514_vm8, %v3186_v16, 0.0  ;;  %v3191_v29 = vsel %vm8514_vm8, %v3184_v52, 0.0  ;;  %v3232_v52 = vsel %vm8543_vm2, %v3224_v53, 0.0  ;;  %vm8547_vm2 = vcmp.eq.s32.totalorder %v7150_v9, 6 }
 0x748   :  { %v3194_v37 = vadd.f32 %v3192_v39, %v3172_v20  ;;  %v3193_v26 = vadd.f32 %v3191_v29, %v3171_v35  ;;  %vm8548_vm3 = vmmov %vm8547_vm2  ;;  %v3234_v7 = vadd.f32 %v3232_v52, %v3212_v54  ;;  %v3290_v39 = vmul.f32 0.03125, %v7998_v27 }
 0x749   :  { %v3289_v29 = vmul.f32 0.03125, %v8000_v41  ;;  %v3312_v52 = vmul.f32 0.03125, %v8010_v58 }
 0x74a   :  { %v3208_v31 = vpop.xlane.xlu1 %3207  ;;  %v3206_v38 = vpop.xlane.xlu0 %3205 }
 0x74b   :  { %v3214_v49 = vsel %vm8513_vm9, %v3208_v31, 0.0  ;;  %v3213_v16 = vsel %vm8513_vm9, %v3206_v38, 0.0  ;;  %v3211_v38 = vadd.f32 %v3209_v40, %v3189_v5  ;;  %vm8551_vm9 = vcmp.eq.s32.totalorder %v7150_v9, 7 }
 0x74c   :  { %v3216_v22 = vadd.f32 %v3214_v49, %v3194_v37  ;;  %v3215_v46 = vadd.f32 %v3213_v16, %v3193_v26  ;;  %vm8552_vm8 = vmmov %vm8551_vm9 }
 0x74d   :  { %v3233_v13 = vadd.f32 %v3231_v21, %v3211_v38  ;;  %v3311_v21 = vmul.f32 0.03125, %v8012_v60 }
 0x74e   :  { %v3230_v15 = vpop.xlane.xlu1 %3229  ;;  %v3228_v47 = vpop.xlane.xlu0 %3227 }
 0x74f   :  { %v3236_v1 = vsel %vm8545_vm0, %v3230_v15, 0.0  ;;  %v3235_v31 = vsel %vm8546_vm1, %v3228_v47, 0.0  ;;  %vm8549_vm0 = vmmov %vm8547_vm2 }
 0x750   :  { %v3238_v28 = vadd.f32 %v3236_v1, %v3216_v22  ;;  %v3237_v36 = vadd.f32 %v3235_v31, %v3215_v46  ;;  %v3254_v15 = vsel %vm8549_vm0, %v3246_v25, 0.0  ;;  %vm8550_vm1 = vmmov %vm8549_vm0  ;;  %vm8557_vm0 = vcmp.eq.s32.totalorder %v7150_v9, 7 }
 0x751   :  { %v3253_v47 = vsel %vm8550_vm1, %v3245_v11, 0.0  ;;  %v3256_v20 = vadd.f32 %v3254_v15, %v3234_v7  ;;  %vm8558_vm1 = vmmov %vm8557_vm0 }
 0x752   :  { %v3252_v55 = vpop.xlane.xlu1 %3251  ;;  %v3250_v61 = vpop.xlane.xlu0 %3249 }
 0x753   :  { %v3258_v14 = vsel %vm8547_vm2, %v3252_v55, 0.0  ;;  %v3257_v12 = vsel %vm8548_vm3, %v3250_v61, 0.0  ;;  %v3268_v55 = vmul.f32 0.03125, %v7986_v10  ;;  %v3267_v61 = vmul.f32 0.03125, %v7988_v43 }
 0x754   :  { %v3260_v53 = vadd.f32 %v3258_v14, %v3238_v28  ;;  %v3259_v57 = vadd.f32 %v3257_v12, %v3237_v36  ;;  %vm8553_vm2 = vcmp.eq.s32.totalorder %v7150_v9, 8  ;;  %v3255_v10 = vadd.f32 %v3253_v47, %v3233_v13 }
 0x755   :  { %v3276_v27 = vsel %vm8557_vm0, %v3268_v55, 0.0  ;;  %v3275_v41 = vsel %vm8558_vm1, %v3267_v61, 0.0  ;;  %v3298_v49 = vsel %vm8553_vm2, %v3290_v39, 0.0  ;;  %v3334_v28 = vmul.f32 0.03125, %v8022_v44 }
 0x756   :  { %v3274_v42 = vpop.xlane.xlu1 %3273  ;;  %v3272_v32 = vpop.xlane.xlu0 %3271  ;;  %v3278_v25 = vadd.f32 %v3276_v27, %v3256_v20  ;;  %v3277_v11 = vadd.f32 %v3275_v41, %v3255_v10  ;;  %v3333_v36 = vmul.f32 0.03125, %v8024_v4  ;;  %v3400_v27 = vmul.f32 0.03125, %v8044_v0 }
 0x757   :  { %v3280_v34 = vsel %vm8551_vm9, %v3274_v42, 0.0  ;;  %v3279_v51 = vsel %vm8552_vm8, %v3272_v32, 0.0  ;;  %vm8554_vm9 = vmmov %vm8553_vm2  ;;  %vm8555_vm8 = vcmp.eq.s32.totalorder %v7150_v9, 9  ;;  %v3399_v41 = vmul.f32 0.03125, %v8046_v45 }
 0x758   :  { %v3282_v5 = vadd.f32 %v3280_v34, %v3260_v53  ;;  %v3281_v32 = vadd.f32 %v3279_v51, %v3259_v57  ;;  %vm8556_vm3 = vmmov %vm8555_vm8  ;;  %v3356_v34 = vmul.f32 0.03125, %v8034_v63  ;;  %v3355_v51 = vmul.f32 0.03125, %v8036_v23 }
 0x759   :  { %v3319_v12 = vsel %vm8556_vm3, %v3311_v21, 0.0  ;;  %v3341_v63 = vsel %vm651_vm15, %v3333_v36, 0.0  ;;  %v3378_v23 = vmul.f32 0.03125, %v8040_v2  ;;  %v3408_v21 = vsel %vm720_vm13, %v3400_v27, 0.0  ;;  %v3628_v27 = vld [vmem:[#allocation10 + $0x18] sm:$0xff] }
 0x75a   :  { %v3296_v3 = vpop.xlane.xlu1 %3295  ;;  %v3294_v62 = vpop.xlane.xlu0 %3293  ;;  %vm8568_vm1 = vcmp.eq.s32.totalorder %v7150_v9, 5 }
 0x75b   :  { %v3302_v6 = vsel %vm8553_vm2, %v3296_v3, 0.0  ;;  %v3301_v42 = vsel %vm8554_vm9, %v3294_v62, 0.0  ;;  %vm8559_vm9 = vmmov %vm8553_vm2 }
 0x75c   :  { %v3304_v3 = vadd.f32 %v3302_v6, %v3282_v5  ;;  %v3303_v33 = vadd.f32 %v3301_v42, %v3281_v32  ;;  %v3297_v16 = vsel %vm8559_vm9, %v3289_v29, 0.0  ;;  %v3342_v6 = vsel %vm651_vm15, %v3334_v28, 0.0  ;;  %vm8569_vm2 = vmmov %vm8568_vm1 }
 0x75d   :  { %v3377_v42 = vmul.f32 0.03125, %v8042_v30  ;;  %v3364_v5 = vsel %vm674_vm11, %v3356_v34, 0.0  ;;  %v3363_v32 = vsel %vm674_vm11, %v3355_v51, 0.0  ;;  %v3794_v34 = vld [vmem:[#allocation8 + $0x18] sm:$0xff]  ;;  %vm8570_vm9 = vcmp.eq.s32.totalorder %v7150_v9, 6 }
 0x75e   :  { %v3318_v50 = vpop.xlane.xlu1 %3317  ;;  %v3316_v56 = vpop.xlane.xlu0 %3315 }
 0x75f   :  { %v3324_v43 = vsel %vm8555_vm8, %v3318_v50, 0.0  ;;  %v3323_v35 = vsel %vm8556_vm3, %v3316_v56, 0.0  ;;  %vm8560_vm8 = vmmov %vm8556_vm3  ;;  %vm8572_vm3 = vcmp.eq.s32.totalorder %v7150_v9, 7 }
 0x760   :  { %v3326_v37 = vadd.f32 %v3324_v43, %v3304_v3  ;;  %v3325_v26 = vadd.f32 %v3323_v35, %v3303_v33  ;;  %v3320_v14 = vsel %vm8560_vm8, %v3312_v52, 0.0  ;;  %vm8571_vm8 = vmmov %vm8570_vm9 }
 0x762   :  { %v3340_v24 = vpop.xlane.xlu1 %3339  ;;  %v3338_v19 = vpop.xlane.xlu0 %3337 }
 0x763   :  { %v3346_v50 = vsel %vm651_vm15, %v3340_v24, 0.0  ;;  %v3345_v56 = vsel %vm651_vm15, %v3338_v19, 0.0  ;;  %v3300_v24 = vadd.f32 %v3298_v49, %v3278_v25  ;;  %v3299_v19 = vadd.f32 %v3297_v16, %v3277_v11 }
 0x764   :  { %v3348_v54 = vadd.f32 %v3346_v50, %v3326_v37  ;;  %v3347_v38 = vadd.f32 %v3345_v56, %v3325_v26  ;;  %v3386_v49 = vsel %vm697_vm10, %v3378_v23, 0.0  ;;  %v3385_v16 = vsel %vm697_vm10, %v3377_v42, 0.0 }
 0x765   :  { %v3322_v4 = vadd.f32 %v3320_v14, %v3300_v24  ;;  %v3407_v37 = vsel %vm720_vm13, %v3399_v41, 0.0  ;;  %v3459_v14 = vld [vmem:[#allocation10] sm:$0xff]  ;;  %v3460_v41 = vld [vmem:[#allocation10 + $0x8] sm:$0xff] }
 0x766   :  { %v3362_v8 = vpop.xlane.xlu1 %3361  ;;  %v3360_v18 = vpop.xlane.xlu0 %3359 }
 0x767   :  { %v3368_v1 = vsel %vm674_vm11, %v3362_v8, 0.0  ;;  %v3367_v31 = vsel %vm674_vm11, %v3360_v18, 0.0  ;;  %v3321_v18 = vadd.f32 %v3319_v12, %v3299_v19  ;;  %v3344_v30 = vadd.f32 %v3342_v6, %v3322_v4 }
 0x768   :  { %v3370_v7 = vadd.f32 %v3368_v1, %v3348_v54  ;;  %v3369_v13 = vadd.f32 %v3367_v31, %v3347_v38  ;;  %v3630_v38 = vld [vmem:[#allocation10 + $0x88] sm:$0xff] }
 0x769   :  { %v3343_v33 = vadd.f32 %v3341_v63, %v3321_v18  ;;  %v3366_v50 = vadd.f32 %v3364_v5, %v3344_v30  ;;  %v8562_v18 = vld [vmem:[#allocation24_spill] sm:$0xff]  ;;  %v8563_v63 = vld [vmem:[#allocation22_spill] sm:$0xff] }
 0x76a   :  { %v3384_v40 = vpop.xlane.xlu1 %3383  ;;  %v3382_v62 = vpop.xlane.xlu0 %3381 }
 0x76b   :  { %v3390_v58 = vsel %vm697_vm10, %v3384_v40, 0.0  ;;  %v3389_v60 = vsel %vm697_vm10, %v3382_v62, 0.0  ;;  %v3365_v0 = vadd.f32 %v3363_v32, %v3343_v33  ;;  %v3388_v11 = vadd.f32 %v3386_v49, %v3366_v50  ;;  %v2614_v49 = vld [vmem:[#allocation2 + $0x30] sm:$0xff] }
 0x76c   :  { %v3392_v55 = vadd.f32 %v3390_v58, %v3370_v7  ;;  %v3391_v61 = vadd.f32 %v3389_v60, %v3369_v13  ;;  %v3627_v60 = vld [vmem:[#allocation10 + $0x10] sm:$0xff] }
 0x76d   :  { %v3387_v1 = vadd.f32 %v3385_v16, %v3365_v0  ;;  %v3960_v0 = vld [vmem:[#allocation10 + $0x98] sm:$0xff] }
 0x76e   :  { %v3406_v22 = vpop.xlane.xlu1 %3405  ;;  %v3404_v46 = vpop.xlane.xlu0 %3403 }
 0x76f   :  { %v3412_v15 = vsel %vm720_vm13, %v3406_v22, 0.0  ;;  %v3411_v47 = vsel %vm720_vm13, %v3404_v46, 0.0  ;;  %v3462_v22 = vld [vmem:[#allocation10 + $0x78] sm:$0xff]  ;;  %v3410_v46 = vadd.f32 %v3408_v21, %v3388_v11  ;;  %v3409_v24 = vadd.f32 %v3407_v37, %v3387_v1  ;;  %v2631_v11 = vld [vmem:[#allocation2 + $0x40] sm:$0xff] }
 0x770   :  { %v3414_v39 = vadd.f32 %v3412_v15, %v3392_v55  ;;  %v3413_v29 = vadd.f32 %v3411_v47, %v3391_v61  ;;  %v3793_v47 = vld [vmem:[#allocation8 + $0x10] sm:$0xff]  ;;  %v2616_v21 = vmul.f32 %v8563_v63, %v2614_v49 }
 0x771   :  { %v6461_v6 = vpack.c.bf16 %v3794_v34, %v3793_v47  ;;  %v2665_v47 = vld [vmem:[#allocation2 + $0x60] sm:$0xff] }
 0x772   :  { %v3428_v53 = vpop.xlane.xlu1 %3427  ;;  %v3426_v57 = vpop.xlane.xlu0 %3425 }
 0x773   :  { %v3434_v8 = vsel %vm743_vm12, %v3428_v53, 0.0  ;;  %v3433_v44 = vsel %vm743_vm12, %v3426_v57, 0.0  ;;  %v2581_v57 = vld [vmem:[#allocation2 + $0x18] sm:$0xff] }
 0x774   :  { %v3436_v20 = vadd.f32 %v3434_v8, %v3414_v39  ;;  %v3435_v10 = vadd.f32 %v3433_v44, %v3413_v29  ;;  %v2580_v8 = vld [vmem:[#allocation2 + $0x10] sm:$0xff]  ;;  %v8561_v44 = vld [vmem:[#allocation23_spill] sm:$0xff]  ;;  %v2583_v23 = vmul.f32 %v8563_v63, %v2581_v57  ;;  %v2667_v57 = vmul.f32 %v8563_v63, %v2665_v47 }
 0x775   :  { %v2582_v42 = vmul.f32 %v8563_v63, %v2580_v8 }
 0x776   :  { %v3450_v43 = vpop.xlane.xlu1 %3449  ;;  %v3448_v35 = vpop.xlane.xlu0 %3447 }
 0x777   :  { %v3456_v3 = vsel %vm766_vm14, %v3450_v43, 0.0  ;;  %v3455_v2 = vsel %vm766_vm14, %v3448_v35, 0.0 }
 0x778   :  { %v3458_v40 = vadd.f32 %v3456_v3, %v3436_v20  ;;  %v3457_v62 = vadd.f32 %v3455_v2, %v3435_v10  ;;  %v2598_v20 = vld [vmem:[#allocation2 + $0x28] sm:$0xff]  ;;  %v2597_v10 = vld [vmem:[#allocation2 + $0x20] sm:$0xff] }
 0x779   :  { %v3959_v3 = vld [vmem:[#allocation10 + $0x90] sm:$0xff]  ;;  %v2600_v2 = vmul.f32 %v8563_v63, %v2598_v20  ;;  %v2599_v30 = vmul.f32 %v8563_v63, %v2597_v10  ;;  %v2700_v20 = vld [vmem:[#allocation2 + $0x88] sm:$0xff] }
 0x77a   :  { %v8192_v56 = vpack.c.bf16 %v3458_v40, %v3457_v62  ;;  %v3420_v45 = vpop.xlane.xlu1 %3419  ;;  %v3418_v52 = vpop.xlane.xlu0 %3417  ;;  %v2615_v62 = vld [vmem:[#allocation2 + $0x38] sm:$0xff]  ;;  %v2699_v10 = vld [vmem:[#allocation2 + $0x80] sm:$0xff] }
 0x77b   :  { %v3422_v26 = vmul.f32 0.03125, %v3420_v45  ;;  %v3421_v25 = vmul.f32 0.03125, %v3418_v52  ;;  %v3957_v45 = vld [vmem:[#allocation10 + $0x20] sm:$0xff]  ;;  %v2617_v52 = vmul.f32 %v8563_v63, %v2615_v62 }
 0x77c   :  { %6446 = vmatprep.subr.bf16.mxu1 %v8192_v56  ;;  %6454 = vmatprep.subr.bf16.mxu0 %v8192_v56  ;;  %v2716_v62 = vld [vmem:[#allocation2 + $0x90] sm:$0xff] }
 0x77d   :  { %v3430_v31 = vsel %vm743_vm12, %v3422_v26, 0.0  ;;  %v3429_v54 = vsel %vm743_vm12, %v3421_v25, 0.0  ;;  %6448 = vmatpush3.bf16.msra.mxu1 %v8192_v56  ;;  %6456 = vmatpush3.bf16.msra.mxu0 %v8192_v56  ;;  %v2632_v25 = vld [vmem:[#allocation2 + $0x48] sm:$0xff] }
 0x77e   :  { %v3442_v19 = vpop.xlane.xlu1 %3441  ;;  %v3440_v58 = vpop.xlane.xlu0 %3439  ;;  %v3432_v13 = vadd.f32 %v3430_v31, %v3410_v46  ;;  %v3431_v28 = vadd.f32 %v3429_v54, %v3409_v24  ;;  %v2634_v54 = vmul.f32 %v8563_v63, %v2632_v25  ;;  %v2649_v24 = vld [vmem:[#allocation2 + $0x58] sm:$0xff]  ;;  %v2733_v25 = vld [vmem:[#allocation2 + $0xa0] sm:$0xff] }
 0x77f   :  { %v3444_v12 = vmul.f32 0.03125, %v3442_v19  ;;  %v3443_v7 = vmul.f32 0.03125, %v3440_v58  ;;  %v2648_v19 = vld [vmem:[#allocation2 + $0x50] sm:$0xff] }
 0x780   :  { %6137 = vmatmul.mubr.msk.f32.vlgmr.msra.gmra.mrb[10].mxu0 %vm780_vm4, %v3630_v38  ;;  %6123 = vmatmul.mubr.msk.f32.vlgmr.msra.gmra.mrb[14].mxu1 %vm780_vm4, %v3462_v22  ;;  %v2633_v38 = vmul.f32 %v8563_v63, %v2631_v11 }
 0x781   :  { %v3452_v36 = vsel %vm766_vm14, %v3444_v12, 0.0  ;;  %v3451_v15 = vsel %vm766_vm14, %v3443_v7, 0.0  ;;  %6143 = vmatprep.mubr.msk.f32.mxu0 %vm780_vm4, %v3627_v60  ;;  %6129 = vmatprep.mubr.msk.f32.mxu1 %vm780_vm4, %v3459_v14  ;;  %v3958_v14 = vld [vmem:[#allocation10 + $0x28] sm:$0xff]  ;;  %v4210_v12 = vld [vmem:[#allocation10 + $0xa0] sm:$0xff]  ;;  %v2651_v7 = vmul.f32 %v8563_v63, %v2649_v24 }
 0x782   :  { %v3454_v51 = vadd.f32 %v3452_v36, %v3432_v13  ;;  %v3453_v55 = vadd.f32 %v3451_v15, %v3431_v28  ;;  %v2567_v61 = vpop.xlane.xlu1 %2566  ;;  %v2564_v53 = vpop.xlane.xlu0 %2563  ;;  %v2650_v13 = vmul.f32 %v8563_v63, %v2648_v19  ;;  %v2666_v15 = vld [vmem:[#allocation2 + $0x68] sm:$0xff]  ;;  %v2750_v24 = vld [vmem:[#allocation2 + $0xb0] sm:$0xff] }
 0x783   :  { %v2569_v4 = vmul.f32 %v2567_v61, %v8561_v44  ;;  %v2568_v39 = vmul.f32 %v2564_v53, %v8562_v18  ;;  %v4208_v61 = vld [vmem:[#allocation10 + $0x30] sm:$0xff]  ;;  %v2668_v53 = vmul.f32 %v8563_v63, %v2666_v15  ;;  %v2682_v18 = vld [vmem:[#allocation2 + $0x70] sm:$0xff] }
 0x784   :  { %v8216_v29 = vpack.c.bf16 %v3454_v51, %v3453_v55  ;;  %v4211_v55 = vld [vmem:[#allocation10 + $0xa8] sm:$0xff]  ;;  %v2767_v15 = vld [vmem:[#allocation2 + $0xc0] sm:$0xff] }
 0x785   :  { %2571 = vst [vmem:[#allocation11 + $0x8] sm:$0xff] %v2569_v4  ;;  %2570 = vst [vmem:[#allocation11] sm:$0xff] %v2568_v39  ;;  %v2683_v4 = vld [vmem:[#allocation2 + $0x78] sm:$0xff] }
 0x786   :  { %v2579_v5 = vpop.xlane.xlu1 %2578  ;;  %6450 = vmatprep.subr.bf16.mxu1 %v8216_v29  ;;  %6458 = vmatprep.subr.bf16.mxu0 %v8216_v29  ;;  %v2576_v32 = vpop.xlane.xlu0 %2575 }
 0x787   :  { %v2585_v43 = vmul.f32 %v2583_v23, %v2579_v5  ;;  %v2584_v35 = vmul.f32 %v2582_v42, %v2576_v32  ;;  %6452 = vmatpush3.bf16.msra.mxu1 %v8216_v29  ;;  %6460 = vmatpush3.bf16.msra.mxu0 %v8216_v29  ;;  %v2685_v23 = vmul.f32 %v8563_v63, %v2683_v4 }
 0x788   :  { %6470 = vmatprep.subr.bf16.mxu0 %v8192_v56  ;;  %6462 = vmatprep.subr.bf16.mxu1 %v6461_v6  ;;  %v2684_v42 = vmul.f32 %v8563_v63, %v2682_v18 }
 0x789   :  { %2588 = vst [vmem:[#allocation11 + $0x18] sm:$0xff] %v2585_v43  ;;  %2587 = vst [vmem:[#allocation11 + $0x10] sm:$0xff] %v2584_v35 }
 0x78a   :  { %v2596_v33 = vpop.xlane.xlu1 %2595  ;;  %6144 = vmatmul.mubr.msk.f32.vlgmr.msra.gmra.mrb[10].mxu0 %vm780_vm4, %v3628_v27  ;;  %v2593_v40 = vpop.xlane.xlu0 %2592  ;;  %6130 = vmatmul.mubr.msk.f32.vlgmr.msra.gmra.mrb[14].mxu1 %vm780_vm4, %v3460_v41  ;;  %v4209_v27 = vld [vmem:[#allocation10 + $0x38] sm:$0xff]  ;;  %v4712_v41 = vld [vmem:[#allocation10 + $0xc0] sm:$0xff] }
 0x78b   :  { %v2602_v16 = vmul.f32 %v2600_v2, %v2596_v33  ;;  %v2601_v50 = vmul.f32 %v2599_v30, %v2593_v40  ;;  %6472 = vmatpush3.bf16.msra.mxu0 %v8192_v56  ;;  %6164 = vmatprep.mubr.msk.f32.mxu0 %vm780_vm4, %v3959_v3  ;;  %v2702_v3 = vmul.f32 %v8563_v63, %v2700_v20  ;;  %v2717_v40 = vld [vmem:[#allocation2 + $0x98] sm:$0xff] }
 0x78c   :  { %6474 = vmatprep.subr.bf16.mxu0 %v8216_v29  ;;  %6464 = vmatpush3.bf16.msra.mxu1 %v6461_v6  ;;  %v2701_v2 = vmul.f32 %v8563_v63, %v2699_v10 }
 0x78d   :  { %2605 = vst [vmem:[#allocation11 + $0x28] sm:$0xff] %v2602_v16  ;;  %2604 = vst [vmem:[#allocation11 + $0x20] sm:$0xff] %v2601_v50  ;;  %v4713_v50 = vld [vmem:[#allocation10 + $0xc8] sm:$0xff] }
 0x78e   :  { %v2613_v37 = vpop.xlane.xlu1 %2612  ;;  %6165 = vmatmul.mubr.msk.f32.vlgmr.msra.gmra.mrb[12].mxu0 %vm780_vm4, %v3960_v0  ;;  %v2610_v26 = vpop.xlane.xlu0 %2609  ;;  %v4710_v0 = vld [vmem:[#allocation10 + $0x50] sm:$0xff] }
 0x78f   :  { %v2619_v1 = vmul.f32 %v2617_v52, %v2613_v37  ;;  %v2618_v31 = vmul.f32 %v2616_v21, %v2610_v26  ;;  %6476 = vmatpush3.bf16.msra.mxu0 %v8216_v29  ;;  %6171 = vmatprep.mubr.msk.f32.mxu0 %vm780_vm4, %v3957_v45  ;;  %v2719_v45 = vmul.f32 %v8563_v63, %v2717_v40  ;;  %v2734_v26 = vld [vmem:[#allocation2 + $0xa8] sm:$0xff] }
 0x790   :  { %6482 = vmatprep.subr.bf16.mxu0 %v8192_v56  ;;  %v2718_v52 = vmul.f32 %v8563_v63, %v2716_v62 }
 0x791   :  { %2622 = vst [vmem:[#allocation11 + $0x38] sm:$0xff] %v2619_v1  ;;  %2621 = vst [vmem:[#allocation11 + $0x30] sm:$0xff] %v2618_v31  ;;  %v2736_v31 = vmul.f32 %v8563_v63, %v2734_v26  ;;  %v4962_v26 = vld [vmem:[#allocation10 + $0x68] sm:$0xff] }
 0x792   :  { %v2630_v22 = vpop.xlane.xlu1 %2629  ;;  %v2627_v46 = vpop.xlane.xlu0 %2626 }
 0x793   :  { %v2636_v58 = vmul.f32 %v2634_v54, %v2630_v22  ;;  %v2635_v60 = vmul.f32 %v2633_v38, %v2627_v46  ;;  %v2735_v54 = vmul.f32 %v8563_v63, %v2733_v25  ;;  %v2751_v46 = vld [vmem:[#allocation2 + $0xb8] sm:$0xff]  ;;  %v4123_v25 = vld [vmem:[#allocation8 + $0x20] sm:$0xff] }
 0x795   :  { %2639 = vst [vmem:[#allocation11 + $0x48] sm:$0xff] %v2636_v58  ;;  %2638 = vst [vmem:[#allocation11 + $0x40] sm:$0xff] %v2635_v60  ;;  %v4711_v60 = vld [vmem:[#allocation10 + $0x58] sm:$0xff] }
 0x796   :  { %v2647_v28 = vpop.xlane.xlu1 %2646  ;;  %6172 = vmatmul.mubr.msk.f32.vlgmr.msra.gmra.mrb[12].mxu0 %vm780_vm4, %v3958_v14  ;;  %v2644_v36 = vpop.xlane.xlu0 %2643  ;;  %v4963_v14 = vld [vmem:[#allocation10 + $0xd0] sm:$0xff] }
 0x797   :  { %v2653_v34 = vmul.f32 %v2651_v7, %v2647_v28  ;;  %6484 = vmatpush3.bf16.msra.mxu0 %v8192_v56  ;;  %v2652_v51 = vmul.f32 %v2650_v13, %v2644_v36  ;;  %6185 = vmatprep.mubr.msk.f32.mxu0 %vm780_vm4, %v4210_v12  ;;  %v2753_v12 = vmul.f32 %v8563_v63, %v2751_v46  ;;  %v2768_v36 = vld [vmem:[#allocation2 + $0xc8] sm:$0xff]  ;;  %v4375_v46 = vld [vmem:[#allocation8 + $0x38] sm:$0xff] }
 0x798   :  { %6486 = vmatprep.subr.bf16.mxu0 %v8216_v29  ;;  %v2752_v7 = vmul.f32 %v8563_v63, %v2750_v24 }
 0x799   :  { %2656 = vst [vmem:[#allocation11 + $0x58] sm:$0xff] %v2653_v34  ;;  %2655 = vst [vmem:[#allocation11 + $0x50] sm:$0xff] %v2652_v51  ;;  %v4964_v51 = vld [vmem:[#allocation10 + $0xd8] sm:$0xff] }
 0x79a   :  { %v2664_v8 = vpop.xlane.xlu1 %2663  ;;  %6186 = vmatmul.mubr.msk.f32.vlgmr.msra.gmra.mrb[14].mxu0 %vm780_vm4, %v4211_v55  ;;  %v2661_v44 = vpop.xlane.xlu0 %2660  ;;  %v2770_v55 = vmul.f32 %v8563_v63, %v2768_v36  ;;  %v4459_v36 = vld [vmem:[#allocation10 + $0x40] sm:$0xff] }
 0x79b   :  { %v2670_v39 = vmul.f32 %v2668_v53, %v2664_v8  ;;  %6488 = vmatpush3.bf16.msra.mxu0 %v8216_v29  ;;  %v2669_v6 = vmul.f32 %v2667_v57, %v2661_v44  ;;  %6192 = vmatprep.mubr.msk.f32.mxu0 %vm780_vm4, %v4208_v61  ;;  %v2769_v61 = vmul.f32 %v8563_v63, %v2767_v15  ;;  %v2785_v8 = vld [vmem:[#allocation2 + $0xd8] sm:$0xff]  ;;  %v2784_v44 = vld [vmem:[#allocation2 + $0xd0] sm:$0xff] }
 0x79c   :  { %6506 = vmatprep.subr.bf16.mxu0 %v8192_v56 }
 0x79d   :  { %2673 = vst [vmem:[#allocation11 + $0x68] sm:$0xff] %v2670_v39  ;;  %2672 = vst [vmem:[#allocation11 + $0x60] sm:$0xff] %v2669_v6  ;;  %v2787_v39 = vmul.f32 %v8563_v63, %v2785_v8  ;;  %v2786_v6 = vmul.f32 %v8563_v63, %v2784_v44  ;;  %v5127_v8 = vld [vmem:[#allocation8 + $0x60] sm:$0xff]  ;;  %v5128_v44 = vld [vmem:[#allocation8 + $0x68] sm:$0xff] }
 0x79e   :  { %v2681_v5 = vpop.xlane.xlu1 %2680  ;;  %v2678_v32 = vpop.xlane.xlu0 %2677 }
 0x79f   :  { %v2687_v43 = vmul.f32 %v2685_v23, %v2681_v5  ;;  %v2686_v35 = vmul.f32 %v2684_v42, %v2678_v32  ;;  %v2802_v5 = vld [vmem:[#allocation2 + $0xe8] sm:$0xff]  ;;  %v2801_v32 = vld [vmem:[#allocation2 + $0xe0] sm:$0xff] }
 0x7a1   :  { %2690 = vst [vmem:[#allocation11 + $0x78] sm:$0xff] %v2687_v43  ;;  %2689 = vst [vmem:[#allocation11 + $0x70] sm:$0xff] %v2686_v35  ;;  %v2804_v43 = vmul.f32 %v8563_v63, %v2802_v5  ;;  %v2803_v35 = vmul.f32 %v8563_v63, %v2801_v32 }
 0x7a2   :  { %v2698_v30 = vpop.xlane.xlu1 %2697  ;;  %6193 = vmatmul.mubr.msk.f32.vlgmr.msra.gmra.mrb[14].mxu0 %vm780_vm4, %v4209_v27  ;;  %v2695_v33 = vpop.xlane.xlu0 %2694 }
 0x7a3   :  { %v2704_v49 = vmul.f32 %v2702_v3, %v2698_v30  ;;  %6508 = vmatpush3.bf16.msra.mxu0 %v8192_v56  ;;  %v2703_v16 = vmul.f32 %v2701_v2, %v2695_v33  ;;  %6227 = vmatprep.mubr.msk.f32.mxu0 %vm780_vm4, %v4712_v41  ;;  %v2819_v3 = vld [vmem:[#allocation2 + $0xf8] sm:$0xff]  ;;  %v2818_v2 = vld [vmem:[#allocation2 + $0xf0] sm:$0xff] }
 0x7a4   :  { %6510 = vmatprep.subr.bf16.mxu0 %v8216_v29  ;;  %v2821_v40 = vmul.f32 %v8563_v63, %v2819_v3  ;;  %v2820_v62 = vmul.f32 %v8563_v63, %v2818_v2 }
 0x7a5   :  { %2707 = vst [vmem:[#allocation11 + $0x88] sm:$0xff] %v2704_v49  ;;  %2706 = vst [vmem:[#allocation11 + $0x80] sm:$0xff] %v2703_v16 }
 0x7a6   :  { %v2715_v21 = vpop.xlane.xlu1 %2714  ;;  %6228 = vmatmul.mubr.msk.f32.vlgmr.msra.gmra.mrb[16].mxu0 %vm780_vm4, %v4713_v50  ;;  %v2712_v37 = vpop.xlane.xlu0 %2711 }
 0x7a7   :  { %v2721_v11 = vmul.f32 %v2719_v45, %v2715_v21  ;;  %6512 = vmatpush3.bf16.msra.mxu0 %v8216_v29  ;;  %v2720_v1 = vmul.f32 %v2718_v52, %v2712_v37  ;;  %6234 = vmatprep.mubr.msk.f32.mxu0 %vm780_vm4, %v4710_v0  ;;  %v3625_v45 = vld [vmem:[#allocation8] sm:$0xff]  ;;  %v3626_v52 = vld [vmem:[#allocation8 + $0x8] sm:$0xff]  ;;  %v4961_v37 = vld [vmem:[#allocation10 + $0x60] sm:$0xff] }
 0x7a8   :  { %6518 = vmatprep.subr.bf16.mxu0 %v8192_v56  ;;  %v6465_v21 = vpack.c.bf16 %v3626_v52, %v3625_v45 }
 0x7a9   :  { %2724 = vst [vmem:[#allocation11 + $0x98] sm:$0xff] %v2721_v11  ;;  %2723 = vst [vmem:[#allocation11 + $0x90] sm:$0xff] %v2720_v1  ;;  %v4124_v11 = vld [vmem:[#allocation8 + $0x28] sm:$0xff] }
 0x7aa   :  { %v2732_v38 = vpop.xlane.xlu1 %2731  ;;  %v2729_v22 = vpop.xlane.xlu0 %2728  ;;  %6466 = vmatprep.subr.bf16.mxu1 %v6465_v21 }
 0x7ab   :  { %v2738_v19 = vmul.f32 %v2736_v31, %v2732_v38  ;;  %v2737_v58 = vmul.f32 %v2735_v54, %v2729_v22  ;;  %v6477_v38 = vpack.c.bf16 %v4124_v11, %v4123_v25  ;;  %v4374_v22 = vld [vmem:[#allocation8 + $0x30] sm:$0xff] }
 0x7ac   :  { %v6489_v24 = vpack.c.bf16 %v4375_v46, %v4374_v22 }
 0x7ad   :  { %2741 = vst [vmem:[#allocation11 + $0xa8] sm:$0xff] %v2738_v19  ;;  %2740 = vst [vmem:[#allocation11 + $0xa0] sm:$0xff] %v2737_v58 }
 0x7ae   :  { %v2749_v13 = vpop.xlane.xlu1 %2748  ;;  %6235 = vmatmul.mubr.msk.f32.vlgmr.msra.gmra.mrb[16].mxu0 %vm780_vm4, %v4711_v60  ;;  %v2746_v28 = vpop.xlane.xlu0 %2745 }
 0x7af   :  { %v2755_v47 = vmul.f32 %v2753_v12, %v2749_v13  ;;  %6520 = vmatpush3.bf16.msra.mxu0 %v8192_v56  ;;  %v2754_v34 = vmul.f32 %v2752_v7, %v2746_v28  ;;  %6248 = vmatprep.mubr.msk.f32.mxu0 %vm780_vm4, %v4963_v14  ;;  %v4461_v12 = vld [vmem:[#allocation10 + $0xb0] sm:$0xff]  ;;  %v4626_v13 = vld [vmem:[#allocation8 + $0x48] sm:$0xff] }
 0x7b0   :  { %6522 = vmatprep.subr.bf16.mxu0 %v8216_v29  ;;  %v4625_v7 = vld [vmem:[#allocation8 + $0x40] sm:$0xff]  ;;  %v4462_v28 = vld [vmem:[#allocation10 + $0xb8] sm:$0xff] }
 0x7b1   :  { %2758 = vst [vmem:[#allocation11 + $0xb8] sm:$0xff] %v2755_v47  ;;  %2757 = vst [vmem:[#allocation11 + $0xb0] sm:$0xff] %v2754_v34  ;;  %v6501_v15 = vpack.c.bf16 %v4626_v13, %v4625_v7  ;;  %v4460_v47 = vld [vmem:[#allocation10 + $0x48] sm:$0xff] }
 0x7b2   :  { %v2766_v53 = vpop.xlane.xlu1 %2765  ;;  %6249 = vmatmul.mubr.msk.f32.vlgmr.msra.gmra.mrb[18].mxu0 %vm780_vm4, %v4964_v51  ;;  %v2763_v57 = vpop.xlane.xlu0 %2762  ;;  %v4876_v51 = vld [vmem:[#allocation8 + $0x50] sm:$0xff] }
 0x7b3   :  { %v2772_v4 = vmul.f32 %v2770_v55, %v2766_v53  ;;  %6524 = vmatpush3.bf16.msra.mxu0 %v8216_v29  ;;  %v2771_v18 = vmul.f32 %v2769_v61, %v2763_v57  ;;  %6255 = vmatprep.mubr.msk.f32.mxu0 %vm780_vm4, %v4961_v37  ;;  %v4877_v55 = vld [vmem:[#allocation8 + $0x58] sm:$0xff] }
 0x7b4   :  { %v6513_v61 = vpack.c.bf16 %v4877_v55, %v4876_v51 }
 0x7b5   :  { %2775 = vst [vmem:[#allocation11 + $0xc8] sm:$0xff] %v2772_v4  ;;  %2774 = vst [vmem:[#allocation11 + $0xc0] sm:$0xff] %v2771_v18 }
 0x7b6   :  { %v2783_v23 = vpop.xlane.xlu1 %2782  ;;  %v2780_v42 = vpop.xlane.xlu0 %2779 }
 0x7b7   :  { %v2789_v20 = vmul.f32 %v2787_v39, %v2783_v23  ;;  %v2788_v10 = vmul.f32 %v2786_v6, %v2780_v42 }
 0x7b9   :  { %2792 = vst [vmem:[#allocation11 + $0xd8] sm:$0xff] %v2789_v20  ;;  %2791 = vst [vmem:[#allocation11 + $0xd0] sm:$0xff] %v2788_v10 }
 0x7ba   :  { %v2800_v27 = vpop.xlane.xlu1 %2799  ;;  %v2797_v41 = vpop.xlane.xlu0 %2796  ;;  %6256 = vmatmul.mubr.msk.f32.vlgmr.msra.gmra.mrb[18].mxu0 %vm780_vm4, %v4962_v26 }
 0x7bb   :  { %v2806_v30 = vmul.f32 %v2804_v43, %v2800_v27  ;;  %v2805_v33 = vmul.f32 %v2803_v35, %v2797_v41 }
 0x7bd   :  { %2809 = vst [vmem:[#allocation11 + $0xe8] sm:$0xff] %v2806_v30  ;;  %2808 = vst [vmem:[#allocation11 + $0xe0] sm:$0xff] %v2805_v33 }
 0x7be   :  { %v2817_v49 = vpop.xlane.xlu1 %2816  ;;  %v2814_v16 = vpop.xlane.xlu0 %2813 }
 0x7bf   :  { %v2823_v50 = vmul.f32 %v2821_v40, %v2817_v49  ;;  %v2822_v0 = vmul.f32 %v2820_v62, %v2814_v16 }
 0x7c1   :  { %2826 = vst [vmem:[#allocation11 + $0xf8] sm:$0xff] %v2823_v50  ;;  %2825 = vst [vmem:[#allocation11 + $0xf0] sm:$0xff] %v2822_v0 }
 0x85d   :  { %v6145_v1 = vpop.f32.mrb[10].mxu0  ;;  %v6131_v63 = vpop.f32.mrb[14].mxu1 }
 0x85e   :  { %v3784_v31 = vpop.f32.mrb[11].mxu0  ;;  %v3616_v54 = vpop.f32.mrb[15].mxu1 }
 0x85f   :  { %6150 = vmatprep.mubr.msk.f32.mxu1 %vm780_vm4, %v3784_v31 }
 0x860   :  { %6151 = vmatmul.mubr.msk.f32.vlgmr.msra.gmra.mrb[16].mxu1 %vm780_vm4, %v6145_v1 }
 0x861   :  { %6157 = vmatprep.mubr.msk.f32.mxu1 %vm780_vm4, %v3616_v54  ;;  %6468 = vmatpush3.bf16.msra.mxu1 %v6465_v21 }
 0x862   :  { %6478 = vmatprep.subr.bf16.mxu1 %v6477_v38 }
 0x868   :  { %6158 = vmatmul.mubr.msk.f32.vlgmr.msra.gmra.mrb[16].mxu1 %vm780_vm4, %v6131_v63 }
 0x869   :  { %v6173_v19 = vpop.f32.mrb[12].mxu0  ;;  %6480 = vmatpush3.bf16.msra.mxu1 %v6477_v38 }
 0x86a   :  { %v4114_v58 = vpop.f32.mrb[13].mxu0  ;;  %6490 = vmatprep.subr.bf16.mxu1 %v6489_v24 }
 0x86b   :  { %6178 = vmatprep.mubr.msk.f32.mxu1 %vm780_vm4, %v4114_v58 }
 0x870   :  { %6179 = vmatmul.mubr.msk.f32.vlgmr.msra.gmra.mrb[16].mxu1 %vm780_vm4, %v6173_v19 }
 0x871   :  { %6492 = vmatpush3.bf16.msra.mxu1 %v6489_v24 }
 0x872   :  { %6494 = vmatprep.subr.bf16.mxu1 %v8192_v56 }
 0x875   :  { %v6194_v60 = vpop.f32.mrb[14].mxu0 }
 0x876   :  { %v4365_v14 = vpop.f32.mrb[15].mxu0 }
 0x877   :  { %6199 = vmatprep.mubr.msk.f32.mxu1 %vm780_vm4, %v4365_v14 }
 0x878   :  { %6200 = vmatmul.mubr.msk.f32.vlgmr.msra.gmra.mrb[16].mxu1 %vm780_vm4, %v6194_v60 }
 0x879   :  { %6496 = vmatpush3.bf16.msra.mxu1 %v8192_v56  ;;  %6206 = vmatprep.mubr.msk.f32.mxu1 %vm780_vm4, %v4461_v12 }
 0x87a   :  { %6498 = vmatprep.subr.bf16.mxu1 %v8216_v29 }
 0x87c   :  { %6207 = vmatmul.mubr.msk.f32.vlgmr.msra.gmra.mrb[18].mxu1 %vm780_vm4, %v4462_v28 }
 0x87d   :  { %6500 = vmatpush3.bf16.msra.mxu1 %v8216_v29  ;;  %6213 = vmatprep.mubr.msk.f32.mxu1 %vm780_vm4, %v4459_v36  ;;  %v6525_v29 = vpack.c.bf16 %v5128_v44, %v5127_v8 }
 0x87e   :  { %6502 = vmatprep.subr.bf16.mxu1 %v6501_v15 }
 0x881   :  { %v6236_v34 = vpop.f32.mrb[16].mxu0 }
 0x882   :  { %v4867_v56 = vpop.f32.mrb[17].mxu0 }
 0x884   :  { %6214 = vmatmul.mubr.msk.f32.vlgmr.msra.gmra.mrb[18].mxu1 %vm780_vm4, %v4460_v47 }
 0x885   :  { %6504 = vmatpush3.bf16.msra.mxu1 %v6501_v15 }
 0x886   :  { %6514 = vmatprep.subr.bf16.mxu1 %v6513_v61 }
 0x88d   :  { %v6257_v53 = vpop.f32.mrb[18].mxu0 }
 0x88e   :  { %v5118_v57 = vpop.f32.mrb[19].mxu0 }
 0x957   :  { %v6215_v4 = vpop.f32.mrb[18].mxu1 }
 0x958   :  { %v4616_v18 = vpop.f32.mrb[19].mxu1 }
 0x959   :  { %6220 = vmatprep.mubr.msk.f32.mxu1 %vm780_vm4, %v4616_v18 }
 0x95a   :  { %6221 = vmatmul.mubr.msk.f32.vlgmr.msra.gmra.mrb[16].mxu1 %vm780_vm4, %v6215_v4 }
 0x95b   :  { %6241 = vmatprep.mubr.msk.f32.mxu1 %vm780_vm4, %v4867_v56  ;;  %6516 = vmatpush3.bf16.msra.mxu1 %v6513_v61 }
 0x95c   :  { %6526 = vmatprep.subr.bf16.mxu1 %v6525_v29 }
 0x962   :  { %6242 = vmatmul.mubr.msk.f32.vlgmr.msra.gmra.mrb[16].mxu1 %vm780_vm4, %v6236_v34 }
 0x963   :  { %6262 = vmatprep.mubr.msk.f32.mxu1 %vm780_vm4, %v5118_v57  ;;  %6528 = vmatpush3.bf16.msra.mxu1 %v6525_v29 }
 0x96a   :  { %6263 = vmatmul.mubr.msk.f32.vlgmr.msra.gmra.mrb[16].mxu1 %vm780_vm4, %v6257_v53 }
 0xa3d   :  { %v6264_v39 = vpop.f32.mrb[16].mxu1 }
 0xa3e   :  { %v5213_v6 = vsub.f32 0.0, %v6264_v39  ;;  %v5201_v23 = vpop.f32.mrb[17].mxu1 }
 0xa3f   :  { %v5212_v42 = vsub.f32 0.0, %v5201_v23 }
 0xa40   :  { %v5216_v5 = vmul.f32 1.442695, %v5213_v6 }
 0xa41   :  { %v5214_v32 = vmul.f32 1.442695, %v5212_v42 }
 0xa42   :  { %6608 = vpow2.f32 %v5216_v5 }
 0xa43   :  { %6610 = vpow2.f32 %v5214_v32 }
 0xa4c   :  { %v6609_v20 = vpop.eup %6608 }
 0xa4d   :  { %v6611_v10 = vpop.eup %6610  ;;  %v5219_v43 = vadd.f32 1.0, %v6609_v20 }
 0xa4e   :  { %v5218_v35 = vadd.f32 1.0, %v6611_v10 }
 0xa4f   :  { %6612 = vrcp.f32 %v5219_v43 }
 0xa50   :  { %6614 = vrcp.f32 %v5218_v35 }
 0xa59   :  { %v8308_v27 = vpop.eup %6612 }
 0xa5a   :  { %v8310_v41 = vpop.eup %6614  ;;  %v5225_v3 = vsel %vm421_vm6, %v8308_v27, 0.0  ;;  %v5238_v40 = vsel %vm444_vm5, %v8308_v27, 0.0  ;;  %v5255_v50 = vsel %vm467_vm7, %v8308_v27, 0.0  ;;  %v5306_v54 = vsel %vm8568_vm1, %v8308_v27, 0.0 }
 0xa5b   :  { %v5229_v2 = vsel %vm780_vm4, %v5225_v3, 0.0  ;;  %v5224_v30 = vsel %vm421_vm6, %v8310_v41, 0.0  ;;  %v5237_v62 = vsel %vm444_vm5, %v8310_v41, 0.0  ;;  %v5242_v49 = vsel %vm780_vm4, %v5238_v40, 0.0 }
 0xa5c   :  { %5230 = vadd.xlane.f32.xlu1 %v5229_v2  ;;  %v5226_v33 = vsel %vm780_vm4, %v5224_v30, 0.0  ;;  %v5239_v16 = vsel %vm780_vm4, %v5237_v62, 0.0  ;;  %v5254_v0 = vsel %vm467_vm7, %v8310_v41, 0.0  ;;  %v5259_v45 = vsel %vm780_vm4, %v5255_v50, 0.0 }
 0xa5d   :  { %5227 = vadd.xlane.f32.xlu0 %v5226_v33  ;;  %v5256_v52 = vsel %vm780_vm4, %v5254_v0, 0.0  ;;  %vm8564_vm5 = vcmp.eq.s32.totalorder %v7150_v9, 3  ;;  %vm8566_vm7 = vcmp.eq.s32.totalorder %v7150_v9, 4  ;;  %v5305_v38 = vsel %vm8569_vm2, %v8310_v41, 0.0 }
 0xa5e   :  { %v5272_v21 = vsel %vm8564_vm5, %v8308_v27, 0.0  ;;  %vm8565_vm6 = vmmov %vm8564_vm5  ;;  %v5289_v11 = vsel %vm8566_vm7, %v8308_v27, 0.0  ;;  %v5310_v22 = vsel %vm780_vm4, %v5306_v54, 0.0  ;;  %v5307_v46 = vsel %vm780_vm4, %v5305_v38, 0.0  ;;  %v5279_v38 = vld [vmem:[#allocation2 + $0x130] sm:$0xff] }
 0xa5f   :  { %v5271_v37 = vsel %vm8565_vm6, %v8310_v41, 0.0  ;;  %v5276_v26 = vsel %vm780_vm4, %v5272_v21, 0.0  ;;  %vm8567_vm0 = vmmov %vm8566_vm7  ;;  %v5293_v63 = vsel %vm780_vm4, %v5289_v11, 0.0  ;;  %v5323_v24 = vsel %vm8570_vm9, %v8308_v27, 0.0  ;;  %v5263_v21 = vld [vmem:[#allocation2 + $0x128] sm:$0xff] }
 0xa60   :  { %5243 = vadd.xlane.f32.xlu1 %v5242_v49  ;;  %v5273_v25 = vsel %vm780_vm4, %v5271_v37, 0.0  ;;  %v5288_v1 = vsel %vm8567_vm0, %v8310_v41, 0.0  ;;  %v5322_v19 = vsel %vm8571_vm8, %v8310_v41, 0.0  ;;  %v5327_v58 = vsel %vm780_vm4, %v5323_v24, 0.0  ;;  %vm8573_vm5 = vmmov %vm8572_vm3 }
 0xa61   :  { %5240 = vadd.xlane.f32.xlu0 %v5239_v16  ;;  %v5290_v31 = vsel %vm780_vm4, %v5288_v1, 0.0  ;;  %v5324_v60 = vsel %vm780_vm4, %v5322_v19, 0.0  ;;  %v5340_v14 = vsel %vm8572_vm3, %v8308_v27, 0.0  ;;  %v5339_v12 = vsel %vm8573_vm5, %v8310_v41, 0.0  ;;  %v5246_v16 = vld [vmem:[#allocation2 + $0x118] sm:$0xff] }
 0xa62   :  { %v5344_v7 = vsel %vm780_vm4, %v5340_v14, 0.0  ;;  %v5341_v13 = vsel %vm780_vm4, %v5339_v12, 0.0  ;;  %vm8574_vm6 = vcmp.eq.s32.totalorder %v7150_v9, 8  ;;  %vm8576_vm0 = vcmp.eq.s32.totalorder %v7150_v9, 9  ;;  %v5296_v12 = vld [vmem:[#allocation2 + $0x140] sm:$0xff] }
 0xa63   :  { %v5357_v28 = vsel %vm8574_vm6, %v8308_v27, 0.0  ;;  %vm8575_vm7 = vmmov %vm8574_vm6  ;;  %v5374_v34 = vsel %vm8576_vm0, %v8308_v27, 0.0  ;;  %v5391_v61 = vsel %vm651_vm15, %v8308_v27, 0.0  ;;  %v5390_v53 = vsel %vm651_vm15, %v8310_v41, 0.0 }
 0xa64   :  { %5260 = vadd.xlane.f32.xlu1 %v5259_v45  ;;  %v5356_v36 = vsel %vm8575_vm7, %v8310_v41, 0.0  ;;  %v5361_v15 = vsel %vm780_vm4, %v5357_v28, 0.0  ;;  %vm8577_vm1 = vmmov %vm8576_vm0  ;;  %v5378_v51 = vsel %vm780_vm4, %v5374_v34, 0.0  ;;  %v5395_v57 = vsel %vm780_vm4, %v5391_v61, 0.0  ;;  %v5245_v45 = vld [vmem:[#allocation2 + $0x110] sm:$0xff] }
 0xa65   :  { %5257 = vadd.xlane.f32.xlu0 %v5256_v52  ;;  %v5358_v47 = vsel %vm780_vm4, %v5356_v36, 0.0  ;;  %v5373_v56 = vsel %vm8577_vm1, %v8310_v41, 0.0  ;;  %v5392_v8 = vsel %vm780_vm4, %v5390_v53, 0.0  ;;  %v5408_v44 = vsel %vm674_vm11, %v8308_v27, 0.0 }
 0xa66   :  { %v5375_v55 = vsel %vm780_vm4, %v5373_v56, 0.0  ;;  %v5407_v4 = vsel %vm674_vm11, %v8310_v41, 0.0  ;;  %v5412_v18 = vsel %vm780_vm4, %v5408_v44, 0.0  ;;  %v5425_v39 = vsel %vm697_vm10, %v8308_v27, 0.0  ;;  %v5313_v56 = vld [vmem:[#allocation2 + $0x150] sm:$0xff] }
 0xa67   :  { %v5409_v29 = vsel %vm780_vm4, %v5407_v4, 0.0  ;;  %v5424_v6 = vsel %vm697_vm10, %v8310_v41, 0.0  ;;  %v5429_v23 = vsel %vm780_vm4, %v5425_v39, 0.0  ;;  %v5442_v5 = vsel %vm720_vm13, %v8308_v27, 0.0  ;;  %v5330_v4 = vld [vmem:[#allocation2 + $0x160] sm:$0xff] }
 0xa68   :  { %5277 = vadd.xlane.f32.xlu1 %v5276_v26  ;;  %v5426_v42 = vsel %vm780_vm4, %v5424_v6, 0.0  ;;  %v5441_v32 = vsel %vm720_vm13, %v8310_v41, 0.0  ;;  %v5446_v20 = vsel %vm780_vm4, %v5442_v5, 0.0  ;;  %v5459_v43 = vsel %vm743_vm12, %v8308_v27, 0.0 }
 0xa69   :  { %5274 = vadd.xlane.f32.xlu0 %v5273_v25  ;;  %v5443_v10 = vsel %vm780_vm4, %v5441_v32, 0.0  ;;  %v5458_v35 = vsel %vm743_vm12, %v8310_v41, 0.0  ;;  %v5463_v3 = vsel %vm780_vm4, %v5459_v43, 0.0  ;;  %v5476_v30 = vsel %vm766_vm14, %v8308_v27, 0.0  ;;  %v5262_v25 = vld [vmem:[#allocation2 + $0x120] sm:$0xff]  ;;  %v5347_v32 = vld [vmem:[#allocation2 + $0x170] sm:$0xff] }
 0xa6a   :  { %v5460_v2 = vsel %vm780_vm4, %v5458_v35, 0.0  ;;  %v5475_v33 = vsel %vm766_vm14, %v8310_v41, 0.0  ;;  %v5480_v40 = vsel %vm780_vm4, %v5476_v30, 0.0  ;;  %v5248_v27 = vmul.f32 %v7702_v59, %v5246_v16 }
 0xa6b   :  { %v5477_v62 = vsel %vm780_vm4, %v5475_v33, 0.0  ;;  %v5247_v41 = vmul.f32 %v7702_v59, %v5245_v45  ;;  %v5265_v1 = vmul.f32 %v7702_v59, %v5263_v21  ;;  %v5281_v19 = vmul.f32 %v7702_v59, %v5279_v38  ;;  %v5364_v33 = vld [vmem:[#allocation2 + $0x180] sm:$0xff] }
 0xa6c   :  { %5294 = vadd.xlane.f32.xlu1 %v5293_v63  ;;  %v5264_v63 = vmul.f32 %v7702_v59, %v5262_v25  ;;  %v5298_v36 = vmul.f32 %v7702_v59, %v5296_v12  ;;  %v5315_v53 = vmul.f32 %v7702_v59, %v5313_v56  ;;  %v5332_v6 = vmul.f32 %v7702_v59, %v5330_v4 }
 0xa6d   :  { %5291 = vadd.xlane.f32.xlu0 %v5290_v31  ;;  %v5349_v35 = vmul.f32 %v7702_v59, %v5347_v32  ;;  %v5366_v16 = vmul.f32 %v7702_v59, %v5364_v33 }
 0xa70   :  { %5311 = vadd.xlane.f32.xlu1 %v5310_v22 }
 0xa71   :  { %5308 = vadd.xlane.f32.xlu0 %v5307_v46 }
 0xa74   :  { %5328 = vadd.xlane.f32.xlu1 %v5327_v58  ;;  %v5297_v58 = vld [vmem:[#allocation2 + $0x148] sm:$0xff] }
 0xa75   :  { %5325 = vadd.xlane.f32.xlu0 %v5324_v60 }
 0xa78   :  { %5345 = vadd.xlane.f32.xlu1 %v5344_v7 }
 0xa79   :  { %5342 = vadd.xlane.f32.xlu0 %v5341_v13  ;;  %v5299_v13 = vmul.f32 %v7702_v59, %v5297_v58 }
 0xa7c   :  { %5362 = vadd.xlane.f32.xlu1 %v5361_v15  ;;  %v5314_v15 = vld [vmem:[#allocation2 + $0x158] sm:$0xff] }
 0xa7d   :  { %5359 = vadd.xlane.f32.xlu0 %v5358_v47 }
 0xa80   :  { %5379 = vadd.xlane.f32.xlu1 %v5378_v51 }
 0xa81   :  { %5376 = vadd.xlane.f32.xlu0 %v5375_v55  ;;  %v5316_v55 = vmul.f32 %v7702_v59, %v5314_v15 }
 0xa84   :  { %5396 = vadd.xlane.f32.xlu1 %v5395_v57  ;;  %v5331_v57 = vld [vmem:[#allocation2 + $0x168] sm:$0xff] }
 0xa85   :  { %5393 = vadd.xlane.f32.xlu0 %v5392_v8 }
 0xa88   :  { %5413 = vadd.xlane.f32.xlu1 %v5412_v18 }
 0xa89   :  { %5410 = vadd.xlane.f32.xlu0 %v5409_v29  ;;  %v5333_v29 = vmul.f32 %v7702_v59, %v5331_v57 }
 0xa8c   :  { %5430 = vadd.xlane.f32.xlu1 %v5429_v23  ;;  %v5348_v23 = vld [vmem:[#allocation2 + $0x178] sm:$0xff] }
 0xa8d   :  { %5427 = vadd.xlane.f32.xlu0 %v5426_v42 }
 0xa90   :  { %5447 = vadd.xlane.f32.xlu1 %v5446_v20 }
 0xa91   :  { %5444 = vadd.xlane.f32.xlu0 %v5443_v10  ;;  %v5350_v10 = vmul.f32 %v7702_v59, %v5348_v23 }
 0xa94   :  { %5464 = vadd.xlane.f32.xlu1 %v5463_v3  ;;  %v5365_v3 = vld [vmem:[#allocation2 + $0x188] sm:$0xff] }
 0xa95   :  { %5461 = vadd.xlane.f32.xlu0 %v5460_v2 }
 0xa98   :  { %5481 = vadd.xlane.f32.xlu1 %v5480_v40 }
 0xa99   :  { %5478 = vadd.xlane.f32.xlu0 %v5477_v62  ;;  %v5367_v62 = vmul.f32 %v7702_v59, %v5365_v3 }
 0xae9   :  { %v5231_v49 = vpop.xlane.xlu1 %5230 }
 0xaea   :  { %v5233_v50 = vmul.f32 %v5231_v49, %v7706_v17  ;;  %v5228_v0 = vpop.xlane.xlu0 %5227 }
 0xaeb   :  { %v5232_v52 = vmul.f32 %v5228_v0, %v7710_v48  ;;  %v5280_v48 = vld [vmem:[#allocation2 + $0x138] sm:$0xff] }
 0xaec   :  { %5236 = vst [vmem:[#allocation11 + $0x108] sm:$0xff] %v5233_v50  ;;  %v5282_v46 = vmul.f32 %v7702_v59, %v5280_v48  ;;  %v5382_v50 = vld [vmem:[#allocation2 + $0x198] sm:$0xff] }
 0xaed   :  { %5235 = vst [vmem:[#allocation11 + $0x100] sm:$0xff] %v5232_v52  ;;  %v5244_v9 = vpop.xlane.xlu1 %5243  ;;  %v5381_v52 = vld [vmem:[#allocation2 + $0x190] sm:$0xff] }
 0xaee   :  { %v5250_v37 = vmul.f32 %v5248_v27, %v5244_v9  ;;  %v5241_v26 = vpop.xlane.xlu0 %5240  ;;  %v5384_v9 = vmul.f32 %v7702_v59, %v5382_v50  ;;  %v5383_v21 = vmul.f32 %v7702_v59, %v5381_v52 }
 0xaef   :  { %v5249_v11 = vmul.f32 %v5247_v41, %v5241_v26 }
 0xaf0   :  { %5253 = vst [vmem:[#allocation11 + $0x118] sm:$0xff] %v5250_v37  ;;  %v5399_v37 = vld [vmem:[#allocation2 + $0x1a8] sm:$0xff] }
 0xaf1   :  { %5252 = vst [vmem:[#allocation11 + $0x110] sm:$0xff] %v5249_v11  ;;  %v5261_v17 = vpop.xlane.xlu1 %5260  ;;  %v5398_v11 = vld [vmem:[#allocation2 + $0x1a0] sm:$0xff] }
 0xaf2   :  { %v5267_v31 = vmul.f32 %v5265_v1, %v5261_v17  ;;  %v5258_v54 = vpop.xlane.xlu0 %5257  ;;  %v5401_v17 = vmul.f32 %v7702_v59, %v5399_v37  ;;  %v5400_v48 = vmul.f32 %v7702_v59, %v5398_v11 }
 0xaf3   :  { %v5266_v22 = vmul.f32 %v5264_v63, %v5258_v54 }
 0xaf4   :  { %5270 = vst [vmem:[#allocation11 + $0x128] sm:$0xff] %v5267_v31  ;;  %v5416_v31 = vld [vmem:[#allocation2 + $0x1b8] sm:$0xff] }
 0xaf5   :  { %5269 = vst [vmem:[#allocation11 + $0x120] sm:$0xff] %v5266_v22  ;;  %v5278_v24 = vpop.xlane.xlu1 %5277  ;;  %v5415_v22 = vld [vmem:[#allocation2 + $0x1b0] sm:$0xff] }
 0xaf6   :  { %v5284_v60 = vmul.f32 %v5282_v46, %v5278_v24  ;;  %v5275_v14 = vpop.xlane.xlu0 %5274  ;;  %v5418_v24 = vmul.f32 %v7702_v59, %v5416_v31  ;;  %v5417_v58 = vmul.f32 %v7702_v59, %v5415_v22 }
 0xaf7   :  { %v5283_v7 = vmul.f32 %v5281_v19, %v5275_v14 }
 0xaf8   :  { %5287 = vst [vmem:[#allocation11 + $0x138] sm:$0xff] %v5284_v60  ;;  %v5433_v60 = vld [vmem:[#allocation2 + $0x1c8] sm:$0xff] }
 0xaf9   :  { %5286 = vst [vmem:[#allocation11 + $0x130] sm:$0xff] %v5283_v7  ;;  %v5295_v28 = vpop.xlane.xlu1 %5294  ;;  %v5432_v7 = vld [vmem:[#allocation2 + $0x1c0] sm:$0xff] }
 0xafa   :  { %v5301_v47 = vmul.f32 %v5299_v13, %v5295_v28  ;;  %v5292_v34 = vpop.xlane.xlu0 %5291  ;;  %v5435_v28 = vmul.f32 %v7702_v59, %v5433_v60  ;;  %v5434_v15 = vmul.f32 %v7702_v59, %v5432_v7 }
 0xafb   :  { %v5300_v51 = vmul.f32 %v5298_v36, %v5292_v34 }
 0xafc   :  { %5304 = vst [vmem:[#allocation11 + $0x148] sm:$0xff] %v5301_v47  ;;  %v5450_v47 = vld [vmem:[#allocation2 + $0x1d8] sm:$0xff] }
 0xafd   :  { %5303 = vst [vmem:[#allocation11 + $0x140] sm:$0xff] %v5300_v51  ;;  %v5312_v61 = vpop.xlane.xlu1 %5311  ;;  %v5449_v51 = vld [vmem:[#allocation2 + $0x1d0] sm:$0xff] }
 0xafe   :  { %v5318_v8 = vmul.f32 %v5316_v55, %v5312_v61  ;;  %v5309_v44 = vpop.xlane.xlu0 %5308  ;;  %v5452_v61 = vmul.f32 %v7702_v59, %v5450_v47  ;;  %v5451_v57 = vmul.f32 %v7702_v59, %v5449_v51 }
 0xaff   :  { %v5317_v18 = vmul.f32 %v5315_v53, %v5309_v44 }
 0xb00   :  { %5321 = vst [vmem:[#allocation11 + $0x158] sm:$0xff] %v5318_v8  ;;  %v5467_v8 = vld [vmem:[#allocation2 + $0x1e8] sm:$0xff] }
 0xb01   :  { %5320 = vst [vmem:[#allocation11 + $0x150] sm:$0xff] %v5317_v18  ;;  %v5329_v39 = vpop.xlane.xlu1 %5328  ;;  %v5466_v18 = vld [vmem:[#allocation2 + $0x1e0] sm:$0xff] }
 0xb02   :  { %v5335_v42 = vmul.f32 %v5333_v29, %v5329_v39  ;;  %v5326_v5 = vpop.xlane.xlu0 %5325  ;;  %v5469_v39 = vmul.f32 %v7702_v59, %v5467_v8  ;;  %v5468_v23 = vmul.f32 %v7702_v59, %v5466_v18 }
 0xb03   :  { %v5334_v20 = vmul.f32 %v5332_v6, %v5326_v5 }
 0xb04   :  { %5338 = vst [vmem:[#allocation11 + $0x168] sm:$0xff] %v5335_v42  ;;  %v5484_v42 = vld [vmem:[#allocation2 + $0x1f8] sm:$0xff] }
 0xb05   :  { %5337 = vst [vmem:[#allocation11 + $0x160] sm:$0xff] %v5334_v20  ;;  %v5346_v43 = vpop.xlane.xlu1 %5345  ;;  %v5483_v20 = vld [vmem:[#allocation2 + $0x1f0] sm:$0xff] }
 0xb06   :  { %v5352_v2 = vmul.f32 %v5350_v10, %v5346_v43  ;;  %v5343_v30 = vpop.xlane.xlu0 %5342  ;;  %v5486_v43 = vmul.f32 %v7702_v59, %v5484_v42  ;;  %v5485_v3 = vmul.f32 %v7702_v59, %v5483_v20 }
 0xb07   :  { %v5351_v40 = vmul.f32 %v5349_v35, %v5343_v30 }
 0xb08   :  { %5355 = vst [vmem:[#allocation11 + $0x178] sm:$0xff] %v5352_v2 }
 0xb09   :  { %5354 = vst [vmem:[#allocation11 + $0x170] sm:$0xff] %v5351_v40  ;;  %v5363_v49 = vpop.xlane.xlu1 %5362 }
 0xb0a   :  { %v5369_v0 = vmul.f32 %v5367_v62, %v5363_v49  ;;  %v5360_v45 = vpop.xlane.xlu0 %5359 }
 0xb0b   :  { %v5368_v27 = vmul.f32 %v5366_v16, %v5360_v45 }
 0xb0c   :  { %5372 = vst [vmem:[#allocation11 + $0x188] sm:$0xff] %v5369_v0 }
 0xb0d   :  { %5371 = vst [vmem:[#allocation11 + $0x180] sm:$0xff] %v5368_v27  ;;  %v5380_v41 = vpop.xlane.xlu1 %5379 }
 0xb0e   :  { %v5386_v26 = vmul.f32 %v5384_v9, %v5380_v41  ;;  %v5377_v25 = vpop.xlane.xlu0 %5376 }
 0xb0f   :  { %v5385_v1 = vmul.f32 %v5383_v21, %v5377_v25 }
 0xb10   :  { %5389 = vst [vmem:[#allocation11 + $0x198] sm:$0xff] %v5386_v26 }
 0xb11   :  { %5388 = vst [vmem:[#allocation11 + $0x190] sm:$0xff] %v5385_v1  ;;  %v5397_v63 = vpop.xlane.xlu1 %5396 }
 0xb12   :  { %v5403_v54 = vmul.f32 %v5401_v17, %v5397_v63  ;;  %v5394_v38 = vpop.xlane.xlu0 %5393 }
 0xb13   :  { %v5402_v46 = vmul.f32 %v5400_v48, %v5394_v38 }
 0xb14   :  { %5406 = vst [vmem:[#allocation11 + $0x1a8] sm:$0xff] %v5403_v54 }
 0xb15   :  { %5405 = vst [vmem:[#allocation11 + $0x1a0] sm:$0xff] %v5402_v46  ;;  %v5414_v19 = vpop.xlane.xlu1 %5413 }
 0xb16   :  { %v5420_v14 = vmul.f32 %v5418_v24, %v5414_v19  ;;  %v5411_v12 = vpop.xlane.xlu0 %5410 }
 0xb17   :  { %v5419_v13 = vmul.f32 %v5417_v58, %v5411_v12 }
 0xb18   :  { %5423 = vst [vmem:[#allocation11 + $0x1b8] sm:$0xff] %v5420_v14 }
 0xb19   :  { %5422 = vst [vmem:[#allocation11 + $0x1b0] sm:$0xff] %v5419_v13  ;;  %v5431_v36 = vpop.xlane.xlu1 %5430 }
 0xb1a   :  { %v5437_v34 = vmul.f32 %v5435_v28, %v5431_v36  ;;  %v5428_v56 = vpop.xlane.xlu0 %5427 }
 0xb1b   :  { %v5436_v55 = vmul.f32 %v5434_v15, %v5428_v56 }
 0xb1c   :  { %5440 = vst [vmem:[#allocation11 + $0x1c8] sm:$0xff] %v5437_v34 }
 0xb1d   :  { %5439 = vst [vmem:[#allocation11 + $0x1c0] sm:$0xff] %v5436_v55  ;;  %v5448_v53 = vpop.xlane.xlu1 %5447 }
 0xb1e   :  { %v5454_v44 = vmul.f32 %v5452_v61, %v5448_v53  ;;  %v5445_v4 = vpop.xlane.xlu0 %5444 }
 0xb1f   :  { %v5453_v29 = vmul.f32 %v5451_v57, %v5445_v4 }
 0xb20   :  { %5457 = vst [vmem:[#allocation11 + $0x1d8] sm:$0xff] %v5454_v44 }
 0xb21   :  { %5456 = vst [vmem:[#allocation11 + $0x1d0] sm:$0xff] %v5453_v29  ;;  %v5465_v6 = vpop.xlane.xlu1 %5464 }
 0xb22   :  { %v5471_v5 = vmul.f32 %v5469_v39, %v5465_v6  ;;  %v5462_v32 = vpop.xlane.xlu0 %5461 }
 0xb23   :  { %v5470_v10 = vmul.f32 %v5468_v23, %v5462_v32 }
 0xb24   :  { %5474 = vst [vmem:[#allocation11 + $0x1e8] sm:$0xff] %v5471_v5 }
 0xb25   :  { %5473 = vst [vmem:[#allocation11 + $0x1e0] sm:$0xff] %v5470_v10  ;;  %v5482_v35 = vpop.xlane.xlu1 %5481 }
 0xb26   :  { %v5488_v2 = vmul.f32 %v5486_v43, %v5482_v35  ;;  %v5479_v30 = vpop.xlane.xlu0 %5478 }
 0xb27   :  { %v5487_v33 = vmul.f32 %v5485_v3, %v5479_v30 }
 0xb28   :  { %5491 = vst [vmem:[#allocation11 + $0x1f8] sm:$0xff] %v5488_v2 }
 0xb29   :  { %5490 = vst [vmem:[#allocation11 + $0x1f0] sm:$0xff] %v5487_v33 }
 0xb2a   :  { %6737 = shalt.err (!%p6734_p2)
}
 0xb2b   :  { %s6738_s7 = scalar_lea.hbm %s8492_s5, 8192 }
 0xb2c   :  { %p6739_p3 = scmp.ne.s32.totalorder %s8492_s5, %s6738_s7  ;;  %p6742_p4 = scmp.lt.u32.totalorder %s6738_s7, %s8492_s5 }
 0xb2e   :  { %p6744_p5 = pnand %p6742_p4, %p6739_p3 }
 0xb30   :  { %6747 = shalt.err (!%p6744_p5)
}
 0xb31   :  { %5503 = dma.vmem_to_hbm [thread:$0]  %s5498_s28, 8192, %s8492_s5, [#allocation4], %s6758_s30, %s6758_s30, %s6759_s6  }
 0xb32   :  { %6754 = dma.done.wait [#allocation4], 8192  }
 0xb33   :  { %6755 = vsyncadd [#allocation4], 4294959104 }
 0xb34   :  { %5507 = vsyncpa [#allocation3], 1 }
 0xb35   :  { %5508 = vsyncpa [#allocation6], 1 }
 0xb36   :  { %5509 = vsyncpa [#allocation9], 1 }
 0xb37   :  { %5510 = vsyncpa [#allocation4], 1 }

</bundles_post_ra>
